<compile_context>
chip_gen: v7x
topology: tpu7x:2x2x1
jax: 0.10.0
libtpu: 0.0.40
codegen_flags: <defaults>
</compile_context>

<pallas_src>
import functools

import jax
import jax.numpy as jnp
from jax.experimental import pallas as pl
from jax.experimental.pallas import tpu as pltpu


# -----------------------------------------------------------------------------
# Tiling helpers
# -----------------------------------------------------------------------------
def _round_up(x, m):
    return ((x + m - 1) // m) * m


def _tile_m(m):
    """Return (M_pad, tm) for the sublane-mapped GEMM dim."""
    for c in (512, 256, 128):
        if m % c == 0:
            return m, c
    if m <= 1024:
        return m, m                      # single full-extent block (always legal)
    return _round_up(m, 256), 256


def _tile_nk(d, allow_full):
    """Return (D_pad, td) for a lane-mapped GEMM dim."""
    if d % 128 == 0:
        for c in (512, 384, 256, 128):
            if d % c == 0:
                return d, c
    if d <= allow_full:
        return d, d                      # full-extent block avoids padding
    dp = _round_up(d, 128)
    for c in (512, 384, 256, 128):
        if dp % c == 0:
            return dp, c
    return dp, 128


# -----------------------------------------------------------------------------
# Pallas kernels
# -----------------------------------------------------------------------------
def _matmul_kernel(*refs, activation, has_residual):
    if has_residual:
        a_ref, b_ref, bias_ref, res_ref, o_ref, acc_ref = refs
    else:
        a_ref, b_ref, bias_ref, o_ref, acc_ref = refs
        res_ref = None
    k = pl.program_id(2)

    @pl.when(k == 0)
    def _():
        acc_ref[...] = jnp.zeros_like(acc_ref)

    acc_ref[...] += jnp.dot(a_ref[...], b_ref[...],
                            preferred_element_type=jnp.float32)

    @pl.when(k == pl.num_programs(2) - 1)
    def _():
        out = acc_ref[...] + bias_ref[...]
        if has_residual:
            out = out + res_ref[...].astype(jnp.float32)
        if activation == "relu":
            out = jnp.maximum(out, 0.0)
        o_ref[...] = out.astype(o_ref.dtype)


def matmul_bias(a, b, bias, residual=None, activation=None,
                out_dtype=jnp.float32):
    """(M,K) @ (K,N) + bias(1,N) [+ residual(M,N)] [+ ReLU], bf16 on the MXU."""
    M, K = a.shape
    K2, N = b.shape
    assert K == K2
    a = a.astype(jnp.bfloat16)
    b = b.astype(jnp.bfloat16)
    bias = bias.astype(jnp.float32)

    M_pad, tm = _tile_m(M)
    N_pad, tn = _tile_nk(N, allow_full=512)
    K_pad, tk = _tile_nk(K, allow_full=1024)

    if (M_pad, K_pad) != (M, K):
        a = jnp.pad(a, ((0, M_pad - M), (0, K_pad - K)))
    if (K_pad, N_pad) != (K, N):
        b = jnp.pad(b, ((0, K_pad - K), (0, N_pad - N)))
    if N_pad != N:
        bias = jnp.pad(bias, ((0, 0), (0, N_pad - N)))

    inputs = [a, b, bias]
    in_specs = [
        pl.BlockSpec((tm, tk), lambda i, j, k: (i, k)),
        pl.BlockSpec((tk, tn), lambda i, j, k: (k, j)),
        pl.BlockSpec((1, tn), lambda i, j, k: (0, j)),
    ]
    has_residual = residual is not None
    if has_residual:
        assert residual.shape == (M, N)
        r = residual
        if (M_pad, N_pad) != (M, N):
            r = jnp.pad(r, ((0, M_pad - M), (0, N_pad - N)))
        inputs.append(r)
        in_specs.append(pl.BlockSpec((tm, tn), lambda i, j, k: (i, j)))

    grid = (M_pad // tm, N_pad // tn, K_pad // tk)
    out = pl.pallas_call(
        functools.partial(_matmul_kernel, activation=activation,
                          has_residual=has_residual),
        out_shape=jax.ShapeDtypeStruct((M_pad, N_pad), out_dtype),
        grid=grid,
        in_specs=in_specs,
        out_specs=pl.BlockSpec((tm, tn), lambda i, j, k: (i, j)),
        scratch_shapes=[pltpu.VMEM((tm, tn), jnp.float32)],
        compiler_params=pltpu.CompilerParams(
            dimension_semantics=("parallel", "parallel", "arbitrary")),
    )(*inputs)
    if (M_pad, N_pad) != (M, N):
        out = out[:M, :N]
    return out


def _mean_pool_kernel(x_ref, o_ref):
    # x_ref: (1, HW, C) -> mean over HW in f32.
    o_ref[...] = jnp.mean(x_ref[...].astype(jnp.float32), axis=1, keepdims=True)


def _lstm_kernel(xp_ref, whh_ref, h_out_ref, h_sc, c_sc, *, hg):
    t = pl.program_id(0)

    @pl.when(t == 0)
    def _():
        h_sc[...] = jnp.zeros_like(h_sc)
        c_sc[...] = jnp.zeros_like(c_sc)

    # gates = x_t @ W_ih^T + b_ih + b_hh (precomputed in xp) + h_{t-1} @ W_hh^T
    gates = xp_ref[0] + jnp.dot(h_sc[...].astype(jnp.bfloat16), whh_ref[...],
                                preferred_element_type=jnp.float32)
    # PyTorch gate order i, f, g, o; each gate padded to hg (multiple of 128)
    # so every slice below is lane-tile aligned.
    i_g = jax.nn.sigmoid(gates[:, 0 * hg:1 * hg])
    f_g = jax.nn.sigmoid(gates[:, 1 * hg:2 * hg])
    g_g = jnp.tanh(gates[:, 2 * hg:3 * hg])
    o_g = jax.nn.sigmoid(gates[:, 3 * hg:4 * hg])
    c = f_g * c_sc[...] + i_g * g_g
    h = o_g * jnp.tanh(c)
    c_sc[...] = c
    h_sc[...] = h
    h_out_ref[0] = h


def lstm_forward(xp_tbg, w_hh_pad, hg):
    """Recurrent LSTM over the grid's time axis; h/c live in VMEM scratch."""
    T, Bp, G = xp_tbg.shape  # G == 4*hg
    return pl.pallas_call(
        functools.partial(_lstm_kernel, hg=hg),
        out_shape=jax.ShapeDtypeStruct((T, Bp, hg), jnp.float32),
        grid=(T,),
        in_specs=[
            pl.BlockSpec((1, Bp, G), lambda t: (t, 0, 0)),
            pl.BlockSpec((hg, G), lambda t: (0, 0)),
        ],
        out_specs=pl.BlockSpec((1, Bp, hg), lambda t: (t, 0, 0)),
        scratch_shapes=[
            pltpu.VMEM((Bp, hg), jnp.float32),
            pltpu.VMEM((Bp, hg), jnp.float32),
        ],
        compiler_params=pltpu.CompilerParams(
            dimension_semantics=("arbitrary",)),
    )(xp_tbg, w_hh_pad)


# -----------------------------------------------------------------------------
# Glue: im2col, conv+BN(eval)+ReLU(+residual), maxpool, basic blocks
# -----------------------------------------------------------------------------
def im2col(x_nhwc, kh, kw, stride, pad):
    n, h, w, c = x_nhwc.shape
    ho = (h + 2 * pad - kh) // stride + 1
    wo = (w + 2 * pad - kw) // stride + 1
    xp = jnp.pad(x_nhwc, ((0, 0), (pad, pad), (pad, pad), (0, 0)))
    views = []
    for i in range(kh):
        for j in range(kw):
            views.append(
                xp[:, i:i + stride * ho:stride, j:j + stride * wo:stride, :])
    # patch layout along K is (kh, kw, Cin); dtype follows x (bf16 in encoder)
    patches = jnp.stack(views, axis=3)               # (N, Ho, Wo, kh*kw, C)
    return patches.reshape(n * ho * wo, kh * kw * c), ho, wo


def conv_bn(x_nhwc, w_khkwio, bn, stride, pad, relu, residual=None,
            out_dtype=jnp.bfloat16, eps=1e-5):
    """Conv (im2col GEMM) with eval-mode BatchNorm folded in; optional fused
    residual add + ReLU in the GEMM epilogue."""
    kh, kw, cin, cout = w_khkwio.shape
    patches, ho, wo = im2col(x_nhwc, kh, kw, stride, pad)
    scale = bn["g"] / jnp.sqrt(bn["v"] + eps)
    w = w_khkwio.reshape(kh * kw * cin, cout) * scale[None, :]
    b = (bn["b"] - bn["m"] * scale)[None, :]
    y = matmul_bias(patches, w, b, residual=residual,
                    activation="relu" if relu else None, out_dtype=out_dtype)
    n = x_nhwc.shape[0]
    return y.reshape(n, ho, wo, cout)


def maxpool_3x3_s2_p1(x_nhwc):
    # TODO(synk): maxpool is a fused XLA pairwise-max over strided views
    # (review-endorsed) rather than a dedicated Pallas kernel.
    n, h, w, c = x_nhwc.shape
    k, stride, pad = 3, 2, 1
    ho = (h + 2 * pad - k) // stride + 1
    wo = (w + 2 * pad - k) // stride + 1
    xp = jnp.pad(x_nhwc, ((0, 0), (pad, pad), (pad, pad), (0, 0)),
                 constant_values=-jnp.inf)
    out = None
    for i in range(k):
        for j in range(k):
            v = xp[:, i:i + stride * ho:stride, j:j + stride * wo:stride, :]
            out = v if out is None else jnp.maximum(out, v)
    return out


def basic_block(x, bp, stride):
    if "ds_w" in bp:
        identity = conv_bn(x, bp["ds_w"], bp["ds_bn"], stride=stride, pad=0,
                           relu=False)
    else:
        identity = x
    out = conv_bn(x, bp["conv1_w"], bp["bn1"], stride=stride, pad=1, relu=True)
    n, h, w, c = identity.shape
    # residual add + ReLU fused into the second conv's GEMM epilogue
    out = conv_bn(out, bp["conv2_w"], bp["bn2"], stride=1, pad=1, relu=True,
                  residual=identity.reshape(n * h * w, c))
    return out


def resnet18_encoder(p, x_nhwc):
    x = conv_bn(x_nhwc, p["conv1_w"], p["bn1"], stride=2, pad=3, relu=True)
    x = maxpool_3x3_s2_p1(x)
    for lname, s in (("layer1", 1), ("layer2", 2), ("layer3", 2), ("layer4", 2)):
        blocks = p[lname]
        x = basic_block(x, blocks[0], stride=s)
        x = basic_block(x, blocks[1], stride=1)
    n, h, w, c = x.shape
    pooled = pl.pallas_call(  # adaptive avg pool to (1,1): mean over spatial
        _mean_pool_kernel,
        out_shape=jax.ShapeDtypeStruct((n, 1, c), jnp.float32),
        grid=(n,),
        in_specs=[pl.BlockSpec((1, h * w, c), lambda i: (i, 0, 0))],
        out_specs=pl.BlockSpec((1, 1, c), lambda i: (i, 0, 0)),
        compiler_params=pltpu.CompilerParams(
            dimension_semantics=("parallel",)),
    )(x.reshape(n, h * w, c)).reshape(n, c)
    return matmul_bias(pooled, p["fc_w"], p["fc_b"])  # (B, embed_dim), f32


# -----------------------------------------------------------------------------
# Full model forward (ResNet18 features -> embed -> LSTM -> vocab logits)
# -----------------------------------------------------------------------------
def _pad_gates(w, hidden, hg):
    """Zero-pad each of the 4 LSTM gate blocks along the last axis to hg."""
    lead = w.shape[:-1]
    w4 = w.reshape(*lead, 4, hidden)
    w4 = jnp.pad(w4, [(0, 0)] * len(lead) + [(0, 0), (0, hg - hidden)])
    return w4.reshape(*lead, 4 * hg)


def image_captioning_forward(params, images_nchw, captions):
    # NCHW (PyTorch convention) -> NHWC bf16 for the encoder kernels.
    x = jnp.transpose(images_nchw, (0, 2, 3, 1)).astype(jnp.bfloat16)
    features = resnet18_encoder(params["encoder"], x)          # (B, E) f32

    # Embedding lookup (gather) in JAX glue.
    emb = jnp.take(params["embedding"], captions, axis=0)       # (B, Tcap, E)
    inputs = jnp.concatenate([features[:, None, :], emb[:, :-1, :]], axis=1)

    b, t, e = inputs.shape
    lstm = params["lstm"]
    hidden = lstm["w_hh_t"].shape[0]
    hg = _round_up(hidden, 128)       # per-gate lane-aligned width
    bp = _round_up(b, 8)              # sublane-aligned batch

    # Gate-pad the LSTM parameters (zero padding keeps padded h/c exactly 0).
    w_ih_t = _pad_gates(lstm["w_ih_t"], hidden, hg)             # (E, 4*hg)
    bias = _pad_gates(lstm["bias"], hidden, hg)                 # (1, 4*hg)
    w_hh_t = _pad_gates(lstm["w_hh_t"], hidden, hg)             # (H, 4*hg)
    w_hh_t = jnp.pad(w_hh_t, ((0, hg - hidden), (0, 0))).astype(jnp.bfloat16)

    # Batch-pad, go time-major, then one big GEMM for the x-projection.
    inp = jnp.pad(inputs, ((0, bp - b), (0, 0), (0, 0)))
    inp = jnp.transpose(inp, (1, 0, 2)).reshape(t * bp, e)       # (T*Bp, E)
    xp = matmul_bias(inp, w_ih_t, bias)                          # (T*Bp, 4*hg)
    xp = xp.reshape(t, bp, 4 * hg)

    h = lstm_forward(xp, w_hh_t, hg)                             # (T, Bp, hg)

    # Vocab FC directly on the padded hidden (padded rows of fc_w are zero).
    fc_w = jnp.pad(params["fc_w"], ((0, hg - hidden), (0, 0)))   # (hg, V)
    vocab = params["fc_w"].shape[1]
    logits = matmul_bias(h.reshape(t * bp, hg), fc_w, params["fc_b"])
    logits = logits.reshape(t, bp, vocab)[:, :b, :]
    return jnp.transpose(logits, (1, 0, 2))                      # (B, T, V)


# -----------------------------------------------------------------------------
# Deterministic synthetic parameters
# -----------------------------------------------------------------------------
def make_params(embed_dim, hidden_dim, vocab_size, pretrained_embeddings, key):
    keys = iter(jax.random.split(key, 64))

    def conv_w(kh, kw, cin, cout):
        return jax.random.normal(next(keys), (kh, kw, cin, cout),
                                 jnp.float32) * (1.0 / jnp.sqrt(kh * kw * cin))

    def bn(c):
        # PyTorch defaults: gamma=1, beta=0, running_mean=0, running_var=1.
        return dict(g=jnp.ones((c,), jnp.float32), b=jnp.zeros((c,), jnp.float32),
                    m=jnp.zeros((c,), jnp.float32), v=jnp.ones((c,), jnp.float32))

    def linear(cin, cout):
        w = jax.random.normal(next(keys), (cin, cout),
                              jnp.float32) * (1.0 / jnp.sqrt(cin))
        b = jnp.zeros((1, cout), jnp.float32)
        return w, b

    def block(cin, cout, stride):
        d = dict(conv1_w=conv_w(3, 3, cin, cout), bn1=bn(cout),
                 conv2_w=conv_w(3, 3, cout, cout), bn2=bn(cout))
        if stride != 1 or cin != cout:
            d["ds_w"] = conv_w(1, 1, cin, cout)
            d["ds_bn"] = bn(cout)
        return d

    enc = dict(conv1_w=conv_w(7, 7, 3, 64), bn1=bn(64))
    enc["layer1"] = [block(64, 64, 1), block(64, 64, 1)]
    enc["layer2"] = [block(64, 128, 2), block(128, 128, 1)]
    enc["layer3"] = [block(128, 256, 2), block(256, 256, 1)]
    enc["layer4"] = [block(256, 512, 2), block(512, 512, 1)]
    enc["fc_w"], enc["fc_b"] = linear(512, embed_dim)

    # LSTM params stored transposed for (x @ W^T) GEMMs; PyTorch gate order i,f,g,o.
    w_ih_t = jax.random.normal(next(keys), (embed_dim, 4 * hidden_dim),
                               jnp.float32) * (1.0 / jnp.sqrt(hidden_dim))
    w_hh_t = jax.random.normal(next(keys), (hidden_dim, 4 * hidden_dim),
                               jnp.float32) * (1.0 / jnp.sqrt(hidden_dim))
    b_ih = jax.random.normal(next(keys), (4 * hidden_dim,),
                             jnp.float32) * (1.0 / jnp.sqrt(hidden_dim))
    b_hh = jax.random.normal(next(keys), (4 * hidden_dim,),
                             jnp.float32) * (1.0 / jnp.sqrt(hidden_dim))
    lstm = dict(w_ih_t=w_ih_t, w_hh_t=w_hh_t, bias=(b_ih + b_hh)[None, :])

    fc_w, fc_b = linear(hidden_dim, vocab_size)

    return dict(encoder=enc,
                embedding=jnp.asarray(pretrained_embeddings, jnp.float32),
                lstm=lstm, fc_w=fc_w, fc_b=fc_b)


# TODO(synk): BatchNorm is implemented in eval mode (running stats folded into
# the conv GEMM); PyTorch train-mode batch statistics are not reproduced.

if __name__ == "__main__":
    B, IMG = 2, 32
    EMBED_DIM, HIDDEN_DIM, VOCAB, T_CAP = 32, 32, 50, 8

    root = jax.random.PRNGKey(0)
    k_img, k_cap, k_emb, k_par = jax.random.split(root, 4)

    images = jax.random.normal(k_img, (B, 3, IMG, IMG), jnp.float32)   # NCHW
    captions = jax.random.randint(k_cap, (B, T_CAP), 0, VOCAB, jnp.int32)
    pretrained_embeddings = jax.random.normal(k_emb, (VOCAB, EMBED_DIM),
                                              jnp.float32)

    params = make_params(EMBED_DIM, HIDDEN_DIM, VOCAB, pretrained_embeddings,
                         k_par)

    out = jax.jit(image_captioning_forward)(params, images, captions)
    out = jax.block_until_ready(out)
    assert out.shape == (B, T_CAP, VOCAB), out.shape
    assert bool(jnp.all(jnp.isfinite(out)))
    print("KERNEL_OK")
</pallas_src>

<mosaic_0001>
module attributes {stable_mosaic.version = 11 : i64} {
  func.func @_matmul_kernel(%arg0: i32, %arg1: i32, %arg2: i32, %arg3: memref<512x147xbf16, #tpu.memory_space<vmem>>, %arg4: memref<147x64xbf16, #tpu.memory_space<vmem>>, %arg5: memref<1x64xf32, #tpu.memory_space<vmem>>, %arg6: memref<512x64xbf16, #tpu.memory_space<vmem>>, %arg7: memref<512x64xf32, #tpu.memory_space<vmem>>) attributes {dimension_semantics = [#tpu.dimension_semantics<parallel>, #tpu.dimension_semantics<parallel>, #tpu.dimension_semantics<arbitrary>], iteration_bounds = array<i64: 1, 1, 1>, scalar_prefetch = 0 : i64, scratch_operands = 1 : i64, tpu.core_type = #tpu.core_type<tc>, window_params = [{transform_indices = @transform_0, window_bounds = array<i64: 512, 147>}, {transform_indices = @transform_1, window_bounds = array<i64: 147, 64>}, {transform_indices = @transform_2, window_bounds = array<i64: 1, 64>}, {transform_indices = @transform_3, window_bounds = array<i64: 512, 64>}]} {
    %c0_i32 = arith.constant 0 : i32
    %0 = arith.cmpi eq, %arg2, %c0_i32 : i32
    %1 = arith.extui %0 : i1 to i32
    %c0_i32_0 = arith.constant 0 : i32
    %2 = arith.cmpi ne, %1, %c0_i32_0 : i32
    scf.if %2 {
      %cst_10 = arith.constant 0.000000e+00 : f32
      %12 = vector.broadcast %cst_10 : f32 to vector<512x64xf32>
      %c0_11 = arith.constant 0 : index
      %c0_12 = arith.constant 0 : index
      %13 = vector.load %arg7[%c0_11, %c0_12] : memref<512x64xf32, #tpu.memory_space<vmem>>, vector<512x64xf32>
      tpu.vector_store %arg7[%c0_11, %c0_12], %12 {strides = array<i32>} : memref<512x64xf32, #tpu.memory_space<vmem>>, vector<512x64xf32>,
    } else {
    }
    %c0 = arith.constant 0 : index
    %c0_1 = arith.constant 0 : index
    %3 = vector.load %arg7[%c0, %c0_1] : memref<512x64xf32, #tpu.memory_space<vmem>>, vector<512x64xf32>
    %c0_2 = arith.constant 0 : index
    %c0_3 = arith.constant 0 : index
    %4 = vector.load %arg3[%c0_2, %c0_3] : memref<512x147xbf16, #tpu.memory_space<vmem>>, vector<512x147xbf16>
    %c0_4 = arith.constant 0 : index
    %c0_5 = arith.constant 0 : index
    %5 = vector.load %arg4[%c0_4, %c0_5] : memref<147x64xbf16, #tpu.memory_space<vmem>>, vector<147x64xbf16>
    %cst = arith.constant dense<0.000000e+00> : vector<512x64xf32>
    %6 = tpu.matmul %4, %5, %cst {dimension_numbers = #tpu.dot_dimension_numbers<[1], [0], [0], [1], [0, 0, 1, 1], [], []>} : vector<512x147xbf16>, vector<147x64xbf16>, vector<512x64xf32> -> vector<512x64xf32>
    %7 = arith.addf %3, %6 : vector<512x64xf32>
    %c0_6 = arith.constant 0 : index
    %c0_7 = arith.constant 0 : index
    %8 = vector.load %arg7[%c0_6, %c0_7] : memref<512x64xf32, #tpu.memory_space<vmem>>, vector<512x64xf32>
    tpu.vector_store %arg7[%c0_6, %c0_7], %7 {strides = array<i32>} : memref<512x64xf32, #tpu.memory_space<vmem>>, vector<512x64xf32>,
    %c0_i32_8 = arith.constant 0 : i32
    %9 = arith.cmpi eq, %arg2, %c0_i32_8 : i32
    %10 = arith.extui %9 : i1 to i32
    %c0_i32_9 = arith.constant 0 : i32
    %11 = arith.cmpi ne, %10, %c0_i32_9 : i32
    scf.if %11 {
      %c0_10 = arith.constant 0 : index
      %c0_11 = arith.constant 0 : index
      %12 = vector.load %arg7[%c0_10, %c0_11] : memref<512x64xf32, #tpu.memory_space<vmem>>, vector<512x64xf32>
      %c0_12 = arith.constant 0 : index
      %c0_13 = arith.constant 0 : index
      %13 = vector.load %arg5[%c0_12, %c0_13] : memref<1x64xf32, #tpu.memory_space<vmem>>, vector<1x64xf32>
      %14 = vector.broadcast %13 : vector<1x64xf32> to vector<512x64xf32>
      %15 = arith.addf %12, %14 : vector<512x64xf32>
      %cst_14 = arith.constant 0.000000e+00 : f32
      %16 = vector.broadcast %cst_14 : f32 to vector<512x64xf32>
      %17 = arith.maximumf %15, %16 : vector<512x64xf32>
      %18 = arith.truncf %17 : vector<512x64xf32> to vector<512x64xbf16>
      %c0_15 = arith.constant 0 : index
      %c0_16 = arith.constant 0 : index
      %19 = vector.load %arg6[%c0_15, %c0_16] : memref<512x64xbf16, #tpu.memory_space<vmem>>, vector<512x64xbf16>
      tpu.vector_store %arg6[%c0_15, %c0_16], %18 {strides = array<i32>} : memref<512x64xbf16, #tpu.memory_space<vmem>>, vector<512x64xbf16>,
    } else {
    }
    return
  }
  func.func @transform_0(%arg0: i32, %arg1: i32, %arg2: i32) -> (i32, i32) {
    %c0_i32 = arith.constant 0 : i32
    return %arg0, %arg2 : i32, i32
  }
  func.func @transform_1(%arg0: i32, %arg1: i32, %arg2: i32) -> (i32, i32) {
    %c0_i32 = arith.constant 0 : i32
    return %arg2, %arg1 : i32, i32
  }
  func.func @transform_2(%arg0: i32, %arg1: i32, %arg2: i32) -> (i32, i32) {
    %c0_i32 = arith.constant 0 : i32
    %c0_i32_0 = arith.constant 0 : i32
    return %c0_i32, %arg1 : i32, i32
  }
  func.func @transform_3(%arg0: i32, %arg1: i32, %arg2: i32) -> (i32, i32) {
    %c0_i32 = arith.constant 0 : i32
    return %arg0, %arg1 : i32, i32
  }
}

module attributes {stable_mosaic.version = 11 : i64} {
  func.func @_matmul_kernel(%arg0: i32, %arg1: i32, %arg2: i32, %arg3: memref<128x576xbf16, #tpu.memory_space<vmem>>, %arg4: memref<576x64xbf16, #tpu.memory_space<vmem>>, %arg5: memref<1x64xf32, #tpu.memory_space<vmem>>, %arg6: memref<128x64xbf16, #tpu.memory_space<vmem>>, %arg7: memref<128x64xf32, #tpu.memory_space<vmem>>) attributes {dimension_semantics = [#tpu.dimension_semantics<parallel>, #tpu.dimension_semantics<parallel>, #tpu.dimension_semantics<arbitrary>], iteration_bounds = array<i64: 1, 1, 1>, scalar_prefetch = 0 : i64, scratch_operands = 1 : i64, tpu.core_type = #tpu.core_type<tc>, window_params = [{transform_indices = @transform_0, window_bounds = array<i64: 128, 576>}, {transform_indices = @transform_1, window_bounds = array<i64: 576, 64>}, {transform_indices = @transform_2, window_bounds = array<i64: 1, 64>}, {transform_indices = @transform_3, window_bounds = array<i64: 128, 64>}]} {
    %c0_i32 = arith.constant 0 : i32
    %0 = arith.cmpi eq, %arg2, %c0_i32 : i32
    %1 = arith.extui %0 : i1 to i32
    %c0_i32_0 = arith.constant 0 : i32
    %2 = arith.cmpi ne, %1, %c0_i32_0 : i32
    scf.if %2 {
      %cst_10 = arith.constant 0.000000e+00 : f32
      %12 = vector.broadcast %cst_10 : f32 to vector<128x64xf32>
      %c0_11 = arith.constant 0 : index
      %c0_12 = arith.constant 0 : index
      %13 = vector.load %arg7[%c0_11, %c0_12] : memref<128x64xf32, #tpu.memory_space<vmem>>, vector<128x64xf32>
      tpu.vector_store %arg7[%c0_11, %c0_12], %12 {strides = array<i32>} : memref<128x64xf32, #tpu.memory_space<vmem>>, vector<128x64xf32>,
    } else {
    }
    %c0 = arith.constant 0 : index
    %c0_1 = arith.constant 0 : index
    %3 = vector.load %arg7[%c0, %c0_1] : memref<128x64xf32, #tpu.memory_space<vmem>>, vector<128x64xf32>
    %c0_2 = arith.constant 0 : index
    %c0_3 = arith.constant 0 : index
    %4 = vector.load %arg3[%c0_2, %c0_3] : memref<128x576xbf16, #tpu.memory_space<vmem>>, vector<128x576xbf16>
    %c0_4 = arith.constant 0 : index
    %c0_5 = arith.constant 0 : index
    %5 = vector.load %arg4[%c0_4, %c0_5] : memref<576x64xbf16, #tpu.memory_space<vmem>>, vector<576x64xbf16>
    %cst = arith.constant dense<0.000000e+00> : vector<128x64xf32>
    %6 = tpu.matmul %4, %5, %cst {dimension_numbers = #tpu.dot_dimension_numbers<[1], [0], [0], [1], [0, 0, 1, 1], [], []>} : vector<128x576xbf16>, vector<576x64xbf16>, vector<128x64xf32> -> vector<128x64xf32>
    %7 = arith.addf %3, %6 : vector<128x64xf32>
    %c0_6 = arith.constant 0 : index
    %c0_7 = arith.constant 0 : index
    %8 = vector.load %arg7[%c0_6, %c0_7] : memref<128x64xf32, #tpu.memory_space<vmem>>, vector<128x64xf32>
    tpu.vector_store %arg7[%c0_6, %c0_7], %7 {strides = array<i32>} : memref<128x64xf32, #tpu.memory_space<vmem>>, vector<128x64xf32>,
    %c0_i32_8 = arith.constant 0 : i32
    %9 = arith.cmpi eq, %arg2, %c0_i32_8 : i32
    %10 = arith.extui %9 : i1 to i32
    %c0_i32_9 = arith.constant 0 : i32
    %11 = arith.cmpi ne, %10, %c0_i32_9 : i32
    scf.if %11 {
      %c0_10 = arith.constant 0 : index
      %c0_11 = arith.constant 0 : index
      %12 = vector.load %arg7[%c0_10, %c0_11] : memref<128x64xf32, #tpu.memory_space<vmem>>, vector<128x64xf32>
      %c0_12 = arith.constant 0 : index
      %c0_13 = arith.constant 0 : index
      %13 = vector.load %arg5[%c0_12, %c0_13] : memref<1x64xf32, #tpu.memory_space<vmem>>, vector<1x64xf32>
      %14 = vector.broadcast %13 : vector<1x64xf32> to vector<128x64xf32>
      %15 = arith.addf %12, %14 : vector<128x64xf32>
      %cst_14 = arith.constant 0.000000e+00 : f32
      %16 = vector.broadcast %cst_14 : f32 to vector<128x64xf32>
      %17 = arith.maximumf %15, %16 : vector<128x64xf32>
      %18 = arith.truncf %17 : vector<128x64xf32> to vector<128x64xbf16>
      %c0_15 = arith.constant 0 : index
      %c0_16 = arith.constant 0 : index
      %19 = vector.load %arg6[%c0_15, %c0_16] : memref<128x64xbf16, #tpu.memory_space<vmem>>, vector<128x64xbf16>
      tpu.vector_store %arg6[%c0_15, %c0_16], %18 {strides = array<i32>} : memref<128x64xbf16, #tpu.memory_space<vmem>>, vector<128x64xbf16>,
    } else {
    }
    return
  }
  func.func @transform_0(%arg0: i32, %arg1: i32, %arg2: i32) -> (i32, i32) {
    %c0_i32 = arith.constant 0 : i32
    return %arg0, %arg2 : i32, i32
  }
  func.func @transform_1(%arg0: i32, %arg1: i32, %arg2: i32) -> (i32, i32) {
    %c0_i32 = arith.constant 0 : i32
    return %arg2, %arg1 : i32, i32
  }
  func.func @transform_2(%arg0: i32, %arg1: i32, %arg2: i32) -> (i32, i32) {
    %c0_i32 = arith.constant 0 : i32
    %c0_i32_0 = arith.constant 0 : i32
    return %c0_i32, %arg1 : i32, i32
  }
  func.func @transform_3(%arg0: i32, %arg1: i32, %arg2: i32) -> (i32, i32) {
    %c0_i32 = arith.constant 0 : i32
    return %arg0, %arg1 : i32, i32
  }
}

module attributes {stable_mosaic.version = 11 : i64} {
  func.func @_matmul_kernel(%arg0: i32, %arg1: i32, %arg2: i32, %arg3: memref<128x576xbf16, #tpu.memory_space<vmem>>, %arg4: memref<576x64xbf16, #tpu.memory_space<vmem>>, %arg5: memref<1x64xf32, #tpu.memory_space<vmem>>, %arg6: memref<128x64xbf16, #tpu.memory_space<vmem>>, %arg7: memref<128x64xbf16, #tpu.memory_space<vmem>>, %arg8: memref<128x64xf32, #tpu.memory_space<vmem>>) attributes {dimension_semantics = [#tpu.dimension_semantics<parallel>, #tpu.dimension_semantics<parallel>, #tpu.dimension_semantics<arbitrary>], iteration_bounds = array<i64: 1, 1, 1>, scalar_prefetch = 0 : i64, scratch_operands = 1 : i64, tpu.core_type = #tpu.core_type<tc>, window_params = [{transform_indices = @transform_0, window_bounds = array<i64: 128, 576>}, {transform_indices = @transform_1, window_bounds = array<i64: 576, 64>}, {transform_indices = @transform_2, window_bounds = array<i64: 1, 64>}, {transform_indices = @transform_3, window_bounds = array<i64: 128, 64>}, {transform_indices = @transform_4, window_bounds = array<i64: 128, 64>}]} {
    %c0_i32 = arith.constant 0 : i32
    %0 = arith.cmpi eq, %arg2, %c0_i32 : i32
    %1 = arith.extui %0 : i1 to i32
    %c0_i32_0 = arith.constant 0 : i32
    %2 = arith.cmpi ne, %1, %c0_i32_0 : i32
    scf.if %2 {
      %cst_10 = arith.constant 0.000000e+00 : f32
      %12 = vector.broadcast %cst_10 : f32 to vector<128x64xf32>
      %c0_11 = arith.constant 0 : index
      %c0_12 = arith.constant 0 : index
      %13 = vector.load %arg8[%c0_11, %c0_12] : memref<128x64xf32, #tpu.memory_space<vmem>>, vector<128x64xf32>
      tpu.vector_store %arg8[%c0_11, %c0_12], %12 {strides = array<i32>} : memref<128x64xf32, #tpu.memory_space<vmem>>, vector<128x64xf32>,
    } else {
    }
    %c0 = arith.constant 0 : index
    %c0_1 = arith.constant 0 : index
    %3 = vector.load %arg8[%c0, %c0_1] : memref<128x64xf32, #tpu.memory_space<vmem>>, vector<128x64xf32>
    %c0_2 = arith.constant 0 : index
    %c0_3 = arith.constant 0 : index
    %4 = vector.load %arg3[%c0_2, %c0_3] : memref<128x576xbf16, #tpu.memory_space<vmem>>, vector<128x576xbf16>
    %c0_4 = arith.constant 0 : index
    %c0_5 = arith.constant 0 : index
    %5 = vector.load %arg4[%c0_4, %c0_5] : memref<576x64xbf16, #tpu.memory_space<vmem>>, vector<576x64xbf16>
    %cst = arith.constant dense<0.000000e+00> : vector<128x64xf32>
    %6 = tpu.matmul %4, %5, %cst {dimension_numbers = #tpu.dot_dimension_numbers<[1], [0], [0], [1], [0, 0, 1, 1], [], []>} : vector<128x576xbf16>, vector<576x64xbf16>, vector<128x64xf32> -> vector<128x64xf32>
    %7 = arith.addf %3, %6 : vector<128x64xf32>
    %c0_6 = arith.constant 0 : index
    %c0_7 = arith.constant 0 : index
    %8 = vector.load %arg8[%c0_6, %c0_7] : memref<128x64xf32, #tpu.memory_space<vmem>>, vector<128x64xf32>
    tpu.vector_store %arg8[%c0_6, %c0_7], %7 {strides = array<i32>} : memref<128x64xf32, #tpu.memory_space<vmem>>, vector<128x64xf32>,
    %c0_i32_8 = arith.constant 0 : i32
    %9 = arith.cmpi eq, %arg2, %c0_i32_8 : i32
    %10 = arith.extui %9 : i1 to i32
    %c0_i32_9 = arith.constant 0 : i32
    %11 = arith.cmpi ne, %10, %c0_i32_9 : i32
    scf.if %11 {
      %c0_10 = arith.constant 0 : index
      %c0_11 = arith.constant 0 : index
      %12 = vector.load %arg8[%c0_10, %c0_11] : memref<128x64xf32, #tpu.memory_space<vmem>>, vector<128x64xf32>
      %c0_12 = arith.constant 0 : index
      %c0_13 = arith.constant 0 : index
      %13 = vector.load %arg5[%c0_12, %c0_13] : memref<1x64xf32, #tpu.memory_space<vmem>>, vector<1x64xf32>
      %14 = vector.broadcast %13 : vector<1x64xf32> to vector<128x64xf32>
      %15 = arith.addf %12, %14 : vector<128x64xf32>
      %c0_14 = arith.constant 0 : index
      %c0_15 = arith.constant 0 : index
      %16 = vector.load %arg6[%c0_14, %c0_15] : memref<128x64xbf16, #tpu.memory_space<vmem>>, vector<128x64xbf16>
      %17 = arith.extf %16 : vector<128x64xbf16> to vector<128x64xf32>
      %18 = arith.addf %15, %17 : vector<128x64xf32>
      %cst_16 = arith.constant 0.000000e+00 : f32
      %19 = vector.broadcast %cst_16 : f32 to vector<128x64xf32>
      %20 = arith.maximumf %18, %19 : vector<128x64xf32>
      %21 = arith.truncf %20 : vector<128x64xf32> to vector<128x64xbf16>
      %c0_17 = arith.constant 0 : index
      %c0_18 = arith.constant 0 : index
      %22 = vector.load %arg7[%c0_17, %c0_18] : memref<128x64xbf16, #tpu.memory_space<vmem>>, vector<128x64xbf16>
      tpu.vector_store %arg7[%c0_17, %c0_18], %21 {strides = array<i32>} : memref<128x64xbf16, #tpu.memory_space<vmem>>, vector<128x64xbf16>,
    } else {
    }
    return
  }
  func.func @transform_0(%arg0: i32, %arg1: i32, %arg2: i32) -> (i32, i32) {
    %c0_i32 = arith.constant 0 : i32
    return %arg0, %arg2 : i32, i32
  }
  func.func @transform_1(%arg0: i32, %arg1: i32, %arg2: i32) -> (i32, i32) {
    %c0_i32 = arith.constant 0 : i32
    return %arg2, %arg1 : i32, i32
  }
  func.func @transform_2(%arg0: i32, %arg1: i32, %arg2: i32) -> (i32, i32) {
    %c0_i32 = arith.constant 0 : i32
    %c0_i32_0 = arith.constant 0 : i32
    return %c0_i32, %arg1 : i32, i32
  }
  func.func @transform_3(%arg0: i32, %arg1: i32, %arg2: i32) -> (i32, i32) {
    %c0_i32 = arith.constant 0 : i32
    return %arg0, %arg1 : i32, i32
  }
  func.func @transform_4(%arg0: i32, %arg1: i32, %arg2: i32) -> (i32, i32) {
    %c0_i32 = arith.constant 0 : i32
    return %arg0, %arg1 : i32, i32
  }
}

module attributes {stable_mosaic.version = 11 : i64} {
  func.func @_matmul_kernel(%arg0: i32, %arg1: i32, %arg2: i32, %arg3: memref<32x576xbf16, #tpu.memory_space<vmem>>, %arg4: memref<576x128xbf16, #tpu.memory_space<vmem>>, %arg5: memref<1x128xf32, #tpu.memory_space<vmem>>, %arg6: memref<32x128xbf16, #tpu.memory_space<vmem>>, %arg7: memref<32x128xf32, #tpu.memory_space<vmem>>) attributes {dimension_semantics = [#tpu.dimension_semantics<parallel>, #tpu.dimension_semantics<parallel>, #tpu.dimension_semantics<arbitrary>], iteration_bounds = array<i64: 1, 1, 1>, scalar_prefetch = 0 : i64, scratch_operands = 1 : i64, tpu.core_type = #tpu.core_type<tc>, window_params = [{transform_indices = @transform_0, window_bounds = array<i64: 32, 576>}, {transform_indices = @transform_1, window_bounds = array<i64: 576, 128>}, {transform_indices = @transform_2, window_bounds = array<i64: 1, 128>}, {transform_indices = @transform_3, window_bounds = array<i64: 32, 128>}]} {
    %c0_i32 = arith.constant 0 : i32
    %0 = arith.cmpi eq, %arg2, %c0_i32 : i32
    %1 = arith.extui %0 : i1 to i32
    %c0_i32_0 = arith.constant 0 : i32
    %2 = arith.cmpi ne, %1, %c0_i32_0 : i32
    scf.if %2 {
      %cst_10 = arith.constant 0.000000e+00 : f32
      %12 = vector.broadcast %cst_10 : f32 to vector<32x128xf32>
      %c0_11 = arith.constant 0 : index
      %c0_12 = arith.constant 0 : index
      %13 = vector.load %arg7[%c0_11, %c0_12] : memref<32x128xf32, #tpu.memory_space<vmem>>, vector<32x128xf32>
      tpu.vector_store %arg7[%c0_11, %c0_12], %12 {strides = array<i32>} : memref<32x128xf32, #tpu.memory_space<vmem>>, vector<32x128xf32>,
    } else {
    }
    %c0 = arith.constant 0 : index
    %c0_1 = arith.constant 0 : index
    %3 = vector.load %arg7[%c0, %c0_1] : memref<32x128xf32, #tpu.memory_space<vmem>>, vector<32x128xf32>
    %c0_2 = arith.constant 0 : index
    %c0_3 = arith.constant 0 : index
    %4 = vector.load %arg3[%c0_2, %c0_3] : memref<32x576xbf16, #tpu.memory_space<vmem>>, vector<32x576xbf16>
    %c0_4 = arith.constant 0 : index
    %c0_5 = arith.constant 0 : index
    %5 = vector.load %arg4[%c0_4, %c0_5] : memref<576x128xbf16, #tpu.memory_space<vmem>>, vector<576x128xbf16>
    %cst = arith.constant dense<0.000000e+00> : vector<32x128xf32>
    %6 = tpu.matmul %4, %5, %cst {dimension_numbers = #tpu.dot_dimension_numbers<[1], [0], [0], [1], [0, 0, 1, 1], [], []>} : vector<32x576xbf16>, vector<576x128xbf16>, vector<32x128xf32> -> vector<32x128xf32>
    %7 = arith.addf %3, %6 : vector<32x128xf32>
    %c0_6 = arith.constant 0 : index
    %c0_7 = arith.constant 0 : index
    %8 = vector.load %arg7[%c0_6, %c0_7] : memref<32x128xf32, #tpu.memory_space<vmem>>, vector<32x128xf32>
    tpu.vector_store %arg7[%c0_6, %c0_7], %7 {strides = array<i32>} : memref<32x128xf32, #tpu.memory_space<vmem>>, vector<32x128xf32>,
    %c0_i32_8 = arith.constant 0 : i32
    %9 = arith.cmpi eq, %arg2, %c0_i32_8 : i32
    %10 = arith.extui %9 : i1 to i32
    %c0_i32_9 = arith.constant 0 : i32
    %11 = arith.cmpi ne, %10, %c0_i32_9 : i32
    scf.if %11 {
      %c0_10 = arith.constant 0 : index
      %c0_11 = arith.constant 0 : index
      %12 = vector.load %arg7[%c0_10, %c0_11] : memref<32x128xf32, #tpu.memory_space<vmem>>, vector<32x128xf32>
      %c0_12 = arith.constant 0 : index
      %c0_13 = arith.constant 0 : index
      %13 = vector.load %arg5[%c0_12, %c0_13] : memref<1x128xf32, #tpu.memory_space<vmem>>, vector<1x128xf32>
      %14 = vector.broadcast %13 : vector<1x128xf32> to vector<32x128xf32>
      %15 = arith.addf %12, %14 : vector<32x128xf32>
      %cst_14 = arith.constant 0.000000e+00 : f32
      %16 = vector.broadcast %cst_14 : f32 to vector<32x128xf32>
      %17 = arith.maximumf %15, %16 : vector<32x128xf32>
      %18 = arith.truncf %17 : vector<32x128xf32> to vector<32x128xbf16>
      %c0_15 = arith.constant 0 : index
      %c0_16 = arith.constant 0 : index
      %19 = vector.load %arg6[%c0_15, %c0_16] : memref<32x128xbf16, #tpu.memory_space<vmem>>, vector<32x128xbf16>
      tpu.vector_store %arg6[%c0_15, %c0_16], %18 {strides = array<i32>} : memref<32x128xbf16, #tpu.memory_space<vmem>>, vector<32x128xbf16>,
    } else {
    }
    return
  }
  func.func @transform_0(%arg0: i32, %arg1: i32, %arg2: i32) -> (i32, i32) {
    %c0_i32 = arith.constant 0 : i32
    return %arg0, %arg2 : i32, i32
  }
  func.func @transform_1(%arg0: i32, %arg1: i32, %arg2: i32) -> (i32, i32) {
    %c0_i32 = arith.constant 0 : i32
    return %arg2, %arg1 : i32, i32
  }
  func.func @transform_2(%arg0: i32, %arg1: i32, %arg2: i32) -> (i32, i32) {
    %c0_i32 = arith.constant 0 : i32
    %c0_i32_0 = arith.constant 0 : i32
    return %c0_i32, %arg1 : i32, i32
  }
  func.func @transform_3(%arg0: i32, %arg1: i32, %arg2: i32) -> (i32, i32) {
    %c0_i32 = arith.constant 0 : i32
    return %arg0, %arg1 : i32, i32
  }
}

module attributes {stable_mosaic.version = 11 : i64} {
  func.func @_matmul_kernel(%arg0: i32, %arg1: i32, %arg2: i32, %arg3: memref<32x64xbf16, #tpu.memory_space<vmem>>, %arg4: memref<64x128xbf16, #tpu.memory_space<vmem>>, %arg5: memref<1x128xf32, #tpu.memory_space<vmem>>, %arg6: memref<32x128xbf16, #tpu.memory_space<vmem>>, %arg7: memref<32x128xf32, #tpu.memory_space<vmem>>) attributes {dimension_semantics = [#tpu.dimension_semantics<parallel>, #tpu.dimension_semantics<parallel>, #tpu.dimension_semantics<arbitrary>], iteration_bounds = array<i64: 1, 1, 1>, scalar_prefetch = 0 : i64, scratch_operands = 1 : i64, tpu.core_type = #tpu.core_type<tc>, window_params = [{transform_indices = @transform_0, window_bounds = array<i64: 32, 64>}, {transform_indices = @transform_1, window_bounds = array<i64: 64, 128>}, {transform_indices = @transform_2, window_bounds = array<i64: 1, 128>}, {transform_indices = @transform_3, window_bounds = array<i64: 32, 128>}]} {
    %c0_i32 = arith.constant 0 : i32
    %0 = arith.cmpi eq, %arg2, %c0_i32 : i32
    %1 = arith.extui %0 : i1 to i32
    %c0_i32_0 = arith.constant 0 : i32
    %2 = arith.cmpi ne, %1, %c0_i32_0 : i32
    scf.if %2 {
      %cst_10 = arith.constant 0.000000e+00 : f32
      %12 = vector.broadcast %cst_10 : f32 to vector<32x128xf32>
      %c0_11 = arith.constant 0 : index
      %c0_12 = arith.constant 0 : index
      %13 = vector.load %arg7[%c0_11, %c0_12] : memref<32x128xf32, #tpu.memory_space<vmem>>, vector<32x128xf32>
      tpu.vector_store %arg7[%c0_11, %c0_12], %12 {strides = array<i32>} : memref<32x128xf32, #tpu.memory_space<vmem>>, vector<32x128xf32>,
    } else {
    }
    %c0 = arith.constant 0 : index
    %c0_1 = arith.constant 0 : index
    %3 = vector.load %arg7[%c0, %c0_1] : memref<32x128xf32, #tpu.memory_space<vmem>>, vector<32x128xf32>
    %c0_2 = arith.constant 0 : index
    %c0_3 = arith.constant 0 : index
    %4 = vector.load %arg3[%c0_2, %c0_3] : memref<32x64xbf16, #tpu.memory_space<vmem>>, vector<32x64xbf16>
    %c0_4 = arith.constant 0 : index
    %c0_5 = arith.constant 0 : index
    %5 = vector.load %arg4[%c0_4, %c0_5] : memref<64x128xbf16, #tpu.memory_space<vmem>>, vector<64x128xbf16>
    %cst = arith.constant dense<0.000000e+00> : vector<32x128xf32>
    %6 = tpu.matmul %4, %5, %cst {dimension_numbers = #tpu.dot_dimension_numbers<[1], [0], [0], [1], [0, 0, 1, 1], [], []>} : vector<32x64xbf16>, vector<64x128xbf16>, vector<32x128xf32> -> vector<32x128xf32>
    %7 = arith.addf %3, %6 : vector<32x128xf32>
    %c0_6 = arith.constant 0 : index
    %c0_7 = arith.constant 0 : index
    %8 = vector.load %arg7[%c0_6, %c0_7] : memref<32x128xf32, #tpu.memory_space<vmem>>, vector<32x128xf32>
    tpu.vector_store %arg7[%c0_6, %c0_7], %7 {strides = array<i32>} : memref<32x128xf32, #tpu.memory_space<vmem>>, vector<32x128xf32>,
    %c0_i32_8 = arith.constant 0 : i32
    %9 = arith.cmpi eq, %arg2, %c0_i32_8 : i32
    %10 = arith.extui %9 : i1 to i32
    %c0_i32_9 = arith.constant 0 : i32
    %11 = arith.cmpi ne, %10, %c0_i32_9 : i32
    scf.if %11 {
      %c0_10 = arith.constant 0 : index
      %c0_11 = arith.constant 0 : index
      %12 = vector.load %arg7[%c0_10, %c0_11] : memref<32x128xf32, #tpu.memory_space<vmem>>, vector<32x128xf32>
      %c0_12 = arith.constant 0 : index
      %c0_13 = arith.constant 0 : index
      %13 = vector.load %arg5[%c0_12, %c0_13] : memref<1x128xf32, #tpu.memory_space<vmem>>, vector<1x128xf32>
      %14 = vector.broadcast %13 : vector<1x128xf32> to vector<32x128xf32>
      %15 = arith.addf %12, %14 : vector<32x128xf32>
      %16 = arith.truncf %15 : vector<32x128xf32> to vector<32x128xbf16>
      %c0_14 = arith.constant 0 : index
      %c0_15 = arith.constant 0 : index
      %17 = vector.load %arg6[%c0_14, %c0_15] : memref<32x128xbf16, #tpu.memory_space<vmem>>, vector<32x128xbf16>
      tpu.vector_store %arg6[%c0_14, %c0_15], %16 {strides = array<i32>} : memref<32x128xbf16, #tpu.memory_space<vmem>>, vector<32x128xbf16>,
    } else {
    }
    return
  }
  func.func @transform_0(%arg0: i32, %arg1: i32, %arg2: i32) -> (i32, i32) {
    %c0_i32 = arith.constant 0 : i32
    return %arg0, %arg2 : i32, i32
  }
  func.func @transform_1(%arg0: i32, %arg1: i32, %arg2: i32) -> (i32, i32) {
    %c0_i32 = arith.constant 0 : i32
    return %arg2, %arg1 : i32, i32
  }
  func.func @transform_2(%arg0: i32, %arg1: i32, %arg2: i32) -> (i32, i32) {
    %c0_i32 = arith.constant 0 : i32
    %c0_i32_0 = arith.constant 0 : i32
    return %c0_i32, %arg1 : i32, i32
  }
  func.func @transform_3(%arg0: i32, %arg1: i32, %arg2: i32) -> (i32, i32) {
    %c0_i32 = arith.constant 0 : i32
    return %arg0, %arg1 : i32, i32
  }
}

module attributes {stable_mosaic.version = 11 : i64} {
  func.func @_matmul_kernel(%arg0: i32, %arg1: i32, %arg2: i32, %arg3: memref<32x384xbf16, #tpu.memory_space<vmem>>, %arg4: memref<384x128xbf16, #tpu.memory_space<vmem>>, %arg5: memref<1x128xf32, #tpu.memory_space<vmem>>, %arg6: memref<32x128xbf16, #tpu.memory_space<vmem>>, %arg7: memref<32x128xbf16, #tpu.memory_space<vmem>>, %arg8: memref<32x128xf32, #tpu.memory_space<vmem>>) attributes {dimension_semantics = [#tpu.dimension_semantics<parallel>, #tpu.dimension_semantics<parallel>, #tpu.dimension_semantics<arbitrary>], iteration_bounds = array<i64: 1, 1, 3>, scalar_prefetch = 0 : i64, scratch_operands = 1 : i64, tpu.core_type = #tpu.core_type<tc>, window_params = [{transform_indices = @transform_0, window_bounds = array<i64: 32, 384>}, {transform_indices = @transform_1, window_bounds = array<i64: 384, 128>}, {transform_indices = @transform_2, window_bounds = array<i64: 1, 128>}, {transform_indices = @transform_3, window_bounds = array<i64: 32, 128>}, {transform_indices = @transform_4, window_bounds = array<i64: 32, 128>}]} {
    %c0_i32 = arith.constant 0 : i32
    %0 = arith.cmpi eq, %arg2, %c0_i32 : i32
    %1 = arith.extui %0 : i1 to i32
    %c0_i32_0 = arith.constant 0 : i32
    %2 = arith.cmpi ne, %1, %c0_i32_0 : i32
    scf.if %2 {
      %cst_9 = arith.constant 0.000000e+00 : f32
      %12 = vector.broadcast %cst_9 : f32 to vector<32x128xf32>
      %c0_10 = arith.constant 0 : index
      %c0_11 = arith.constant 0 : index
      %13 = vector.load %arg8[%c0_10, %c0_11] : memref<32x128xf32, #tpu.memory_space<vmem>>, vector<32x128xf32>
      tpu.vector_store %arg8[%c0_10, %c0_11], %12 {strides = array<i32>} : memref<32x128xf32, #tpu.memory_space<vmem>>, vector<32x128xf32>,
    } else {
    }
    %c0 = arith.constant 0 : index
    %c0_1 = arith.constant 0 : index
    %3 = vector.load %arg8[%c0, %c0_1] : memref<32x128xf32, #tpu.memory_space<vmem>>, vector<32x128xf32>
    %c0_2 = arith.constant 0 : index
    %c0_3 = arith.constant 0 : index
    %4 = vector.load %arg3[%c0_2, %c0_3] : memref<32x384xbf16, #tpu.memory_space<vmem>>, vector<32x384xbf16>
    %c0_4 = arith.constant 0 : index
    %c0_5 = arith.constant 0 : index
    %5 = vector.load %arg4[%c0_4, %c0_5] : memref<384x128xbf16, #tpu.memory_space<vmem>>, vector<384x128xbf16>
    %cst = arith.constant dense<0.000000e+00> : vector<32x128xf32>
    %6 = tpu.matmul %4, %5, %cst {dimension_numbers = #tpu.dot_dimension_numbers<[1], [0], [0], [1], [0, 0, 1, 1], [], []>} : vector<32x384xbf16>, vector<384x128xbf16>, vector<32x128xf32> -> vector<32x128xf32>
    %7 = arith.addf %3, %6 : vector<32x128xf32>
    %c0_6 = arith.constant 0 : index
    %c0_7 = arith.constant 0 : index
    %8 = vector.load %arg8[%c0_6, %c0_7] : memref<32x128xf32, #tpu.memory_space<vmem>>, vector<32x128xf32>
    tpu.vector_store %arg8[%c0_6, %c0_7], %7 {strides = array<i32>} : memref<32x128xf32, #tpu.memory_space<vmem>>, vector<32x128xf32>,
    %c2_i32 = arith.constant 2 : i32
    %9 = arith.cmpi eq, %arg2, %c2_i32 : i32
    %10 = arith.extui %9 : i1 to i32
    %c0_i32_8 = arith.constant 0 : i32
    %11 = arith.cmpi ne, %10, %c0_i32_8 : i32
    scf.if %11 {
      %c0_9 = arith.constant 0 : index
      %c0_10 = arith.constant 0 : index
      %12 = vector.load %arg8[%c0_9, %c0_10] : memref<32x128xf32, #tpu.memory_space<vmem>>, vector<32x128xf32>
      %c0_11 = arith.constant 0 : index
      %c0_12 = arith.constant 0 : index
      %13 = vector.load %arg5[%c0_11, %c0_12] : memref<1x128xf32, #tpu.memory_space<vmem>>, vector<1x128xf32>
      %14 = vector.broadcast %13 : vector<1x128xf32> to vector<32x128xf32>
      %15 = arith.addf %12, %14 : vector<32x128xf32>
      %c0_13 = arith.constant 0 : index
      %c0_14 = arith.constant 0 : index
      %16 = vector.load %arg6[%c0_13, %c0_14] : memref<32x128xbf16, #tpu.memory_space<vmem>>, vector<32x128xbf16>
      %17 = arith.extf %16 : vector<32x128xbf16> to vector<32x128xf32>
      %18 = arith.addf %15, %17 : vector<32x128xf32>
      %cst_15 = arith.constant 0.000000e+00 : f32
      %19 = vector.broadcast %cst_15 : f32 to vector<32x128xf32>
      %20 = arith.maximumf %18, %19 : vector<32x128xf32>
      %21 = arith.truncf %20 : vector<32x128xf32> to vector<32x128xbf16>
      %c0_16 = arith.constant 0 : index
      %c0_17 = arith.constant 0 : index
      %22 = vector.load %arg7[%c0_16, %c0_17] : memref<32x128xbf16, #tpu.memory_space<vmem>>, vector<32x128xbf16>
      tpu.vector_store %arg7[%c0_16, %c0_17], %21 {strides = array<i32>} : memref<32x128xbf16, #tpu.memory_space<vmem>>, vector<32x128xbf16>,
    } else {
    }
    return
  }
  func.func @transform_0(%arg0: i32, %arg1: i32, %arg2: i32) -> (i32, i32) {
    %c0_i32 = arith.constant 0 : i32
    return %arg0, %arg2 : i32, i32
  }
  func.func @transform_1(%arg0: i32, %arg1: i32, %arg2: i32) -> (i32, i32) {
    %c0_i32 = arith.constant 0 : i32
    return %arg2, %arg1 : i32, i32
  }
  func.func @transform_2(%arg0: i32, %arg1: i32, %arg2: i32) -> (i32, i32) {
    %c0_i32 = arith.constant 0 : i32
    %c0_i32_0 = arith.constant 0 : i32
    return %c0_i32, %arg1 : i32, i32
  }
  func.func @transform_3(%arg0: i32, %arg1: i32, %arg2: i32) -> (i32, i32) {
    %c0_i32 = arith.constant 0 : i32
    return %arg0, %arg1 : i32, i32
  }
  func.func @transform_4(%arg0: i32, %arg1: i32, %arg2: i32) -> (i32, i32) {
    %c0_i32 = arith.constant 0 : i32
    return %arg0, %arg1 : i32, i32
  }
}

module attributes {stable_mosaic.version = 11 : i64} {
  func.func @_matmul_kernel(%arg0: i32, %arg1: i32, %arg2: i32, %arg3: memref<32x384xbf16, #tpu.memory_space<vmem>>, %arg4: memref<384x128xbf16, #tpu.memory_space<vmem>>, %arg5: memref<1x128xf32, #tpu.memory_space<vmem>>, %arg6: memref<32x128xbf16, #tpu.memory_space<vmem>>, %arg7: memref<32x128xf32, #tpu.memory_space<vmem>>) attributes {dimension_semantics = [#tpu.dimension_semantics<parallel>, #tpu.dimension_semantics<parallel>, #tpu.dimension_semantics<arbitrary>], iteration_bounds = array<i64: 1, 1, 3>, scalar_prefetch = 0 : i64, scratch_operands = 1 : i64, tpu.core_type = #tpu.core_type<tc>, window_params = [{transform_indices = @transform_0, window_bounds = array<i64: 32, 384>}, {transform_indices = @transform_1, window_bounds = array<i64: 384, 128>}, {transform_indices = @transform_2, window_bounds = array<i64: 1, 128>}, {transform_indices = @transform_3, window_bounds = array<i64: 32, 128>}]} {
    %c0_i32 = arith.constant 0 : i32
    %0 = arith.cmpi eq, %arg2, %c0_i32 : i32
    %1 = arith.extui %0 : i1 to i32
    %c0_i32_0 = arith.constant 0 : i32
    %2 = arith.cmpi ne, %1, %c0_i32_0 : i32
    scf.if %2 {
      %cst_9 = arith.constant 0.000000e+00 : f32
      %12 = vector.broadcast %cst_9 : f32 to vector<32x128xf32>
      %c0_10 = arith.constant 0 : index
      %c0_11 = arith.constant 0 : index
      %13 = vector.load %arg7[%c0_10, %c0_11] : memref<32x128xf32, #tpu.memory_space<vmem>>, vector<32x128xf32>
      tpu.vector_store %arg7[%c0_10, %c0_11], %12 {strides = array<i32>} : memref<32x128xf32, #tpu.memory_space<vmem>>, vector<32x128xf32>,
    } else {
    }
    %c0 = arith.constant 0 : index
    %c0_1 = arith.constant 0 : index
    %3 = vector.load %arg7[%c0, %c0_1] : memref<32x128xf32, #tpu.memory_space<vmem>>, vector<32x128xf32>
    %c0_2 = arith.constant 0 : index
    %c0_3 = arith.constant 0 : index
    %4 = vector.load %arg3[%c0_2, %c0_3] : memref<32x384xbf16, #tpu.memory_space<vmem>>, vector<32x384xbf16>
    %c0_4 = arith.constant 0 : index
    %c0_5 = arith.constant 0 : index
    %5 = vector.load %arg4[%c0_4, %c0_5] : memref<384x128xbf16, #tpu.memory_space<vmem>>, vector<384x128xbf16>
    %cst = arith.constant dense<0.000000e+00> : vector<32x128xf32>
    %6 = tpu.matmul %4, %5, %cst {dimension_numbers = #tpu.dot_dimension_numbers<[1], [0], [0], [1], [0, 0, 1, 1], [], []>} : vector<32x384xbf16>, vector<384x128xbf16>, vector<32x128xf32> -> vector<32x128xf32>
    %7 = arith.addf %3, %6 : vector<32x128xf32>
    %c0_6 = arith.constant 0 : index
    %c0_7 = arith.constant 0 : index
    %8 = vector.load %arg7[%c0_6, %c0_7] : memref<32x128xf32, #tpu.memory_space<vmem>>, vector<32x128xf32>
    tpu.vector_store %arg7[%c0_6, %c0_7], %7 {strides = array<i32>} : memref<32x128xf32, #tpu.memory_space<vmem>>, vector<32x128xf32>,
    %c2_i32 = arith.constant 2 : i32
    %9 = arith.cmpi eq, %arg2, %c2_i32 : i32
    %10 = arith.extui %9 : i1 to i32
    %c0_i32_8 = arith.constant 0 : i32
    %11 = arith.cmpi ne, %10, %c0_i32_8 : i32
    scf.if %11 {
      %c0_9 = arith.constant 0 : index
      %c0_10 = arith.constant 0 : index
      %12 = vector.load %arg7[%c0_9, %c0_10] : memref<32x128xf32, #tpu.memory_space<vmem>>, vector<32x128xf32>
      %c0_11 = arith.constant 0 : index
      %c0_12 = arith.constant 0 : index
      %13 = vector.load %arg5[%c0_11, %c0_12] : memref<1x128xf32, #tpu.memory_space<vmem>>, vector<1x128xf32>
      %14 = vector.broadcast %13 : vector<1x128xf32> to vector<32x128xf32>
      %15 = arith.addf %12, %14 : vector<32x128xf32>
      %cst_13 = arith.constant 0.000000e+00 : f32
      %16 = vector.broadcast %cst_13 : f32 to vector<32x128xf32>
      %17 = arith.maximumf %15, %16 : vector<32x128xf32>
      %18 = arith.truncf %17 : vector<32x128xf32> to vector<32x128xbf16>
      %c0_14 = arith.constant 0 : index
      %c0_15 = arith.constant 0 : index
      %19 = vector.load %arg6[%c0_14, %c0_15] : memref<32x128xbf16, #tpu.memory_space<vmem>>, vector<32x128xbf16>
      tpu.vector_store %arg6[%c0_14, %c0_15], %18 {strides = array<i32>} : memref<32x128xbf16, #tpu.memory_space<vmem>>, vector<32x128xbf16>,
    } else {
    }
    return
  }
  func.func @transform_0(%arg0: i32, %arg1: i32, %arg2: i32) -> (i32, i32) {
    %c0_i32 = arith.constant 0 : i32
    return %arg0, %arg2 : i32, i32
  }
  func.func @transform_1(%arg0: i32, %arg1: i32, %arg2: i32) -> (i32, i32) {
    %c0_i32 = arith.constant 0 : i32
    return %arg2, %arg1 : i32, i32
  }
  func.func @transform_2(%arg0: i32, %arg1: i32, %arg2: i32) -> (i32, i32) {
    %c0_i32 = arith.constant 0 : i32
    %c0_i32_0 = arith.constant 0 : i32
    return %c0_i32, %arg1 : i32, i32
  }
  func.func @transform_3(%arg0: i32, %arg1: i32, %arg2: i32) -> (i32, i32) {
    %c0_i32 = arith.constant 0 : i32
    return %arg0, %arg1 : i32, i32
  }
}

module attributes {stable_mosaic.version = 11 : i64} {
  func.func @_matmul_kernel(%arg0: i32, %arg1: i32, %arg2: i32, %arg3: memref<8x384xbf16, #tpu.memory_space<vmem>>, %arg4: memref<384x256xbf16, #tpu.memory_space<vmem>>, %arg5: memref<1x256xf32, #tpu.memory_space<vmem>>, %arg6: memref<8x256xbf16, #tpu.memory_space<vmem>>, %arg7: memref<8x256xf32, #tpu.memory_space<vmem>>) attributes {dimension_semantics = [#tpu.dimension_semantics<parallel>, #tpu.dimension_semantics<parallel>, #tpu.dimension_semantics<arbitrary>], iteration_bounds = array<i64: 1, 1, 3>, scalar_prefetch = 0 : i64, scratch_operands = 1 : i64, tpu.core_type = #tpu.core_type<tc>, window_params = [{transform_indices = @transform_0, window_bounds = array<i64: 8, 384>}, {transform_indices = @transform_1, window_bounds = array<i64: 384, 256>}, {transform_indices = @transform_2, window_bounds = array<i64: 1, 256>}, {transform_indices = @transform_3, window_bounds = array<i64: 8, 256>}]} {
    %c0_i32 = arith.constant 0 : i32
    %0 = arith.cmpi eq, %arg2, %c0_i32 : i32
    %1 = arith.extui %0 : i1 to i32
    %c0_i32_0 = arith.constant 0 : i32
    %2 = arith.cmpi ne, %1, %c0_i32_0 : i32
    scf.if %2 {
      %cst_9 = arith.constant 0.000000e+00 : f32
      %12 = vector.broadcast %cst_9 : f32 to vector<8x256xf32>
      %c0_10 = arith.constant 0 : index
      %c0_11 = arith.constant 0 : index
      %13 = vector.load %arg7[%c0_10, %c0_11] : memref<8x256xf32, #tpu.memory_space<vmem>>, vector<8x256xf32>
      tpu.vector_store %arg7[%c0_10, %c0_11], %12 {strides = array<i32>} : memref<8x256xf32, #tpu.memory_space<vmem>>, vector<8x256xf32>,
    } else {
    }
    %c0 = arith.constant 0 : index
    %c0_1 = arith.constant 0 : index
    %3 = vector.load %arg7[%c0, %c0_1] : memref<8x256xf32, #tpu.memory_space<vmem>>, vector<8x256xf32>
    %c0_2 = arith.constant 0 : index
    %c0_3 = arith.constant 0 : index
    %4 = vector.load %arg3[%c0_2, %c0_3] : memref<8x384xbf16, #tpu.memory_space<vmem>>, vector<8x384xbf16>
    %c0_4 = arith.constant 0 : index
    %c0_5 = arith.constant 0 : index
    %5 = vector.load %arg4[%c0_4, %c0_5] : memref<384x256xbf16, #tpu.memory_space<vmem>>, vector<384x256xbf16>
    %cst = arith.constant dense<0.000000e+00> : vector<8x256xf32>
    %6 = tpu.matmul %4, %5, %cst {dimension_numbers = #tpu.dot_dimension_numbers<[1], [0], [0], [1], [0, 0, 1, 1], [], []>} : vector<8x384xbf16>, vector<384x256xbf16>, vector<8x256xf32> -> vector<8x256xf32>
    %7 = arith.addf %3, %6 : vector<8x256xf32>
    %c0_6 = arith.constant 0 : index
    %c0_7 = arith.constant 0 : index
    %8 = vector.load %arg7[%c0_6, %c0_7] : memref<8x256xf32, #tpu.memory_space<vmem>>, vector<8x256xf32>
    tpu.vector_store %arg7[%c0_6, %c0_7], %7 {strides = array<i32>} : memref<8x256xf32, #tpu.memory_space<vmem>>, vector<8x256xf32>,
    %c2_i32 = arith.constant 2 : i32
    %9 = arith.cmpi eq, %arg2, %c2_i32 : i32
    %10 = arith.extui %9 : i1 to i32
    %c0_i32_8 = arith.constant 0 : i32
    %11 = arith.cmpi ne, %10, %c0_i32_8 : i32
    scf.if %11 {
      %c0_9 = arith.constant 0 : index
      %c0_10 = arith.constant 0 : index
      %12 = vector.load %arg7[%c0_9, %c0_10] : memref<8x256xf32, #tpu.memory_space<vmem>>, vector<8x256xf32>
      %c0_11 = arith.constant 0 : index
      %c0_12 = arith.constant 0 : index
      %13 = vector.load %arg5[%c0_11, %c0_12] : memref<1x256xf32, #tpu.memory_space<vmem>>, vector<1x256xf32>
      %14 = vector.broadcast %13 : vector<1x256xf32> to vector<8x256xf32>
      %15 = arith.addf %12, %14 : vector<8x256xf32>
      %cst_13 = arith.constant 0.000000e+00 : f32
      %16 = vector.broadcast %cst_13 : f32 to vector<8x256xf32>
      %17 = arith.maximumf %15, %16 : vector<8x256xf32>
      %18 = arith.truncf %17 : vector<8x256xf32> to vector<8x256xbf16>
      %c0_14 = arith.constant 0 : index
      %c0_15 = arith.constant 0 : index
      %19 = vector.load %arg6[%c0_14, %c0_15] : memref<8x256xbf16, #tpu.memory_space<vmem>>, vector<8x256xbf16>
      tpu.vector_store %arg6[%c0_14, %c0_15], %18 {strides = array<i32>} : memref<8x256xbf16, #tpu.memory_space<vmem>>, vector<8x256xbf16>,
    } else {
    }
    return
  }
  func.func @transform_0(%arg0: i32, %arg1: i32, %arg2: i32) -> (i32, i32) {
    %c0_i32 = arith.constant 0 : i32
    return %arg0, %arg2 : i32, i32
  }
  func.func @transform_1(%arg0: i32, %arg1: i32, %arg2: i32) -> (i32, i32) {
    %c0_i32 = arith.constant 0 : i32
    return %arg2, %arg1 : i32, i32
  }
  func.func @transform_2(%arg0: i32, %arg1: i32, %arg2: i32) -> (i32, i32) {
    %c0_i32 = arith.constant 0 : i32
    %c0_i32_0 = arith.constant 0 : i32
    return %c0_i32, %arg1 : i32, i32
  }
  func.func @transform_3(%arg0: i32, %arg1: i32, %arg2: i32) -> (i32, i32) {
    %c0_i32 = arith.constant 0 : i32
    return %arg0, %arg1 : i32, i32
  }
}

module attributes {stable_mosaic.version = 11 : i64} {
  func.func @_matmul_kernel(%arg0: i32, %arg1: i32, %arg2: i32, %arg3: memref<8x128xbf16, #tpu.memory_space<vmem>>, %arg4: memref<128x256xbf16, #tpu.memory_space<vmem>>, %arg5: memref<1x256xf32, #tpu.memory_space<vmem>>, %arg6: memref<8x256xbf16, #tpu.memory_space<vmem>>, %arg7: memref<8x256xf32, #tpu.memory_space<vmem>>) attributes {dimension_semantics = [#tpu.dimension_semantics<parallel>, #tpu.dimension_semantics<parallel>, #tpu.dimension_semantics<arbitrary>], iteration_bounds = array<i64: 1, 1, 1>, scalar_prefetch = 0 : i64, scratch_operands = 1 : i64, tpu.core_type = #tpu.core_type<tc>, window_params = [{transform_indices = @transform_0, window_bounds = array<i64: 8, 128>}, {transform_indices = @transform_1, window_bounds = array<i64: 128, 256>}, {transform_indices = @transform_2, window_bounds = array<i64: 1, 256>}, {transform_indices = @transform_3, window_bounds = array<i64: 8, 256>}]} {
    %c0_i32 = arith.constant 0 : i32
    %0 = arith.cmpi eq, %arg2, %c0_i32 : i32
    %1 = arith.extui %0 : i1 to i32
    %c0_i32_0 = arith.constant 0 : i32
    %2 = arith.cmpi ne, %1, %c0_i32_0 : i32
    scf.if %2 {
      %cst_10 = arith.constant 0.000000e+00 : f32
      %12 = vector.broadcast %cst_10 : f32 to vector<8x256xf32>
      %c0_11 = arith.constant 0 : index
      %c0_12 = arith.constant 0 : index
      %13 = vector.load %arg7[%c0_11, %c0_12] : memref<8x256xf32, #tpu.memory_space<vmem>>, vector<8x256xf32>
      tpu.vector_store %arg7[%c0_11, %c0_12], %12 {strides = array<i32>} : memref<8x256xf32, #tpu.memory_space<vmem>>, vector<8x256xf32>,
    } else {
    }
    %c0 = arith.constant 0 : index
    %c0_1 = arith.constant 0 : index
    %3 = vector.load %arg7[%c0, %c0_1] : memref<8x256xf32, #tpu.memory_space<vmem>>, vector<8x256xf32>
    %c0_2 = arith.constant 0 : index
    %c0_3 = arith.constant 0 : index
    %4 = vector.load %arg3[%c0_2, %c0_3] : memref<8x128xbf16, #tpu.memory_space<vmem>>, vector<8x128xbf16>
    %c0_4 = arith.constant 0 : index
    %c0_5 = arith.constant 0 : index
    %5 = vector.load %arg4[%c0_4, %c0_5] : memref<128x256xbf16, #tpu.memory_space<vmem>>, vector<128x256xbf16>
    %cst = arith.constant dense<0.000000e+00> : vector<8x256xf32>
    %6 = tpu.matmul %4, %5, %cst {dimension_numbers = #tpu.dot_dimension_numbers<[1], [0], [0], [1], [0, 0, 1, 1], [], []>} : vector<8x128xbf16>, vector<128x256xbf16>, vector<8x256xf32> -> vector<8x256xf32>
    %7 = arith.addf %3, %6 : vector<8x256xf32>
    %c0_6 = arith.constant 0 : index
    %c0_7 = arith.constant 0 : index
    %8 = vector.load %arg7[%c0_6, %c0_7] : memref<8x256xf32, #tpu.memory_space<vmem>>, vector<8x256xf32>
    tpu.vector_store %arg7[%c0_6, %c0_7], %7 {strides = array<i32>} : memref<8x256xf32, #tpu.memory_space<vmem>>, vector<8x256xf32>,
    %c0_i32_8 = arith.constant 0 : i32
    %9 = arith.cmpi eq, %arg2, %c0_i32_8 : i32
    %10 = arith.extui %9 : i1 to i32
    %c0_i32_9 = arith.constant 0 : i32
    %11 = arith.cmpi ne, %10, %c0_i32_9 : i32
    scf.if %11 {
      %c0_10 = arith.constant 0 : index
      %c0_11 = arith.constant 0 : index
      %12 = vector.load %arg7[%c0_10, %c0_11] : memref<8x256xf32, #tpu.memory_space<vmem>>, vector<8x256xf32>
      %c0_12 = arith.constant 0 : index
      %c0_13 = arith.constant 0 : index
      %13 = vector.load %arg5[%c0_12, %c0_13] : memref<1x256xf32, #tpu.memory_space<vmem>>, vector<1x256xf32>
      %14 = vector.broadcast %13 : vector<1x256xf32> to vector<8x256xf32>
      %15 = arith.addf %12, %14 : vector<8x256xf32>
      %16 = arith.truncf %15 : vector<8x256xf32> to vector<8x256xbf16>
      %c0_14 = arith.constant 0 : index
      %c0_15 = arith.constant 0 : index
      %17 = vector.load %arg6[%c0_14, %c0_15] : memref<8x256xbf16, #tpu.memory_space<vmem>>, vector<8x256xbf16>
      tpu.vector_store %arg6[%c0_14, %c0_15], %16 {strides = array<i32>} : memref<8x256xbf16, #tpu.memory_space<vmem>>, vector<8x256xbf16>,
    } else {
    }
    return
  }
  func.func @transform_0(%arg0: i32, %arg1: i32, %arg2: i32) -> (i32, i32) {
    %c0_i32 = arith.constant 0 : i32
    return %arg0, %arg2 : i32, i32
  }
  func.func @transform_1(%arg0: i32, %arg1: i32, %arg2: i32) -> (i32, i32) {
    %c0_i32 = arith.constant 0 : i32
    return %arg2, %arg1 : i32, i32
  }
  func.func @transform_2(%arg0: i32, %arg1: i32, %arg2: i32) -> (i32, i32) {
    %c0_i32 = arith.constant 0 : i32
    %c0_i32_0 = arith.constant 0 : i32
    return %c0_i32, %arg1 : i32, i32
  }
  func.func @transform_3(%arg0: i32, %arg1: i32, %arg2: i32) -> (i32, i32) {
    %c0_i32 = arith.constant 0 : i32
    return %arg0, %arg1 : i32, i32
  }
}

module attributes {stable_mosaic.version = 11 : i64} {
  func.func @_matmul_kernel(%arg0: i32, %arg1: i32, %arg2: i32, %arg3: memref<8x384xbf16, #tpu.memory_space<vmem>>, %arg4: memref<384x256xbf16, #tpu.memory_space<vmem>>, %arg5: memref<1x256xf32, #tpu.memory_space<vmem>>, %arg6: memref<8x256xbf16, #tpu.memory_space<vmem>>, %arg7: memref<8x256xbf16, #tpu.memory_space<vmem>>, %arg8: memref<8x256xf32, #tpu.memory_space<vmem>>) attributes {dimension_semantics = [#tpu.dimension_semantics<parallel>, #tpu.dimension_semantics<parallel>, #tpu.dimension_semantics<arbitrary>], iteration_bounds = array<i64: 1, 1, 6>, scalar_prefetch = 0 : i64, scratch_operands = 1 : i64, tpu.core_type = #tpu.core_type<tc>, window_params = [{transform_indices = @transform_0, window_bounds = array<i64: 8, 384>}, {transform_indices = @transform_1, window_bounds = array<i64: 384, 256>}, {transform_indices = @transform_2, window_bounds = array<i64: 1, 256>}, {transform_indices = @transform_3, window_bounds = array<i64: 8, 256>}, {transform_indices = @transform_4, window_bounds = array<i64: 8, 256>}]} {
    %c0_i32 = arith.constant 0 : i32
    %0 = arith.cmpi eq, %arg2, %c0_i32 : i32
    %1 = arith.extui %0 : i1 to i32
    %c0_i32_0 = arith.constant 0 : i32
    %2 = arith.cmpi ne, %1, %c0_i32_0 : i32
    scf.if %2 {
      %cst_9 = arith.constant 0.000000e+00 : f32
      %12 = vector.broadcast %cst_9 : f32 to vector<8x256xf32>
      %c0_10 = arith.constant 0 : index
      %c0_11 = arith.constant 0 : index
      %13 = vector.load %arg8[%c0_10, %c0_11] : memref<8x256xf32, #tpu.memory_space<vmem>>, vector<8x256xf32>
      tpu.vector_store %arg8[%c0_10, %c0_11], %12 {strides = array<i32>} : memref<8x256xf32, #tpu.memory_space<vmem>>, vector<8x256xf32>,
    } else {
    }
    %c0 = arith.constant 0 : index
    %c0_1 = arith.constant 0 : index
    %3 = vector.load %arg8[%c0, %c0_1] : memref<8x256xf32, #tpu.memory_space<vmem>>, vector<8x256xf32>
    %c0_2 = arith.constant 0 : index
    %c0_3 = arith.constant 0 : index
    %4 = vector.load %arg3[%c0_2, %c0_3] : memref<8x384xbf16, #tpu.memory_space<vmem>>, vector<8x384xbf16>
    %c0_4 = arith.constant 0 : index
    %c0_5 = arith.constant 0 : index
    %5 = vector.load %arg4[%c0_4, %c0_5] : memref<384x256xbf16, #tpu.memory_space<vmem>>, vector<384x256xbf16>
    %cst = arith.constant dense<0.000000e+00> : vector<8x256xf32>
    %6 = tpu.matmul %4, %5, %cst {dimension_numbers = #tpu.dot_dimension_numbers<[1], [0], [0], [1], [0, 0, 1, 1], [], []>} : vector<8x384xbf16>, vector<384x256xbf16>, vector<8x256xf32> -> vector<8x256xf32>
    %7 = arith.addf %3, %6 : vector<8x256xf32>
    %c0_6 = arith.constant 0 : index
    %c0_7 = arith.constant 0 : index
    %8 = vector.load %arg8[%c0_6, %c0_7] : memref<8x256xf32, #tpu.memory_space<vmem>>, vector<8x256xf32>
    tpu.vector_store %arg8[%c0_6, %c0_7], %7 {strides = array<i32>} : memref<8x256xf32, #tpu.memory_space<vmem>>, vector<8x256xf32>,
    %c5_i32 = arith.constant 5 : i32
    %9 = arith.cmpi eq, %arg2, %c5_i32 : i32
    %10 = arith.extui %9 : i1 to i32
    %c0_i32_8 = arith.constant 0 : i32
    %11 = arith.cmpi ne, %10, %c0_i32_8 : i32
    scf.if %11 {
      %c0_9 = arith.constant 0 : index
      %c0_10 = arith.constant 0 : index
      %12 = vector.load %arg8[%c0_9, %c0_10] : memref<8x256xf32, #tpu.memory_space<vmem>>, vector<8x256xf32>
      %c0_11 = arith.constant 0 : index
      %c0_12 = arith.constant 0 : index
      %13 = vector.load %arg5[%c0_11, %c0_12] : memref<1x256xf32, #tpu.memory_space<vmem>>, vector<1x256xf32>
      %14 = vector.broadcast %13 : vector<1x256xf32> to vector<8x256xf32>
      %15 = arith.addf %12, %14 : vector<8x256xf32>
      %c0_13 = arith.constant 0 : index
      %c0_14 = arith.constant 0 : index
      %16 = vector.load %arg6[%c0_13, %c0_14] : memref<8x256xbf16, #tpu.memory_space<vmem>>, vector<8x256xbf16>
      %17 = arith.extf %16 : vector<8x256xbf16> to vector<8x256xf32>
      %18 = arith.addf %15, %17 : vector<8x256xf32>
      %cst_15 = arith.constant 0.000000e+00 : f32
      %19 = vector.broadcast %cst_15 : f32 to vector<8x256xf32>
      %20 = arith.maximumf %18, %19 : vector<8x256xf32>
      %21 = arith.truncf %20 : vector<8x256xf32> to vector<8x256xbf16>
      %c0_16 = arith.constant 0 : index
      %c0_17 = arith.constant 0 : index
      %22 = vector.load %arg7[%c0_16, %c0_17] : memref<8x256xbf16, #tpu.memory_space<vmem>>, vector<8x256xbf16>
      tpu.vector_store %arg7[%c0_16, %c0_17], %21 {strides = array<i32>} : memref<8x256xbf16, #tpu.memory_space<vmem>>, vector<8x256xbf16>,
    } else {
    }
    return
  }
  func.func @transform_0(%arg0: i32, %arg1: i32, %arg2: i32) -> (i32, i32) {
    %c0_i32 = arith.constant 0 : i32
    return %arg0, %arg2 : i32, i32
  }
  func.func @transform_1(%arg0: i32, %arg1: i32, %arg2: i32) -> (i32, i32) {
    %c0_i32 = arith.constant 0 : i32
    return %arg2, %arg1 : i32, i32
  }
  func.func @transform_2(%arg0: i32, %arg1: i32, %arg2: i32) -> (i32, i32) {
    %c0_i32 = arith.constant 0 : i32
    %c0_i32_0 = arith.constant 0 : i32
    return %c0_i32, %arg1 : i32, i32
  }
  func.func @transform_3(%arg0: i32, %arg1: i32, %arg2: i32) -> (i32, i32) {
    %c0_i32 = arith.constant 0 : i32
    return %arg0, %arg1 : i32, i32
  }
  func.func @transform_4(%arg0: i32, %arg1: i32, %arg2: i32) -> (i32, i32) {
    %c0_i32 = arith.constant 0 : i32
    return %arg0, %arg1 : i32, i32
  }
}

module attributes {stable_mosaic.version = 11 : i64} {
  func.func @_matmul_kernel(%arg0: i32, %arg1: i32, %arg2: i32, %arg3: memref<8x384xbf16, #tpu.memory_space<vmem>>, %arg4: memref<384x256xbf16, #tpu.memory_space<vmem>>, %arg5: memref<1x256xf32, #tpu.memory_space<vmem>>, %arg6: memref<8x256xbf16, #tpu.memory_space<vmem>>, %arg7: memref<8x256xf32, #tpu.memory_space<vmem>>) attributes {dimension_semantics = [#tpu.dimension_semantics<parallel>, #tpu.dimension_semantics<parallel>, #tpu.dimension_semantics<arbitrary>], iteration_bounds = array<i64: 1, 1, 6>, scalar_prefetch = 0 : i64, scratch_operands = 1 : i64, tpu.core_type = #tpu.core_type<tc>, window_params = [{transform_indices = @transform_0, window_bounds = array<i64: 8, 384>}, {transform_indices = @transform_1, window_bounds = array<i64: 384, 256>}, {transform_indices = @transform_2, window_bounds = array<i64: 1, 256>}, {transform_indices = @transform_3, window_bounds = array<i64: 8, 256>}]} {
    %c0_i32 = arith.constant 0 : i32
    %0 = arith.cmpi eq, %arg2, %c0_i32 : i32
    %1 = arith.extui %0 : i1 to i32
    %c0_i32_0 = arith.constant 0 : i32
    %2 = arith.cmpi ne, %1, %c0_i32_0 : i32
    scf.if %2 {
      %cst_9 = arith.constant 0.000000e+00 : f32
      %12 = vector.broadcast %cst_9 : f32 to vector<8x256xf32>
      %c0_10 = arith.constant 0 : index
      %c0_11 = arith.constant 0 : index
      %13 = vector.load %arg7[%c0_10, %c0_11] : memref<8x256xf32, #tpu.memory_space<vmem>>, vector<8x256xf32>
      tpu.vector_store %arg7[%c0_10, %c0_11], %12 {strides = array<i32>} : memref<8x256xf32, #tpu.memory_space<vmem>>, vector<8x256xf32>,
    } else {
    }
    %c0 = arith.constant 0 : index
    %c0_1 = arith.constant 0 : index
    %3 = vector.load %arg7[%c0, %c0_1] : memref<8x256xf32, #tpu.memory_space<vmem>>, vector<8x256xf32>
    %c0_2 = arith.constant 0 : index
    %c0_3 = arith.constant 0 : index
    %4 = vector.load %arg3[%c0_2, %c0_3] : memref<8x384xbf16, #tpu.memory_space<vmem>>, vector<8x384xbf16>
    %c0_4 = arith.constant 0 : index
    %c0_5 = arith.constant 0 : index
    %5 = vector.load %arg4[%c0_4, %c0_5] : memref<384x256xbf16, #tpu.memory_space<vmem>>, vector<384x256xbf16>
    %cst = arith.constant dense<0.000000e+00> : vector<8x256xf32>
    %6 = tpu.matmul %4, %5, %cst {dimension_numbers = #tpu.dot_dimension_numbers<[1], [0], [0], [1], [0, 0, 1, 1], [], []>} : vector<8x384xbf16>, vector<384x256xbf16>, vector<8x256xf32> -> vector<8x256xf32>
    %7 = arith.addf %3, %6 : vector<8x256xf32>
    %c0_6 = arith.constant 0 : index
    %c0_7 = arith.constant 0 : index
    %8 = vector.load %arg7[%c0_6, %c0_7] : memref<8x256xf32, #tpu.memory_space<vmem>>, vector<8x256xf32>
    tpu.vector_store %arg7[%c0_6, %c0_7], %7 {strides = array<i32>} : memref<8x256xf32, #tpu.memory_space<vmem>>, vector<8x256xf32>,
    %c5_i32 = arith.constant 5 : i32
    %9 = arith.cmpi eq, %arg2, %c5_i32 : i32
    %10 = arith.extui %9 : i1 to i32
    %c0_i32_8 = arith.constant 0 : i32
    %11 = arith.cmpi ne, %10, %c0_i32_8 : i32
    scf.if %11 {
      %c0_9 = arith.constant 0 : index
      %c0_10 = arith.constant 0 : index
      %12 = vector.load %arg7[%c0_9, %c0_10] : memref<8x256xf32, #tpu.memory_space<vmem>>, vector<8x256xf32>
      %c0_11 = arith.constant 0 : index
      %c0_12 = arith.constant 0 : index
      %13 = vector.load %arg5[%c0_11, %c0_12] : memref<1x256xf32, #tpu.memory_space<vmem>>, vector<1x256xf32>
      %14 = vector.broadcast %13 : vector<1x256xf32> to vector<8x256xf32>
      %15 = arith.addf %12, %14 : vector<8x256xf32>
      %cst_13 = arith.constant 0.000000e+00 : f32
      %16 = vector.broadcast %cst_13 : f32 to vector<8x256xf32>
      %17 = arith.maximumf %15, %16 : vector<8x256xf32>
      %18 = arith.truncf %17 : vector<8x256xf32> to vector<8x256xbf16>
      %c0_14 = arith.constant 0 : index
      %c0_15 = arith.constant 0 : index
      %19 = vector.load %arg6[%c0_14, %c0_15] : memref<8x256xbf16, #tpu.memory_space<vmem>>, vector<8x256xbf16>
      tpu.vector_store %arg6[%c0_14, %c0_15], %18 {strides = array<i32>} : memref<8x256xbf16, #tpu.memory_space<vmem>>, vector<8x256xbf16>,
    } else {
    }
    return
  }
  func.func @transform_0(%arg0: i32, %arg1: i32, %arg2: i32) -> (i32, i32) {
    %c0_i32 = arith.constant 0 : i32
    return %arg0, %arg2 : i32, i32
  }
  func.func @transform_1(%arg0: i32, %arg1: i32, %arg2: i32) -> (i32, i32) {
    %c0_i32 = arith.constant 0 : i32
    return %arg2, %arg1 : i32, i32
  }
  func.func @transform_2(%arg0: i32, %arg1: i32, %arg2: i32) -> (i32, i32) {
    %c0_i32 = arith.constant 0 : i32
    %c0_i32_0 = arith.constant 0 : i32
    return %c0_i32, %arg1 : i32, i32
  }
  func.func @transform_3(%arg0: i32, %arg1: i32, %arg2: i32) -> (i32, i32) {
    %c0_i32 = arith.constant 0 : i32
    return %arg0, %arg1 : i32, i32
  }
}

module attributes {stable_mosaic.version = 11 : i64} {
  func.func @_matmul_kernel(%arg0: i32, %arg1: i32, %arg2: i32, %arg3: memref<2x384xbf16, #tpu.memory_space<vmem>>, %arg4: memref<384x512xbf16, #tpu.memory_space<vmem>>, %arg5: memref<1x512xf32, #tpu.memory_space<vmem>>, %arg6: memref<2x512xbf16, #tpu.memory_space<vmem>>, %arg7: memref<2x512xf32, #tpu.memory_space<vmem>>) attributes {dimension_semantics = [#tpu.dimension_semantics<parallel>, #tpu.dimension_semantics<parallel>, #tpu.dimension_semantics<arbitrary>], iteration_bounds = array<i64: 1, 1, 6>, scalar_prefetch = 0 : i64, scratch_operands = 1 : i64, tpu.core_type = #tpu.core_type<tc>, window_params = [{transform_indices = @transform_0, window_bounds = array<i64: 2, 384>}, {transform_indices = @transform_1, window_bounds = array<i64: 384, 512>}, {transform_indices = @transform_2, window_bounds = array<i64: 1, 512>}, {transform_indices = @transform_3, window_bounds = array<i64: 2, 512>}]} {
    %c0_i32 = arith.constant 0 : i32
    %0 = arith.cmpi eq, %arg2, %c0_i32 : i32
    %1 = arith.extui %0 : i1 to i32
    %c0_i32_0 = arith.constant 0 : i32
    %2 = arith.cmpi ne, %1, %c0_i32_0 : i32
    scf.if %2 {
      %cst_9 = arith.constant 0.000000e+00 : f32
      %12 = vector.broadcast %cst_9 : f32 to vector<2x512xf32>
      %c0_10 = arith.constant 0 : index
      %c0_11 = arith.constant 0 : index
      %13 = vector.load %arg7[%c0_10, %c0_11] : memref<2x512xf32, #tpu.memory_space<vmem>>, vector<2x512xf32>
      tpu.vector_store %arg7[%c0_10, %c0_11], %12 {strides = array<i32>} : memref<2x512xf32, #tpu.memory_space<vmem>>, vector<2x512xf32>,
    } else {
    }
    %c0 = arith.constant 0 : index
    %c0_1 = arith.constant 0 : index
    %3 = vector.load %arg7[%c0, %c0_1] : memref<2x512xf32, #tpu.memory_space<vmem>>, vector<2x512xf32>
    %c0_2 = arith.constant 0 : index
    %c0_3 = arith.constant 0 : index
    %4 = vector.load %arg3[%c0_2, %c0_3] : memref<2x384xbf16, #tpu.memory_space<vmem>>, vector<2x384xbf16>
    %c0_4 = arith.constant 0 : index
    %c0_5 = arith.constant 0 : index
    %5 = vector.load %arg4[%c0_4, %c0_5] : memref<384x512xbf16, #tpu.memory_space<vmem>>, vector<384x512xbf16>
    %cst = arith.constant dense<0.000000e+00> : vector<2x512xf32>
    %6 = tpu.matmul %4, %5, %cst {dimension_numbers = #tpu.dot_dimension_numbers<[1], [0], [0], [1], [0, 0, 1, 1], [], []>} : vector<2x384xbf16>, vector<384x512xbf16>, vector<2x512xf32> -> vector<2x512xf32>
    %7 = arith.addf %3, %6 : vector<2x512xf32>
    %c0_6 = arith.constant 0 : index
    %c0_7 = arith.constant 0 : index
    %8 = vector.load %arg7[%c0_6, %c0_7] : memref<2x512xf32, #tpu.memory_space<vmem>>, vector<2x512xf32>
    tpu.vector_store %arg7[%c0_6, %c0_7], %7 {strides = array<i32>} : memref<2x512xf32, #tpu.memory_space<vmem>>, vector<2x512xf32>,
    %c5_i32 = arith.constant 5 : i32
    %9 = arith.cmpi eq, %arg2, %c5_i32 : i32
    %10 = arith.extui %9 : i1 to i32
    %c0_i32_8 = arith.constant 0 : i32
    %11 = arith.cmpi ne, %10, %c0_i32_8 : i32
    scf.if %11 {
      %c0_9 = arith.constant 0 : index
      %c0_10 = arith.constant 0 : index
      %12 = vector.load %arg7[%c0_9, %c0_10] : memref<2x512xf32, #tpu.memory_space<vmem>>, vector<2x512xf32>
      %c0_11 = arith.constant 0 : index
      %c0_12 = arith.constant 0 : index
      %13 = vector.load %arg5[%c0_11, %c0_12] : memref<1x512xf32, #tpu.memory_space<vmem>>, vector<1x512xf32>
      %14 = vector.broadcast %13 : vector<1x512xf32> to vector<2x512xf32>
      %15 = arith.addf %12, %14 : vector<2x512xf32>
      %cst_13 = arith.constant 0.000000e+00 : f32
      %16 = vector.broadcast %cst_13 : f32 to vector<2x512xf32>
      %17 = arith.maximumf %15, %16 : vector<2x512xf32>
      %18 = arith.truncf %17 : vector<2x512xf32> to vector<2x512xbf16>
      %c0_14 = arith.constant 0 : index
      %c0_15 = arith.constant 0 : index
      %19 = vector.load %arg6[%c0_14, %c0_15] : memref<2x512xbf16, #tpu.memory_space<vmem>>, vector<2x512xbf16>
      tpu.vector_store %arg6[%c0_14, %c0_15], %18 {strides = array<i32>} : memref<2x512xbf16, #tpu.memory_space<vmem>>, vector<2x512xbf16>,
    } else {
    }
    return
  }
  func.func @transform_0(%arg0: i32, %arg1: i32, %arg2: i32) -> (i32, i32) {
    %c0_i32 = arith.constant 0 : i32
    return %arg0, %arg2 : i32, i32
  }
  func.func @transform_1(%arg0: i32, %arg1: i32, %arg2: i32) -> (i32, i32) {
    %c0_i32 = arith.constant 0 : i32
    return %arg2, %arg1 : i32, i32
  }
  func.func @transform_2(%arg0: i32, %arg1: i32, %arg2: i32) -> (i32, i32) {
    %c0_i32 = arith.constant 0 : i32
    %c0_i32_0 = arith.constant 0 : i32
    return %c0_i32, %arg1 : i32, i32
  }
  func.func @transform_3(%arg0: i32, %arg1: i32, %arg2: i32) -> (i32, i32) {
    %c0_i32 = arith.constant 0 : i32
    return %arg0, %arg1 : i32, i32
  }
}

module attributes {stable_mosaic.version = 11 : i64} {
  func.func @_matmul_kernel(%arg0: i32, %arg1: i32, %arg2: i32, %arg3: memref<2x256xbf16, #tpu.memory_space<vmem>>, %arg4: memref<256x512xbf16, #tpu.memory_space<vmem>>, %arg5: memref<1x512xf32, #tpu.memory_space<vmem>>, %arg6: memref<2x512xbf16, #tpu.memory_space<vmem>>, %arg7: memref<2x512xf32, #tpu.memory_space<vmem>>) attributes {dimension_semantics = [#tpu.dimension_semantics<parallel>, #tpu.dimension_semantics<parallel>, #tpu.dimension_semantics<arbitrary>], iteration_bounds = array<i64: 1, 1, 1>, scalar_prefetch = 0 : i64, scratch_operands = 1 : i64, tpu.core_type = #tpu.core_type<tc>, window_params = [{transform_indices = @transform_0, window_bounds = array<i64: 2, 256>}, {transform_indices = @transform_1, window_bounds = array<i64: 256, 512>}, {transform_indices = @transform_2, window_bounds = array<i64: 1, 512>}, {transform_indices = @transform_3, window_bounds = array<i64: 2, 512>}]} {
    %c0_i32 = arith.constant 0 : i32
    %0 = arith.cmpi eq, %arg2, %c0_i32 : i32
    %1 = arith.extui %0 : i1 to i32
    %c0_i32_0 = arith.constant 0 : i32
    %2 = arith.cmpi ne, %1, %c0_i32_0 : i32
    scf.if %2 {
      %cst_10 = arith.constant 0.000000e+00 : f32
      %12 = vector.broadcast %cst_10 : f32 to vector<2x512xf32>
      %c0_11 = arith.constant 0 : index
      %c0_12 = arith.constant 0 : index
      %13 = vector.load %arg7[%c0_11, %c0_12] : memref<2x512xf32, #tpu.memory_space<vmem>>, vector<2x512xf32>
      tpu.vector_store %arg7[%c0_11, %c0_12], %12 {strides = array<i32>} : memref<2x512xf32, #tpu.memory_space<vmem>>, vector<2x512xf32>,
    } else {
    }
    %c0 = arith.constant 0 : index
    %c0_1 = arith.constant 0 : index
    %3 = vector.load %arg7[%c0, %c0_1] : memref<2x512xf32, #tpu.memory_space<vmem>>, vector<2x512xf32>
    %c0_2 = arith.constant 0 : index
    %c0_3 = arith.constant 0 : index
    %4 = vector.load %arg3[%c0_2, %c0_3] : memref<2x256xbf16, #tpu.memory_space<vmem>>, vector<2x256xbf16>
    %c0_4 = arith.constant 0 : index
    %c0_5 = arith.constant 0 : index
    %5 = vector.load %arg4[%c0_4, %c0_5] : memref<256x512xbf16, #tpu.memory_space<vmem>>, vector<256x512xbf16>
    %cst = arith.constant dense<0.000000e+00> : vector<2x512xf32>
    %6 = tpu.matmul %4, %5, %cst {dimension_numbers = #tpu.dot_dimension_numbers<[1], [0], [0], [1], [0, 0, 1, 1], [], []>} : vector<2x256xbf16>, vector<256x512xbf16>, vector<2x512xf32> -> vector<2x512xf32>
    %7 = arith.addf %3, %6 : vector<2x512xf32>
    %c0_6 = arith.constant 0 : index
    %c0_7 = arith.constant 0 : index
    %8 = vector.load %arg7[%c0_6, %c0_7] : memref<2x512xf32, #tpu.memory_space<vmem>>, vector<2x512xf32>
    tpu.vector_store %arg7[%c0_6, %c0_7], %7 {strides = array<i32>} : memref<2x512xf32, #tpu.memory_space<vmem>>, vector<2x512xf32>,
    %c0_i32_8 = arith.constant 0 : i32
    %9 = arith.cmpi eq, %arg2, %c0_i32_8 : i32
    %10 = arith.extui %9 : i1 to i32
    %c0_i32_9 = arith.constant 0 : i32
    %11 = arith.cmpi ne, %10, %c0_i32_9 : i32
    scf.if %11 {
      %c0_10 = arith.constant 0 : index
      %c0_11 = arith.constant 0 : index
      %12 = vector.load %arg7[%c0_10, %c0_11] : memref<2x512xf32, #tpu.memory_space<vmem>>, vector<2x512xf32>
      %c0_12 = arith.constant 0 : index
      %c0_13 = arith.constant 0 : index
      %13 = vector.load %arg5[%c0_12, %c0_13] : memref<1x512xf32, #tpu.memory_space<vmem>>, vector<1x512xf32>
      %14 = vector.broadcast %13 : vector<1x512xf32> to vector<2x512xf32>
      %15 = arith.addf %12, %14 : vector<2x512xf32>
      %16 = arith.truncf %15 : vector<2x512xf32> to vector<2x512xbf16>
      %c0_14 = arith.constant 0 : index
      %c0_15 = arith.constant 0 : index
      %17 = vector.load %arg6[%c0_14, %c0_15] : memref<2x512xbf16, #tpu.memory_space<vmem>>, vector<2x512xbf16>
      tpu.vector_store %arg6[%c0_14, %c0_15], %16 {strides = array<i32>} : memref<2x512xbf16, #tpu.memory_space<vmem>>, vector<2x512xbf16>,
    } else {
    }
    return
  }
  func.func @transform_0(%arg0: i32, %arg1: i32, %arg2: i32) -> (i32, i32) {
    %c0_i32 = arith.constant 0 : i32
    return %arg0, %arg2 : i32, i32
  }
  func.func @transform_1(%arg0: i32, %arg1: i32, %arg2: i32) -> (i32, i32) {
    %c0_i32 = arith.constant 0 : i32
    return %arg2, %arg1 : i32, i32
  }
  func.func @transform_2(%arg0: i32, %arg1: i32, %arg2: i32) -> (i32, i32) {
    %c0_i32 = arith.constant 0 : i32
    %c0_i32_0 = arith.constant 0 : i32
    return %c0_i32, %arg1 : i32, i32
  }
  func.func @transform_3(%arg0: i32, %arg1: i32, %arg2: i32) -> (i32, i32) {
    %c0_i32 = arith.constant 0 : i32
    return %arg0, %arg1 : i32, i32
  }
}

module attributes {stable_mosaic.version = 11 : i64} {
  func.func @_matmul_kernel(%arg0: i32, %arg1: i32, %arg2: i32, %arg3: memref<2x512xbf16, #tpu.memory_space<vmem>>, %arg4: memref<512x512xbf16, #tpu.memory_space<vmem>>, %arg5: memref<1x512xf32, #tpu.memory_space<vmem>>, %arg6: memref<2x512xbf16, #tpu.memory_space<vmem>>, %arg7: memref<2x512xbf16, #tpu.memory_space<vmem>>, %arg8: memref<2x512xf32, #tpu.memory_space<vmem>>) attributes {dimension_semantics = [#tpu.dimension_semantics<parallel>, #tpu.dimension_semantics<parallel>, #tpu.dimension_semantics<arbitrary>], iteration_bounds = array<i64: 1, 1, 9>, scalar_prefetch = 0 : i64, scratch_operands = 1 : i64, tpu.core_type = #tpu.core_type<tc>, window_params = [{transform_indices = @transform_0, window_bounds = array<i64: 2, 512>}, {transform_indices = @transform_1, window_bounds = array<i64: 512, 512>}, {transform_indices = @transform_2, window_bounds = array<i64: 1, 512>}, {transform_indices = @transform_3, window_bounds = array<i64: 2, 512>}, {transform_indices = @transform_4, window_bounds = array<i64: 2, 512>}]} {
    %c0_i32 = arith.constant 0 : i32
    %0 = arith.cmpi eq, %arg2, %c0_i32 : i32
    %1 = arith.extui %0 : i1 to i32
    %c0_i32_0 = arith.constant 0 : i32
    %2 = arith.cmpi ne, %1, %c0_i32_0 : i32
    scf.if %2 {
      %cst_9 = arith.constant 0.000000e+00 : f32
      %12 = vector.broadcast %cst_9 : f32 to vector<2x512xf32>
      %c0_10 = arith.constant 0 : index
      %c0_11 = arith.constant 0 : index
      %13 = vector.load %arg8[%c0_10, %c0_11] : memref<2x512xf32, #tpu.memory_space<vmem>>, vector<2x512xf32>
      tpu.vector_store %arg8[%c0_10, %c0_11], %12 {strides = array<i32>} : memref<2x512xf32, #tpu.memory_space<vmem>>, vector<2x512xf32>,
    } else {
    }
    %c0 = arith.constant 0 : index
    %c0_1 = arith.constant 0 : index
    %3 = vector.load %arg8[%c0, %c0_1] : memref<2x512xf32, #tpu.memory_space<vmem>>, vector<2x512xf32>
    %c0_2 = arith.constant 0 : index
    %c0_3 = arith.constant 0 : index
    %4 = vector.load %arg3[%c0_2, %c0_3] : memref<2x512xbf16, #tpu.memory_space<vmem>>, vector<2x512xbf16>
    %c0_4 = arith.constant 0 : index
    %c0_5 = arith.constant 0 : index
    %5 = vector.load %arg4[%c0_4, %c0_5] : memref<512x512xbf16, #tpu.memory_space<vmem>>, vector<512x512xbf16>
    %cst = arith.constant dense<0.000000e+00> : vector<2x512xf32>
    %6 = tpu.matmul %4, %5, %cst {dimension_numbers = #tpu.dot_dimension_numbers<[1], [0], [0], [1], [0, 0, 1, 1], [], []>} : vector<2x512xbf16>, vector<512x512xbf16>, vector<2x512xf32> -> vector<2x512xf32>
    %7 = arith.addf %3, %6 : vector<2x512xf32>
    %c0_6 = arith.constant 0 : index
    %c0_7 = arith.constant 0 : index
    %8 = vector.load %arg8[%c0_6, %c0_7] : memref<2x512xf32, #tpu.memory_space<vmem>>, vector<2x512xf32>
    tpu.vector_store %arg8[%c0_6, %c0_7], %7 {strides = array<i32>} : memref<2x512xf32, #tpu.memory_space<vmem>>, vector<2x512xf32>,
    %c8_i32 = arith.constant 8 : i32
    %9 = arith.cmpi eq, %arg2, %c8_i32 : i32
    %10 = arith.extui %9 : i1 to i32
    %c0_i32_8 = arith.constant 0 : i32
    %11 = arith.cmpi ne, %10, %c0_i32_8 : i32
    scf.if %11 {
      %c0_9 = arith.constant 0 : index
      %c0_10 = arith.constant 0 : index
      %12 = vector.load %arg8[%c0_9, %c0_10] : memref<2x512xf32, #tpu.memory_space<vmem>>, vector<2x512xf32>
      %c0_11 = arith.constant 0 : index
      %c0_12 = arith.constant 0 : index
      %13 = vector.load %arg5[%c0_11, %c0_12] : memref<1x512xf32, #tpu.memory_space<vmem>>, vector<1x512xf32>
      %14 = vector.broadcast %13 : vector<1x512xf32> to vector<2x512xf32>
      %15 = arith.addf %12, %14 : vector<2x512xf32>
      %c0_13 = arith.constant 0 : index
      %c0_14 = arith.constant 0 : index
      %16 = vector.load %arg6[%c0_13, %c0_14] : memref<2x512xbf16, #tpu.memory_space<vmem>>, vector<2x512xbf16>
      %17 = arith.extf %16 : vector<2x512xbf16> to vector<2x512xf32>
      %18 = arith.addf %15, %17 : vector<2x512xf32>
      %cst_15 = arith.constant 0.000000e+00 : f32
      %19 = vector.broadcast %cst_15 : f32 to vector<2x512xf32>
      %20 = arith.maximumf %18, %19 : vector<2x512xf32>
      %21 = arith.truncf %20 : vector<2x512xf32> to vector<2x512xbf16>
      %c0_16 = arith.constant 0 : index
      %c0_17 = arith.constant 0 : index
      %22 = vector.load %arg7[%c0_16, %c0_17] : memref<2x512xbf16, #tpu.memory_space<vmem>>, vector<2x512xbf16>
      tpu.vector_store %arg7[%c0_16, %c0_17], %21 {strides = array<i32>} : memref<2x512xbf16, #tpu.memory_space<vmem>>, vector<2x512xbf16>,
    } else {
    }
    return
  }
  func.func @transform_0(%arg0: i32, %arg1: i32, %arg2: i32) -> (i32, i32) {
    %c0_i32 = arith.constant 0 : i32
    return %arg0, %arg2 : i32, i32
  }
  func.func @transform_1(%arg0: i32, %arg1: i32, %arg2: i32) -> (i32, i32) {
    %c0_i32 = arith.constant 0 : i32
    return %arg2, %arg1 : i32, i32
  }
  func.func @transform_2(%arg0: i32, %arg1: i32, %arg2: i32) -> (i32, i32) {
    %c0_i32 = arith.constant 0 : i32
    %c0_i32_0 = arith.constant 0 : i32
    return %c0_i32, %arg1 : i32, i32
  }
  func.func @transform_3(%arg0: i32, %arg1: i32, %arg2: i32) -> (i32, i32) {
    %c0_i32 = arith.constant 0 : i32
    return %arg0, %arg1 : i32, i32
  }
  func.func @transform_4(%arg0: i32, %arg1: i32, %arg2: i32) -> (i32, i32) {
    %c0_i32 = arith.constant 0 : i32
    return %arg0, %arg1 : i32, i32
  }
}

module attributes {stable_mosaic.version = 11 : i64} {
  func.func @_matmul_kernel(%arg0: i32, %arg1: i32, %arg2: i32, %arg3: memref<2x512xbf16, #tpu.memory_space<vmem>>, %arg4: memref<512x512xbf16, #tpu.memory_space<vmem>>, %arg5: memref<1x512xf32, #tpu.memory_space<vmem>>, %arg6: memref<2x512xbf16, #tpu.memory_space<vmem>>, %arg7: memref<2x512xf32, #tpu.memory_space<vmem>>) attributes {dimension_semantics = [#tpu.dimension_semantics<parallel>, #tpu.dimension_semantics<parallel>, #tpu.dimension_semantics<arbitrary>], iteration_bounds = array<i64: 1, 1, 9>, scalar_prefetch = 0 : i64, scratch_operands = 1 : i64, tpu.core_type = #tpu.core_type<tc>, window_params = [{transform_indices = @transform_0, window_bounds = array<i64: 2, 512>}, {transform_indices = @transform_1, window_bounds = array<i64: 512, 512>}, {transform_indices = @transform_2, window_bounds = array<i64: 1, 512>}, {transform_indices = @transform_3, window_bounds = array<i64: 2, 512>}]} {
    %c0_i32 = arith.constant 0 : i32
    %0 = arith.cmpi eq, %arg2, %c0_i32 : i32
    %1 = arith.extui %0 : i1 to i32
    %c0_i32_0 = arith.constant 0 : i32
    %2 = arith.cmpi ne, %1, %c0_i32_0 : i32
    scf.if %2 {
      %cst_9 = arith.constant 0.000000e+00 : f32
      %12 = vector.broadcast %cst_9 : f32 to vector<2x512xf32>
      %c0_10 = arith.constant 0 : index
      %c0_11 = arith.constant 0 : index
      %13 = vector.load %arg7[%c0_10, %c0_11] : memref<2x512xf32, #tpu.memory_space<vmem>>, vector<2x512xf32>
      tpu.vector_store %arg7[%c0_10, %c0_11], %12 {strides = array<i32>} : memref<2x512xf32, #tpu.memory_space<vmem>>, vector<2x512xf32>,
    } else {
    }
    %c0 = arith.constant 0 : index
    %c0_1 = arith.constant 0 : index
    %3 = vector.load %arg7[%c0, %c0_1] : memref<2x512xf32, #tpu.memory_space<vmem>>, vector<2x512xf32>
    %c0_2 = arith.constant 0 : index
    %c0_3 = arith.constant 0 : index
    %4 = vector.load %arg3[%c0_2, %c0_3] : memref<2x512xbf16, #tpu.memory_space<vmem>>, vector<2x512xbf16>
    %c0_4 = arith.constant 0 : index
    %c0_5 = arith.constant 0 : index
    %5 = vector.load %arg4[%c0_4, %c0_5] : memref<512x512xbf16, #tpu.memory_space<vmem>>, vector<512x512xbf16>
    %cst = arith.constant dense<0.000000e+00> : vector<2x512xf32>
    %6 = tpu.matmul %4, %5, %cst {dimension_numbers = #tpu.dot_dimension_numbers<[1], [0], [0], [1], [0, 0, 1, 1], [], []>} : vector<2x512xbf16>, vector<512x512xbf16>, vector<2x512xf32> -> vector<2x512xf32>
    %7 = arith.addf %3, %6 : vector<2x512xf32>
    %c0_6 = arith.constant 0 : index
    %c0_7 = arith.constant 0 : index
    %8 = vector.load %arg7[%c0_6, %c0_7] : memref<2x512xf32, #tpu.memory_space<vmem>>, vector<2x512xf32>
    tpu.vector_store %arg7[%c0_6, %c0_7], %7 {strides = array<i32>} : memref<2x512xf32, #tpu.memory_space<vmem>>, vector<2x512xf32>,
    %c8_i32 = arith.constant 8 : i32
    %9 = arith.cmpi eq, %arg2, %c8_i32 : i32
    %10 = arith.extui %9 : i1 to i32
    %c0_i32_8 = arith.constant 0 : i32
    %11 = arith.cmpi ne, %10, %c0_i32_8 : i32
    scf.if %11 {
      %c0_9 = arith.constant 0 : index
      %c0_10 = arith.constant 0 : index
      %12 = vector.load %arg7[%c0_9, %c0_10] : memref<2x512xf32, #tpu.memory_space<vmem>>, vector<2x512xf32>
      %c0_11 = arith.constant 0 : index
      %c0_12 = arith.constant 0 : index
      %13 = vector.load %arg5[%c0_11, %c0_12] : memref<1x512xf32, #tpu.memory_space<vmem>>, vector<1x512xf32>
      %14 = vector.broadcast %13 : vector<1x512xf32> to vector<2x512xf32>
      %15 = arith.addf %12, %14 : vector<2x512xf32>
      %cst_13 = arith.constant 0.000000e+00 : f32
      %16 = vector.broadcast %cst_13 : f32 to vector<2x512xf32>
      %17 = arith.maximumf %15, %16 : vector<2x512xf32>
      %18 = arith.truncf %17 : vector<2x512xf32> to vector<2x512xbf16>
      %c0_14 = arith.constant 0 : index
      %c0_15 = arith.constant 0 : index
      %19 = vector.load %arg6[%c0_14, %c0_15] : memref<2x512xbf16, #tpu.memory_space<vmem>>, vector<2x512xbf16>
      tpu.vector_store %arg6[%c0_14, %c0_15], %18 {strides = array<i32>} : memref<2x512xbf16, #tpu.memory_space<vmem>>, vector<2x512xbf16>,
    } else {
    }
    return
  }
  func.func @transform_0(%arg0: i32, %arg1: i32, %arg2: i32) -> (i32, i32) {
    %c0_i32 = arith.constant 0 : i32
    return %arg0, %arg2 : i32, i32
  }
  func.func @transform_1(%arg0: i32, %arg1: i32, %arg2: i32) -> (i32, i32) {
    %c0_i32 = arith.constant 0 : i32
    return %arg2, %arg1 : i32, i32
  }
  func.func @transform_2(%arg0: i32, %arg1: i32, %arg2: i32) -> (i32, i32) {
    %c0_i32 = arith.constant 0 : i32
    %c0_i32_0 = arith.constant 0 : i32
    return %c0_i32, %arg1 : i32, i32
  }
  func.func @transform_3(%arg0: i32, %arg1: i32, %arg2: i32) -> (i32, i32) {
    %c0_i32 = arith.constant 0 : i32
    return %arg0, %arg1 : i32, i32
  }
}

module attributes {stable_mosaic.version = 11 : i64} {
  func.func @_mean_pool_kernel(%arg0: i32, %arg1: memref<1x1x512xbf16, #tpu.memory_space<vmem>>, %arg2: memref<1x1x512xf32, #tpu.memory_space<vmem>>) attributes {dimension_semantics = [#tpu.dimension_semantics<parallel>], iteration_bounds = array<i64: 2>, scalar_prefetch = 0 : i64, scratch_operands = 0 : i64, tpu.core_type = #tpu.core_type<tc>, window_params = [{transform_indices = @transform_0, window_bounds = array<i64: 1, 1, 512>}, {transform_indices = @transform_1, window_bounds = array<i64: 1, 1, 512>}]} {
    %c0 = arith.constant 0 : index
    %c0_0 = arith.constant 0 : index
    %c0_1 = arith.constant 0 : index
    %0 = vector.load %arg1[%c0, %c0_0, %c0_1] : memref<1x1x512xbf16, #tpu.memory_space<vmem>>, vector<1x1x512xbf16>
    %1 = arith.extf %0 : vector<1x1x512xbf16> to vector<1x1x512xf32>
    %cst = arith.constant dense<0.000000e+00> : vector<1x512xf32>
    %2 = vector.multi_reduction <add>, %1, %cst [1] : vector<1x1x512xf32> to vector<1x512xf32>
    %3 = vector.shape_cast %2 : vector<1x512xf32> to vector<1x1x512xf32>
    %cst_2 = arith.constant 1.000000e+00 : f32
    %4 = vector.broadcast %cst_2 : f32 to vector<1x1x512xf32>
    %5 = arith.divf %3, %4 : vector<1x1x512xf32>
    %c0_3 = arith.constant 0 : index
    %c0_4 = arith.constant 0 : index
    %c0_5 = arith.constant 0 : index
    %6 = vector.load %arg2[%c0_3, %c0_4, %c0_5] : memref<1x1x512xf32, #tpu.memory_space<vmem>>, vector<1x1x512xf32>
    tpu.vector_store %arg2[%c0_3, %c0_4, %c0_5], %5 {strides = array<i32>} : memref<1x1x512xf32, #tpu.memory_space<vmem>>, vector<1x1x512xf32>,
    return
  }
  func.func @transform_0(%arg0: i32) -> (i32, i32, i32) {
    %c0_i32 = arith.constant 0 : i32
    %c0_i32_0 = arith.constant 0 : i32
    %c0_i32_1 = arith.constant 0 : i32
    return %arg0, %c0_i32, %c0_i32_0 : i32, i32, i32
  }
  func.func @transform_1(%arg0: i32) -> (i32, i32, i32) {
    %c0_i32 = arith.constant 0 : i32
    %c0_i32_0 = arith.constant 0 : i32
    %c0_i32_1 = arith.constant 0 : i32
    return %arg0, %c0_i32, %c0_i32_0 : i32, i32, i32
  }
}

module attributes {stable_mosaic.version = 11 : i64} {
  func.func @_matmul_kernel(%arg0: i32, %arg1: i32, %arg2: i32, %arg3: memref<2x512xbf16, #tpu.memory_space<vmem>>, %arg4: memref<512x32xbf16, #tpu.memory_space<vmem>>, %arg5: memref<1x32xf32, #tpu.memory_space<vmem>>, %arg6: memref<2x32xf32, #tpu.memory_space<vmem>>, %arg7: memref<2x32xf32, #tpu.memory_space<vmem>>) attributes {dimension_semantics = [#tpu.dimension_semantics<parallel>, #tpu.dimension_semantics<parallel>, #tpu.dimension_semantics<arbitrary>], iteration_bounds = array<i64: 1, 1, 1>, scalar_prefetch = 0 : i64, scratch_operands = 1 : i64, tpu.core_type = #tpu.core_type<tc>, window_params = [{transform_indices = @transform_0, window_bounds = array<i64: 2, 512>}, {transform_indices = @transform_1, window_bounds = array<i64: 512, 32>}, {transform_indices = @transform_2, window_bounds = array<i64: 1, 32>}, {transform_indices = @transform_3, window_bounds = array<i64: 2, 32>}]} {
    %c0_i32 = arith.constant 0 : i32
    %0 = arith.cmpi eq, %arg2, %c0_i32 : i32
    %1 = arith.extui %0 : i1 to i32
    %c0_i32_0 = arith.constant 0 : i32
    %2 = arith.cmpi ne, %1, %c0_i32_0 : i32
    scf.if %2 {
      %cst_10 = arith.constant 0.000000e+00 : f32
      %12 = vector.broadcast %cst_10 : f32 to vector<2x32xf32>
      %c0_11 = arith.constant 0 : index
      %c0_12 = arith.constant 0 : index
      %13 = vector.load %arg7[%c0_11, %c0_12] : memref<2x32xf32, #tpu.memory_space<vmem>>, vector<2x32xf32>
      tpu.vector_store %arg7[%c0_11, %c0_12], %12 {strides = array<i32>} : memref<2x32xf32, #tpu.memory_space<vmem>>, vector<2x32xf32>,
    } else {
    }
    %c0 = arith.constant 0 : index
    %c0_1 = arith.constant 0 : index
    %3 = vector.load %arg7[%c0, %c0_1] : memref<2x32xf32, #tpu.memory_space<vmem>>, vector<2x32xf32>
    %c0_2 = arith.constant 0 : index
    %c0_3 = arith.constant 0 : index
    %4 = vector.load %arg3[%c0_2, %c0_3] : memref<2x512xbf16, #tpu.memory_space<vmem>>, vector<2x512xbf16>
    %c0_4 = arith.constant 0 : index
    %c0_5 = arith.constant 0 : index
    %5 = vector.load %arg4[%c0_4, %c0_5] : memref<512x32xbf16, #tpu.memory_space<vmem>>, vector<512x32xbf16>
    %cst = arith.constant dense<0.000000e+00> : vector<2x32xf32>
    %6 = tpu.matmul %4, %5, %cst {dimension_numbers = #tpu.dot_dimension_numbers<[1], [0], [0], [1], [0, 0, 1, 1], [], []>} : vector<2x512xbf16>, vector<512x32xbf16>, vector<2x32xf32> -> vector<2x32xf32>
    %7 = arith.addf %3, %6 : vector<2x32xf32>
    %c0_6 = arith.constant 0 : index
    %c0_7 = arith.constant 0 : index
    %8 = vector.load %arg7[%c0_6, %c0_7] : memref<2x32xf32, #tpu.memory_space<vmem>>, vector<2x32xf32>
    tpu.vector_store %arg7[%c0_6, %c0_7], %7 {strides = array<i32>} : memref<2x32xf32, #tpu.memory_space<vmem>>, vector<2x32xf32>,
    %c0_i32_8 = arith.constant 0 : i32
    %9 = arith.cmpi eq, %arg2, %c0_i32_8 : i32
    %10 = arith.extui %9 : i1 to i32
    %c0_i32_9 = arith.constant 0 : i32
    %11 = arith.cmpi ne, %10, %c0_i32_9 : i32
    scf.if %11 {
      %c0_10 = arith.constant 0 : index
      %c0_11 = arith.constant 0 : index
      %12 = vector.load %arg7[%c0_10, %c0_11] : memref<2x32xf32, #tpu.memory_space<vmem>>, vector<2x32xf32>
      %c0_12 = arith.constant 0 : index
      %c0_13 = arith.constant 0 : index
      %13 = vector.load %arg5[%c0_12, %c0_13] : memref<1x32xf32, #tpu.memory_space<vmem>>, vector<1x32xf32>
      %14 = vector.broadcast %13 : vector<1x32xf32> to vector<2x32xf32>
      %15 = arith.addf %12, %14 : vector<2x32xf32>
      %c0_14 = arith.constant 0 : index
      %c0_15 = arith.constant 0 : index
      %16 = vector.load %arg6[%c0_14, %c0_15] : memref<2x32xf32, #tpu.memory_space<vmem>>, vector<2x32xf32>
      tpu.vector_store %arg6[%c0_14, %c0_15], %15 {strides = array<i32>} : memref<2x32xf32, #tpu.memory_space<vmem>>, vector<2x32xf32>,
    } else {
    }
    return
  }
  func.func @transform_0(%arg0: i32, %arg1: i32, %arg2: i32) -> (i32, i32) {
    %c0_i32 = arith.constant 0 : i32
    return %arg0, %arg2 : i32, i32
  }
  func.func @transform_1(%arg0: i32, %arg1: i32, %arg2: i32) -> (i32, i32) {
    %c0_i32 = arith.constant 0 : i32
    return %arg2, %arg1 : i32, i32
  }
  func.func @transform_2(%arg0: i32, %arg1: i32, %arg2: i32) -> (i32, i32) {
    %c0_i32 = arith.constant 0 : i32
    %c0_i32_0 = arith.constant 0 : i32
    return %c0_i32, %arg1 : i32, i32
  }
  func.func @transform_3(%arg0: i32, %arg1: i32, %arg2: i32) -> (i32, i32) {
    %c0_i32 = arith.constant 0 : i32
    return %arg0, %arg1 : i32, i32
  }
}

module attributes {stable_mosaic.version = 11 : i64} {
  func.func @_matmul_kernel(%arg0: i32, %arg1: i32, %arg2: i32, %arg3: memref<64x32xbf16, #tpu.memory_space<vmem>>, %arg4: memref<32x512xbf16, #tpu.memory_space<vmem>>, %arg5: memref<1x512xf32, #tpu.memory_space<vmem>>, %arg6: memref<64x512xf32, #tpu.memory_space<vmem>>, %arg7: memref<64x512xf32, #tpu.memory_space<vmem>>) attributes {dimension_semantics = [#tpu.dimension_semantics<parallel>, #tpu.dimension_semantics<parallel>, #tpu.dimension_semantics<arbitrary>], iteration_bounds = array<i64: 1, 1, 1>, scalar_prefetch = 0 : i64, scratch_operands = 1 : i64, tpu.core_type = #tpu.core_type<tc>, window_params = [{transform_indices = @transform_0, window_bounds = array<i64: 64, 32>}, {transform_indices = @transform_1, window_bounds = array<i64: 32, 512>}, {transform_indices = @transform_2, window_bounds = array<i64: 1, 512>}, {transform_indices = @transform_3, window_bounds = array<i64: 64, 512>}]} {
    %c0_i32 = arith.constant 0 : i32
    %0 = arith.cmpi eq, %arg2, %c0_i32 : i32
    %1 = arith.extui %0 : i1 to i32
    %c0_i32_0 = arith.constant 0 : i32
    %2 = arith.cmpi ne, %1, %c0_i32_0 : i32
    scf.if %2 {
      %cst_10 = arith.constant 0.000000e+00 : f32
      %12 = vector.broadcast %cst_10 : f32 to vector<64x512xf32>
      %c0_11 = arith.constant 0 : index
      %c0_12 = arith.constant 0 : index
      %13 = vector.load %arg7[%c0_11, %c0_12] : memref<64x512xf32, #tpu.memory_space<vmem>>, vector<64x512xf32>
      tpu.vector_store %arg7[%c0_11, %c0_12], %12 {strides = array<i32>} : memref<64x512xf32, #tpu.memory_space<vmem>>, vector<64x512xf32>,
    } else {
    }
    %c0 = arith.constant 0 : index
    %c0_1 = arith.constant 0 : index
    %3 = vector.load %arg7[%c0, %c0_1] : memref<64x512xf32, #tpu.memory_space<vmem>>, vector<64x512xf32>
    %c0_2 = arith.constant 0 : index
    %c0_3 = arith.constant 0 : index
    %4 = vector.load %arg3[%c0_2, %c0_3] : memref<64x32xbf16, #tpu.memory_space<vmem>>, vector<64x32xbf16>
    %c0_4 = arith.constant 0 : index
    %c0_5 = arith.constant 0 : index
    %5 = vector.load %arg4[%c0_4, %c0_5] : memref<32x512xbf16, #tpu.memory_space<vmem>>, vector<32x512xbf16>
    %cst = arith.constant dense<0.000000e+00> : vector<64x512xf32>
    %6 = tpu.matmul %4, %5, %cst {dimension_numbers = #tpu.dot_dimension_numbers<[1], [0], [0], [1], [0, 0, 1, 1], [], []>} : vector<64x32xbf16>, vector<32x512xbf16>, vector<64x512xf32> -> vector<64x512xf32>
    %7 = arith.addf %3, %6 : vector<64x512xf32>
    %c0_6 = arith.constant 0 : index
    %c0_7 = arith.constant 0 : index
    %8 = vector.load %arg7[%c0_6, %c0_7] : memref<64x512xf32, #tpu.memory_space<vmem>>, vector<64x512xf32>
    tpu.vector_store %arg7[%c0_6, %c0_7], %7 {strides = array<i32>} : memref<64x512xf32, #tpu.memory_space<vmem>>, vector<64x512xf32>,
    %c0_i32_8 = arith.constant 0 : i32
    %9 = arith.cmpi eq, %arg2, %c0_i32_8 : i32
    %10 = arith.extui %9 : i1 to i32
    %c0_i32_9 = arith.constant 0 : i32
    %11 = arith.cmpi ne, %10, %c0_i32_9 : i32
    scf.if %11 {
      %c0_10 = arith.constant 0 : index
      %c0_11 = arith.constant 0 : index
      %12 = vector.load %arg7[%c0_10, %c0_11] : memref<64x512xf32, #tpu.memory_space<vmem>>, vector<64x512xf32>
      %c0_12 = arith.constant 0 : index
      %c0_13 = arith.constant 0 : index
      %13 = vector.load %arg5[%c0_12, %c0_13] : memref<1x512xf32, #tpu.memory_space<vmem>>, vector<1x512xf32>
      %14 = vector.broadcast %13 : vector<1x512xf32> to vector<64x512xf32>
      %15 = arith.addf %12, %14 : vector<64x512xf32>
      %c0_14 = arith.constant 0 : index
      %c0_15 = arith.constant 0 : index
      %16 = vector.load %arg6[%c0_14, %c0_15] : memref<64x512xf32, #tpu.memory_space<vmem>>, vector<64x512xf32>
      tpu.vector_store %arg6[%c0_14, %c0_15], %15 {strides = array<i32>} : memref<64x512xf32, #tpu.memory_space<vmem>>, vector<64x512xf32>,
    } else {
    }
    return
  }
  func.func @transform_0(%arg0: i32, %arg1: i32, %arg2: i32) -> (i32, i32) {
    %c0_i32 = arith.constant 0 : i32
    return %arg0, %arg2 : i32, i32
  }
  func.func @transform_1(%arg0: i32, %arg1: i32, %arg2: i32) -> (i32, i32) {
    %c0_i32 = arith.constant 0 : i32
    return %arg2, %arg1 : i32, i32
  }
  func.func @transform_2(%arg0: i32, %arg1: i32, %arg2: i32) -> (i32, i32) {
    %c0_i32 = arith.constant 0 : i32
    %c0_i32_0 = arith.constant 0 : i32
    return %c0_i32, %arg1 : i32, i32
  }
  func.func @transform_3(%arg0: i32, %arg1: i32, %arg2: i32) -> (i32, i32) {
    %c0_i32 = arith.constant 0 : i32
    return %arg0, %arg1 : i32, i32
  }
}

module attributes {stable_mosaic.version = 11 : i64} {
  func.func @_lstm_kernel(%arg0: i32, %arg1: memref<1x8x512xf32, #tpu.memory_space<vmem>>, %arg2: memref<128x512xbf16, #tpu.memory_space<vmem>>, %arg3: memref<1x8x128xf32, #tpu.memory_space<vmem>>, %arg4: memref<8x128xf32, #tpu.memory_space<vmem>>, %arg5: memref<8x128xf32, #tpu.memory_space<vmem>>) attributes {dimension_semantics = [#tpu.dimension_semantics<arbitrary>], iteration_bounds = array<i64: 8>, scalar_prefetch = 0 : i64, scratch_operands = 2 : i64, tpu.core_type = #tpu.core_type<tc>, window_params = [{transform_indices = @transform_0, window_bounds = array<i64: 1, 8, 512>}, {pipeline_mode = #tpu.pipeline_mode<synchronous>, transform_indices = @transform_1, window_bounds = array<i64: 128, 512>}, {transform_indices = @transform_2, window_bounds = array<i64: 1, 8, 128>}]} {
    %c0_i32 = arith.constant 0 : i32
    %0 = arith.cmpi eq, %arg0, %c0_i32 : i32
    %1 = arith.extui %0 : i1 to i32
    %c0_i32_0 = arith.constant 0 : i32
    %2 = arith.cmpi ne, %1, %c0_i32_0 : i32
    scf.if %2 {
      %cst_19 = arith.constant 0.000000e+00 : f32
      %41 = vector.broadcast %cst_19 : f32 to vector<8x128xf32>
      %c0_20 = arith.constant 0 : index
      %c0_21 = arith.constant 0 : index
      %42 = vector.load %arg4[%c0_20, %c0_21] : memref<8x128xf32, #tpu.memory_space<vmem>>, vector<8x128xf32>
      tpu.vector_store %arg4[%c0_20, %c0_21], %41 {strides = array<i32>} : memref<8x128xf32, #tpu.memory_space<vmem>>, vector<8x128xf32>,
      %cst_22 = arith.constant 0.000000e+00 : f32
      %43 = vector.broadcast %cst_22 : f32 to vector<8x128xf32>
      %c0_23 = arith.constant 0 : index
      %c0_24 = arith.constant 0 : index
      %44 = vector.load %arg5[%c0_23, %c0_24] : memref<8x128xf32, #tpu.memory_space<vmem>>, vector<8x128xf32>
      tpu.vector_store %arg5[%c0_23, %c0_24], %43 {strides = array<i32>} : memref<8x128xf32, #tpu.memory_space<vmem>>, vector<8x128xf32>,
    } else {
    }
    %c0 = arith.constant 0 : index
    %c0_1 = arith.constant 0 : index
    %c0_2 = arith.constant 0 : index
    %3 = vector.load %arg1[%c0, %c0_1, %c0_2] : memref<1x8x512xf32, #tpu.memory_space<vmem>>, vector<1x8x512xf32>
    %4 = vector.shape_cast %3 : vector<1x8x512xf32> to vector<8x512xf32>
    %c0_3 = arith.constant 0 : index
    %c0_4 = arith.constant 0 : index
    %5 = vector.load %arg4[%c0_3, %c0_4] : memref<8x128xf32, #tpu.memory_space<vmem>>, vector<8x128xf32>
    %6 = arith.truncf %5 : vector<8x128xf32> to vector<8x128xbf16>
    %c0_5 = arith.constant 0 : index
    %c0_6 = arith.constant 0 : index
    %7 = vector.load %arg2[%c0_5, %c0_6] : memref<128x512xbf16, #tpu.memory_space<vmem>>, vector<128x512xbf16>
    %cst = arith.constant dense<0.000000e+00> : vector<8x512xf32>
    %8 = tpu.matmul %6, %7, %cst {dimension_numbers = #tpu.dot_dimension_numbers<[1], [0], [0], [1], [0, 0, 1, 1], [], []>} : vector<8x128xbf16>, vector<128x512xbf16>, vector<8x512xf32> -> vector<8x512xf32>
    %9 = arith.addf %4, %8 : vector<8x512xf32>
    %10 = vector.extract_strided_slice %9 {offsets = [0, 0], sizes = [8, 128], strides = [1, 1]} : vector<8x512xf32> to vector<8x128xf32>
    %11 = arith.negf %10 : vector<8x128xf32>
    %12 = math.exp %11 : vector<8x128xf32>
    %cst_7 = arith.constant 1.000000e+00 : f32
    %13 = vector.broadcast %cst_7 : f32 to vector<8x128xf32>
    %14 = arith.addf %13, %12 : vector<8x128xf32>
    %15 = arith.divf %13, %14 : vector<8x128xf32>
    %16 = vector.extract_strided_slice %9 {offsets = [0, 128], sizes = [8, 128], strides = [1, 1]} : vector<8x512xf32> to vector<8x128xf32>
    %17 = arith.negf %16 : vector<8x128xf32>
    %18 = math.exp %17 : vector<8x128xf32>
    %cst_8 = arith.constant 1.000000e+00 : f32
    %19 = vector.broadcast %cst_8 : f32 to vector<8x128xf32>
    %20 = arith.addf %19, %18 : vector<8x128xf32>
    %21 = arith.divf %19, %20 : vector<8x128xf32>
    %22 = vector.extract_strided_slice %9 {offsets = [0, 256], sizes = [8, 128], strides = [1, 1]} : vector<8x512xf32> to vector<8x128xf32>
    %23 = math.tanh %22 : vector<8x128xf32>
    %24 = vector.extract_strided_slice %9 {offsets = [0, 384], sizes = [8, 128], strides = [1, 1]} : vector<8x512xf32> to vector<8x128xf32>
    %25 = arith.negf %24 : vector<8x128xf32>
    %26 = math.exp %25 : vector<8x128xf32>
    %cst_9 = arith.constant 1.000000e+00 : f32
    %27 = vector.broadcast %cst_9 : f32 to vector<8x128xf32>
    %28 = arith.addf %27, %26 : vector<8x128xf32>
    %29 = arith.divf %27, %28 : vector<8x128xf32>
    %c0_10 = arith.constant 0 : index
    %c0_11 = arith.constant 0 : index
    %30 = vector.load %arg5[%c0_10, %c0_11] : memref<8x128xf32, #tpu.memory_space<vmem>>, vector<8x128xf32>
    %31 = arith.mulf %21, %30 : vector<8x128xf32>
    %32 = arith.mulf %15, %23 : vector<8x128xf32>
    %33 = arith.addf %31, %32 : vector<8x128xf32>
    %34 = math.tanh %33 : vector<8x128xf32>
    %35 = arith.mulf %29, %34 : vector<8x128xf32>
    %c0_12 = arith.constant 0 : index
    %c0_13 = arith.constant 0 : index
    %36 = vector.load %arg5[%c0_12, %c0_13] : memref<8x128xf32, #tpu.memory_space<vmem>>, vector<8x128xf32>
    tpu.vector_store %arg5[%c0_12, %c0_13], %33 {strides = array<i32>} : memref<8x128xf32, #tpu.memory_space<vmem>>, vector<8x128xf32>,
    %c0_14 = arith.constant 0 : index
    %c0_15 = arith.constant 0 : index
    %37 = vector.load %arg4[%c0_14, %c0_15] : memref<8x128xf32, #tpu.memory_space<vmem>>, vector<8x128xf32>
    tpu.vector_store %arg4[%c0_14, %c0_15], %35 {strides = array<i32>} : memref<8x128xf32, #tpu.memory_space<vmem>>, vector<8x128xf32>,
    %c0_16 = arith.constant 0 : index
    %c0_17 = arith.constant 0 : index
    %c0_18 = arith.constant 0 : index
    %38 = vector.load %arg3[%c0_16, %c0_17, %c0_18] : memref<1x8x128xf32, #tpu.memory_space<vmem>>, vector<1x8x128xf32>
    %39 = vector.shape_cast %38 : vector<1x8x128xf32> to vector<8x128xf32>
    %40 = vector.shape_cast %35 : vector<8x128xf32> to vector<1x8x128xf32>
    tpu.vector_store %arg3[%c0_16, %c0_17, %c0_18], %40 {strides = array<i32>} : memref<1x8x128xf32, #tpu.memory_space<vmem>>, vector<1x8x128xf32>,
    return
  }
  func.func @transform_0(%arg0: i32) -> (i32, i32, i32) {
    %c0_i32 = arith.constant 0 : i32
    %c0_i32_0 = arith.constant 0 : i32
    %c0_i32_1 = arith.constant 0 : i32
    return %arg0, %c0_i32, %c0_i32_0 : i32, i32, i32
  }
  func.func @transform_1(%arg0: i32) -> (i32, i32) {
    %c0_i32 = arith.constant 0 : i32
    %c0_i32_0 = arith.constant 0 : i32
    %c0_i32_1 = arith.constant 0 : i32
    return %c0_i32, %c0_i32_0 : i32, i32
  }
  func.func @transform_2(%arg0: i32) -> (i32, i32, i32) {
    %c0_i32 = arith.constant 0 : i32
    %c0_i32_0 = arith.constant 0 : i32
    %c0_i32_1 = arith.constant 0 : i32
    return %arg0, %c0_i32, %c0_i32_0 : i32, i32, i32
  }
}

module attributes {stable_mosaic.version = 11 : i64} {
  func.func @_matmul_kernel(%arg0: i32, %arg1: i32, %arg2: i32, %arg3: memref<64x128xbf16, #tpu.memory_space<vmem>>, %arg4: memref<128x50xbf16, #tpu.memory_space<vmem>>, %arg5: memref<1x50xf32, #tpu.memory_space<vmem>>, %arg6: memref<64x50xf32, #tpu.memory_space<vmem>>, %arg7: memref<64x50xf32, #tpu.memory_space<vmem>>) attributes {dimension_semantics = [#tpu.dimension_semantics<parallel>, #tpu.dimension_semantics<parallel>, #tpu.dimension_semantics<arbitrary>], iteration_bounds = array<i64: 1, 1, 1>, scalar_prefetch = 0 : i64, scratch_operands = 1 : i64, tpu.core_type = #tpu.core_type<tc>, window_params = [{transform_indices = @transform_0, window_bounds = array<i64: 64, 128>}, {transform_indices = @transform_1, window_bounds = array<i64: 128, 50>}, {transform_indices = @transform_2, window_bounds = array<i64: 1, 50>}, {transform_indices = @transform_3, window_bounds = array<i64: 64, 50>}]} {
    %c0_i32 = arith.constant 0 : i32
    %0 = arith.cmpi eq, %arg2, %c0_i32 : i32
    %1 = arith.extui %0 : i1 to i32
    %c0_i32_0 = arith.constant 0 : i32
    %2 = arith.cmpi ne, %1, %c0_i32_0 : i32
    scf.if %2 {
      %cst_10 = arith.constant 0.000000e+00 : f32
      %12 = vector.broadcast %cst_10 : f32 to vector<64x50xf32>
      %c0_11 = arith.constant 0 : index
      %c0_12 = arith.constant 0 : index
      %13 = vector.load %arg7[%c0_11, %c0_12] : memref<64x50xf32, #tpu.memory_space<vmem>>, vector<64x50xf32>
      tpu.vector_store %arg7[%c0_11, %c0_12], %12 {strides = array<i32>} : memref<64x50xf32, #tpu.memory_space<vmem>>, vector<64x50xf32>,
    } else {
    }
    %c0 = arith.constant 0 : index
    %c0_1 = arith.constant 0 : index
    %3 = vector.load %arg7[%c0, %c0_1] : memref<64x50xf32, #tpu.memory_space<vmem>>, vector<64x50xf32>
    %c0_2 = arith.constant 0 : index
    %c0_3 = arith.constant 0 : index
    %4 = vector.load %arg3[%c0_2, %c0_3] : memref<64x128xbf16, #tpu.memory_space<vmem>>, vector<64x128xbf16>
    %c0_4 = arith.constant 0 : index
    %c0_5 = arith.constant 0 : index
    %5 = vector.load %arg4[%c0_4, %c0_5] : memref<128x50xbf16, #tpu.memory_space<vmem>>, vector<128x50xbf16>
    %cst = arith.constant dense<0.000000e+00> : vector<64x50xf32>
    %6 = tpu.matmul %4, %5, %cst {dimension_numbers = #tpu.dot_dimension_numbers<[1], [0], [0], [1], [0, 0, 1, 1], [], []>} : vector<64x128xbf16>, vector<128x50xbf16>, vector<64x50xf32> -> vector<64x50xf32>
    %7 = arith.addf %3, %6 : vector<64x50xf32>
    %c0_6 = arith.constant 0 : index
    %c0_7 = arith.constant 0 : index
    %8 = vector.load %arg7[%c0_6, %c0_7] : memref<64x50xf32, #tpu.memory_space<vmem>>, vector<64x50xf32>
    tpu.vector_store %arg7[%c0_6, %c0_7], %7 {strides = array<i32>} : memref<64x50xf32, #tpu.memory_space<vmem>>, vector<64x50xf32>,
    %c0_i32_8 = arith.constant 0 : i32
    %9 = arith.cmpi eq, %arg2, %c0_i32_8 : i32
    %10 = arith.extui %9 : i1 to i32
    %c0_i32_9 = arith.constant 0 : i32
    %11 = arith.cmpi ne, %10, %c0_i32_9 : i32
    scf.if %11 {
      %c0_10 = arith.constant 0 : index
      %c0_11 = arith.constant 0 : index
      %12 = vector.load %arg7[%c0_10, %c0_11] : memref<64x50xf32, #tpu.memory_space<vmem>>, vector<64x50xf32>
      %c0_12 = arith.constant 0 : index
      %c0_13 = arith.constant 0 : index
      %13 = vector.load %arg5[%c0_12, %c0_13] : memref<1x50xf32, #tpu.memory_space<vmem>>, vector<1x50xf32>
      %14 = vector.broadcast %13 : vector<1x50xf32> to vector<64x50xf32>
      %15 = arith.addf %12, %14 : vector<64x50xf32>
      %c0_14 = arith.constant 0 : index
      %c0_15 = arith.constant 0 : index
      %16 = vector.load %arg6[%c0_14, %c0_15] : memref<64x50xf32, #tpu.memory_space<vmem>>, vector<64x50xf32>
      tpu.vector_store %arg6[%c0_14, %c0_15], %15 {strides = array<i32>} : memref<64x50xf32, #tpu.memory_space<vmem>>, vector<64x50xf32>,
    } else {
    }
    return
  }
  func.func @transform_0(%arg0: i32, %arg1: i32, %arg2: i32) -> (i32, i32) {
    %c0_i32 = arith.constant 0 : i32
    return %arg0, %arg2 : i32, i32
  }
  func.func @transform_1(%arg0: i32, %arg1: i32, %arg2: i32) -> (i32, i32) {
    %c0_i32 = arith.constant 0 : i32
    return %arg2, %arg1 : i32, i32
  }
  func.func @transform_2(%arg0: i32, %arg1: i32, %arg2: i32) -> (i32, i32) {
    %c0_i32 = arith.constant 0 : i32
    %c0_i32_0 = arith.constant 0 : i32
    return %c0_i32, %arg1 : i32, i32
  }
  func.func @transform_3(%arg0: i32, %arg1: i32, %arg2: i32) -> (i32, i32) {
    %c0_i32 = arith.constant 0 : i32
    return %arg0, %arg1 : i32, i32
  }
}

</mosaic_0001>

<bundles_post_ra>
// kernel: image_captioning_forward.27
= control target key start
LH: loop header
LB: loop body
LE: loop exit
PB: predicated region body
PF: predicated region fallthrough
CT: control target
= control target key end

     0   :  { %v1990_v0 = vmov 0   ;;  %vm576_vm0 = vcmask 154624   ;;  %vm673_vm1 = vcmask 1040384   ;;  %vm674_vm2 = vcmask 1041408   ;;  %s2793_s1 = inlined_call_operand.vmem [shape: bf16[147,64], index: 1, kind: input, shape index: {}]   ;;  %s2794_s0 = inlined_call_operand.vmem [shape: bf16[512,147], index: 0, kind: input, shape index: {}]   ;;  %s2795_s2 = inlined_call_operand.vmem [shape: f32[1,64], index: 2, kind: input, shape index: {}]   ;;  %s2796_s3 = inlined_call_operand.vmem [shape: bf16[512,64], index: 3, kind: output, shape index: {}]  }
   0x1   :  { %680 = vmatprep.subr.bf16.mxu0 %v1990_v0  ;;  %1860 = vmatprep.subr.bf16.mxu1 %v1990_v0  ;;  %v1883_v1 = vld [vmem:[%s2793_s1] sm:$0xff]   ;;  %v1884_v2 = vld [vmem:[%s2793_s1 + $0x8] sm:$0xff]   ;;  %v1885_v3 = vld [vmem:[%s2793_s1 + $0x10] sm:$0xff]   ;;  %v1991_v11 = vmov 65535   ;;  %vm19_vm3 = vcmask 523264   ;;  %v1992_v17 = vmov 0.0  }
   0x2   :  { %681 = vmatpush1.bf16.msra.mxu0 %v1883_v1  ;;  %1870 = vmatpush1.bf16.msra.mxu1 %v1883_v1  ;;  %v1886_v4 = vld [vmem:[%s2793_s1 + $0x18] sm:$0xff]   ;;  %v1895_v5 = vld [vmem:[%s2794_s0 + $0x4] ss:$8 sps:$4 sm:$0xff]   ;;  %v1889_v9 = vld [vmem:[%s2793_s1 + $0x30] sm:$0xff]   ;;  %v675_v12 = vsel %vm673_vm1, 4294967295, %v1991_v11  ;;  %20 = vst.msk [vmem:[#allocation2] sm:$0xff] %vm19_vm3, %v1992_v17 }
   0x3   :  { %682 = vmatprep.subr.bf16.mxu0 %v1990_v0  ;;  %1861 = vmatprep.subr.bf16.mxu1 %v1990_v0  ;;  %v1898_v6 = vld [vmem:[%s2794_s0 + $0x104] ss:$8 sps:$4 sm:$0xff]   ;;  %v1890_v10 = vld [vmem:[%s2793_s1 + $0x38] sm:$0xff]   ;;  %v1892_v14 = vld [vmem:[%s2793_s1 + $0x48] ss:$0 sps:$4 sm:$0x33]  }
   0x4   :  { %1699 = vmatprep.mubr.msk.bf16.mxu0 %vm576_vm0, %v1895_v5  ;;  %v1887_v7 = vld [vmem:[%s2793_s1 + $0x20] sm:$0xff]   ;;  %1715 = vmatprep.mubr.msk.bf16.mxu1 %vm576_vm0, %v1898_v6  ;;  %v1888_v8 = vld [vmem:[%s2793_s1 + $0x28] sm:$0xff]   ;;  %v676_v15 = vsel %vm674_vm2, %v675_v12, 0  ;;  %21 = vst.msk [vmem:[#allocation2 + $0x8] sm:$0xff] %vm19_vm3, %v1992_v17  ;;  %22 = vst.msk [vmem:[#allocation2 + $0x10] sm:$0xff] %vm19_vm3, %v1992_v17  ;;  %vm1556_vm4 = vcmask 519168  }
   0x5   :  { %v1891_v13 = vld [vmem:[%s2793_s1 + $0x40] sm:$0xff]   ;;  %v2051_v16 = vand.u32 %v1892_v14, %v676_v15  ;;  %23 = vst.msk [vmem:[#allocation2 + $0x18] sm:$0xff] %vm19_vm3, %v1992_v17  ;;  %24 = vst.msk [vmem:[#allocation2 + $0x20] sm:$0xff] %vm19_vm3, %v1992_v17  ;;  %v1899_v20 = vld [vmem:[%s2794_s0 + $0x14] ss:$8 sps:$4 sm:$0xff]  }
   0x6   :  { %683 = vmatpush1.bf16.msra.mxu0 %v1884_v2  ;;  %1871 = vmatpush1.bf16.msra.mxu1 %v1884_v2  ;;  %25 = vst.msk [vmem:[#allocation2 + $0x28] sm:$0xff] %vm19_vm3, %v1992_v17  ;;  %26 = vst.msk [vmem:[#allocation2 + $0x30] sm:$0xff] %vm19_vm3, %v1992_v17  ;;  %v1893_v18 = vld [vmem:[%s2794_s0] ss:$8 sps:$4 sm:$0xff]   ;;  %v1901_v21 = vld [vmem:[%s2794_s0 + $0x114] ss:$8 sps:$4 sm:$0xff]  }
   0x7   :  { %684 = vmatprep.subr.bf16.mxu0 %v1990_v0  ;;  %1862 = vmatprep.subr.bf16.mxu1 %v1990_v0  ;;  %27 = vst.msk [vmem:[#allocation2 + $0x38] sm:$0xff] %vm19_vm3, %v1992_v17  ;;  %28 = vst.msk [vmem:[#allocation2 + $0x40] sm:$0xff] %vm19_vm3, %v1992_v17  ;;  %v1896_v19 = vld [vmem:[%s2794_s0 + $0x100] ss:$8 sps:$4 sm:$0xff]   ;;  %v1903_v22 = vld [vmem:[%s2794_s0 + $0x10] ss:$8 sps:$4 sm:$0xff]  }
   0x8   :  { %29 = vst.msk [vmem:[#allocation2 + $0x48] sm:$0xff] %vm19_vm3, %v1992_v17  ;;  %30 = vst.msk [vmem:[#allocation2 + $0x50] sm:$0xff] %vm19_vm3, %v1992_v17  ;;  %v1904_v23 = vld [vmem:[%s2794_s0 + $0x110] ss:$8 sps:$4 sm:$0xff]   ;;  %v1905_v24 = vld [vmem:[%s2794_s0 + $0x24] ss:$8 sps:$4 sm:$0xff]  }
   0x9   :  { %31 = vst.msk [vmem:[#allocation2 + $0x58] sm:$0xff] %vm19_vm3, %v1992_v17  ;;  %32 = vst.msk [vmem:[#allocation2 + $0x60] sm:$0xff] %vm19_vm3, %v1992_v17  ;;  %v1907_v25 = vld [vmem:[%s2794_s0 + $0x124] ss:$8 sps:$4 sm:$0xff]   ;;  %v1909_v26 = vld [vmem:[%s2794_s0 + $0x20] ss:$8 sps:$4 sm:$0xff]  }
   0xa   :  { %685 = vmatpush1.bf16.msra.mxu0 %v1885_v3  ;;  %1872 = vmatpush1.bf16.msra.mxu1 %v1885_v3  ;;  %33 = vst.msk [vmem:[#allocation2 + $0x68] sm:$0xff] %vm19_vm3, %v1992_v17  ;;  %34 = vst.msk [vmem:[#allocation2 + $0x70] sm:$0xff] %vm19_vm3, %v1992_v17  ;;  %v1910_v27 = vld [vmem:[%s2794_s0 + $0x120] ss:$8 sps:$4 sm:$0xff]   ;;  %v1911_v28 = vld [vmem:[%s2794_s0 + $0x34] ss:$8 sps:$4 sm:$0xff]  }
   0xb   :  { %686 = vmatprep.subr.bf16.mxu0 %v1990_v0  ;;  %1863 = vmatprep.subr.bf16.mxu1 %v1990_v0  ;;  %35 = vst.msk [vmem:[#allocation2 + $0x78] sm:$0xff] %vm19_vm3, %v1992_v17  ;;  %36 = vst.msk [vmem:[#allocation2 + $0x80] sm:$0xff] %vm19_vm3, %v1992_v17  ;;  %v1913_v29 = vld [vmem:[%s2794_s0 + $0x134] ss:$8 sps:$4 sm:$0xff]   ;;  %v1915_v30 = vld [vmem:[%s2794_s0 + $0x30] ss:$8 sps:$4 sm:$0xff]  }
   0xc   :  { %37 = vst.msk [vmem:[#allocation2 + $0x88] sm:$0xff] %vm19_vm3, %v1992_v17  ;;  %38 = vst.msk [vmem:[#allocation2 + $0x90] sm:$0xff] %vm19_vm3, %v1992_v17  ;;  %v1916_v31 = vld [vmem:[%s2794_s0 + $0x130] ss:$8 sps:$4 sm:$0xff]   ;;  %v1917_v32 = vld [vmem:[%s2794_s0 + $0x44] ss:$8 sps:$4 sm:$0xff]  }
   0xd   :  { %39 = vst.msk [vmem:[#allocation2 + $0x98] sm:$0xff] %vm19_vm3, %v1992_v17  ;;  %40 = vst.msk [vmem:[#allocation2 + $0xa0] sm:$0xff] %vm19_vm3, %v1992_v17  ;;  %v1919_v33 = vld [vmem:[%s2794_s0 + $0x144] ss:$8 sps:$4 sm:$0xff]   ;;  %v1921_v34 = vld [vmem:[%s2794_s0 + $0x40] ss:$8 sps:$4 sm:$0xff]  }
   0xe   :  { %687 = vmatpush1.bf16.msra.mxu0 %v1886_v4  ;;  %1873 = vmatpush1.bf16.msra.mxu1 %v1886_v4  ;;  %41 = vst.msk [vmem:[#allocation2 + $0xa8] sm:$0xff] %vm19_vm3, %v1992_v17  ;;  %42 = vst.msk [vmem:[#allocation2 + $0xb0] sm:$0xff] %vm19_vm3, %v1992_v17  ;;  %v1922_v35 = vld [vmem:[%s2794_s0 + $0x140] ss:$8 sps:$4 sm:$0xff]   ;;  %v1923_v36 = vld [vmem:[%s2794_s0 + $0x54] ss:$8 sps:$4 sm:$0xff]  }
   0xf   :  { %688 = vmatprep.subr.bf16.mxu0 %v1990_v0  ;;  %1864 = vmatprep.subr.bf16.mxu1 %v1990_v0  ;;  %43 = vst.msk [vmem:[#allocation2 + $0xb8] sm:$0xff] %vm19_vm3, %v1992_v17  ;;  %44 = vst.msk [vmem:[#allocation2 + $0xc0] sm:$0xff] %vm19_vm3, %v1992_v17  ;;  %v1925_v37 = vld [vmem:[%s2794_s0 + $0x154] ss:$8 sps:$4 sm:$0xff]   ;;  %v1927_v38 = vld [vmem:[%s2794_s0 + $0x50] ss:$8 sps:$4 sm:$0xff]  }
  0x10   :  { %45 = vst.msk [vmem:[#allocation2 + $0xc8] sm:$0xff] %vm19_vm3, %v1992_v17  ;;  %46 = vst.msk [vmem:[#allocation2 + $0xd0] sm:$0xff] %vm19_vm3, %v1992_v17  ;;  %v1928_v39 = vld [vmem:[%s2794_s0 + $0x150] ss:$8 sps:$4 sm:$0xff]   ;;  %v1929_v40 = vld [vmem:[%s2794_s0 + $0x64] ss:$8 sps:$4 sm:$0xff]  }
  0x11   :  { %47 = vst.msk [vmem:[#allocation2 + $0xd8] sm:$0xff] %vm19_vm3, %v1992_v17  ;;  %48 = vst.msk [vmem:[#allocation2 + $0xe0] sm:$0xff] %vm19_vm3, %v1992_v17  ;;  %v1931_v41 = vld [vmem:[%s2794_s0 + $0x164] ss:$8 sps:$4 sm:$0xff]   ;;  %v1933_v42 = vld [vmem:[%s2794_s0 + $0x60] ss:$8 sps:$4 sm:$0xff]  }
  0x12   :  { %689 = vmatpush1.bf16.msra.mxu0 %v1887_v7  ;;  %1874 = vmatpush1.bf16.msra.mxu1 %v1887_v7  ;;  %49 = vst.msk [vmem:[#allocation2 + $0xe8] sm:$0xff] %vm19_vm3, %v1992_v17  ;;  %50 = vst.msk [vmem:[#allocation2 + $0xf0] sm:$0xff] %vm19_vm3, %v1992_v17  ;;  %v1934_v43 = vld [vmem:[%s2794_s0 + $0x160] ss:$8 sps:$4 sm:$0xff]   ;;  %v1935_v44 = vld [vmem:[%s2794_s0 + $0x74] ss:$8 sps:$4 sm:$0xff]  }
  0x13   :  { %690 = vmatprep.subr.bf16.mxu0 %v1990_v0  ;;  %1865 = vmatprep.subr.bf16.mxu1 %v1990_v0  ;;  %51 = vst.msk [vmem:[#allocation2 + $0xf8] sm:$0xff] %vm19_vm3, %v1992_v17  ;;  %52 = vst.msk [vmem:[#allocation2 + $0x100] sm:$0xff] %vm19_vm3, %v1992_v17  ;;  %v1937_v45 = vld [vmem:[%s2794_s0 + $0x174] ss:$8 sps:$4 sm:$0xff]   ;;  %v1939_v46 = vld [vmem:[%s2794_s0 + $0x70] ss:$8 sps:$4 sm:$0xff]  }
  0x14   :  { %53 = vst.msk [vmem:[#allocation2 + $0x108] sm:$0xff] %vm19_vm3, %v1992_v17  ;;  %54 = vst.msk [vmem:[#allocation2 + $0x110] sm:$0xff] %vm19_vm3, %v1992_v17  ;;  %v1940_v47 = vld [vmem:[%s2794_s0 + $0x170] ss:$8 sps:$4 sm:$0xff]   ;;  %v1941_v48 = vld [vmem:[%s2794_s0 + $0x84] ss:$8 sps:$4 sm:$0xff]  }
  0x15   :  { %55 = vst.msk [vmem:[#allocation2 + $0x118] sm:$0xff] %vm19_vm3, %v1992_v17  ;;  %56 = vst.msk [vmem:[#allocation2 + $0x120] sm:$0xff] %vm19_vm3, %v1992_v17  ;;  %v1943_v49 = vld [vmem:[%s2794_s0 + $0x184] ss:$8 sps:$4 sm:$0xff]   ;;  %v1945_v50 = vld [vmem:[%s2794_s0 + $0x80] ss:$8 sps:$4 sm:$0xff]  }
  0x16   :  { %691 = vmatpush1.bf16.msra.mxu0 %v1888_v8  ;;  %1875 = vmatpush1.bf16.msra.mxu1 %v1888_v8  ;;  %57 = vst.msk [vmem:[#allocation2 + $0x128] sm:$0xff] %vm19_vm3, %v1992_v17  ;;  %58 = vst.msk [vmem:[#allocation2 + $0x130] sm:$0xff] %vm19_vm3, %v1992_v17  ;;  %v1946_v51 = vld [vmem:[%s2794_s0 + $0x180] ss:$8 sps:$4 sm:$0xff]   ;;  %v1947_v52 = vld [vmem:[%s2794_s0 + $0x94] ss:$8 sps:$4 sm:$0xff]  }
  0x17   :  { %692 = vmatprep.subr.bf16.mxu0 %v1990_v0  ;;  %1866 = vmatprep.subr.bf16.mxu1 %v1990_v0  ;;  %59 = vst.msk [vmem:[#allocation2 + $0x138] sm:$0xff] %vm19_vm3, %v1992_v17  ;;  %60 = vst.msk [vmem:[#allocation2 + $0x140] sm:$0xff] %vm19_vm3, %v1992_v17  ;;  %v1949_v53 = vld [vmem:[%s2794_s0 + $0x194] ss:$8 sps:$4 sm:$0xff]   ;;  %v1951_v54 = vld [vmem:[%s2794_s0 + $0x90] ss:$8 sps:$4 sm:$0xff]  }
  0x18   :  { %61 = vst.msk [vmem:[#allocation2 + $0x148] sm:$0xff] %vm19_vm3, %v1992_v17  ;;  %62 = vst.msk [vmem:[#allocation2 + $0x150] sm:$0xff] %vm19_vm3, %v1992_v17  ;;  %v1952_v55 = vld [vmem:[%s2794_s0 + $0x190] ss:$8 sps:$4 sm:$0xff]   ;;  %v1953_v56 = vld [vmem:[%s2794_s0 + $0xa4] ss:$8 sps:$4 sm:$0xff]  }
  0x19   :  { %63 = vst.msk [vmem:[#allocation2 + $0x158] sm:$0xff] %vm19_vm3, %v1992_v17  ;;  %64 = vst.msk [vmem:[#allocation2 + $0x160] sm:$0xff] %vm19_vm3, %v1992_v17  ;;  %v1955_v57 = vld [vmem:[%s2794_s0 + $0x1a4] ss:$8 sps:$4 sm:$0xff]   ;;  %v1957_v58 = vld [vmem:[%s2794_s0 + $0xa0] ss:$8 sps:$4 sm:$0xff]  }
  0x1a   :  { %693 = vmatpush1.bf16.msra.mxu0 %v1889_v9  ;;  %1876 = vmatpush1.bf16.msra.mxu1 %v1889_v9  ;;  %65 = vst.msk [vmem:[#allocation2 + $0x168] sm:$0xff] %vm19_vm3, %v1992_v17  ;;  %66 = vst.msk [vmem:[#allocation2 + $0x170] sm:$0xff] %vm19_vm3, %v1992_v17  ;;  %v1958_v59 = vld [vmem:[%s2794_s0 + $0x1a0] ss:$8 sps:$4 sm:$0xff]   ;;  %v1959_v60 = vld [vmem:[%s2794_s0 + $0xb4] ss:$8 sps:$4 sm:$0xff]  }
  0x1b   :  { %694 = vmatprep.subr.bf16.mxu0 %v1990_v0  ;;  %1867 = vmatprep.subr.bf16.mxu1 %v1990_v0  ;;  %67 = vst.msk [vmem:[#allocation2 + $0x178] sm:$0xff] %vm19_vm3, %v1992_v17  ;;  %68 = vst.msk [vmem:[#allocation2 + $0x180] sm:$0xff] %vm19_vm3, %v1992_v17  ;;  %v1961_v61 = vld [vmem:[%s2794_s0 + $0x1b4] ss:$8 sps:$4 sm:$0xff]   ;;  %v1963_v62 = vld [vmem:[%s2794_s0 + $0xb0] ss:$8 sps:$4 sm:$0xff]  }
  0x1c   :  { %69 = vst.msk [vmem:[#allocation2 + $0x188] sm:$0xff] %vm19_vm3, %v1992_v17  ;;  %70 = vst.msk [vmem:[#allocation2 + $0x190] sm:$0xff] %vm19_vm3, %v1992_v17  ;;  %v1964_v63 = vld [vmem:[%s2794_s0 + $0x1b0] ss:$8 sps:$4 sm:$0xff]   ;;  %v1967_v1 = vld [vmem:[%s2794_s0 + $0x1c4] ss:$8 sps:$4 sm:$0xff]  }
  0x1d   :  { %71 = vst.msk [vmem:[#allocation2 + $0x198] sm:$0xff] %vm19_vm3, %v1992_v17  ;;  %72 = vst.msk [vmem:[#allocation2 + $0x1a0] sm:$0xff] %vm19_vm3, %v1992_v17  ;;  %v1969_v2 = vld [vmem:[%s2794_s0 + $0xc0] ss:$8 sps:$4 sm:$0xff]   ;;  %v1971_v4 = vld [vmem:[%s2794_s0 + $0xd4] ss:$8 sps:$4 sm:$0xff]  }
  0x1e   :  { %695 = vmatpush1.bf16.msra.mxu0 %v1890_v10  ;;  %1877 = vmatpush1.bf16.msra.mxu1 %v1890_v10  ;;  %73 = vst.msk [vmem:[#allocation2 + $0x1a8] sm:$0xff] %vm19_vm3, %v1992_v17  ;;  %74 = vst.msk [vmem:[#allocation2 + $0x1b0] sm:$0xff] %vm19_vm3, %v1992_v17  ;;  %v1970_v3 = vld [vmem:[%s2794_s0 + $0x1c0] ss:$8 sps:$4 sm:$0xff]   ;;  %v1973_v5 = vld [vmem:[%s2794_s0 + $0x1d4] ss:$8 sps:$4 sm:$0xff]  }
  0x1f   :  { %696 = vmatprep.subr.bf16.mxu0 %v1990_v0  ;;  %1868 = vmatprep.subr.bf16.mxu1 %v1990_v0  ;;  %75 = vst.msk [vmem:[#allocation2 + $0x1b8] sm:$0xff] %vm19_vm3, %v1992_v17  ;;  %76 = vst.msk [vmem:[#allocation2 + $0x1c0] sm:$0xff] %vm19_vm3, %v1992_v17  ;;  %v1975_v6 = vld [vmem:[%s2794_s0 + $0xd0] ss:$8 sps:$4 sm:$0xff]   ;;  %v1977_v8 = vld [vmem:[%s2794_s0 + $0xe4] ss:$8 sps:$4 sm:$0xff]  }
  0x20   :  { %77 = vst.msk [vmem:[#allocation2 + $0x1c8] sm:$0xff] %vm19_vm3, %v1992_v17  ;;  %78 = vst.msk [vmem:[#allocation2 + $0x1d0] sm:$0xff] %vm19_vm3, %v1992_v17  ;;  %v1976_v7 = vld [vmem:[%s2794_s0 + $0x1d0] ss:$8 sps:$4 sm:$0xff]   ;;  %v1979_v9 = vld [vmem:[%s2794_s0 + $0x1e4] ss:$8 sps:$4 sm:$0xff]  }
  0x21   :  { %79 = vst.msk [vmem:[#allocation2 + $0x1d8] sm:$0xff] %vm19_vm3, %v1992_v17  ;;  %80 = vst.msk [vmem:[#allocation2 + $0x1e0] sm:$0xff] %vm19_vm3, %v1992_v17  ;;  %v1981_v10 = vld [vmem:[%s2794_s0 + $0xe0] ss:$8 sps:$4 sm:$0xff]   ;;  %v1983_v12 = vld [vmem:[%s2794_s0 + $0xf4] ss:$8 sps:$4 sm:$0xff]  }
  0x22   :  { %697 = vmatpush1.bf16.msra.mxu0 %v1891_v13  ;;  %1878 = vmatpush1.bf16.msra.mxu1 %v1891_v13  ;;  %81 = vst.msk [vmem:[#allocation2 + $0x1e8] sm:$0xff] %vm19_vm3, %v1992_v17  ;;  %82 = vst.msk [vmem:[#allocation2 + $0x1f0] sm:$0xff] %vm19_vm3, %v1992_v17  ;;  %v1982_v11 = vld [vmem:[%s2794_s0 + $0x1e0] ss:$8 sps:$4 sm:$0xff]   ;;  %v1985_v13 = vld [vmem:[%s2794_s0 + $0x1f4] ss:$8 sps:$4 sm:$0xff]  }
  0x23   :  { %698 = vmatprep.subr.bf16.mxu0 %v1990_v0  ;;  %1869 = vmatprep.subr.bf16.mxu1 %v1990_v0  ;;  %83 = vst.msk [vmem:[#allocation2 + $0x1f8] sm:$0xff] %vm19_vm3, %v1992_v17  ;;  %v1965_v0 = vld [vmem:[%s2794_s0 + $0xc4] ss:$8 sps:$4 sm:$0xff]   ;;  %v1987_v14 = vld [vmem:[%s2794_s0 + $0xf0] ss:$8 sps:$4 sm:$0xff]  }
  0x24   :  { %v1988_v15 = vld [vmem:[%s2794_s0 + $0x1f0] ss:$8 sps:$4 sm:$0xff]   ;;  %v116_v17 = vld [vmem:[#allocation2 + $0x100] sm:$0xff] }
  0x26   :  { %699 = vmatpush1.bf16.msra.mxu0 %v2051_v16  ;;  %1879 = vmatpush1.bf16.msra.mxu1 %v2051_v16  ;;  %v84_v16 = vld [vmem:[#allocation2] sm:$0xff] }
  0x29   :  { %713 = vmatmul.mubr.bf16.vlgmr.msra.gmra.mrb[0].mxu0 %v1893_v18  ;;  %841 = vmatmul.mubr.bf16.vlgmr.msra.gmra.mrb[0].mxu1 %v1896_v19 }
  0x2a   :  { %1700 = vmatprep.mubr.msk.bf16.mxu0 %vm576_vm0, %v1899_v20  ;;  %1716 = vmatprep.mubr.msk.bf16.mxu1 %vm576_vm0, %v1901_v21  ;;  %v85_v20 = vld [vmem:[#allocation2 + $0x8] sm:$0xff] }
  0x2b   :  { %v117_v21 = vld [vmem:[#allocation2 + $0x108] sm:$0xff] }
  0x31   :  { %721 = vmatmul.mubr.bf16.gmra.mrb[4].mxu0 %v1903_v22  ;;  %849 = vmatmul.mubr.bf16.gmra.mrb[4].mxu1 %v1904_v23 }
  0x32   :  { %1701 = vmatprep.mubr.msk.bf16.mxu0 %vm576_vm0, %v1905_v24  ;;  %1717 = vmatprep.mubr.msk.bf16.mxu1 %vm576_vm0, %v1907_v25 }
  0x39   :  { %729 = vmatmul.mubr.bf16.gmra.mrb[8].mxu0 %v1909_v26  ;;  %857 = vmatmul.mubr.bf16.gmra.mrb[8].mxu1 %v1910_v27 }
  0x3a   :  { %1702 = vmatprep.mubr.msk.bf16.mxu0 %vm576_vm0, %v1911_v28  ;;  %1718 = vmatprep.mubr.msk.bf16.mxu1 %vm576_vm0, %v1913_v29 }
  0x41   :  { %737 = vmatmul.mubr.bf16.gmra.mrb[12].mxu0 %v1915_v30  ;;  %865 = vmatmul.mubr.bf16.gmra.mrb[12].mxu1 %v1916_v31 }
  0x42   :  { %1703 = vmatprep.mubr.msk.bf16.mxu0 %vm576_vm0, %v1917_v32  ;;  %1719 = vmatprep.mubr.msk.bf16.mxu1 %vm576_vm0, %v1919_v33  ;;  %v86_v32 = vld [vmem:[#allocation2 + $0x10] sm:$0xff] }
  0x43   :  { %v118_v33 = vld [vmem:[#allocation2 + $0x110] sm:$0xff] }
  0x49   :  { %745 = vmatmul.mubr.bf16.gmra.mrb[16].mxu0 %v1921_v34  ;;  %873 = vmatmul.mubr.bf16.gmra.mrb[16].mxu1 %v1922_v35  ;;  %v2406_v34 = vld [vmem:[%s2795_s2] ss:$0 sm:$0xff] }
  0x4a   :  { %1704 = vmatprep.mubr.msk.bf16.mxu0 %vm576_vm0, %v1923_v36  ;;  %1720 = vmatprep.mubr.msk.bf16.mxu1 %vm576_vm0, %v1925_v37  ;;  %v87_v37 = vld [vmem:[#allocation2 + $0x18] sm:$0xff] }
  0x51   :  { %753 = vmatmul.mubr.bf16.gmra.mrb[20].mxu0 %v1927_v38  ;;  %881 = vmatmul.mubr.bf16.gmra.mrb[20].mxu1 %v1928_v39  ;;  %v119_v38 = vld [vmem:[#allocation2 + $0x118] sm:$0xff] }
  0x52   :  { %1705 = vmatprep.mubr.msk.bf16.mxu0 %vm576_vm0, %v1929_v40  ;;  %1721 = vmatprep.mubr.msk.bf16.mxu1 %vm576_vm0, %v1931_v41 }
  0x59   :  { %761 = vmatmul.mubr.bf16.gmra.mrb[24].mxu0 %v1933_v42  ;;  %889 = vmatmul.mubr.bf16.gmra.mrb[24].mxu1 %v1934_v43 }
  0x5a   :  { %1706 = vmatprep.mubr.msk.bf16.mxu0 %vm576_vm0, %v1935_v44  ;;  %1722 = vmatprep.mubr.msk.bf16.mxu1 %vm576_vm0, %v1937_v45 }
  0x61   :  { %769 = vmatmul.mubr.bf16.gmra.mrb[28].mxu0 %v1939_v46  ;;  %897 = vmatmul.mubr.bf16.gmra.mrb[28].mxu1 %v1940_v47 }
  0x62   :  { %1707 = vmatprep.mubr.msk.bf16.mxu0 %vm576_vm0, %v1941_v48  ;;  %1723 = vmatprep.mubr.msk.bf16.mxu1 %vm576_vm0, %v1943_v49 }
  0x69   :  { %777 = vmatmul.mubr.bf16.gmra.mrb[32].mxu0 %v1945_v50  ;;  %905 = vmatmul.mubr.bf16.gmra.mrb[32].mxu1 %v1946_v51 }
  0x6a   :  { %1708 = vmatprep.mubr.msk.bf16.mxu0 %vm576_vm0, %v1947_v52  ;;  %1724 = vmatprep.mubr.msk.bf16.mxu1 %vm576_vm0, %v1949_v53 }
  0x71   :  { %785 = vmatmul.mubr.bf16.gmra.mrb[36].mxu0 %v1951_v54  ;;  %913 = vmatmul.mubr.bf16.gmra.mrb[36].mxu1 %v1952_v55 }
  0x72   :  { %1709 = vmatprep.mubr.msk.bf16.mxu0 %vm576_vm0, %v1953_v56  ;;  %1725 = vmatprep.mubr.msk.bf16.mxu1 %vm576_vm0, %v1955_v57 }
  0x79   :  { %793 = vmatmul.mubr.bf16.gmra.mrb[40].mxu0 %v1957_v58  ;;  %921 = vmatmul.mubr.bf16.gmra.mrb[40].mxu1 %v1958_v59  ;;  %v88_v59 = vld [vmem:[#allocation2 + $0x20] sm:$0xff] }
  0x7a   :  { %1710 = vmatprep.mubr.msk.bf16.mxu0 %vm576_vm0, %v1959_v60  ;;  %1726 = vmatprep.mubr.msk.bf16.mxu1 %vm576_vm0, %v1961_v61  ;;  %v120_v60 = vld [vmem:[#allocation2 + $0x120] sm:$0xff] }
  0x81   :  { %801 = vmatmul.mubr.bf16.gmra.mrb[44].mxu0 %v1963_v62  ;;  %929 = vmatmul.mubr.bf16.gmra.mrb[44].mxu1 %v1964_v63 }
  0x82   :  { %1711 = vmatprep.mubr.msk.bf16.mxu0 %vm576_vm0, %v1965_v0  ;;  %1727 = vmatprep.mubr.msk.bf16.mxu1 %vm576_vm0, %v1967_v1 }
  0x89   :  { %809 = vmatmul.mubr.bf16.gmra.mrb[48].mxu0 %v1969_v2  ;;  %937 = vmatmul.mubr.bf16.gmra.mrb[48].mxu1 %v1970_v3  ;;  %v89_v3 = vld [vmem:[#allocation2 + $0x28] sm:$0xff] }
  0x8a   :  { %1712 = vmatprep.mubr.msk.bf16.mxu0 %vm576_vm0, %v1971_v4  ;;  %1728 = vmatprep.mubr.msk.bf16.mxu1 %vm576_vm0, %v1973_v5  ;;  %v121_v4 = vld [vmem:[#allocation2 + $0x128] sm:$0xff] }
  0x91   :  { %817 = vmatmul.mubr.bf16.gmra.mrb[52].mxu0 %v1975_v6  ;;  %945 = vmatmul.mubr.bf16.gmra.mrb[52].mxu1 %v1976_v7 }
  0x92   :  { %1713 = vmatprep.mubr.msk.bf16.mxu0 %vm576_vm0, %v1977_v8  ;;  %1729 = vmatprep.mubr.msk.bf16.mxu1 %vm576_vm0, %v1979_v9 }
  0x99   :  { %825 = vmatmul.mubr.bf16.gmra.mrb[56].mxu0 %v1981_v10  ;;  %953 = vmatmul.mubr.bf16.gmra.mrb[56].mxu1 %v1982_v11 }
  0x9a   :  { %1714 = vmatprep.mubr.msk.bf16.mxu0 %vm576_vm0, %v1983_v12  ;;  %1730 = vmatprep.mubr.msk.bf16.mxu1 %vm576_vm0, %v1985_v13 }
  0xa1   :  { %833 = vmatmul.mubr.bf16.gmra.mrb[60].mxu0 %v1987_v14  ;;  %961 = vmatmul.mubr.bf16.gmra.mrb[60].mxu1 %v1988_v15 }
  0xfc   :  { %v714_v18 = vpop.f32.mrb[0].mxu0  ;;  %v842_v19 = vpop.f32.mrb[0].mxu1 }
  0xfd   :  { %v969_v22 = vadd.f32 %v714_v18, %v84_v16  ;;  %v1001_v23 = vadd.f32 %v842_v19, %v116_v17  ;;  %v716_v24 = vpop.f32.mrb[1].mxu0  ;;  %v844_v25 = vpop.f32.mrb[1].mxu1 }
  0xfe   :  { %v717_v26 = vpop.f32.mrb[2].mxu0  ;;  %v845_v27 = vpop.f32.mrb[2].mxu1 }
  0xff   :  { %1034 = vst.msk [vmem:[#allocation2] sm:$0xff] %vm19_vm3, %v969_v22  ;;  %1066 = vst.msk [vmem:[#allocation2 + $0x100] sm:$0xff] %vm19_vm3, %v1001_v23  ;;  %v970_v28 = vadd.f32 %v717_v26, %v85_v20  ;;  %v1002_v29 = vadd.f32 %v845_v27, %v117_v21  ;;  %v719_v30 = vpop.f32.mrb[3].mxu0  ;;  %v847_v31 = vpop.f32.mrb[3].mxu1  ;;  %v90_v27 = vld [vmem:[#allocation2 + $0x30] sm:$0xff] }
 0x101   :  { %1035 = vst.msk [vmem:[#allocation2 + $0x8] sm:$0xff] %vm19_vm3, %v970_v28  ;;  %1067 = vst.msk [vmem:[#allocation2 + $0x108] sm:$0xff] %vm19_vm3, %v1002_v29  ;;  %v122_v28 = vld [vmem:[#allocation2 + $0x130] sm:$0xff] }
 0x104   :  { %v722_v35 = vpop.f32.mrb[4].mxu0  ;;  %v850_v36 = vpop.f32.mrb[4].mxu1 }
 0x105   :  { %v971_v39 = vadd.f32 %v722_v35, %v86_v32  ;;  %v1003_v40 = vadd.f32 %v850_v36, %v118_v33  ;;  %v724_v41 = vpop.f32.mrb[5].mxu0  ;;  %v852_v42 = vpop.f32.mrb[5].mxu1  ;;  %v91_v36 = vld [vmem:[#allocation2 + $0x38] sm:$0xff] }
 0x106   :  { %v1101_v43 = vld [vmem:[#allocation2] sm:$0xff]  ;;  %v725_v45 = vpop.f32.mrb[6].mxu0  ;;  %v853_v46 = vpop.f32.mrb[6].mxu1 }
 0x107   :  { %v1133_v44 = vld [vmem:[#allocation2 + $0x100] sm:$0xff]  ;;  %v1172_v47 = vadd.f32 %v2406_v34, %v1101_v43  ;;  %1036 = vst.msk [vmem:[#allocation2 + $0x10] sm:$0xff] %vm19_vm3, %v971_v39  ;;  %1068 = vst.msk [vmem:[#allocation2 + $0x110] sm:$0xff] %vm19_vm3, %v1003_v40  ;;  %v972_v49 = vadd.f32 %v725_v45, %v87_v37  ;;  %v1004_v50 = vadd.f32 %v853_v46, %v119_v38  ;;  %v727_v51 = vpop.f32.mrb[7].mxu0  ;;  %v855_v52 = vpop.f32.mrb[7].mxu1  ;;  %v123_v37 = vld [vmem:[#allocation2 + $0x138] sm:$0xff] }
 0x108   :  { %v1204_v48 = vadd.f32 %v2406_v34, %v1133_v44  ;;  %v1102_v53 = vld [vmem:[#allocation2 + $0x8] sm:$0xff] }
 0x109   :  { %v1134_v54 = vld [vmem:[#allocation2 + $0x108] sm:$0xff]  ;;  %v1236_v55 = vmax.f32 %v1172_v47, 0.0  ;;  %v1173_v57 = vadd.f32 %v2406_v34, %v1102_v53  ;;  %1037 = vst.msk [vmem:[#allocation2 + $0x18] sm:$0xff] %vm19_vm3, %v972_v49  ;;  %1069 = vst.msk [vmem:[#allocation2 + $0x118] sm:$0xff] %vm19_vm3, %v1004_v50 }
 0x10a   :  { %v1268_v56 = vmax.f32 %v1204_v48, 0.0  ;;  %v1205_v58 = vadd.f32 %v2406_v34, %v1134_v54 }
 0x10b   :  { %v1796_v61 = vpack.c.bf16 %v1236_v55, %v1236_v55  ;;  %v1237_v63 = vmax.f32 %v1173_v57, 0.0 }
 0x10c   :  { %v1828_v62 = vpack.c.bf16 %v1268_v56, %v1268_v56  ;;  %v1269_v0 = vmax.f32 %v1205_v58, 0.0  ;;  %v730_v1 = vpop.f32.mrb[8].mxu0  ;;  %v858_v2 = vpop.f32.mrb[8].mxu1 }
 0x10d   :  { %1557 = vst.msk [vmem:[%s2796_s3] sm:$0xf] %vm1556_vm4, %v1796_v61  ;;  %v1797_v5 = vpack.c.bf16 %v1237_v63, %v1237_v63  ;;  %v973_v7 = vadd.f32 %v730_v1, %v88_v59  ;;  %v1005_v8 = vadd.f32 %v858_v2, %v120_v60  ;;  %v732_v9 = vpop.f32.mrb[9].mxu0  ;;  %v860_v10 = vpop.f32.mrb[9].mxu1  ;;  %v92_v60 = vld [vmem:[#allocation2 + $0x40] sm:$0xff] }
 0x10e   :  { %1589 = vst.msk [vmem:[%s2796_s3 + $0x80] sm:$0xf] %vm1556_vm4, %v1828_v62  ;;  %v1829_v6 = vpack.c.bf16 %v1269_v0, %v1269_v0  ;;  %v1103_v11 = vld [vmem:[#allocation2 + $0x10] sm:$0xff]  ;;  %v733_v13 = vpop.f32.mrb[10].mxu0  ;;  %v861_v14 = vpop.f32.mrb[10].mxu1  ;;  %v124_v61 = vld [vmem:[#allocation2 + $0x140] sm:$0xff] }
 0x10f   :  { %v1135_v12 = vld [vmem:[#allocation2 + $0x110] sm:$0xff]  ;;  %1558 = vst.msk [vmem:[%s2796_s3 + $0x4] sm:$0xf] %vm1556_vm4, %v1797_v5  ;;  %v1174_v15 = vadd.f32 %v2406_v34, %v1103_v11  ;;  %v974_v17 = vadd.f32 %v733_v13, %v89_v3  ;;  %v1006_v18 = vadd.f32 %v861_v14, %v121_v4  ;;  %v735_v19 = vpop.f32.mrb[11].mxu0  ;;  %v863_v20 = vpop.f32.mrb[11].mxu1  ;;  %v93_v4 = vld [vmem:[#allocation2 + $0x48] sm:$0xff] }
 0x110   :  { %1590 = vst.msk [vmem:[%s2796_s3 + $0x84] sm:$0xf] %vm1556_vm4, %v1829_v6  ;;  %v1206_v16 = vadd.f32 %v2406_v34, %v1135_v12  ;;  %v1104_v21 = vld [vmem:[#allocation2 + $0x18] sm:$0xff]  ;;  %v125_v5 = vld [vmem:[#allocation2 + $0x148] sm:$0xff] }
 0x111   :  { %1038 = vst.msk [vmem:[#allocation2 + $0x20] sm:$0xff] %vm19_vm3, %v973_v7  ;;  %1070 = vst.msk [vmem:[#allocation2 + $0x120] sm:$0xff] %vm19_vm3, %v1005_v8  ;;  %v1136_v22 = vld [vmem:[#allocation2 + $0x118] sm:$0xff]  ;;  %v1238_v23 = vmax.f32 %v1174_v15, 0.0  ;;  %v1175_v25 = vadd.f32 %v2406_v34, %v1104_v21 }
 0x112   :  { %v1270_v24 = vmax.f32 %v1206_v16, 0.0  ;;  %v1207_v26 = vadd.f32 %v2406_v34, %v1136_v22  ;;  %1039 = vst.msk [vmem:[#allocation2 + $0x28] sm:$0xff] %vm19_vm3, %v974_v17  ;;  %1071 = vst.msk [vmem:[#allocation2 + $0x128] sm:$0xff] %vm19_vm3, %v1006_v18 }
 0x113   :  { %v1798_v29 = vpack.c.bf16 %v1238_v23, %v1238_v23  ;;  %v1239_v31 = vmax.f32 %v1175_v25, 0.0 }
 0x114   :  { %v1830_v30 = vpack.c.bf16 %v1270_v24, %v1270_v24  ;;  %v1271_v32 = vmax.f32 %v1207_v26, 0.0  ;;  %v738_v33 = vpop.f32.mrb[12].mxu0  ;;  %v866_v35 = vpop.f32.mrb[12].mxu1 }
 0x115   :  { %1559 = vst.msk [vmem:[%s2796_s3 + $0x8] sm:$0xf] %vm1556_vm4, %v1798_v29  ;;  %v1799_v38 = vpack.c.bf16 %v1239_v31, %v1239_v31  ;;  %v975_v40 = vadd.f32 %v738_v33, %v90_v27  ;;  %v1007_v41 = vadd.f32 %v866_v35, %v122_v28  ;;  %v740_v42 = vpop.f32.mrb[13].mxu0  ;;  %v868_v43 = vpop.f32.mrb[13].mxu1  ;;  %v94_v28 = vld [vmem:[#allocation2 + $0x50] sm:$0xff] }
 0x116   :  { %1591 = vst.msk [vmem:[%s2796_s3 + $0x88] sm:$0xf] %vm1556_vm4, %v1830_v30  ;;  %v1831_v39 = vpack.c.bf16 %v1271_v32, %v1271_v32  ;;  %v741_v46 = vpop.f32.mrb[14].mxu0  ;;  %v869_v47 = vpop.f32.mrb[14].mxu1  ;;  %v126_v29 = vld [vmem:[#allocation2 + $0x150] sm:$0xff] }
 0x117   :  { %1560 = vst.msk [vmem:[%s2796_s3 + $0xc] sm:$0xf] %vm1556_vm4, %v1799_v38  ;;  %v976_v50 = vadd.f32 %v741_v46, %v91_v36  ;;  %v1008_v51 = vadd.f32 %v869_v47, %v123_v37  ;;  %v743_v52 = vpop.f32.mrb[15].mxu0  ;;  %v871_v53 = vpop.f32.mrb[15].mxu1  ;;  %v95_v37 = vld [vmem:[#allocation2 + $0x58] sm:$0xff] }
 0x118   :  { %v1105_v44 = vld [vmem:[#allocation2 + $0x20] sm:$0xff]  ;;  %1592 = vst.msk [vmem:[%s2796_s3 + $0x8c] sm:$0xf] %vm1556_vm4, %v1831_v39  ;;  %v127_v38 = vld [vmem:[#allocation2 + $0x158] sm:$0xff] }
 0x119   :  { %v1137_v45 = vld [vmem:[#allocation2 + $0x120] sm:$0xff]  ;;  %v1176_v48 = vadd.f32 %v2406_v34, %v1105_v44  ;;  %1040 = vst.msk [vmem:[#allocation2 + $0x30] sm:$0xff] %vm19_vm3, %v975_v40  ;;  %1072 = vst.msk [vmem:[#allocation2 + $0x130] sm:$0xff] %vm19_vm3, %v1007_v41  ;;  %v1106_v54 = vld [vmem:[#allocation2 + $0x28] sm:$0xff] }
 0x11a   :  { %v1208_v49 = vadd.f32 %v2406_v34, %v1137_v45  ;;  %v1138_v55 = vld [vmem:[#allocation2 + $0x128] sm:$0xff]  ;;  %v1177_v58 = vadd.f32 %v2406_v34, %v1106_v54  ;;  %1041 = vst.msk [vmem:[#allocation2 + $0x38] sm:$0xff] %vm19_vm3, %v976_v50  ;;  %1073 = vst.msk [vmem:[#allocation2 + $0x138] sm:$0xff] %vm19_vm3, %v1008_v51 }
 0x11b   :  { %v1240_v56 = vmax.f32 %v1176_v48, 0.0  ;;  %v1209_v59 = vadd.f32 %v2406_v34, %v1138_v55 }
 0x11c   :  { %v1272_v57 = vmax.f32 %v1208_v49, 0.0  ;;  %v1241_v0 = vmax.f32 %v1177_v58, 0.0  ;;  %v746_v2 = vpop.f32.mrb[16].mxu0  ;;  %v874_v3 = vpop.f32.mrb[16].mxu1 }
 0x11d   :  { %v1800_v62 = vpack.c.bf16 %v1240_v56, %v1240_v56  ;;  %v1273_v1 = vmax.f32 %v1209_v59, 0.0  ;;  %v977_v8 = vadd.f32 %v746_v2, %v92_v60  ;;  %v1009_v9 = vadd.f32 %v874_v3, %v124_v61  ;;  %v748_v10 = vpop.f32.mrb[17].mxu0  ;;  %v876_v11 = vpop.f32.mrb[17].mxu1  ;;  %v96_v61 = vld [vmem:[#allocation2 + $0x60] sm:$0xff] }
 0x11e   :  { %v1832_v63 = vpack.c.bf16 %v1272_v57, %v1272_v57  ;;  %v1801_v6 = vpack.c.bf16 %v1241_v0, %v1241_v0  ;;  %v749_v14 = vpop.f32.mrb[18].mxu0  ;;  %v877_v15 = vpop.f32.mrb[18].mxu1 }
 0x11f   :  { %1561 = vst.msk [vmem:[%s2796_s3 + $0x10] sm:$0xf] %vm1556_vm4, %v1800_v62  ;;  %v1833_v7 = vpack.c.bf16 %v1273_v1, %v1273_v1  ;;  %v978_v18 = vadd.f32 %v749_v14, %v93_v4  ;;  %v1010_v19 = vadd.f32 %v877_v15, %v125_v5  ;;  %v751_v20 = vpop.f32.mrb[19].mxu0  ;;  %v879_v21 = vpop.f32.mrb[19].mxu1  ;;  %v128_v62 = vld [vmem:[#allocation2 + $0x160] sm:$0xff]  ;;  %v97_v5 = vld [vmem:[#allocation2 + $0x68] sm:$0xff] }
 0x120   :  { %1593 = vst.msk [vmem:[%s2796_s3 + $0x90] sm:$0xf] %vm1556_vm4, %v1832_v63  ;;  %v1107_v12 = vld [vmem:[#allocation2 + $0x30] sm:$0xff]  ;;  %1562 = vst.msk [vmem:[%s2796_s3 + $0x14] sm:$0xf] %vm1556_vm4, %v1801_v6  ;;  %v129_v6 = vld [vmem:[#allocation2 + $0x168] sm:$0xff] }
 0x121   :  { %v1139_v13 = vld [vmem:[#allocation2 + $0x130] sm:$0xff]  ;;  %1594 = vst.msk [vmem:[%s2796_s3 + $0x94] sm:$0xf] %vm1556_vm4, %v1833_v7  ;;  %v1178_v16 = vadd.f32 %v2406_v34, %v1107_v12  ;;  %v1108_v22 = vld [vmem:[#allocation2 + $0x38] sm:$0xff] }
 0x122   :  { %v1210_v17 = vadd.f32 %v2406_v34, %v1139_v13  ;;  %1042 = vst.msk [vmem:[#allocation2 + $0x40] sm:$0xff] %vm19_vm3, %v977_v8  ;;  %1074 = vst.msk [vmem:[#allocation2 + $0x140] sm:$0xff] %vm19_vm3, %v1009_v9  ;;  %v1140_v23 = vld [vmem:[#allocation2 + $0x138] sm:$0xff]  ;;  %v1179_v26 = vadd.f32 %v2406_v34, %v1108_v22 }
 0x123   :  { %v1242_v24 = vmax.f32 %v1178_v16, 0.0  ;;  %v1211_v27 = vadd.f32 %v2406_v34, %v1140_v23  ;;  %1043 = vst.msk [vmem:[#allocation2 + $0x48] sm:$0xff] %vm19_vm3, %v978_v18  ;;  %1075 = vst.msk [vmem:[#allocation2 + $0x148] sm:$0xff] %vm19_vm3, %v1010_v19 }
 0x124   :  { %v1274_v25 = vmax.f32 %v1210_v17, 0.0  ;;  %v1243_v32 = vmax.f32 %v1179_v26, 0.0  ;;  %v754_v35 = vpop.f32.mrb[20].mxu0  ;;  %v882_v36 = vpop.f32.mrb[20].mxu1 }
 0x125   :  { %v1802_v30 = vpack.c.bf16 %v1242_v24, %v1242_v24  ;;  %v1275_v33 = vmax.f32 %v1211_v27, 0.0  ;;  %v979_v41 = vadd.f32 %v754_v35, %v94_v28  ;;  %v1011_v42 = vadd.f32 %v882_v36, %v126_v29  ;;  %v756_v43 = vpop.f32.mrb[21].mxu0  ;;  %v884_v44 = vpop.f32.mrb[21].mxu1  ;;  %v98_v29 = vld [vmem:[#allocation2 + $0x70] sm:$0xff] }
 0x126   :  { %v1834_v31 = vpack.c.bf16 %v1274_v25, %v1274_v25  ;;  %v1803_v39 = vpack.c.bf16 %v1243_v32, %v1243_v32  ;;  %v757_v47 = vpop.f32.mrb[22].mxu0  ;;  %v885_v48 = vpop.f32.mrb[22].mxu1 }
 0x127   :  { %1563 = vst.msk [vmem:[%s2796_s3 + $0x18] sm:$0xf] %vm1556_vm4, %v1802_v30  ;;  %v1835_v40 = vpack.c.bf16 %v1275_v33, %v1275_v33  ;;  %v980_v51 = vadd.f32 %v757_v47, %v95_v37  ;;  %v1012_v52 = vadd.f32 %v885_v48, %v127_v38  ;;  %v759_v53 = vpop.f32.mrb[23].mxu0  ;;  %v887_v54 = vpop.f32.mrb[23].mxu1  ;;  %v130_v30 = vld [vmem:[#allocation2 + $0x170] sm:$0xff]  ;;  %v99_v38 = vld [vmem:[#allocation2 + $0x78] sm:$0xff] }
 0x128   :  { %1595 = vst.msk [vmem:[%s2796_s3 + $0x98] sm:$0xf] %vm1556_vm4, %v1834_v31  ;;  %1564 = vst.msk [vmem:[%s2796_s3 + $0x1c] sm:$0xf] %vm1556_vm4, %v1803_v39  ;;  %v131_v39 = vld [vmem:[#allocation2 + $0x178] sm:$0xff] }
 0x129   :  { %v1109_v45 = vld [vmem:[#allocation2 + $0x40] sm:$0xff]  ;;  %1596 = vst.msk [vmem:[%s2796_s3 + $0x9c] sm:$0xf] %vm1556_vm4, %v1835_v40 }
 0x12a   :  { %v1141_v46 = vld [vmem:[#allocation2 + $0x140] sm:$0xff]  ;;  %v1180_v49 = vadd.f32 %v2406_v34, %v1109_v45  ;;  %1044 = vst.msk [vmem:[#allocation2 + $0x50] sm:$0xff] %vm19_vm3, %v979_v41  ;;  %1076 = vst.msk [vmem:[#allocation2 + $0x150] sm:$0xff] %vm19_vm3, %v1011_v42  ;;  %v1110_v55 = vld [vmem:[#allocation2 + $0x48] sm:$0xff] }
 0x12b   :  { %v1212_v50 = vadd.f32 %v2406_v34, %v1141_v46  ;;  %v1142_v56 = vld [vmem:[#allocation2 + $0x148] sm:$0xff]  ;;  %v1181_v59 = vadd.f32 %v2406_v34, %v1110_v55  ;;  %1045 = vst.msk [vmem:[#allocation2 + $0x58] sm:$0xff] %vm19_vm3, %v980_v51  ;;  %1077 = vst.msk [vmem:[#allocation2 + $0x158] sm:$0xff] %vm19_vm3, %v1012_v52 }
 0x12c   :  { %v1244_v57 = vmax.f32 %v1180_v49, 0.0  ;;  %v1213_v60 = vadd.f32 %v2406_v34, %v1142_v56  ;;  %v762_v3 = vpop.f32.mrb[24].mxu0  ;;  %v890_v4 = vpop.f32.mrb[24].mxu1 }
 0x12d   :  { %v1276_v58 = vmax.f32 %v1212_v50, 0.0  ;;  %v1245_v1 = vmax.f32 %v1181_v59, 0.0  ;;  %v981_v9 = vadd.f32 %v762_v3, %v96_v61  ;;  %v1013_v10 = vadd.f32 %v890_v4, %v128_v62  ;;  %v764_v11 = vpop.f32.mrb[25].mxu0  ;;  %v892_v12 = vpop.f32.mrb[25].mxu1  ;;  %v100_v62 = vld [vmem:[#allocation2 + $0x80] sm:$0xff] }
 0x12e   :  { %v1804_v63 = vpack.c.bf16 %v1244_v57, %v1244_v57  ;;  %v1277_v2 = vmax.f32 %v1213_v60, 0.0  ;;  %v765_v15 = vpop.f32.mrb[26].mxu0  ;;  %v893_v16 = vpop.f32.mrb[26].mxu1 }
 0x12f   :  { %v1836_v0 = vpack.c.bf16 %v1276_v58, %v1276_v58  ;;  %v1805_v7 = vpack.c.bf16 %v1245_v1, %v1245_v1  ;;  %1046 = vst.msk [vmem:[#allocation2 + $0x60] sm:$0xff] %vm19_vm3, %v981_v9  ;;  %1078 = vst.msk [vmem:[#allocation2 + $0x160] sm:$0xff] %vm19_vm3, %v1013_v10  ;;  %v982_v19 = vadd.f32 %v765_v15, %v97_v5  ;;  %v767_v21 = vpop.f32.mrb[27].mxu0  ;;  %v895_v22 = vpop.f32.mrb[27].mxu1 }
 0x130   :  { %1565 = vst.msk [vmem:[%s2796_s3 + $0x20] sm:$0xf] %vm1556_vm4, %v1804_v63  ;;  %v1837_v8 = vpack.c.bf16 %v1277_v2, %v1277_v2  ;;  %v1014_v20 = vadd.f32 %v893_v16, %v129_v6  ;;  %v132_v63 = vld [vmem:[#allocation2 + $0x180] sm:$0xff]  ;;  %v101_v6 = vld [vmem:[#allocation2 + $0x88] sm:$0xff] }
 0x131   :  { %1597 = vst.msk [vmem:[%s2796_s3 + $0xa0] sm:$0xf] %vm1556_vm4, %v1836_v0  ;;  %v1111_v13 = vld [vmem:[#allocation2 + $0x50] sm:$0xff]  ;;  %1566 = vst.msk [vmem:[%s2796_s3 + $0x24] sm:$0xf] %vm1556_vm4, %v1805_v7  ;;  %v133_v7 = vld [vmem:[#allocation2 + $0x188] sm:$0xff] }
 0x132   :  { %v1143_v14 = vld [vmem:[#allocation2 + $0x150] sm:$0xff]  ;;  %1598 = vst.msk [vmem:[%s2796_s3 + $0xa4] sm:$0xf] %vm1556_vm4, %v1837_v8  ;;  %v1182_v17 = vadd.f32 %v2406_v34, %v1111_v13  ;;  %v1112_v23 = vld [vmem:[#allocation2 + $0x58] sm:$0xff] }
 0x133   :  { %v1214_v18 = vadd.f32 %v2406_v34, %v1143_v14  ;;  %v1144_v24 = vld [vmem:[#allocation2 + $0x158] sm:$0xff]  ;;  %v1183_v27 = vadd.f32 %v2406_v34, %v1112_v23  ;;  %1047 = vst.msk [vmem:[#allocation2 + $0x68] sm:$0xff] %vm19_vm3, %v982_v19  ;;  %1079 = vst.msk [vmem:[#allocation2 + $0x168] sm:$0xff] %vm19_vm3, %v1014_v20 }
 0x134   :  { %v1246_v25 = vmax.f32 %v1182_v17, 0.0  ;;  %v1215_v28 = vadd.f32 %v2406_v34, %v1144_v24  ;;  %v770_v36 = vpop.f32.mrb[28].mxu0  ;;  %v898_v37 = vpop.f32.mrb[28].mxu1 }
 0x135   :  { %v1278_v26 = vmax.f32 %v1214_v18, 0.0  ;;  %v1247_v33 = vmax.f32 %v1183_v27, 0.0  ;;  %v983_v42 = vadd.f32 %v770_v36, %v98_v29  ;;  %v1015_v43 = vadd.f32 %v898_v37, %v130_v30  ;;  %v772_v44 = vpop.f32.mrb[29].mxu0  ;;  %v900_v45 = vpop.f32.mrb[29].mxu1  ;;  %v102_v30 = vld [vmem:[#allocation2 + $0x90] sm:$0xff] }
 0x136   :  { %v1806_v31 = vpack.c.bf16 %v1246_v25, %v1246_v25  ;;  %v1279_v35 = vmax.f32 %v1215_v28, 0.0  ;;  %v1113_v46 = vld [vmem:[#allocation2 + $0x60] sm:$0xff]  ;;  %v773_v48 = vpop.f32.mrb[30].mxu0  ;;  %v901_v49 = vpop.f32.mrb[30].mxu1 }
 0x137   :  { %v1838_v32 = vpack.c.bf16 %v1278_v26, %v1278_v26  ;;  %v1807_v40 = vpack.c.bf16 %v1247_v33, %v1247_v33  ;;  %v1145_v47 = vld [vmem:[#allocation2 + $0x160] sm:$0xff]  ;;  %v1184_v50 = vadd.f32 %v2406_v34, %v1113_v46  ;;  %1048 = vst.msk [vmem:[#allocation2 + $0x70] sm:$0xff] %vm19_vm3, %v983_v42  ;;  %1080 = vst.msk [vmem:[#allocation2 + $0x170] sm:$0xff] %vm19_vm3, %v1015_v43  ;;  %v775_v54 = vpop.f32.mrb[31].mxu0  ;;  %v903_v55 = vpop.f32.mrb[31].mxu1 }
 0x138   :  { %1567 = vst.msk [vmem:[%s2796_s3 + $0x28] sm:$0xf] %vm1556_vm4, %v1806_v31  ;;  %v1839_v41 = vpack.c.bf16 %v1279_v35, %v1279_v35  ;;  %v1216_v51 = vadd.f32 %v2406_v34, %v1145_v47  ;;  %v984_v52 = vadd.f32 %v773_v48, %v99_v38  ;;  %v1016_v53 = vadd.f32 %v901_v49, %v131_v39  ;;  %v134_v31 = vld [vmem:[#allocation2 + $0x190] sm:$0xff]  ;;  %v103_v39 = vld [vmem:[#allocation2 + $0x98] sm:$0xff] }
 0x139   :  { %1599 = vst.msk [vmem:[%s2796_s3 + $0xa8] sm:$0xf] %vm1556_vm4, %v1838_v32  ;;  %1568 = vst.msk [vmem:[%s2796_s3 + $0x2c] sm:$0xf] %vm1556_vm4, %v1807_v40  ;;  %v1248_v58 = vmax.f32 %v1184_v50, 0.0  ;;  %v135_v40 = vld [vmem:[#allocation2 + $0x198] sm:$0xff] }
 0x13a   :  { %1600 = vst.msk [vmem:[%s2796_s3 + $0xac] sm:$0xf] %vm1556_vm4, %v1839_v41  ;;  %v1114_v56 = vld [vmem:[#allocation2 + $0x68] sm:$0xff]  ;;  %v1280_v59 = vmax.f32 %v1216_v51, 0.0 }
 0x13b   :  { %v1146_v57 = vld [vmem:[#allocation2 + $0x168] sm:$0xff]  ;;  %v1185_v60 = vadd.f32 %v2406_v34, %v1114_v56  ;;  %1049 = vst.msk [vmem:[#allocation2 + $0x78] sm:$0xff] %vm19_vm3, %v984_v52  ;;  %1081 = vst.msk [vmem:[#allocation2 + $0x178] sm:$0xff] %vm19_vm3, %v1016_v53  ;;  %v1808_v0 = vpack.c.bf16 %v1248_v58, %v1248_v58 }
 0x13c   :  { %v1217_v61 = vadd.f32 %v2406_v34, %v1146_v57  ;;  %v1840_v1 = vpack.c.bf16 %v1280_v59, %v1280_v59  ;;  %v778_v4 = vpop.f32.mrb[32].mxu0  ;;  %v906_v5 = vpop.f32.mrb[32].mxu1 }
 0x13d   :  { %v1249_v2 = vmax.f32 %v1185_v60, 0.0  ;;  %1569 = vst.msk [vmem:[%s2796_s3 + $0x30] sm:$0xf] %vm1556_vm4, %v1808_v0  ;;  %v985_v10 = vadd.f32 %v778_v4, %v100_v62  ;;  %v1017_v11 = vadd.f32 %v906_v5, %v132_v63  ;;  %v780_v12 = vpop.f32.mrb[33].mxu0  ;;  %v908_v13 = vpop.f32.mrb[33].mxu1  ;;  %v104_v63 = vld [vmem:[#allocation2 + $0xa0] sm:$0xff] }
 0x13e   :  { %v1281_v3 = vmax.f32 %v1217_v61, 0.0  ;;  %1601 = vst.msk [vmem:[%s2796_s3 + $0xb0] sm:$0xf] %vm1556_vm4, %v1840_v1  ;;  %v1115_v14 = vld [vmem:[#allocation2 + $0x70] sm:$0xff]  ;;  %v781_v16 = vpop.f32.mrb[34].mxu0  ;;  %v909_v17 = vpop.f32.mrb[34].mxu1 }
 0x13f   :  { %v1809_v8 = vpack.c.bf16 %v1249_v2, %v1249_v2  ;;  %v1147_v15 = vld [vmem:[#allocation2 + $0x170] sm:$0xff]  ;;  %v1186_v18 = vadd.f32 %v2406_v34, %v1115_v14  ;;  %1050 = vst.msk [vmem:[#allocation2 + $0x80] sm:$0xff] %vm19_vm3, %v985_v10  ;;  %1082 = vst.msk [vmem:[#allocation2 + $0x180] sm:$0xff] %vm19_vm3, %v1017_v11  ;;  %v986_v20 = vadd.f32 %v781_v16, %v101_v6  ;;  %v783_v22 = vpop.f32.mrb[35].mxu0  ;;  %v911_v23 = vpop.f32.mrb[35].mxu1  ;;  %v136_v0 = vld [vmem:[#allocation2 + $0x1a0] sm:$0xff] }
 0x140   :  { %v1841_v9 = vpack.c.bf16 %v1281_v3, %v1281_v3  ;;  %v1218_v19 = vadd.f32 %v2406_v34, %v1147_v15  ;;  %v1018_v21 = vadd.f32 %v909_v17, %v133_v7  ;;  %v105_v7 = vld [vmem:[#allocation2 + $0xa8] sm:$0xff] }
 0x141   :  { %1570 = vst.msk [vmem:[%s2796_s3 + $0x34] sm:$0xf] %vm1556_vm4, %v1809_v8  ;;  %v1250_v26 = vmax.f32 %v1186_v18, 0.0  ;;  %v137_v8 = vld [vmem:[#allocation2 + $0x1a8] sm:$0xff] }
 0x142   :  { %1602 = vst.msk [vmem:[%s2796_s3 + $0xb4] sm:$0xf] %vm1556_vm4, %v1841_v9  ;;  %v1116_v24 = vld [vmem:[#allocation2 + $0x78] sm:$0xff]  ;;  %v1282_v27 = vmax.f32 %v1218_v19, 0.0 }
 0x143   :  { %v1148_v25 = vld [vmem:[#allocation2 + $0x178] sm:$0xff]  ;;  %v1187_v28 = vadd.f32 %v2406_v34, %v1116_v24  ;;  %1051 = vst.msk [vmem:[#allocation2 + $0x88] sm:$0xff] %vm19_vm3, %v986_v20  ;;  %1083 = vst.msk [vmem:[#allocation2 + $0x188] sm:$0xff] %vm19_vm3, %v1018_v21  ;;  %v1810_v32 = vpack.c.bf16 %v1250_v26, %v1250_v26 }
 0x144   :  { %v1219_v29 = vadd.f32 %v2406_v34, %v1148_v25  ;;  %v1842_v33 = vpack.c.bf16 %v1282_v27, %v1282_v27  ;;  %v786_v37 = vpop.f32.mrb[36].mxu0  ;;  %v914_v38 = vpop.f32.mrb[36].mxu1 }
 0x145   :  { %v1251_v35 = vmax.f32 %v1187_v28, 0.0  ;;  %1571 = vst.msk [vmem:[%s2796_s3 + $0x38] sm:$0xf] %vm1556_vm4, %v1810_v32  ;;  %v987_v43 = vadd.f32 %v786_v37, %v102_v30  ;;  %v1019_v44 = vadd.f32 %v914_v38, %v134_v31  ;;  %v788_v45 = vpop.f32.mrb[37].mxu0  ;;  %v916_v46 = vpop.f32.mrb[37].mxu1  ;;  %v106_v31 = vld [vmem:[#allocation2 + $0xb0] sm:$0xff] }
 0x146   :  { %v1283_v36 = vmax.f32 %v1219_v29, 0.0  ;;  %1603 = vst.msk [vmem:[%s2796_s3 + $0xb8] sm:$0xf] %vm1556_vm4, %v1842_v33  ;;  %v1117_v47 = vld [vmem:[#allocation2 + $0x80] sm:$0xff]  ;;  %v789_v49 = vpop.f32.mrb[38].mxu0  ;;  %v917_v50 = vpop.f32.mrb[38].mxu1 }
 0x147   :  { %v1811_v41 = vpack.c.bf16 %v1251_v35, %v1251_v35  ;;  %v1149_v48 = vld [vmem:[#allocation2 + $0x180] sm:$0xff]  ;;  %v1188_v51 = vadd.f32 %v2406_v34, %v1117_v47  ;;  %1052 = vst.msk [vmem:[#allocation2 + $0x90] sm:$0xff] %vm19_vm3, %v987_v43  ;;  %1084 = vst.msk [vmem:[#allocation2 + $0x190] sm:$0xff] %vm19_vm3, %v1019_v44  ;;  %v988_v53 = vadd.f32 %v789_v49, %v103_v39  ;;  %v791_v55 = vpop.f32.mrb[39].mxu0  ;;  %v919_v56 = vpop.f32.mrb[39].mxu1  ;;  %v138_v32 = vld [vmem:[#allocation2 + $0x1b0] sm:$0xff] }
 0x148   :  { %v1843_v42 = vpack.c.bf16 %v1283_v36, %v1283_v36  ;;  %v1220_v52 = vadd.f32 %v2406_v34, %v1149_v48  ;;  %v1020_v54 = vadd.f32 %v917_v50, %v135_v40  ;;  %v107_v40 = vld [vmem:[#allocation2 + $0xb8] sm:$0xff] }
 0x149   :  { %1572 = vst.msk [vmem:[%s2796_s3 + $0x3c] sm:$0xf] %vm1556_vm4, %v1811_v41  ;;  %v1252_v59 = vmax.f32 %v1188_v51, 0.0  ;;  %v139_v41 = vld [vmem:[#allocation2 + $0x1b8] sm:$0xff] }
 0x14a   :  { %1604 = vst.msk [vmem:[%s2796_s3 + $0xbc] sm:$0xf] %vm1556_vm4, %v1843_v42  ;;  %v1118_v57 = vld [vmem:[#allocation2 + $0x88] sm:$0xff]  ;;  %v1284_v60 = vmax.f32 %v1220_v52, 0.0 }
 0x14b   :  { %v1150_v58 = vld [vmem:[#allocation2 + $0x188] sm:$0xff]  ;;  %v1189_v61 = vadd.f32 %v2406_v34, %v1118_v57  ;;  %1053 = vst.msk [vmem:[#allocation2 + $0x98] sm:$0xff] %vm19_vm3, %v988_v53  ;;  %1085 = vst.msk [vmem:[#allocation2 + $0x198] sm:$0xff] %vm19_vm3, %v1020_v54  ;;  %v1812_v1 = vpack.c.bf16 %v1252_v59, %v1252_v59 }
 0x14c   :  { %v1221_v62 = vadd.f32 %v2406_v34, %v1150_v58  ;;  %v1844_v2 = vpack.c.bf16 %v1284_v60, %v1284_v60  ;;  %v794_v5 = vpop.f32.mrb[40].mxu0  ;;  %v922_v6 = vpop.f32.mrb[40].mxu1 }
 0x14d   :  { %v1253_v3 = vmax.f32 %v1189_v61, 0.0  ;;  %1573 = vst.msk [vmem:[%s2796_s3 + $0x40] sm:$0xf] %vm1556_vm4, %v1812_v1  ;;  %v989_v11 = vadd.f32 %v794_v5, %v104_v63  ;;  %v1021_v12 = vadd.f32 %v922_v6, %v136_v0  ;;  %v796_v13 = vpop.f32.mrb[41].mxu0  ;;  %v924_v14 = vpop.f32.mrb[41].mxu1  ;;  %v108_v0 = vld [vmem:[#allocation2 + $0xc0] sm:$0xff] }
 0x14e   :  { %v1285_v4 = vmax.f32 %v1221_v62, 0.0  ;;  %1605 = vst.msk [vmem:[%s2796_s3 + $0xc0] sm:$0xf] %vm1556_vm4, %v1844_v2  ;;  %v1119_v15 = vld [vmem:[#allocation2 + $0x90] sm:$0xff]  ;;  %v797_v17 = vpop.f32.mrb[42].mxu0  ;;  %v925_v18 = vpop.f32.mrb[42].mxu1 }
 0x14f   :  { %v1813_v9 = vpack.c.bf16 %v1253_v3, %v1253_v3  ;;  %v1151_v16 = vld [vmem:[#allocation2 + $0x190] sm:$0xff]  ;;  %v1190_v19 = vadd.f32 %v2406_v34, %v1119_v15  ;;  %1054 = vst.msk [vmem:[#allocation2 + $0xa0] sm:$0xff] %vm19_vm3, %v989_v11  ;;  %1086 = vst.msk [vmem:[#allocation2 + $0x1a0] sm:$0xff] %vm19_vm3, %v1021_v12  ;;  %v990_v21 = vadd.f32 %v797_v17, %v105_v7  ;;  %v799_v23 = vpop.f32.mrb[43].mxu0  ;;  %v927_v24 = vpop.f32.mrb[43].mxu1  ;;  %v140_v1 = vld [vmem:[#allocation2 + $0x1c0] sm:$0xff] }
 0x150   :  { %v1845_v10 = vpack.c.bf16 %v1285_v4, %v1285_v4  ;;  %v1222_v20 = vadd.f32 %v2406_v34, %v1151_v16  ;;  %v1022_v22 = vadd.f32 %v925_v18, %v137_v8  ;;  %v109_v8 = vld [vmem:[#allocation2 + $0xc8] sm:$0xff] }
 0x151   :  { %1574 = vst.msk [vmem:[%s2796_s3 + $0x44] sm:$0xf] %vm1556_vm4, %v1813_v9  ;;  %v1254_v27 = vmax.f32 %v1190_v19, 0.0  ;;  %v141_v9 = vld [vmem:[#allocation2 + $0x1c8] sm:$0xff] }
 0x152   :  { %1606 = vst.msk [vmem:[%s2796_s3 + $0xc4] sm:$0xf] %vm1556_vm4, %v1845_v10  ;;  %v1120_v25 = vld [vmem:[#allocation2 + $0x98] sm:$0xff]  ;;  %v1286_v28 = vmax.f32 %v1222_v20, 0.0 }
 0x153   :  { %v1152_v26 = vld [vmem:[#allocation2 + $0x198] sm:$0xff]  ;;  %v1191_v29 = vadd.f32 %v2406_v34, %v1120_v25  ;;  %1055 = vst.msk [vmem:[#allocation2 + $0xa8] sm:$0xff] %vm19_vm3, %v990_v21  ;;  %1087 = vst.msk [vmem:[#allocation2 + $0x1a8] sm:$0xff] %vm19_vm3, %v1022_v22  ;;  %v1814_v33 = vpack.c.bf16 %v1254_v27, %v1254_v27 }
 0x154   :  { %v1223_v30 = vadd.f32 %v2406_v34, %v1152_v26  ;;  %v1846_v35 = vpack.c.bf16 %v1286_v28, %v1286_v28  ;;  %v802_v38 = vpop.f32.mrb[44].mxu0  ;;  %v930_v39 = vpop.f32.mrb[44].mxu1 }
 0x155   :  { %v1255_v36 = vmax.f32 %v1191_v29, 0.0  ;;  %1575 = vst.msk [vmem:[%s2796_s3 + $0x48] sm:$0xf] %vm1556_vm4, %v1814_v33  ;;  %v991_v44 = vadd.f32 %v802_v38, %v106_v31  ;;  %v1023_v45 = vadd.f32 %v930_v39, %v138_v32  ;;  %v804_v46 = vpop.f32.mrb[45].mxu0  ;;  %v932_v47 = vpop.f32.mrb[45].mxu1  ;;  %v110_v32 = vld [vmem:[#allocation2 + $0xd0] sm:$0xff] }
 0x156   :  { %v1287_v37 = vmax.f32 %v1223_v30, 0.0  ;;  %1607 = vst.msk [vmem:[%s2796_s3 + $0xc8] sm:$0xf] %vm1556_vm4, %v1846_v35  ;;  %v1121_v48 = vld [vmem:[#allocation2 + $0xa0] sm:$0xff]  ;;  %v805_v50 = vpop.f32.mrb[46].mxu0  ;;  %v933_v51 = vpop.f32.mrb[46].mxu1 }
 0x157   :  { %v1815_v42 = vpack.c.bf16 %v1255_v36, %v1255_v36  ;;  %v1153_v49 = vld [vmem:[#allocation2 + $0x1a0] sm:$0xff]  ;;  %v1192_v52 = vadd.f32 %v2406_v34, %v1121_v48  ;;  %1056 = vst.msk [vmem:[#allocation2 + $0xb0] sm:$0xff] %vm19_vm3, %v991_v44  ;;  %1088 = vst.msk [vmem:[#allocation2 + $0x1b0] sm:$0xff] %vm19_vm3, %v1023_v45  ;;  %v992_v54 = vadd.f32 %v805_v50, %v107_v40  ;;  %v807_v56 = vpop.f32.mrb[47].mxu0  ;;  %v935_v57 = vpop.f32.mrb[47].mxu1  ;;  %v142_v33 = vld [vmem:[#allocation2 + $0x1d0] sm:$0xff] }
 0x158   :  { %v1847_v43 = vpack.c.bf16 %v1287_v37, %v1287_v37  ;;  %v1224_v53 = vadd.f32 %v2406_v34, %v1153_v49  ;;  %v1024_v55 = vadd.f32 %v933_v51, %v139_v41  ;;  %v111_v41 = vld [vmem:[#allocation2 + $0xd8] sm:$0xff] }
 0x159   :  { %1576 = vst.msk [vmem:[%s2796_s3 + $0x4c] sm:$0xf] %vm1556_vm4, %v1815_v42  ;;  %v1256_v60 = vmax.f32 %v1192_v52, 0.0  ;;  %v143_v42 = vld [vmem:[#allocation2 + $0x1d8] sm:$0xff] }
 0x15a   :  { %1608 = vst.msk [vmem:[%s2796_s3 + $0xcc] sm:$0xf] %vm1556_vm4, %v1847_v43  ;;  %v1122_v58 = vld [vmem:[#allocation2 + $0xa8] sm:$0xff]  ;;  %v1288_v61 = vmax.f32 %v1224_v53, 0.0 }
 0x15b   :  { %v1154_v59 = vld [vmem:[#allocation2 + $0x1a8] sm:$0xff]  ;;  %v1193_v62 = vadd.f32 %v2406_v34, %v1122_v58  ;;  %1057 = vst.msk [vmem:[#allocation2 + $0xb8] sm:$0xff] %vm19_vm3, %v992_v54  ;;  %1089 = vst.msk [vmem:[#allocation2 + $0x1b8] sm:$0xff] %vm19_vm3, %v1024_v55  ;;  %v1816_v2 = vpack.c.bf16 %v1256_v60, %v1256_v60 }
 0x15c   :  { %v1225_v63 = vadd.f32 %v2406_v34, %v1154_v59  ;;  %v1848_v3 = vpack.c.bf16 %v1288_v61, %v1288_v61  ;;  %v810_v6 = vpop.f32.mrb[48].mxu0  ;;  %v938_v7 = vpop.f32.mrb[48].mxu1 }
 0x15d   :  { %v1257_v4 = vmax.f32 %v1193_v62, 0.0  ;;  %1577 = vst.msk [vmem:[%s2796_s3 + $0x50] sm:$0xf] %vm1556_vm4, %v1816_v2  ;;  %v993_v12 = vadd.f32 %v810_v6, %v108_v0  ;;  %v1025_v13 = vadd.f32 %v938_v7, %v140_v1  ;;  %v812_v14 = vpop.f32.mrb[49].mxu0  ;;  %v940_v15 = vpop.f32.mrb[49].mxu1  ;;  %v112_v1 = vld [vmem:[#allocation2 + $0xe0] sm:$0xff] }
 0x15e   :  { %v1289_v5 = vmax.f32 %v1225_v63, 0.0  ;;  %1609 = vst.msk [vmem:[%s2796_s3 + $0xd0] sm:$0xf] %vm1556_vm4, %v1848_v3  ;;  %v1123_v16 = vld [vmem:[#allocation2 + $0xb0] sm:$0xff]  ;;  %v813_v18 = vpop.f32.mrb[50].mxu0  ;;  %v941_v19 = vpop.f32.mrb[50].mxu1 }
 0x15f   :  { %v1817_v10 = vpack.c.bf16 %v1257_v4, %v1257_v4  ;;  %v1155_v17 = vld [vmem:[#allocation2 + $0x1b0] sm:$0xff]  ;;  %v1194_v20 = vadd.f32 %v2406_v34, %v1123_v16  ;;  %1058 = vst.msk [vmem:[#allocation2 + $0xc0] sm:$0xff] %vm19_vm3, %v993_v12  ;;  %1090 = vst.msk [vmem:[#allocation2 + $0x1c0] sm:$0xff] %vm19_vm3, %v1025_v13  ;;  %v994_v22 = vadd.f32 %v813_v18, %v109_v8  ;;  %v815_v24 = vpop.f32.mrb[51].mxu0  ;;  %v943_v25 = vpop.f32.mrb[51].mxu1  ;;  %v144_v2 = vld [vmem:[#allocation2 + $0x1e0] sm:$0xff] }
 0x160   :  { %v1849_v11 = vpack.c.bf16 %v1289_v5, %v1289_v5  ;;  %v1226_v21 = vadd.f32 %v2406_v34, %v1155_v17  ;;  %v1026_v23 = vadd.f32 %v941_v19, %v141_v9  ;;  %v113_v9 = vld [vmem:[#allocation2 + $0xe8] sm:$0xff] }
 0x161   :  { %1578 = vst.msk [vmem:[%s2796_s3 + $0x54] sm:$0xf] %vm1556_vm4, %v1817_v10  ;;  %v1258_v28 = vmax.f32 %v1194_v20, 0.0  ;;  %v145_v10 = vld [vmem:[#allocation2 + $0x1e8] sm:$0xff]  ;;  %v2723_v20 = vld [vmem:[%s2795_s2] ss:$0 sm:$0xff] }
 0x162   :  { %1610 = vst.msk [vmem:[%s2796_s3 + $0xd4] sm:$0xf] %vm1556_vm4, %v1849_v11  ;;  %v1124_v26 = vld [vmem:[#allocation2 + $0xb8] sm:$0xff]  ;;  %v1290_v29 = vmax.f32 %v1226_v21, 0.0 }
 0x163   :  { %v1156_v27 = vld [vmem:[#allocation2 + $0x1b8] sm:$0xff]  ;;  %v1195_v30 = vadd.f32 %v2406_v34, %v1124_v26  ;;  %1059 = vst.msk [vmem:[#allocation2 + $0xc8] sm:$0xff] %vm19_vm3, %v994_v22  ;;  %1091 = vst.msk [vmem:[#allocation2 + $0x1c8] sm:$0xff] %vm19_vm3, %v1026_v23  ;;  %v1818_v35 = vpack.c.bf16 %v1258_v28, %v1258_v28 }
 0x164   :  { %v1227_v31 = vadd.f32 %v2406_v34, %v1156_v27  ;;  %v1850_v36 = vpack.c.bf16 %v1290_v29, %v1290_v29  ;;  %v818_v39 = vpop.f32.mrb[52].mxu0  ;;  %v946_v40 = vpop.f32.mrb[52].mxu1 }
 0x165   :  { %v1259_v37 = vmax.f32 %v1195_v30, 0.0  ;;  %1579 = vst.msk [vmem:[%s2796_s3 + $0x58] sm:$0xf] %vm1556_vm4, %v1818_v35  ;;  %v995_v45 = vadd.f32 %v818_v39, %v110_v32  ;;  %v1027_v46 = vadd.f32 %v946_v40, %v142_v33  ;;  %v820_v47 = vpop.f32.mrb[53].mxu0  ;;  %v948_v48 = vpop.f32.mrb[53].mxu1  ;;  %v114_v33 = vld [vmem:[#allocation2 + $0xf0] sm:$0xff] }
 0x166   :  { %v1291_v38 = vmax.f32 %v1227_v31, 0.0  ;;  %1611 = vst.msk [vmem:[%s2796_s3 + $0xd8] sm:$0xf] %vm1556_vm4, %v1850_v36  ;;  %v1125_v49 = vld [vmem:[#allocation2 + $0xc0] sm:$0xff]  ;;  %v821_v51 = vpop.f32.mrb[54].mxu0  ;;  %v949_v52 = vpop.f32.mrb[54].mxu1 }
 0x167   :  { %v1819_v43 = vpack.c.bf16 %v1259_v37, %v1259_v37  ;;  %v1157_v50 = vld [vmem:[#allocation2 + $0x1c0] sm:$0xff]  ;;  %v1196_v53 = vadd.f32 %v2406_v34, %v1125_v49  ;;  %1060 = vst.msk [vmem:[#allocation2 + $0xd0] sm:$0xff] %vm19_vm3, %v995_v45  ;;  %1092 = vst.msk [vmem:[#allocation2 + $0x1d0] sm:$0xff] %vm19_vm3, %v1027_v46  ;;  %v996_v55 = vadd.f32 %v821_v51, %v111_v41  ;;  %v823_v57 = vpop.f32.mrb[55].mxu0  ;;  %v951_v58 = vpop.f32.mrb[55].mxu1  ;;  %v146_v35 = vld [vmem:[#allocation2 + $0x1f0] sm:$0xff] }
 0x168   :  { %v1851_v44 = vpack.c.bf16 %v1291_v38, %v1291_v38  ;;  %v1228_v54 = vadd.f32 %v2406_v34, %v1157_v50  ;;  %v1028_v56 = vadd.f32 %v949_v52, %v143_v42  ;;  %v115_v42 = vld [vmem:[#allocation2 + $0xf8] sm:$0xff] }
 0x169   :  { %1580 = vst.msk [vmem:[%s2796_s3 + $0x5c] sm:$0xf] %vm1556_vm4, %v1819_v43  ;;  %v1260_v61 = vmax.f32 %v1196_v53, 0.0  ;;  %v147_v43 = vld [vmem:[#allocation2 + $0x1f8] sm:$0xff] }
 0x16a   :  { %1612 = vst.msk [vmem:[%s2796_s3 + $0xdc] sm:$0xf] %vm1556_vm4, %v1851_v44  ;;  %v1126_v59 = vld [vmem:[#allocation2 + $0xc8] sm:$0xff]  ;;  %v1292_v62 = vmax.f32 %v1228_v54, 0.0 }
 0x16b   :  { %v1158_v60 = vld [vmem:[#allocation2 + $0x1c8] sm:$0xff]  ;;  %v1197_v63 = vadd.f32 %v2406_v34, %v1126_v59  ;;  %1061 = vst.msk [vmem:[#allocation2 + $0xd8] sm:$0xff] %vm19_vm3, %v996_v55  ;;  %1093 = vst.msk [vmem:[#allocation2 + $0x1d8] sm:$0xff] %vm19_vm3, %v1028_v56  ;;  %v1820_v3 = vpack.c.bf16 %v1260_v61, %v1260_v61 }
 0x16c   :  { %v1229_v0 = vadd.f32 %v2406_v34, %v1158_v60  ;;  %v1852_v4 = vpack.c.bf16 %v1292_v62, %v1292_v62  ;;  %v826_v7 = vpop.f32.mrb[56].mxu0  ;;  %v954_v8 = vpop.f32.mrb[56].mxu1 }
 0x16d   :  { %v1261_v5 = vmax.f32 %v1197_v63, 0.0  ;;  %1581 = vst.msk [vmem:[%s2796_s3 + $0x60] sm:$0xf] %vm1556_vm4, %v1820_v3  ;;  %v997_v12 = vadd.f32 %v826_v7, %v112_v1  ;;  %v1029_v13 = vadd.f32 %v954_v8, %v144_v2  ;;  %v828_v14 = vpop.f32.mrb[57].mxu0  ;;  %v956_v15 = vpop.f32.mrb[57].mxu1 }
 0x16e   :  { %v1293_v6 = vmax.f32 %v1229_v0, 0.0  ;;  %1613 = vst.msk [vmem:[%s2796_s3 + $0xe0] sm:$0xf] %vm1556_vm4, %v1852_v4  ;;  %v1127_v16 = vld [vmem:[#allocation2 + $0xd0] sm:$0xff]  ;;  %v829_v18 = vpop.f32.mrb[58].mxu0  ;;  %v957_v19 = vpop.f32.mrb[58].mxu1 }
 0x16f   :  { %v1821_v34 = vpack.c.bf16 %v1261_v5, %v1261_v5  ;;  %v1159_v17 = vld [vmem:[#allocation2 + $0x1d0] sm:$0xff]  ;;  %v1198_v21 = vadd.f32 %v2723_v20, %v1127_v16  ;;  %1062 = vst.msk [vmem:[#allocation2 + $0xe0] sm:$0xff] %vm19_vm3, %v997_v12  ;;  %1094 = vst.msk [vmem:[#allocation2 + $0x1e0] sm:$0xff] %vm19_vm3, %v1029_v13  ;;  %v998_v23 = vadd.f32 %v829_v18, %v113_v9  ;;  %v831_v25 = vpop.f32.mrb[59].mxu0  ;;  %v959_v26 = vpop.f32.mrb[59].mxu1 }
 0x170   :  { %v1853_v11 = vpack.c.bf16 %v1293_v6, %v1293_v6  ;;  %v1230_v22 = vadd.f32 %v2723_v20, %v1159_v17  ;;  %v1030_v24 = vadd.f32 %v957_v19, %v145_v10 }
 0x171   :  { %1582 = vst.msk [vmem:[%s2796_s3 + $0x64] sm:$0xf] %vm1556_vm4, %v1821_v34  ;;  %v1262_v29 = vmax.f32 %v1198_v21, 0.0 }
 0x172   :  { %1614 = vst.msk [vmem:[%s2796_s3 + $0xe4] sm:$0xf] %vm1556_vm4, %v1853_v11  ;;  %v1128_v27 = vld [vmem:[#allocation2 + $0xd8] sm:$0xff]  ;;  %v1294_v30 = vmax.f32 %v1230_v22, 0.0 }
 0x173   :  { %v1160_v28 = vld [vmem:[#allocation2 + $0x1d8] sm:$0xff]  ;;  %v1199_v31 = vadd.f32 %v2723_v20, %v1128_v27  ;;  %1063 = vst.msk [vmem:[#allocation2 + $0xe8] sm:$0xff] %vm19_vm3, %v998_v23  ;;  %1095 = vst.msk [vmem:[#allocation2 + $0x1e8] sm:$0xff] %vm19_vm3, %v1030_v24  ;;  %v1822_v36 = vpack.c.bf16 %v1262_v29, %v1262_v29 }
 0x174   :  { %v1231_v32 = vadd.f32 %v2723_v20, %v1160_v28  ;;  %v1854_v37 = vpack.c.bf16 %v1294_v30, %v1294_v30  ;;  %v834_v40 = vpop.f32.mrb[60].mxu0  ;;  %v962_v41 = vpop.f32.mrb[60].mxu1 }
 0x175   :  { %v1263_v38 = vmax.f32 %v1199_v31, 0.0  ;;  %1583 = vst.msk [vmem:[%s2796_s3 + $0x68] sm:$0xf] %vm1556_vm4, %v1822_v36  ;;  %v999_v46 = vadd.f32 %v834_v40, %v114_v33  ;;  %v1031_v47 = vadd.f32 %v962_v41, %v146_v35  ;;  %v836_v48 = vpop.f32.mrb[61].mxu0  ;;  %v964_v49 = vpop.f32.mrb[61].mxu1 }
 0x176   :  { %v1295_v39 = vmax.f32 %v1231_v32, 0.0  ;;  %1615 = vst.msk [vmem:[%s2796_s3 + $0xe8] sm:$0xf] %vm1556_vm4, %v1854_v37  ;;  %v1129_v50 = vld [vmem:[#allocation2 + $0xe0] sm:$0xff]  ;;  %v837_v52 = vpop.f32.mrb[62].mxu0  ;;  %v965_v53 = vpop.f32.mrb[62].mxu1 }
 0x177   :  { %v1823_v44 = vpack.c.bf16 %v1263_v38, %v1263_v38  ;;  %v1161_v51 = vld [vmem:[#allocation2 + $0x1e0] sm:$0xff]  ;;  %v1200_v54 = vadd.f32 %v2723_v20, %v1129_v50  ;;  %1064 = vst.msk [vmem:[#allocation2 + $0xf0] sm:$0xff] %vm19_vm3, %v999_v46  ;;  %1096 = vst.msk [vmem:[#allocation2 + $0x1f0] sm:$0xff] %vm19_vm3, %v1031_v47  ;;  %v1000_v56 = vadd.f32 %v837_v52, %v115_v42  ;;  %v839_v58 = vpop.f32.mrb[63].mxu0  ;;  %v967_v59 = vpop.f32.mrb[63].mxu1 }
 0x178   :  { %v1855_v45 = vpack.c.bf16 %v1295_v39, %v1295_v39  ;;  %v1232_v55 = vadd.f32 %v2723_v20, %v1161_v51  ;;  %v1032_v57 = vadd.f32 %v965_v53, %v147_v43 }
 0x179   :  { %1584 = vst.msk [vmem:[%s2796_s3 + $0x6c] sm:$0xf] %vm1556_vm4, %v1823_v44  ;;  %v1264_v62 = vmax.f32 %v1200_v54, 0.0 }
 0x17a   :  { %1616 = vst.msk [vmem:[%s2796_s3 + $0xec] sm:$0xf] %vm1556_vm4, %v1855_v45  ;;  %v1130_v60 = vld [vmem:[#allocation2 + $0xe8] sm:$0xff]  ;;  %v1296_v63 = vmax.f32 %v1232_v55, 0.0 }
 0x17b   :  { %v1162_v61 = vld [vmem:[#allocation2 + $0x1e8] sm:$0xff]  ;;  %v1201_v0 = vadd.f32 %v2723_v20, %v1130_v60  ;;  %1065 = vst.msk [vmem:[#allocation2 + $0xf8] sm:$0xff] %vm19_vm3, %v1000_v56  ;;  %1097 = vst.msk [vmem:[#allocation2 + $0x1f8] sm:$0xff] %vm19_vm3, %v1032_v57  ;;  %v1824_v2 = vpack.c.bf16 %v1264_v62, %v1264_v62 }
 0x17c   :  { %v1233_v1 = vadd.f32 %v2723_v20, %v1162_v61  ;;  %v1856_v3 = vpack.c.bf16 %v1296_v63, %v1296_v63 }
 0x17d   :  { %v1265_v4 = vmax.f32 %v1201_v0, 0.0  ;;  %1585 = vst.msk [vmem:[%s2796_s3 + $0x70] sm:$0xf] %vm1556_vm4, %v1824_v2 }
 0x17e   :  { %v1297_v5 = vmax.f32 %v1233_v1, 0.0  ;;  %1617 = vst.msk [vmem:[%s2796_s3 + $0xf0] sm:$0xf] %vm1556_vm4, %v1856_v3  ;;  %v1131_v8 = vld [vmem:[#allocation2 + $0xf0] sm:$0xff] }
 0x17f   :  { %v1825_v6 = vpack.c.bf16 %v1265_v4, %v1265_v4  ;;  %v1163_v9 = vld [vmem:[#allocation2 + $0x1f0] sm:$0xff]  ;;  %v1202_v10 = vadd.f32 %v2723_v20, %v1131_v8 }
 0x180   :  { %v1857_v7 = vpack.c.bf16 %v1297_v5, %v1297_v5  ;;  %v1234_v34 = vadd.f32 %v2723_v20, %v1163_v9 }
 0x181   :  { %1586 = vst.msk [vmem:[%s2796_s3 + $0x74] sm:$0xf] %vm1556_vm4, %v1825_v6  ;;  %v1266_v13 = vmax.f32 %v1202_v10, 0.0 }
 0x182   :  { %1618 = vst.msk [vmem:[%s2796_s3 + $0xf4] sm:$0xf] %vm1556_vm4, %v1857_v7  ;;  %v1132_v11 = vld [vmem:[#allocation2 + $0xf8] sm:$0xff]  ;;  %v1298_v14 = vmax.f32 %v1234_v34, 0.0 }
 0x183   :  { %v1164_v12 = vld [vmem:[#allocation2 + $0x1f8] sm:$0xff]  ;;  %v1203_v15 = vadd.f32 %v2723_v20, %v1132_v11  ;;  %v1826_v17 = vpack.c.bf16 %v1266_v13, %v1266_v13 }
 0x184   :  { %v1235_v16 = vadd.f32 %v2723_v20, %v1164_v12  ;;  %v1858_v18 = vpack.c.bf16 %v1298_v14, %v1298_v14 }
 0x185   :  { %v1267_v19 = vmax.f32 %v1203_v15, 0.0  ;;  %1587 = vst.msk [vmem:[%s2796_s3 + $0x78] sm:$0xf] %vm1556_vm4, %v1826_v17 }
 0x186   :  { %v1299_v21 = vmax.f32 %v1235_v16, 0.0  ;;  %1619 = vst.msk [vmem:[%s2796_s3 + $0xf8] sm:$0xf] %vm1556_vm4, %v1858_v18 }
 0x187   :  { %v1827_v22 = vpack.c.bf16 %v1267_v19, %v1267_v19 }
 0x188   :  { %v1859_v23 = vpack.c.bf16 %v1299_v21, %v1299_v21 }
 0x189   :  { %1588 = vst.msk [vmem:[%s2796_s3 + $0x7c] sm:$0xf] %vm1556_vm4, %v1827_v22 }
 0x18a   :  { %1620 = vst.msk [vmem:[%s2796_s3 + $0xfc] sm:$0xf] %vm1556_vm4, %v1859_v23 }

// kernel: image_captioning_forward.28
= control target key start
LH: loop header
LB: loop body
LE: loop exit
PB: predicated region body
PF: predicated region fallthrough
CT: control target
= control target key end

     0   :  { %vm19_vm0 = vcmask 523264   ;;  %vm1058_vm1 = vcmask 519168   ;;  %s1871_s1 = inlined_call_operand.vmem [shape: bf16[576,64], index: 1, kind: input, shape index: {}]   ;;  %s1872_s0 = inlined_call_operand.vmem [shape: bf16[128,576], index: 0, kind: input, shape index: {}]   ;;  %s1873_s2 = inlined_call_operand.vmem [shape: f32[1,64], index: 2, kind: input, shape index: {}]   ;;  %s1874_s3 = inlined_call_operand.vmem [shape: bf16[128,64], index: 3, kind: output, shape index: {}]  }
   0x1   :  { %v1369_v0 = vld [vmem:[%s1871_s1 + $0x40] sm:$0xff]   ;;  %v1373_v4 = vld [vmem:[%s1871_s1 + $0x48] sm:$0xff]   ;;  %v1377_v8 = vld [vmem:[%s1871_s1 + $0x50] sm:$0xff]  }
   0x2   :  { %v1370_v1 = vld [vmem:[%s1871_s1 + $0xc0] sm:$0xff]   ;;  %1196 = vmatprep.subr.bf16.mxu0 %v1369_v0  ;;  %v1374_v5 = vld [vmem:[%s1871_s1 + $0xc8] sm:$0xff]   ;;  %v1378_v9 = vld [vmem:[%s1871_s1 + $0xd0] sm:$0xff]  }
   0x3   :  { %v1371_v2 = vld [vmem:[%s1871_s1] sm:$0xff]   ;;  %1260 = vmatprep.subr.bf16.mxu1 %v1370_v1  ;;  %v1375_v6 = vld [vmem:[%s1871_s1 + $0x8] sm:$0xff]   ;;  %v1379_v10 = vld [vmem:[%s1871_s1 + $0x10] sm:$0xff]  }
   0x4   :  { %v1372_v3 = vld [vmem:[%s1871_s1 + $0x80] sm:$0xff]   ;;  %1197 = vmatpush3.bf16.msra.mxu0 %v1371_v2  ;;  %v1376_v7 = vld [vmem:[%s1871_s1 + $0x88] sm:$0xff]   ;;  %v1380_v11 = vld [vmem:[%s1871_s1 + $0x90] sm:$0xff]  }
   0x5   :  { %1261 = vmatpush3.bf16.msra.mxu1 %v1372_v3  ;;  %1198 = vmatprep.subr.bf16.mxu0 %v1373_v4  ;;  %v1381_v12 = vld [vmem:[%s1871_s1 + $0x58] sm:$0xff]   ;;  %v1385_v16 = vld [vmem:[%s1871_s1 + $0x60] sm:$0xff]   ;;  %v1389_v20 = vld [vmem:[%s1871_s1 + $0x68] sm:$0xff]  }
   0x6   :  { %1262 = vmatprep.subr.bf16.mxu1 %v1374_v5  ;;  %v1382_v13 = vld [vmem:[%s1871_s1 + $0xd8] sm:$0xff]   ;;  %v1386_v17 = vld [vmem:[%s1871_s1 + $0xe0] sm:$0xff]   ;;  %v1390_v21 = vld [vmem:[%s1871_s1 + $0xe8] sm:$0xff]  }
   0x7   :  { %v1383_v14 = vld [vmem:[%s1871_s1 + $0x18] sm:$0xff]   ;;  %v1387_v18 = vld [vmem:[%s1871_s1 + $0x20] sm:$0xff]   ;;  %v1391_v22 = vld [vmem:[%s1871_s1 + $0x28] sm:$0xff]  }
   0x8   :  { %1199 = vmatpush3.bf16.msra.mxu0 %v1375_v6  ;;  %v1384_v15 = vld [vmem:[%s1871_s1 + $0x98] sm:$0xff]   ;;  %v1388_v19 = vld [vmem:[%s1871_s1 + $0xa0] sm:$0xff]   ;;  %v1392_v23 = vld [vmem:[%s1871_s1 + $0xa8] sm:$0xff]  }
   0x9   :  { %1263 = vmatpush3.bf16.msra.mxu1 %v1376_v7  ;;  %1200 = vmatprep.subr.bf16.mxu0 %v1377_v8  ;;  %v1393_v24 = vld [vmem:[%s1871_s1 + $0x70] sm:$0xff]   ;;  %v1397_v28 = vld [vmem:[%s1871_s1 + $0x78] sm:$0xff]   ;;  %v1406_v35 = vld [vmem:[%s1872_s0 + $0xc] ss:$20 sps:$4 sm:$0xff]  }
   0xa   :  { %1264 = vmatprep.subr.bf16.mxu1 %v1378_v9  ;;  %v1394_v25 = vld [vmem:[%s1871_s1 + $0xf0] sm:$0xff]   ;;  %v1398_v29 = vld [vmem:[%s1871_s1 + $0xf8] sm:$0xff]   ;;  %v1407_v36 = vld [vmem:[%s1871_s1 + $0x100] sm:$0xff]   ;;  %742 = vmatprep.mubr.bf16.mxu1 %v1406_v35 }
   0xb   :  { %v1395_v26 = vld [vmem:[%s1871_s1 + $0x30] sm:$0xff]   ;;  %v1399_v30 = vld [vmem:[%s1871_s1 + $0x38] sm:$0xff]   ;;  %v1408_v37 = vld [vmem:[%s1872_s0 + $0x2c] ss:$20 sps:$4 sm:$0xff]  }
   0xc   :  { %1201 = vmatpush3.bf16.msra.mxu0 %v1379_v10  ;;  %v1396_v27 = vld [vmem:[%s1871_s1 + $0xb0] sm:$0xff]   ;;  %v1400_v31 = vld [vmem:[%s1871_s1 + $0xb8] sm:$0xff]   ;;  %v1420_v42 = vld [vmem:[%s1871_s1 + $0x108] sm:$0xff]  }
   0xd   :  { %1265 = vmatpush3.bf16.msra.mxu1 %v1380_v11  ;;  %1202 = vmatprep.subr.bf16.mxu0 %v1381_v12  ;;  %v1401_v32 = vld [vmem:[%s1872_s0] ss:$20 sps:$4 sm:$0xff]   ;;  %v1403_v33 = vld [vmem:[%s1872_s0 + $0x4] ss:$20 sps:$4 sm:$0xff]   ;;  %v1404_v34 = vld [vmem:[%s1872_s0 + $0x8] ss:$20 sps:$4 sm:$0xff]  }
   0xe   :  { %1266 = vmatprep.subr.bf16.mxu1 %v1382_v13  ;;  %645 = vmatprep.mubr.bf16.mxu0 %v1403_v33  ;;  %v1410_v38 = vld [vmem:[%s1872_s0 + $0x34] ss:$20 sps:$4 sm:$0xff]   ;;  %v1413_v40 = vld [vmem:[%s1872_s0 + $0x30] ss:$20 sps:$4 sm:$0xff]   ;;  %v1419_v45 = vld [vmem:[%s1872_s0 + $0x58] ss:$20 sps:$4 sm:$0xff]  }
   0xf   :  { %v1412_v39 = vld [vmem:[%s1872_s0 + $0x28] ss:$20 sps:$4 sm:$0xff]   ;;  %v1418_v44 = vld [vmem:[%s1872_s0 + $0x50] ss:$20 sps:$4 sm:$0xff]   ;;  %v1425_v50 = vld [vmem:[%s1872_s0 + $0x78] ss:$20 sps:$4 sm:$0xff]  }
  0x10   :  { %1203 = vmatpush3.bf16.msra.mxu0 %v1383_v14  ;;  %v1414_v41 = vld [vmem:[%s1872_s0 + $0x54] ss:$20 sps:$4 sm:$0xff]   ;;  %v1416_v43 = vld [vmem:[%s1872_s0 + $0x5c] ss:$20 sps:$4 sm:$0xff]   ;;  %v1423_v48 = vld [vmem:[%s1872_s0 + $0x84] ss:$20 sps:$4 sm:$0xff]  }
  0x11   :  { %1267 = vmatpush3.bf16.msra.mxu1 %v1384_v15  ;;  %1204 = vmatprep.subr.bf16.mxu0 %v1385_v16  ;;  %v1433_v46 = vld [vmem:[%s1871_s1 + $0x110] sm:$0xff]   ;;  %v1446_v49 = vld [vmem:[%s1871_s1 + $0x118] sm:$0xff]   ;;  %v1429_v53 = vld [vmem:[%s1872_s0 + $0xac] ss:$20 sps:$4 sm:$0xff]   ;;  %v1461_v12 = vmov 0.0  }
  0x12   :  { %1268 = vmatprep.subr.bf16.mxu1 %v1386_v17  ;;  %v1421_v47 = vld [vmem:[%s1872_s0 + $0x7c] ss:$20 sps:$4 sm:$0xff]   ;;  %v1426_v51 = vld [vmem:[%s1872_s0 + $0x80] ss:$20 sps:$4 sm:$0xff]   ;;  %v1427_v52 = vld [vmem:[%s1872_s0 + $0xa4] ss:$20 sps:$4 sm:$0xff]  }
  0x13   :  { %v1431_v54 = vld [vmem:[%s1872_s0 + $0xa0] ss:$20 sps:$4 sm:$0xff]   ;;  %v1432_v55 = vld [vmem:[%s1872_s0 + $0xa8] ss:$20 sps:$4 sm:$0xff]   ;;  %v1439_v59 = vld [vmem:[%s1872_s0 + $0xd0] ss:$20 sps:$4 sm:$0xff]  }
  0x14   :  { %1205 = vmatpush3.bf16.msra.mxu0 %v1387_v18  ;;  %v1434_v56 = vld [vmem:[%s1872_s0 + $0xcc] ss:$20 sps:$4 sm:$0xff]   ;;  %v1436_v57 = vld [vmem:[%s1872_s0 + $0xd4] ss:$20 sps:$4 sm:$0xff]   ;;  %v1442_v61 = vld [vmem:[%s1872_s0 + $0xfc] ss:$20 sps:$4 sm:$0xff]  }
  0x15   :  { %1269 = vmatpush3.bf16.msra.mxu1 %v1388_v19  ;;  %1206 = vmatprep.subr.bf16.mxu0 %v1389_v20  ;;  %v1438_v58 = vld [vmem:[%s1872_s0 + $0xc8] ss:$20 sps:$4 sm:$0xff]   ;;  %v1444_v62 = vld [vmem:[%s1872_s0 + $0xf0] ss:$20 sps:$4 sm:$0xff]   ;;  %v1445_v63 = vld [vmem:[%s1872_s0 + $0xf8] ss:$20 sps:$4 sm:$0xff]  }
  0x16   :  { %1270 = vmatprep.subr.bf16.mxu1 %v1390_v21  ;;  %v1440_v60 = vld [vmem:[%s1872_s0 + $0xf4] ss:$20 sps:$4 sm:$0xff]   ;;  %v1447_v0 = vld [vmem:[%s1872_s0 + $0x11c] ss:$20 sps:$4 sm:$0xff]   ;;  %v1449_v1 = vld [vmem:[%s1872_s0 + $0x124] ss:$20 sps:$4 sm:$0xff]  }
  0x17   :  { %v1451_v2 = vld [vmem:[%s1872_s0 + $0x118] ss:$20 sps:$4 sm:$0xff]   ;;  %v1452_v3 = vld [vmem:[%s1872_s0 + $0x120] ss:$20 sps:$4 sm:$0xff]   ;;  %v1453_v4 = vld [vmem:[%s1872_s0 + $0x10] ss:$20 sps:$4 sm:$0xff]  }
  0x18   :  { %1207 = vmatpush3.bf16.msra.mxu0 %v1391_v22  ;;  %v1454_v5 = vld [vmem:[%s1872_s0 + $0xb0] ss:$20 sps:$4 sm:$0xff]   ;;  %v1455_v6 = vld [vmem:[%s1872_s0 + $0x38] ss:$20 sps:$4 sm:$0xff]   ;;  %v1457_v8 = vld [vmem:[%s1872_s0 + $0x60] ss:$20 sps:$4 sm:$0xff]  }
  0x19   :  { %1271 = vmatpush3.bf16.msra.mxu1 %v1392_v23  ;;  %1208 = vmatprep.subr.bf16.mxu0 %v1393_v24  ;;  %v1456_v7 = vld [vmem:[%s1872_s0 + $0xd8] ss:$20 sps:$4 sm:$0xff]   ;;  %v1458_v9 = vld [vmem:[%s1872_s0 + $0x100] ss:$20 sps:$4 sm:$0xff]   ;;  %v1459_v10 = vld [vmem:[%s1872_s0 + $0x88] ss:$20 sps:$4 sm:$0xff]  }
  0x1a   :  { %1272 = vmatprep.subr.bf16.mxu1 %v1394_v25  ;;  %v1460_v11 = vld [vmem:[%s1872_s0 + $0x128] ss:$20 sps:$4 sm:$0xff]   ;;  %22 = vst.msk [vmem:[#allocation2 + $0x10] sm:$0xff] %vm19_vm0, %v1461_v12  ;;  %20 = vst.msk [vmem:[#allocation2] sm:$0xff] %vm19_vm0, %v1461_v12 }
  0x1b   :  { %21 = vst.msk [vmem:[#allocation2 + $0x8] sm:$0xff] %vm19_vm0, %v1461_v12  ;;  %23 = vst.msk [vmem:[#allocation2 + $0x18] sm:$0xff] %vm19_vm0, %v1461_v12 }
  0x1c   :  { %1209 = vmatpush3.bf16.msra.mxu0 %v1395_v26  ;;  %24 = vst.msk [vmem:[#allocation2 + $0x20] sm:$0xff] %vm19_vm0, %v1461_v12  ;;  %25 = vst.msk [vmem:[#allocation2 + $0x28] sm:$0xff] %vm19_vm0, %v1461_v12 }
  0x1d   :  { %1273 = vmatpush3.bf16.msra.mxu1 %v1396_v27  ;;  %1210 = vmatprep.subr.bf16.mxu0 %v1397_v28  ;;  %26 = vst.msk [vmem:[#allocation2 + $0x30] sm:$0xff] %vm19_vm0, %v1461_v12  ;;  %27 = vst.msk [vmem:[#allocation2 + $0x38] sm:$0xff] %vm19_vm0, %v1461_v12 }
  0x1e   :  { %1274 = vmatprep.subr.bf16.mxu1 %v1398_v29  ;;  %28 = vst.msk [vmem:[#allocation2 + $0x40] sm:$0xff] %vm19_vm0, %v1461_v12  ;;  %29 = vst.msk [vmem:[#allocation2 + $0x48] sm:$0xff] %vm19_vm0, %v1461_v12 }
  0x1f   :  { %30 = vst.msk [vmem:[#allocation2 + $0x50] sm:$0xff] %vm19_vm0, %v1461_v12  ;;  %31 = vst.msk [vmem:[#allocation2 + $0x58] sm:$0xff] %vm19_vm0, %v1461_v12 }
  0x20   :  { %1211 = vmatpush3.bf16.msra.mxu0 %v1399_v30  ;;  %32 = vst.msk [vmem:[#allocation2 + $0x60] sm:$0xff] %vm19_vm0, %v1461_v12  ;;  %33 = vst.msk [vmem:[#allocation2 + $0x68] sm:$0xff] %vm19_vm0, %v1461_v12 }
  0x21   :  { %1275 = vmatpush3.bf16.msra.mxu1 %v1400_v31  ;;  %1336 = vmatprep.subr.bf16.mxu0 %v1407_v36  ;;  %34 = vst.msk [vmem:[#allocation2 + $0x70] sm:$0xff] %vm19_vm0, %v1461_v12  ;;  %35 = vst.msk [vmem:[#allocation2 + $0x78] sm:$0xff] %vm19_vm0, %v1461_v12 }
  0x22   :  { %1360 = vmatprep.subr.bf16.mxu1 %v1407_v36 }
  0x23   :  { %646 = vmatmul.mubr.bf16.vlgmr.msra.gmra.mrb[0].mxu0 %v1401_v32 }
  0x24   :  { %743 = vmatmul.mubr.bf16.vlgmr.msra.gmra.mrb[0].mxu1 %v1404_v34  ;;  %1337 = vmatpush3.bf16.msra.mxu0 %v1407_v36 }
  0x25   :  { %1364 = vmatpush3.bf16.msra.mxu1 %v1407_v36  ;;  %653 = vmatprep.mubr.bf16.mxu0 %v1408_v37 }
  0x26   :  { %750 = vmatprep.mubr.bf16.mxu1 %v1410_v38  ;;  %1338 = vmatprep.subr.bf16.mxu0 %v1420_v42 }
  0x27   :  { %1361 = vmatprep.subr.bf16.mxu1 %v1420_v42 }
  0x28   :  { %1339 = vmatpush3.bf16.msra.mxu0 %v1420_v42 }
  0x29   :  { %1365 = vmatpush3.bf16.msra.mxu1 %v1420_v42  ;;  %1340 = vmatprep.subr.bf16.mxu0 %v1433_v46 }
  0x2a   :  { %1362 = vmatprep.subr.bf16.mxu1 %v1433_v46 }
  0x2b   :  { %654 = vmatmul.mubr.bf16.gmra.mrb[4].mxu0 %v1412_v39 }
  0x2c   :  { %751 = vmatmul.mubr.bf16.gmra.mrb[4].mxu1 %v1413_v40  ;;  %661 = vmatprep.mubr.bf16.mxu0 %v1414_v41 }
  0x2d   :  { %758 = vmatprep.mubr.bf16.mxu1 %v1416_v43  ;;  %1341 = vmatpush3.bf16.msra.mxu0 %v1433_v46 }
  0x2e   :  { %1366 = vmatpush3.bf16.msra.mxu1 %v1433_v46  ;;  %1342 = vmatprep.subr.bf16.mxu0 %v1446_v49 }
  0x2f   :  { %1363 = vmatprep.subr.bf16.mxu1 %v1446_v49 }
  0x31   :  { %1343 = vmatpush3.bf16.msra.mxu0 %v1446_v49 }
  0x32   :  { %1367 = vmatpush3.bf16.msra.mxu1 %v1446_v49 }
  0x33   :  { %662 = vmatmul.mubr.bf16.gmra.mrb[8].mxu0 %v1418_v44 }
  0x34   :  { %759 = vmatmul.mubr.bf16.gmra.mrb[8].mxu1 %v1419_v45  ;;  %669 = vmatprep.mubr.bf16.mxu0 %v1421_v47 }
  0x35   :  { %766 = vmatprep.mubr.bf16.mxu1 %v1423_v48 }
  0x3b   :  { %670 = vmatmul.mubr.bf16.gmra.mrb[12].mxu0 %v1425_v50 }
  0x3c   :  { %767 = vmatmul.mubr.bf16.gmra.mrb[12].mxu1 %v1426_v51  ;;  %677 = vmatprep.mubr.bf16.mxu0 %v1427_v52 }
  0x3d   :  { %774 = vmatprep.mubr.bf16.mxu1 %v1429_v53 }
  0x43   :  { %678 = vmatmul.mubr.bf16.gmra.mrb[16].mxu0 %v1431_v54 }
  0x44   :  { %775 = vmatmul.mubr.bf16.gmra.mrb[16].mxu1 %v1432_v55  ;;  %685 = vmatprep.mubr.bf16.mxu0 %v1434_v56 }
  0x45   :  { %782 = vmatprep.mubr.bf16.mxu1 %v1436_v57 }
  0x4b   :  { %686 = vmatmul.mubr.bf16.gmra.mrb[20].mxu0 %v1438_v58 }
  0x4c   :  { %783 = vmatmul.mubr.bf16.gmra.mrb[20].mxu1 %v1439_v59  ;;  %693 = vmatprep.mubr.bf16.mxu0 %v1440_v60 }
  0x4d   :  { %790 = vmatprep.mubr.bf16.mxu1 %v1442_v61 }
  0x53   :  { %694 = vmatmul.mubr.bf16.gmra.mrb[24].mxu0 %v1444_v62 }
  0x54   :  { %791 = vmatmul.mubr.bf16.gmra.mrb[24].mxu1 %v1445_v63  ;;  %701 = vmatprep.mubr.bf16.mxu0 %v1447_v0 }
  0x55   :  { %798 = vmatprep.mubr.bf16.mxu1 %v1449_v1 }
  0x5b   :  { %702 = vmatmul.mubr.bf16.gmra.mrb[28].mxu0 %v1451_v2 }
  0x5c   :  { %799 = vmatmul.mubr.bf16.gmra.mrb[28].mxu1 %v1452_v3  ;;  %1344 = vmatprep.mubr.msk.bf16.mxu0 %vm19_vm0, %v1453_v4 }
  0x5d   :  { %1352 = vmatprep.mubr.msk.bf16.mxu1 %vm19_vm0, %v1454_v5 }
  0x63   :  { %1345 = vmatmul.mubr.msk.bf16.vlgmr.msra.gmra.mrb[32].mxu0 %vm19_vm0, %v1455_v6 }
  0x64   :  { %1353 = vmatmul.mubr.msk.bf16.vlgmr.msra.gmra.mrb[32].mxu1 %vm19_vm0, %v1456_v7  ;;  %1348 = vmatprep.mubr.msk.bf16.mxu0 %vm19_vm0, %v1457_v8 }
  0x65   :  { %1356 = vmatprep.mubr.msk.bf16.mxu1 %vm19_vm0, %v1458_v9 }
  0x6b   :  { %1349 = vmatmul.mubr.msk.bf16.gmra.mrb[36].mxu0 %vm19_vm0, %v1459_v10 }
  0x6c   :  { %1357 = vmatmul.mubr.msk.bf16.gmra.mrb[36].mxu1 %vm19_vm0, %v1460_v11 }
  0xf6   :  { %v1212_v13 = vpop.f32.mrb[0].mxu0 }
  0xf7   :  { %v1276_v14 = vpop.f32.mrb[0].mxu1  ;;  %v1213_v15 = vpop.f32.mrb[1].mxu0 }
  0xf8   :  { %v1214_v16 = vadd.f32 %v1213_v15, %v1212_v13  ;;  %v1277_v17 = vpop.f32.mrb[1].mxu1  ;;  %v1215_v18 = vpop.f32.mrb[2].mxu0 }
  0xf9   :  { %v1278_v19 = vadd.f32 %v1277_v17, %v1276_v14  ;;  %v1279_v20 = vpop.f32.mrb[2].mxu1  ;;  %v1216_v21 = vpop.f32.mrb[3].mxu0 }
  0xfa   :  { %v1217_v22 = vadd.f32 %v1216_v21, %v1215_v18  ;;  %v1280_v23 = vpop.f32.mrb[3].mxu1 }
  0xfb   :  { %v1281_v24 = vadd.f32 %v1280_v23, %v1279_v20  ;;  %v1734_v25 = vadd.f32 %v1278_v19, %v1214_v16 }
  0xfd   :  { %v1736_v26 = vadd.f32 %v1281_v24, %v1217_v22 }
  0xfe   :  { %v1218_v27 = vpop.f32.mrb[4].mxu0 }
  0xff   :  { %v1282_v28 = vpop.f32.mrb[4].mxu1  ;;  %v1219_v29 = vpop.f32.mrb[5].mxu0 }
 0x100   :  { %v1220_v30 = vadd.f32 %v1219_v29, %v1218_v27  ;;  %v1283_v31 = vpop.f32.mrb[5].mxu1  ;;  %v1221_v32 = vpop.f32.mrb[6].mxu0 }
 0x101   :  { %v1284_v33 = vadd.f32 %v1283_v31, %v1282_v28  ;;  %v1285_v34 = vpop.f32.mrb[6].mxu1  ;;  %v1222_v35 = vpop.f32.mrb[7].mxu0 }
 0x102   :  { %v1223_v36 = vadd.f32 %v1222_v35, %v1221_v32  ;;  %v1286_v37 = vpop.f32.mrb[7].mxu1 }
 0x103   :  { %v1287_v38 = vadd.f32 %v1286_v37, %v1285_v34  ;;  %v1738_v39 = vadd.f32 %v1284_v33, %v1220_v30 }
 0x105   :  { %v1740_v40 = vadd.f32 %v1287_v38, %v1223_v36 }
 0x106   :  { %v1224_v41 = vpop.f32.mrb[8].mxu0 }
 0x107   :  { %v1288_v42 = vpop.f32.mrb[8].mxu1  ;;  %v1225_v43 = vpop.f32.mrb[9].mxu0 }
 0x108   :  { %v1226_v44 = vadd.f32 %v1225_v43, %v1224_v41  ;;  %v1289_v45 = vpop.f32.mrb[9].mxu1  ;;  %v1227_v46 = vpop.f32.mrb[10].mxu0 }
 0x109   :  { %v1290_v47 = vadd.f32 %v1289_v45, %v1288_v42  ;;  %v1291_v48 = vpop.f32.mrb[10].mxu1  ;;  %v1228_v49 = vpop.f32.mrb[11].mxu0 }
 0x10a   :  { %v1229_v50 = vadd.f32 %v1228_v49, %v1227_v46  ;;  %v1292_v51 = vpop.f32.mrb[11].mxu1 }
 0x10b   :  { %v1293_v52 = vadd.f32 %v1292_v51, %v1291_v48  ;;  %v1742_v53 = vadd.f32 %v1290_v47, %v1226_v44 }
 0x10d   :  { %v1744_v54 = vadd.f32 %v1293_v52, %v1229_v50 }
 0x10e   :  { %v1230_v55 = vpop.f32.mrb[12].mxu0 }
 0x10f   :  { %v1294_v56 = vpop.f32.mrb[12].mxu1  ;;  %v1231_v57 = vpop.f32.mrb[13].mxu0 }
 0x110   :  { %v1232_v58 = vadd.f32 %v1231_v57, %v1230_v55  ;;  %v1295_v59 = vpop.f32.mrb[13].mxu1  ;;  %v1233_v60 = vpop.f32.mrb[14].mxu0 }
 0x111   :  { %v1296_v61 = vadd.f32 %v1295_v59, %v1294_v56  ;;  %v1297_v62 = vpop.f32.mrb[14].mxu1  ;;  %v1234_v63 = vpop.f32.mrb[15].mxu0 }
 0x112   :  { %v1235_v0 = vadd.f32 %v1234_v63, %v1233_v60  ;;  %v1298_v1 = vpop.f32.mrb[15].mxu1 }
 0x113   :  { %v1299_v2 = vadd.f32 %v1298_v1, %v1297_v62  ;;  %v1746_v3 = vadd.f32 %v1296_v61, %v1232_v58 }
 0x115   :  { %v1748_v4 = vadd.f32 %v1299_v2, %v1235_v0 }
 0x116   :  { %v1236_v5 = vpop.f32.mrb[16].mxu0 }
 0x117   :  { %v1300_v6 = vpop.f32.mrb[16].mxu1  ;;  %v1237_v7 = vpop.f32.mrb[17].mxu0 }
 0x118   :  { %v1238_v8 = vadd.f32 %v1237_v7, %v1236_v5  ;;  %v1301_v9 = vpop.f32.mrb[17].mxu1  ;;  %v1239_v10 = vpop.f32.mrb[18].mxu0  ;;  %v38_v5 = vld [vmem:[#allocation2 + $0x10] sm:$0xff] }
 0x119   :  { %v1302_v11 = vadd.f32 %v1301_v9, %v1300_v6  ;;  %v1303_v12 = vpop.f32.mrb[18].mxu1  ;;  %v1240_v13 = vpop.f32.mrb[19].mxu0 }
 0x11a   :  { %v1241_v14 = vadd.f32 %v1240_v13, %v1239_v10  ;;  %v1304_v15 = vpop.f32.mrb[19].mxu1  ;;  %v36_v10 = vld [vmem:[#allocation2] sm:$0xff] }
 0x11b   :  { %v1305_v16 = vadd.f32 %v1304_v15, %v1303_v12  ;;  %v777_v17 = vadd.f32 %v1302_v11, %v1238_v8  ;;  %v46_v8 = vld [vmem:[#allocation2 + $0x50] sm:$0xff] }
 0x11d   :  { %v1750_v18 = vadd.f32 %v1305_v16, %v1241_v14  ;;  %v44_v14 = vld [vmem:[#allocation2 + $0x40] sm:$0xff]  ;;  %v39_v16 = vld [vmem:[#allocation2 + $0x18] sm:$0xff] }
 0x11e   :  { %v1242_v19 = vpop.f32.mrb[20].mxu0 }
 0x11f   :  { %v1306_v20 = vpop.f32.mrb[20].mxu1  ;;  %v1243_v21 = vpop.f32.mrb[21].mxu0 }
 0x120   :  { %v1244_v22 = vadd.f32 %v1243_v21, %v1242_v19  ;;  %v1307_v23 = vpop.f32.mrb[21].mxu1  ;;  %v1245_v24 = vpop.f32.mrb[22].mxu0 }
 0x121   :  { %v1308_v27 = vadd.f32 %v1307_v23, %v1306_v20  ;;  %v1309_v28 = vpop.f32.mrb[22].mxu1  ;;  %v1246_v29 = vpop.f32.mrb[23].mxu0  ;;  %v47_v23 = vld [vmem:[#allocation2 + $0x58] sm:$0xff] }
 0x122   :  { %v1247_v30 = vadd.f32 %v1246_v29, %v1245_v24  ;;  %v1310_v31 = vpop.f32.mrb[23].mxu1 }
 0x123   :  { %v1311_v32 = vadd.f32 %v1310_v31, %v1309_v28  ;;  %v785_v33 = vadd.f32 %v1308_v27, %v1244_v22  ;;  %v37_v27 = vld [vmem:[#allocation2 + $0x8] sm:$0xff] }
 0x125   :  { %v788_v34 = vadd.f32 %v1311_v32, %v1247_v30  ;;  %v45_v32 = vld [vmem:[#allocation2 + $0x48] sm:$0xff] }
 0x126   :  { %v1248_v35 = vpop.f32.mrb[24].mxu0 }
 0x127   :  { %v1312_v36 = vpop.f32.mrb[24].mxu1  ;;  %v1249_v37 = vpop.f32.mrb[25].mxu0 }
 0x128   :  { %v1250_v38 = vadd.f32 %v1249_v37, %v1248_v35  ;;  %v1313_v41 = vpop.f32.mrb[25].mxu1  ;;  %v1251_v42 = vpop.f32.mrb[26].mxu0 }
 0x129   :  { %v1314_v43 = vadd.f32 %v1313_v41, %v1312_v36  ;;  %v1315_v44 = vpop.f32.mrb[26].mxu1  ;;  %v1252_v45 = vpop.f32.mrb[27].mxu0 }
 0x12a   :  { %v1253_v46 = vadd.f32 %v1252_v45, %v1251_v42  ;;  %v1316_v47 = vpop.f32.mrb[27].mxu1  ;;  %v40_v42 = vld [vmem:[#allocation2 + $0x20] sm:$0xff] }
 0x12b   :  { %v1317_v48 = vadd.f32 %v1316_v47, %v1315_v44  ;;  %v1752_v49 = vadd.f32 %v1314_v43, %v1250_v38  ;;  %v50_v38 = vld [vmem:[#allocation2 + $0x70] sm:$0xff]  ;;  %v1775_v44 = vld [vmem:[%s1873_s2] ss:$0 sm:$0xff] }
 0x12c   :  { %v48_v47 = vld [vmem:[#allocation2 + $0x60] sm:$0xff] }
 0x12d   :  { %v1754_v50 = vadd.f32 %v1317_v48, %v1253_v46 }
 0x12e   :  { %v1254_v51 = vpop.f32.mrb[28].mxu0 }
 0x12f   :  { %v1318_v52 = vpop.f32.mrb[28].mxu1  ;;  %v1255_v55 = vpop.f32.mrb[29].mxu0 }
 0x130   :  { %v1256_v56 = vadd.f32 %v1255_v55, %v1254_v51  ;;  %v1319_v57 = vpop.f32.mrb[29].mxu1  ;;  %v1257_v58 = vpop.f32.mrb[30].mxu0  ;;  %v43_v51 = vld [vmem:[#allocation2 + $0x38] sm:$0xff] }
 0x131   :  { %v1320_v59 = vadd.f32 %v1319_v57, %v1318_v52  ;;  %v1321_v60 = vpop.f32.mrb[30].mxu1  ;;  %v1258_v61 = vpop.f32.mrb[31].mxu0  ;;  %v51_v57 = vld [vmem:[#allocation2 + $0x78] sm:$0xff] }
 0x132   :  { %v1259_v62 = vadd.f32 %v1258_v61, %v1257_v58  ;;  %v1322_v63 = vpop.f32.mrb[31].mxu1 }
 0x133   :  { %v1323_v0 = vadd.f32 %v1322_v63, %v1321_v60  ;;  %v801_v1 = vadd.f32 %v1320_v59, %v1256_v56  ;;  %v41_v59 = vld [vmem:[#allocation2 + $0x28] sm:$0xff] }
 0x135   :  { %v1756_v2 = vadd.f32 %v1323_v0, %v1259_v62 }
 0x136   :  { %v1346_v6 = vpop.f32.mrb[32].mxu0 }
 0x137   :  { %v850_v7 = vadd.f32 %v1346_v6, %v1738_v39  ;;  %v1354_v9 = vpop.f32.mrb[32].mxu1  ;;  %v841_v11 = vpop.f32.mrb[33].mxu0 }
 0x138   :  { %v882_v12 = vadd.f32 %v1354_v9, %v785_v33  ;;  %v842_v13 = vadd.f32 %v841_v11, %v1734_v25  ;;  %v873_v15 = vpop.f32.mrb[33].mxu1  ;;  %v1347_v19 = vpop.f32.mrb[34].mxu0 }
 0x139   :  { %v906_v20 = vadd.f32 %v850_v7, %v38_v5  ;;  %v874_v21 = vadd.f32 %v873_v15, %v777_v17  ;;  %v853_v22 = vadd.f32 %v1347_v19, %v1740_v40  ;;  %v1355_v24 = vpop.f32.mrb[34].mxu1  ;;  %v844_v28 = vpop.f32.mrb[35].mxu0 }
 0x13a   :  { %v914_v39 = vadd.f32 %v882_v12, %v46_v8  ;;  %v904_v29 = vadd.f32 %v842_v13, %v36_v10  ;;  %v885_v30 = vadd.f32 %v1355_v24, %v788_v34  ;;  %v845_v31 = vadd.f32 %v844_v28, %v1736_v26  ;;  %v876_v33 = vpop.f32.mrb[35].mxu1  ;;  %v42_v26 = vld [vmem:[#allocation2 + $0x30] sm:$0xff] }
 0x13b   :  { %922 = vst.msk [vmem:[#allocation2 + $0x10] sm:$0xff] %vm19_vm0, %v906_v20  ;;  %v912_v25 = vadd.f32 %v874_v21, %v44_v14  ;;  %v907_v35 = vadd.f32 %v853_v22, %v39_v16  ;;  %v877_v36 = vadd.f32 %v876_v33, %v1750_v18 }
 0x13c   :  { %930 = vst.msk [vmem:[#allocation2 + $0x50] sm:$0xff] %vm19_vm0, %v914_v39  ;;  %920 = vst.msk [vmem:[#allocation2] sm:$0xff] %vm19_vm0, %v904_v29  ;;  %v915_v40 = vadd.f32 %v885_v30, %v47_v23  ;;  %v905_v17 = vadd.f32 %v845_v31, %v37_v27 }
 0x13d   :  { %928 = vst.msk [vmem:[#allocation2 + $0x40] sm:$0xff] %vm19_vm0, %v912_v25  ;;  %923 = vst.msk [vmem:[#allocation2 + $0x18] sm:$0xff] %vm19_vm0, %v907_v35  ;;  %v913_v34 = vadd.f32 %v877_v36, %v45_v32 }
 0x13e   :  { %931 = vst.msk [vmem:[#allocation2 + $0x58] sm:$0xff] %vm19_vm0, %v915_v40  ;;  %921 = vst.msk [vmem:[#allocation2 + $0x8] sm:$0xff] %vm19_vm0, %v905_v17  ;;  %v1350_v37 = vpop.f32.mrb[36].mxu0 }
 0x13f   :  { %929 = vst.msk [vmem:[#allocation2 + $0x48] sm:$0xff] %vm19_vm0, %v913_v34  ;;  %v866_v18 = vadd.f32 %v1350_v37, %v1746_v3  ;;  %v1358_v41 = vpop.f32.mrb[36].mxu1  ;;  %v857_v43 = vpop.f32.mrb[37].mxu0 }
 0x140   :  { %v898_v45 = vadd.f32 %v1358_v41, %v801_v1  ;;  %v858_v46 = vadd.f32 %v857_v43, %v1742_v53  ;;  %v889_v48 = vpop.f32.mrb[37].mxu1  ;;  %v1351_v52 = vpop.f32.mrb[38].mxu0  ;;  %v49_v1 = vld [vmem:[#allocation2 + $0x68] sm:$0xff] }
 0x141   :  { %v910_v55 = vadd.f32 %v866_v18, %v42_v26  ;;  %v890_v3 = vadd.f32 %v889_v48, %v1752_v49  ;;  %v869_v56 = vadd.f32 %v1351_v52, %v1748_v4  ;;  %v1359_v58 = vpop.f32.mrb[38].mxu1  ;;  %v860_v60 = vpop.f32.mrb[39].mxu0 }
 0x142   :  { %v941_v61 = vld [vmem:[#allocation2 + $0x10] sm:$0xff]  ;;  %v918_v62 = vadd.f32 %v898_v45, %v50_v38  ;;  %v908_v63 = vadd.f32 %v858_v46, %v40_v42  ;;  %v901_v0 = vadd.f32 %v1359_v58, %v1756_v2  ;;  %v861_v53 = vadd.f32 %v860_v60, %v1744_v54  ;;  %v892_v5 = vpop.f32.mrb[39].mxu1 }
 0x143   :  { %v964_v6 = vadd.f32 %v1775_v44, %v941_v61  ;;  %v949_v7 = vld [vmem:[#allocation2 + $0x50] sm:$0xff]  ;;  %v939_v8 = vld [vmem:[#allocation2] sm:$0xff]  ;;  %926 = vst.msk [vmem:[#allocation2 + $0x30] sm:$0xff] %vm19_vm0, %v910_v55  ;;  %v916_v4 = vadd.f32 %v890_v3, %v48_v47  ;;  %v911_v49 = vadd.f32 %v869_v56, %v43_v51  ;;  %v893_v9 = vadd.f32 %v892_v5, %v1754_v50 }
 0x144   :  { %v972_v10 = vadd.f32 %v1775_v44, %v949_v7  ;;  %v962_v11 = vadd.f32 %v1775_v44, %v939_v8  ;;  %v947_v12 = vld [vmem:[#allocation2 + $0x40] sm:$0xff]  ;;  %v942_v2 = vld [vmem:[#allocation2 + $0x18] sm:$0xff]  ;;  %934 = vst.msk [vmem:[#allocation2 + $0x70] sm:$0xff] %vm19_vm0, %v918_v62  ;;  %924 = vst.msk [vmem:[#allocation2 + $0x20] sm:$0xff] %vm19_vm0, %v908_v63  ;;  %v919_v54 = vadd.f32 %v901_v0, %v51_v57 }
 0x145   :  { %v909_v13 = vadd.f32 %v861_v53, %v41_v59  ;;  %v980_v14 = vmax.f32 %v964_v6, 0.0  ;;  %v970_v15 = vadd.f32 %v1775_v44, %v947_v12  ;;  %v965_v16 = vadd.f32 %v1775_v44, %v942_v2  ;;  %v950_v19 = vld [vmem:[#allocation2 + $0x58] sm:$0xff]  ;;  %v940_v20 = vld [vmem:[#allocation2 + $0x8] sm:$0xff]  ;;  %932 = vst.msk [vmem:[#allocation2 + $0x60] sm:$0xff] %vm19_vm0, %v916_v4  ;;  %927 = vst.msk [vmem:[#allocation2 + $0x38] sm:$0xff] %vm19_vm0, %v911_v49 }
 0x146   :  { %v917_v50 = vadd.f32 %v893_v9, %v49_v1  ;;  %v988_v21 = vmax.f32 %v972_v10, 0.0  ;;  %v978_v22 = vmax.f32 %v962_v11, 0.0  ;;  %v973_v23 = vadd.f32 %v1775_v44, %v950_v19  ;;  %v948_v27 = vld [vmem:[#allocation2 + $0x48] sm:$0xff]  ;;  %935 = vst.msk [vmem:[#allocation2 + $0x78] sm:$0xff] %vm19_vm0, %v919_v54 }
 0x147   :  { %v963_v24 = vadd.f32 %v1775_v44, %v940_v20  ;;  %925 = vst.msk [vmem:[#allocation2 + $0x28] sm:$0xff] %vm19_vm0, %v909_v13  ;;  %v1182_v28 = vpack.c.bf16 %v980_v14, %v980_v14  ;;  %v986_v39 = vmax.f32 %v970_v15, 0.0  ;;  %v981_v29 = vmax.f32 %v965_v16, 0.0 }
 0x148   :  { %v971_v30 = vadd.f32 %v1775_v44, %v948_v27  ;;  %933 = vst.msk [vmem:[#allocation2 + $0x68] sm:$0xff] %vm19_vm0, %v917_v50  ;;  %v1190_v31 = vpack.c.bf16 %v988_v21, %v988_v21  ;;  %v1180_v32 = vpack.c.bf16 %v978_v22, %v978_v22  ;;  %v989_v33 = vmax.f32 %v973_v23, 0.0 }
 0x149   :  { %v979_v25 = vmax.f32 %v963_v24, 0.0  ;;  %1061 = vst.msk [vmem:[%s1874_s3 + $0x8] sm:$0xf] %vm1058_vm1, %v1182_v28  ;;  %v1188_v35 = vpack.c.bf16 %v986_v39, %v986_v39  ;;  %v1183_v36 = vpack.c.bf16 %v981_v29, %v981_v29 }
 0x14a   :  { %v987_v40 = vmax.f32 %v971_v30, 0.0  ;;  %1069 = vst.msk [vmem:[%s1874_s3 + $0x28] sm:$0xf] %vm1058_vm1, %v1190_v31  ;;  %1059 = vst.msk [vmem:[%s1874_s3] sm:$0xf] %vm1058_vm1, %v1180_v32  ;;  %v1191_v17 = vpack.c.bf16 %v989_v33, %v989_v33  ;;  %v945_v26 = vld [vmem:[#allocation2 + $0x30] sm:$0xff] }
 0x14b   :  { %v1181_v34 = vpack.c.bf16 %v979_v25, %v979_v25  ;;  %1067 = vst.msk [vmem:[%s1874_s3 + $0x20] sm:$0xf] %vm1058_vm1, %v1188_v35  ;;  %1062 = vst.msk [vmem:[%s1874_s3 + $0xc] sm:$0xf] %vm1058_vm1, %v1183_v36  ;;  %v968_v18 = vadd.f32 %v1775_v44, %v945_v26  ;;  %v953_v38 = vld [vmem:[#allocation2 + $0x70] sm:$0xff]  ;;  %v943_v41 = vld [vmem:[#allocation2 + $0x20] sm:$0xff] }
 0x14c   :  { %v1189_v37 = vpack.c.bf16 %v987_v40, %v987_v40  ;;  %1070 = vst.msk [vmem:[%s1874_s3 + $0x2c] sm:$0xf] %vm1058_vm1, %v1191_v17  ;;  %v976_v42 = vadd.f32 %v1775_v44, %v953_v38  ;;  %v966_v43 = vadd.f32 %v1775_v44, %v943_v41  ;;  %v951_v45 = vld [vmem:[#allocation2 + $0x60] sm:$0xff]  ;;  %v946_v46 = vld [vmem:[#allocation2 + $0x38] sm:$0xff] }
 0x14d   :  { %1060 = vst.msk [vmem:[%s1874_s3 + $0x4] sm:$0xf] %vm1058_vm1, %v1181_v34  ;;  %v984_v47 = vmax.f32 %v968_v18, 0.0  ;;  %v974_v48 = vadd.f32 %v1775_v44, %v951_v45  ;;  %v969_v51 = vadd.f32 %v1775_v44, %v946_v46  ;;  %v954_v52 = vld [vmem:[#allocation2 + $0x78] sm:$0xff] }
 0x14e   :  { %1068 = vst.msk [vmem:[%s1874_s3 + $0x24] sm:$0xf] %vm1058_vm1, %v1189_v37  ;;  %v944_v55 = vld [vmem:[#allocation2 + $0x28] sm:$0xff]  ;;  %v992_v3 = vmax.f32 %v976_v42, 0.0  ;;  %v982_v56 = vmax.f32 %v966_v43, 0.0  ;;  %v977_v57 = vadd.f32 %v1775_v44, %v954_v52 }
 0x14f   :  { %v967_v58 = vadd.f32 %v1775_v44, %v944_v55  ;;  %v952_v59 = vld [vmem:[#allocation2 + $0x68] sm:$0xff]  ;;  %v1186_v60 = vpack.c.bf16 %v984_v47, %v984_v47  ;;  %v990_v61 = vmax.f32 %v974_v48, 0.0  ;;  %v985_v62 = vmax.f32 %v969_v51, 0.0 }
 0x150   :  { %v975_v63 = vadd.f32 %v1775_v44, %v952_v59  ;;  %v1194_v0 = vpack.c.bf16 %v992_v3, %v992_v3  ;;  %v1184_v53 = vpack.c.bf16 %v982_v56, %v982_v56  ;;  %v993_v1 = vmax.f32 %v977_v57, 0.0 }
 0x151   :  { %v983_v5 = vmax.f32 %v967_v58, 0.0  ;;  %1065 = vst.msk [vmem:[%s1874_s3 + $0x18] sm:$0xf] %vm1058_vm1, %v1186_v60  ;;  %v1192_v6 = vpack.c.bf16 %v990_v61, %v990_v61  ;;  %v1187_v7 = vpack.c.bf16 %v985_v62, %v985_v62 }
 0x152   :  { %v991_v8 = vmax.f32 %v975_v63, 0.0  ;;  %1073 = vst.msk [vmem:[%s1874_s3 + $0x38] sm:$0xf] %vm1058_vm1, %v1194_v0  ;;  %1063 = vst.msk [vmem:[%s1874_s3 + $0x10] sm:$0xf] %vm1058_vm1, %v1184_v53  ;;  %v1195_v44 = vpack.c.bf16 %v993_v1, %v993_v1 }
 0x153   :  { %v1185_v4 = vpack.c.bf16 %v983_v5, %v983_v5  ;;  %1071 = vst.msk [vmem:[%s1874_s3 + $0x30] sm:$0xf] %vm1058_vm1, %v1192_v6  ;;  %1066 = vst.msk [vmem:[%s1874_s3 + $0x1c] sm:$0xf] %vm1058_vm1, %v1187_v7 }
 0x154   :  { %v1193_v49 = vpack.c.bf16 %v991_v8, %v991_v8  ;;  %1074 = vst.msk [vmem:[%s1874_s3 + $0x3c] sm:$0xf] %vm1058_vm1, %v1195_v44 }
 0x155   :  { %1064 = vst.msk [vmem:[%s1874_s3 + $0x14] sm:$0xf] %vm1058_vm1, %v1185_v4 }
 0x156   :  { %1072 = vst.msk [vmem:[%s1874_s3 + $0x34] sm:$0xf] %vm1058_vm1, %v1193_v49 }

// kernel: image_captioning_forward.29
= control target key start
LH: loop header
LB: loop body
LE: loop exit
PB: predicated region body
PF: predicated region fallthrough
CT: control target
= control target key end

     0   :  { %vm22_vm0 = vcmask 523264   ;;  %vm1109_vm1 = vcmask 519168   ;;  %s2060_s1 = inlined_call_operand.vmem [shape: bf16[576,64], index: 1, kind: input, shape index: {}]   ;;  %s2061_s0 = inlined_call_operand.vmem [shape: bf16[128,576], index: 0, kind: input, shape index: {}]   ;;  %s2062_s3 = inlined_call_operand.vmem [shape: bf16[128,64], index: 3, kind: input, shape index: {}]   ;;  %s2063_s2 = inlined_call_operand.vmem [shape: f32[1,64], index: 2, kind: input, shape index: {}]   ;;  %s2064_s4 = inlined_call_operand.vmem [shape: bf16[128,64], index: 4, kind: output, shape index: {}]  }
   0x1   :  { %v1459_v0 = vld [vmem:[%s2060_s1 + $0x40] sm:$0xff]   ;;  %v1463_v4 = vld [vmem:[%s2060_s1 + $0x48] sm:$0xff]   ;;  %v1467_v8 = vld [vmem:[%s2060_s1 + $0x50] sm:$0xff]  }
   0x2   :  { %v1460_v1 = vld [vmem:[%s2060_s1 + $0xc0] sm:$0xff]   ;;  %1286 = vmatprep.subr.bf16.mxu0 %v1459_v0  ;;  %v1464_v5 = vld [vmem:[%s2060_s1 + $0xc8] sm:$0xff]   ;;  %v1468_v9 = vld [vmem:[%s2060_s1 + $0xd0] sm:$0xff]  }
   0x3   :  { %v1461_v2 = vld [vmem:[%s2060_s1] sm:$0xff]   ;;  %1350 = vmatprep.subr.bf16.mxu1 %v1460_v1  ;;  %v1465_v6 = vld [vmem:[%s2060_s1 + $0x8] sm:$0xff]   ;;  %v1469_v10 = vld [vmem:[%s2060_s1 + $0x10] sm:$0xff]  }
   0x4   :  { %v1462_v3 = vld [vmem:[%s2060_s1 + $0x80] sm:$0xff]   ;;  %1287 = vmatpush3.bf16.msra.mxu0 %v1461_v2  ;;  %v1466_v7 = vld [vmem:[%s2060_s1 + $0x88] sm:$0xff]   ;;  %v1470_v11 = vld [vmem:[%s2060_s1 + $0x90] sm:$0xff]  }
   0x5   :  { %1351 = vmatpush3.bf16.msra.mxu1 %v1462_v3  ;;  %1288 = vmatprep.subr.bf16.mxu0 %v1463_v4  ;;  %v1471_v12 = vld [vmem:[%s2060_s1 + $0x58] sm:$0xff]   ;;  %v1475_v16 = vld [vmem:[%s2060_s1 + $0x60] sm:$0xff]   ;;  %v1479_v20 = vld [vmem:[%s2060_s1 + $0x68] sm:$0xff]  }
   0x6   :  { %1352 = vmatprep.subr.bf16.mxu1 %v1464_v5  ;;  %v1472_v13 = vld [vmem:[%s2060_s1 + $0xd8] sm:$0xff]   ;;  %v1476_v17 = vld [vmem:[%s2060_s1 + $0xe0] sm:$0xff]   ;;  %v1480_v21 = vld [vmem:[%s2060_s1 + $0xe8] sm:$0xff]  }
   0x7   :  { %v1473_v14 = vld [vmem:[%s2060_s1 + $0x18] sm:$0xff]   ;;  %v1477_v18 = vld [vmem:[%s2060_s1 + $0x20] sm:$0xff]   ;;  %v1481_v22 = vld [vmem:[%s2060_s1 + $0x28] sm:$0xff]  }
   0x8   :  { %1289 = vmatpush3.bf16.msra.mxu0 %v1465_v6  ;;  %v1474_v15 = vld [vmem:[%s2060_s1 + $0x98] sm:$0xff]   ;;  %v1478_v19 = vld [vmem:[%s2060_s1 + $0xa0] sm:$0xff]   ;;  %v1482_v23 = vld [vmem:[%s2060_s1 + $0xa8] sm:$0xff]  }
   0x9   :  { %1353 = vmatpush3.bf16.msra.mxu1 %v1466_v7  ;;  %1290 = vmatprep.subr.bf16.mxu0 %v1467_v8  ;;  %v1483_v24 = vld [vmem:[%s2060_s1 + $0x70] sm:$0xff]   ;;  %v1487_v28 = vld [vmem:[%s2060_s1 + $0x78] sm:$0xff]   ;;  %v1496_v35 = vld [vmem:[%s2061_s0 + $0xc] ss:$20 sps:$4 sm:$0xff]  }
   0xa   :  { %1354 = vmatprep.subr.bf16.mxu1 %v1468_v9  ;;  %v1484_v25 = vld [vmem:[%s2060_s1 + $0xf0] sm:$0xff]   ;;  %v1488_v29 = vld [vmem:[%s2060_s1 + $0xf8] sm:$0xff]   ;;  %v1497_v36 = vld [vmem:[%s2060_s1 + $0x100] sm:$0xff]   ;;  %745 = vmatprep.mubr.bf16.mxu1 %v1496_v35 }
   0xb   :  { %v1485_v26 = vld [vmem:[%s2060_s1 + $0x30] sm:$0xff]   ;;  %v1489_v30 = vld [vmem:[%s2060_s1 + $0x38] sm:$0xff]   ;;  %v1498_v37 = vld [vmem:[%s2061_s0 + $0x2c] ss:$20 sps:$4 sm:$0xff]  }
   0xc   :  { %1291 = vmatpush3.bf16.msra.mxu0 %v1469_v10  ;;  %v1486_v27 = vld [vmem:[%s2060_s1 + $0xb0] sm:$0xff]   ;;  %v1490_v31 = vld [vmem:[%s2060_s1 + $0xb8] sm:$0xff]   ;;  %v1510_v42 = vld [vmem:[%s2060_s1 + $0x108] sm:$0xff]  }
   0xd   :  { %1355 = vmatpush3.bf16.msra.mxu1 %v1470_v11  ;;  %1292 = vmatprep.subr.bf16.mxu0 %v1471_v12  ;;  %v1491_v32 = vld [vmem:[%s2061_s0] ss:$20 sps:$4 sm:$0xff]   ;;  %v1493_v33 = vld [vmem:[%s2061_s0 + $0x4] ss:$20 sps:$4 sm:$0xff]   ;;  %v1494_v34 = vld [vmem:[%s2061_s0 + $0x8] ss:$20 sps:$4 sm:$0xff]  }
   0xe   :  { %1356 = vmatprep.subr.bf16.mxu1 %v1472_v13  ;;  %648 = vmatprep.mubr.bf16.mxu0 %v1493_v33  ;;  %v1500_v38 = vld [vmem:[%s2061_s0 + $0x34] ss:$20 sps:$4 sm:$0xff]   ;;  %v1503_v40 = vld [vmem:[%s2061_s0 + $0x30] ss:$20 sps:$4 sm:$0xff]   ;;  %v1509_v45 = vld [vmem:[%s2061_s0 + $0x58] ss:$20 sps:$4 sm:$0xff]  }
   0xf   :  { %v1502_v39 = vld [vmem:[%s2061_s0 + $0x28] ss:$20 sps:$4 sm:$0xff]   ;;  %v1508_v44 = vld [vmem:[%s2061_s0 + $0x50] ss:$20 sps:$4 sm:$0xff]   ;;  %v1515_v50 = vld [vmem:[%s2061_s0 + $0x78] ss:$20 sps:$4 sm:$0xff]  }
  0x10   :  { %1293 = vmatpush3.bf16.msra.mxu0 %v1473_v14  ;;  %v1504_v41 = vld [vmem:[%s2061_s0 + $0x54] ss:$20 sps:$4 sm:$0xff]   ;;  %v1506_v43 = vld [vmem:[%s2061_s0 + $0x5c] ss:$20 sps:$4 sm:$0xff]   ;;  %v1513_v48 = vld [vmem:[%s2061_s0 + $0x84] ss:$20 sps:$4 sm:$0xff]  }
  0x11   :  { %1357 = vmatpush3.bf16.msra.mxu1 %v1474_v15  ;;  %1294 = vmatprep.subr.bf16.mxu0 %v1475_v16  ;;  %v1523_v46 = vld [vmem:[%s2060_s1 + $0x110] sm:$0xff]   ;;  %v1536_v49 = vld [vmem:[%s2060_s1 + $0x118] sm:$0xff]   ;;  %v1519_v53 = vld [vmem:[%s2061_s0 + $0xac] ss:$20 sps:$4 sm:$0xff]   ;;  %v1551_v12 = vmov 0.0  }
  0x12   :  { %1358 = vmatprep.subr.bf16.mxu1 %v1476_v17  ;;  %v1511_v47 = vld [vmem:[%s2061_s0 + $0x7c] ss:$20 sps:$4 sm:$0xff]   ;;  %v1516_v51 = vld [vmem:[%s2061_s0 + $0x80] ss:$20 sps:$4 sm:$0xff]   ;;  %v1517_v52 = vld [vmem:[%s2061_s0 + $0xa4] ss:$20 sps:$4 sm:$0xff]  }
  0x13   :  { %v1521_v54 = vld [vmem:[%s2061_s0 + $0xa0] ss:$20 sps:$4 sm:$0xff]   ;;  %v1522_v55 = vld [vmem:[%s2061_s0 + $0xa8] ss:$20 sps:$4 sm:$0xff]   ;;  %v1529_v59 = vld [vmem:[%s2061_s0 + $0xd0] ss:$20 sps:$4 sm:$0xff]  }
  0x14   :  { %1295 = vmatpush3.bf16.msra.mxu0 %v1477_v18  ;;  %v1524_v56 = vld [vmem:[%s2061_s0 + $0xcc] ss:$20 sps:$4 sm:$0xff]   ;;  %v1526_v57 = vld [vmem:[%s2061_s0 + $0xd4] ss:$20 sps:$4 sm:$0xff]   ;;  %v1532_v61 = vld [vmem:[%s2061_s0 + $0xfc] ss:$20 sps:$4 sm:$0xff]  }
  0x15   :  { %1359 = vmatpush3.bf16.msra.mxu1 %v1478_v19  ;;  %1296 = vmatprep.subr.bf16.mxu0 %v1479_v20  ;;  %v1528_v58 = vld [vmem:[%s2061_s0 + $0xc8] ss:$20 sps:$4 sm:$0xff]   ;;  %v1534_v62 = vld [vmem:[%s2061_s0 + $0xf0] ss:$20 sps:$4 sm:$0xff]   ;;  %v1535_v63 = vld [vmem:[%s2061_s0 + $0xf8] ss:$20 sps:$4 sm:$0xff]  }
  0x16   :  { %1360 = vmatprep.subr.bf16.mxu1 %v1480_v21  ;;  %v1530_v60 = vld [vmem:[%s2061_s0 + $0xf4] ss:$20 sps:$4 sm:$0xff]   ;;  %v1537_v0 = vld [vmem:[%s2061_s0 + $0x11c] ss:$20 sps:$4 sm:$0xff]   ;;  %v1539_v1 = vld [vmem:[%s2061_s0 + $0x124] ss:$20 sps:$4 sm:$0xff]  }
  0x17   :  { %v1541_v2 = vld [vmem:[%s2061_s0 + $0x118] ss:$20 sps:$4 sm:$0xff]   ;;  %v1542_v3 = vld [vmem:[%s2061_s0 + $0x120] ss:$20 sps:$4 sm:$0xff]   ;;  %v1543_v4 = vld [vmem:[%s2061_s0 + $0x10] ss:$20 sps:$4 sm:$0xff]  }
  0x18   :  { %1297 = vmatpush3.bf16.msra.mxu0 %v1481_v22  ;;  %v1544_v5 = vld [vmem:[%s2061_s0 + $0xb0] ss:$20 sps:$4 sm:$0xff]   ;;  %v1545_v6 = vld [vmem:[%s2061_s0 + $0x38] ss:$20 sps:$4 sm:$0xff]   ;;  %v1547_v8 = vld [vmem:[%s2061_s0 + $0x60] ss:$20 sps:$4 sm:$0xff]  }
  0x19   :  { %1361 = vmatpush3.bf16.msra.mxu1 %v1482_v23  ;;  %1298 = vmatprep.subr.bf16.mxu0 %v1483_v24  ;;  %v1546_v7 = vld [vmem:[%s2061_s0 + $0xd8] ss:$20 sps:$4 sm:$0xff]   ;;  %v1548_v9 = vld [vmem:[%s2061_s0 + $0x100] ss:$20 sps:$4 sm:$0xff]   ;;  %v1549_v10 = vld [vmem:[%s2061_s0 + $0x88] ss:$20 sps:$4 sm:$0xff]  }
  0x1a   :  { %1362 = vmatprep.subr.bf16.mxu1 %v1484_v25  ;;  %v1550_v11 = vld [vmem:[%s2061_s0 + $0x128] ss:$20 sps:$4 sm:$0xff]   ;;  %25 = vst.msk [vmem:[#allocation2 + $0x10] sm:$0xff] %vm22_vm0, %v1551_v12  ;;  %23 = vst.msk [vmem:[#allocation2] sm:$0xff] %vm22_vm0, %v1551_v12 }
  0x1b   :  { %24 = vst.msk [vmem:[#allocation2 + $0x8] sm:$0xff] %vm22_vm0, %v1551_v12  ;;  %26 = vst.msk [vmem:[#allocation2 + $0x18] sm:$0xff] %vm22_vm0, %v1551_v12 }
  0x1c   :  { %1299 = vmatpush3.bf16.msra.mxu0 %v1485_v26  ;;  %27 = vst.msk [vmem:[#allocation2 + $0x20] sm:$0xff] %vm22_vm0, %v1551_v12  ;;  %28 = vst.msk [vmem:[#allocation2 + $0x28] sm:$0xff] %vm22_vm0, %v1551_v12 }
  0x1d   :  { %1363 = vmatpush3.bf16.msra.mxu1 %v1486_v27  ;;  %1300 = vmatprep.subr.bf16.mxu0 %v1487_v28  ;;  %29 = vst.msk [vmem:[#allocation2 + $0x30] sm:$0xff] %vm22_vm0, %v1551_v12  ;;  %30 = vst.msk [vmem:[#allocation2 + $0x38] sm:$0xff] %vm22_vm0, %v1551_v12 }
  0x1e   :  { %1364 = vmatprep.subr.bf16.mxu1 %v1488_v29  ;;  %31 = vst.msk [vmem:[#allocation2 + $0x40] sm:$0xff] %vm22_vm0, %v1551_v12  ;;  %32 = vst.msk [vmem:[#allocation2 + $0x48] sm:$0xff] %vm22_vm0, %v1551_v12 }
  0x1f   :  { %33 = vst.msk [vmem:[#allocation2 + $0x50] sm:$0xff] %vm22_vm0, %v1551_v12  ;;  %34 = vst.msk [vmem:[#allocation2 + $0x58] sm:$0xff] %vm22_vm0, %v1551_v12 }
  0x20   :  { %1301 = vmatpush3.bf16.msra.mxu0 %v1489_v30  ;;  %35 = vst.msk [vmem:[#allocation2 + $0x60] sm:$0xff] %vm22_vm0, %v1551_v12  ;;  %36 = vst.msk [vmem:[#allocation2 + $0x68] sm:$0xff] %vm22_vm0, %v1551_v12 }
  0x21   :  { %1365 = vmatpush3.bf16.msra.mxu1 %v1490_v31  ;;  %1426 = vmatprep.subr.bf16.mxu0 %v1497_v36  ;;  %37 = vst.msk [vmem:[#allocation2 + $0x70] sm:$0xff] %vm22_vm0, %v1551_v12  ;;  %38 = vst.msk [vmem:[#allocation2 + $0x78] sm:$0xff] %vm22_vm0, %v1551_v12 }
  0x22   :  { %1450 = vmatprep.subr.bf16.mxu1 %v1497_v36 }
  0x23   :  { %649 = vmatmul.mubr.bf16.vlgmr.msra.gmra.mrb[0].mxu0 %v1491_v32 }
  0x24   :  { %746 = vmatmul.mubr.bf16.vlgmr.msra.gmra.mrb[0].mxu1 %v1494_v34  ;;  %1427 = vmatpush3.bf16.msra.mxu0 %v1497_v36 }
  0x25   :  { %1454 = vmatpush3.bf16.msra.mxu1 %v1497_v36  ;;  %656 = vmatprep.mubr.bf16.mxu0 %v1498_v37 }
  0x26   :  { %753 = vmatprep.mubr.bf16.mxu1 %v1500_v38  ;;  %1428 = vmatprep.subr.bf16.mxu0 %v1510_v42 }
  0x27   :  { %1451 = vmatprep.subr.bf16.mxu1 %v1510_v42 }
  0x28   :  { %1429 = vmatpush3.bf16.msra.mxu0 %v1510_v42 }
  0x29   :  { %1455 = vmatpush3.bf16.msra.mxu1 %v1510_v42  ;;  %1430 = vmatprep.subr.bf16.mxu0 %v1523_v46 }
  0x2a   :  { %1452 = vmatprep.subr.bf16.mxu1 %v1523_v46 }
  0x2b   :  { %657 = vmatmul.mubr.bf16.gmra.mrb[4].mxu0 %v1502_v39 }
  0x2c   :  { %754 = vmatmul.mubr.bf16.gmra.mrb[4].mxu1 %v1503_v40  ;;  %664 = vmatprep.mubr.bf16.mxu0 %v1504_v41 }
  0x2d   :  { %761 = vmatprep.mubr.bf16.mxu1 %v1506_v43  ;;  %1431 = vmatpush3.bf16.msra.mxu0 %v1523_v46 }
  0x2e   :  { %1456 = vmatpush3.bf16.msra.mxu1 %v1523_v46  ;;  %1432 = vmatprep.subr.bf16.mxu0 %v1536_v49 }
  0x2f   :  { %1453 = vmatprep.subr.bf16.mxu1 %v1536_v49 }
  0x31   :  { %1433 = vmatpush3.bf16.msra.mxu0 %v1536_v49 }
  0x32   :  { %1457 = vmatpush3.bf16.msra.mxu1 %v1536_v49 }
  0x33   :  { %665 = vmatmul.mubr.bf16.gmra.mrb[8].mxu0 %v1508_v44 }
  0x34   :  { %762 = vmatmul.mubr.bf16.gmra.mrb[8].mxu1 %v1509_v45  ;;  %672 = vmatprep.mubr.bf16.mxu0 %v1511_v47 }
  0x35   :  { %769 = vmatprep.mubr.bf16.mxu1 %v1513_v48 }
  0x3b   :  { %673 = vmatmul.mubr.bf16.gmra.mrb[12].mxu0 %v1515_v50 }
  0x3c   :  { %770 = vmatmul.mubr.bf16.gmra.mrb[12].mxu1 %v1516_v51  ;;  %680 = vmatprep.mubr.bf16.mxu0 %v1517_v52 }
  0x3d   :  { %777 = vmatprep.mubr.bf16.mxu1 %v1519_v53 }
  0x43   :  { %681 = vmatmul.mubr.bf16.gmra.mrb[16].mxu0 %v1521_v54 }
  0x44   :  { %778 = vmatmul.mubr.bf16.gmra.mrb[16].mxu1 %v1522_v55  ;;  %688 = vmatprep.mubr.bf16.mxu0 %v1524_v56 }
  0x45   :  { %785 = vmatprep.mubr.bf16.mxu1 %v1526_v57 }
  0x4b   :  { %689 = vmatmul.mubr.bf16.gmra.mrb[20].mxu0 %v1528_v58 }
  0x4c   :  { %786 = vmatmul.mubr.bf16.gmra.mrb[20].mxu1 %v1529_v59  ;;  %696 = vmatprep.mubr.bf16.mxu0 %v1530_v60 }
  0x4d   :  { %793 = vmatprep.mubr.bf16.mxu1 %v1532_v61 }
  0x53   :  { %697 = vmatmul.mubr.bf16.gmra.mrb[24].mxu0 %v1534_v62 }
  0x54   :  { %794 = vmatmul.mubr.bf16.gmra.mrb[24].mxu1 %v1535_v63  ;;  %704 = vmatprep.mubr.bf16.mxu0 %v1537_v0 }
  0x55   :  { %801 = vmatprep.mubr.bf16.mxu1 %v1539_v1 }
  0x5b   :  { %705 = vmatmul.mubr.bf16.gmra.mrb[28].mxu0 %v1541_v2 }
  0x5c   :  { %802 = vmatmul.mubr.bf16.gmra.mrb[28].mxu1 %v1542_v3  ;;  %1434 = vmatprep.mubr.msk.bf16.mxu0 %vm22_vm0, %v1543_v4 }
  0x5d   :  { %1442 = vmatprep.mubr.msk.bf16.mxu1 %vm22_vm0, %v1544_v5 }
  0x63   :  { %1435 = vmatmul.mubr.msk.bf16.vlgmr.msra.gmra.mrb[32].mxu0 %vm22_vm0, %v1545_v6 }
  0x64   :  { %1443 = vmatmul.mubr.msk.bf16.vlgmr.msra.gmra.mrb[32].mxu1 %vm22_vm0, %v1546_v7  ;;  %1438 = vmatprep.mubr.msk.bf16.mxu0 %vm22_vm0, %v1547_v8 }
  0x65   :  { %1446 = vmatprep.mubr.msk.bf16.mxu1 %vm22_vm0, %v1548_v9 }
  0x6b   :  { %1439 = vmatmul.mubr.msk.bf16.gmra.mrb[36].mxu0 %vm22_vm0, %v1549_v10 }
  0x6c   :  { %1447 = vmatmul.mubr.msk.bf16.gmra.mrb[36].mxu1 %vm22_vm0, %v1550_v11 }
  0xf6   :  { %v1302_v13 = vpop.f32.mrb[0].mxu0 }
  0xf7   :  { %v1366_v14 = vpop.f32.mrb[0].mxu1  ;;  %v1303_v15 = vpop.f32.mrb[1].mxu0 }
  0xf8   :  { %v1304_v16 = vadd.f32 %v1303_v15, %v1302_v13  ;;  %v1367_v17 = vpop.f32.mrb[1].mxu1  ;;  %v1305_v18 = vpop.f32.mrb[2].mxu0 }
  0xf9   :  { %v1368_v19 = vadd.f32 %v1367_v17, %v1366_v14  ;;  %v1369_v20 = vpop.f32.mrb[2].mxu1  ;;  %v1306_v21 = vpop.f32.mrb[3].mxu0 }
  0xfa   :  { %v1307_v22 = vadd.f32 %v1306_v21, %v1305_v18  ;;  %v1370_v23 = vpop.f32.mrb[3].mxu1 }
  0xfb   :  { %v1371_v24 = vadd.f32 %v1370_v23, %v1369_v20  ;;  %v1829_v25 = vadd.f32 %v1368_v19, %v1304_v16 }
  0xfd   :  { %v1831_v26 = vadd.f32 %v1371_v24, %v1307_v22 }
  0xfe   :  { %v1308_v27 = vpop.f32.mrb[4].mxu0 }
  0xff   :  { %v1372_v28 = vpop.f32.mrb[4].mxu1  ;;  %v1309_v29 = vpop.f32.mrb[5].mxu0 }
 0x100   :  { %v1310_v30 = vadd.f32 %v1309_v29, %v1308_v27  ;;  %v1373_v31 = vpop.f32.mrb[5].mxu1  ;;  %v1311_v32 = vpop.f32.mrb[6].mxu0 }
 0x101   :  { %v1374_v33 = vadd.f32 %v1373_v31, %v1372_v28  ;;  %v1375_v34 = vpop.f32.mrb[6].mxu1  ;;  %v1312_v35 = vpop.f32.mrb[7].mxu0 }
 0x102   :  { %v1313_v36 = vadd.f32 %v1312_v35, %v1311_v32  ;;  %v1376_v37 = vpop.f32.mrb[7].mxu1 }
 0x103   :  { %v1377_v38 = vadd.f32 %v1376_v37, %v1375_v34  ;;  %v1833_v39 = vadd.f32 %v1374_v33, %v1310_v30 }
 0x105   :  { %v1835_v40 = vadd.f32 %v1377_v38, %v1313_v36 }
 0x106   :  { %v1314_v41 = vpop.f32.mrb[8].mxu0 }
 0x107   :  { %v1378_v42 = vpop.f32.mrb[8].mxu1  ;;  %v1315_v43 = vpop.f32.mrb[9].mxu0 }
 0x108   :  { %v1316_v44 = vadd.f32 %v1315_v43, %v1314_v41  ;;  %v1379_v45 = vpop.f32.mrb[9].mxu1  ;;  %v1317_v46 = vpop.f32.mrb[10].mxu0 }
 0x109   :  { %v1380_v47 = vadd.f32 %v1379_v45, %v1378_v42  ;;  %v1381_v48 = vpop.f32.mrb[10].mxu1  ;;  %v1318_v49 = vpop.f32.mrb[11].mxu0 }
 0x10a   :  { %v1319_v50 = vadd.f32 %v1318_v49, %v1317_v46  ;;  %v1382_v51 = vpop.f32.mrb[11].mxu1 }
 0x10b   :  { %v1383_v52 = vadd.f32 %v1382_v51, %v1381_v48  ;;  %v1837_v53 = vadd.f32 %v1380_v47, %v1316_v44 }
 0x10d   :  { %v1839_v54 = vadd.f32 %v1383_v52, %v1319_v50 }
 0x10e   :  { %v1320_v55 = vpop.f32.mrb[12].mxu0 }
 0x10f   :  { %v1384_v56 = vpop.f32.mrb[12].mxu1  ;;  %v1321_v57 = vpop.f32.mrb[13].mxu0 }
 0x110   :  { %v1322_v58 = vadd.f32 %v1321_v57, %v1320_v55  ;;  %v1385_v59 = vpop.f32.mrb[13].mxu1  ;;  %v1323_v60 = vpop.f32.mrb[14].mxu0 }
 0x111   :  { %v1386_v61 = vadd.f32 %v1385_v59, %v1384_v56  ;;  %v1387_v62 = vpop.f32.mrb[14].mxu1  ;;  %v1324_v63 = vpop.f32.mrb[15].mxu0 }
 0x112   :  { %v1325_v0 = vadd.f32 %v1324_v63, %v1323_v60  ;;  %v1388_v1 = vpop.f32.mrb[15].mxu1 }
 0x113   :  { %v1389_v2 = vadd.f32 %v1388_v1, %v1387_v62  ;;  %v1841_v3 = vadd.f32 %v1386_v61, %v1322_v58 }
 0x115   :  { %v1843_v4 = vadd.f32 %v1389_v2, %v1325_v0 }
 0x116   :  { %v1326_v5 = vpop.f32.mrb[16].mxu0 }
 0x117   :  { %v1390_v6 = vpop.f32.mrb[16].mxu1  ;;  %v1327_v7 = vpop.f32.mrb[17].mxu0 }
 0x118   :  { %v1328_v8 = vadd.f32 %v1327_v7, %v1326_v5  ;;  %v1391_v9 = vpop.f32.mrb[17].mxu1  ;;  %v1329_v10 = vpop.f32.mrb[18].mxu0  ;;  %v41_v5 = vld [vmem:[#allocation2 + $0x10] sm:$0xff] }
 0x119   :  { %v1392_v11 = vadd.f32 %v1391_v9, %v1390_v6  ;;  %v1393_v12 = vpop.f32.mrb[18].mxu1  ;;  %v1330_v13 = vpop.f32.mrb[19].mxu0 }
 0x11a   :  { %v1331_v14 = vadd.f32 %v1330_v13, %v1329_v10  ;;  %v1394_v15 = vpop.f32.mrb[19].mxu1  ;;  %v39_v10 = vld [vmem:[#allocation2] sm:$0xff]  ;;  %v1861_v13 = vld [vmem:[%s2062_s3 + $0x8] sm:$0xff]  }
 0x11b   :  { %v1395_v16 = vadd.f32 %v1394_v15, %v1393_v12  ;;  %v1845_v17 = vadd.f32 %v1392_v11, %v1328_v8  ;;  %v49_v8 = vld [vmem:[#allocation2 + $0x50] sm:$0xff]  ;;  %v47_v12 = vld [vmem:[#allocation2 + $0x40] sm:$0xff] }
 0x11d   :  { %v1847_v18 = vadd.f32 %v1395_v16, %v1331_v14 }
 0x11e   :  { %v1332_v19 = vpop.f32.mrb[20].mxu0 }
 0x11f   :  { %v1396_v20 = vpop.f32.mrb[20].mxu1  ;;  %v1333_v21 = vpop.f32.mrb[21].mxu0 }
 0x120   :  { %v1334_v22 = vadd.f32 %v1333_v21, %v1332_v19  ;;  %v1397_v23 = vpop.f32.mrb[21].mxu1  ;;  %v1335_v24 = vpop.f32.mrb[22].mxu0  ;;  %v42_v19 = vld [vmem:[#allocation2 + $0x18] sm:$0xff] }
 0x121   :  { %v1398_v27 = vadd.f32 %v1397_v23, %v1396_v20  ;;  %v1399_v28 = vpop.f32.mrb[22].mxu1  ;;  %v1336_v29 = vpop.f32.mrb[23].mxu0  ;;  %v50_v21 = vld [vmem:[#allocation2 + $0x58] sm:$0xff]  ;;  %v1872_v23 = vld [vmem:[%s2062_s3] sm:$0xff]  }
 0x122   :  { %v1337_v30 = vadd.f32 %v1336_v29, %v1335_v24  ;;  %v1400_v31 = vpop.f32.mrb[23].mxu1 }
 0x123   :  { %v1401_v32 = vadd.f32 %v1400_v31, %v1399_v28  ;;  %v788_v33 = vadd.f32 %v1398_v27, %v1334_v22  ;;  %v40_v28 = vld [vmem:[#allocation2 + $0x8] sm:$0xff] }
 0x125   :  { %v791_v34 = vadd.f32 %v1401_v32, %v1337_v30  ;;  %v1879_v32 = vld [vmem:[%s2062_s3 + $0x20] sm:$0xff]  }
 0x126   :  { %v1338_v35 = vpop.f32.mrb[24].mxu0 }
 0x127   :  { %v1402_v36 = vpop.f32.mrb[24].mxu1  ;;  %v1339_v37 = vpop.f32.mrb[25].mxu0 }
 0x128   :  { %v1340_v38 = vadd.f32 %v1339_v37, %v1338_v35  ;;  %v1403_v41 = vpop.f32.mrb[25].mxu1  ;;  %v1341_v42 = vpop.f32.mrb[26].mxu0 }
 0x129   :  { %v1404_v43 = vadd.f32 %v1403_v41, %v1402_v36  ;;  %v1405_v44 = vpop.f32.mrb[26].mxu1  ;;  %v1342_v45 = vpop.f32.mrb[27].mxu0  ;;  %v48_v36 = vld [vmem:[#allocation2 + $0x48] sm:$0xff] }
 0x12a   :  { %v1343_v46 = vadd.f32 %v1342_v45, %v1341_v42  ;;  %v1406_v47 = vpop.f32.mrb[27].mxu1  ;;  %v1888_v42 = vld [vmem:[%s2062_s3 + $0x18] sm:$0xff]   ;;  %v1902_v45 = vld [vmem:[%s2062_s3 + $0x10] sm:$0xff]  }
 0x12b   :  { %v1407_v48 = vadd.f32 %v1406_v47, %v1405_v44  ;;  %v1849_v49 = vadd.f32 %v1404_v43, %v1340_v38  ;;  %v1249_v43 = vunpack.c.l.bf16 %v1872_v23  ;;  %v1265_v47 = vunpack.c.l.bf16 %v1879_v32 }
 0x12d   :  { %v1851_v50 = vadd.f32 %v1407_v48, %v1343_v46  ;;  %v1907_v46 = vld [vmem:[%s2062_s3 + $0x30] sm:$0xff]   ;;  %v1254_v48 = vunpack.c.h.bf16 %v1861_v13 }
 0x12e   :  { %v1344_v51 = vpop.f32.mrb[28].mxu0 }
 0x12f   :  { %v1408_v52 = vpop.f32.mrb[28].mxu1  ;;  %v1345_v55 = vpop.f32.mrb[29].mxu0 }
 0x130   :  { %v1346_v56 = vadd.f32 %v1345_v55, %v1344_v51  ;;  %v1409_v57 = vpop.f32.mrb[29].mxu1  ;;  %v1347_v58 = vpop.f32.mrb[30].mxu0  ;;  %v1250_v55 = vunpack.c.h.bf16 %v1872_v23 }
 0x131   :  { %v1410_v59 = vadd.f32 %v1409_v57, %v1408_v52  ;;  %v1411_v60 = vpop.f32.mrb[30].mxu1  ;;  %v1348_v61 = vpop.f32.mrb[31].mxu0  ;;  %v45_v57 = vld [vmem:[#allocation2 + $0x30] sm:$0xff] }
 0x132   :  { %v1349_v62 = vadd.f32 %v1348_v61, %v1347_v58  ;;  %v1412_v63 = vpop.f32.mrb[31].mxu1 }
 0x133   :  { %v1413_v0 = vadd.f32 %v1412_v63, %v1411_v60  ;;  %v1853_v1 = vadd.f32 %v1410_v59, %v1346_v56  ;;  %v1266_v56 = vunpack.c.h.bf16 %v1879_v32  ;;  %v1261_v59 = vunpack.c.l.bf16 %v1888_v42 }
 0x135   :  { %v1855_v2 = vadd.f32 %v1413_v0, %v1349_v62  ;;  %v53_v62 = vld [vmem:[#allocation2 + $0x70] sm:$0xff]  ;;  %v43_v0 = vld [vmem:[#allocation2 + $0x20] sm:$0xff] }
 0x136   :  { %v1436_v6 = vpop.f32.mrb[32].mxu0 }
 0x137   :  { %v853_v7 = vadd.f32 %v1436_v6, %v1833_v39  ;;  %v1444_v9 = vpop.f32.mrb[32].mxu1  ;;  %v844_v11 = vpop.f32.mrb[33].mxu0  ;;  %v1867_v39 = vld [vmem:[%s2062_s3 + $0x28] sm:$0xff]   ;;  %v1257_v6 = vunpack.c.l.bf16 %v1902_v45 }
 0x138   :  { %v885_v14 = vadd.f32 %v1444_v9, %v788_v33  ;;  %v845_v15 = vadd.f32 %v844_v11, %v1829_v25  ;;  %v876_v16 = vpop.f32.mrb[33].mxu1  ;;  %v1437_v20 = vpop.f32.mrb[34].mxu0  ;;  %v1270_v51 = vunpack.c.h.bf16 %v1867_v39  ;;  %v1928_v9 = vld [vmem:[%s2063_s2] ss:$0 sm:$0xff] }
 0x139   :  { %v909_v22 = vadd.f32 %v853_v7, %v41_v5  ;;  %v877_v24 = vadd.f32 %v876_v16, %v1845_v17  ;;  %v856_v27 = vadd.f32 %v1437_v20, %v1835_v40  ;;  %v1445_v25 = vpop.f32.mrb[34].mxu1  ;;  %v847_v29 = vpop.f32.mrb[35].mxu0  ;;  %v1253_v17 = vunpack.c.l.bf16 %v1861_v13  ;;  %v51_v11 = vld [vmem:[#allocation2 + $0x60] sm:$0xff] }
 0x13a   :  { %v917_v30 = vadd.f32 %v885_v14, %v49_v8  ;;  %v907_v31 = vadd.f32 %v845_v15, %v39_v10  ;;  %v888_v33 = vadd.f32 %v1445_v25, %v791_v34  ;;  %v848_v35 = vadd.f32 %v847_v29, %v1831_v26  ;;  %v879_v37 = vpop.f32.mrb[35].mxu1  ;;  %v1893_v34 = vld [vmem:[%s2062_s3 + $0x38] sm:$0xff]   ;;  %v44_v25 = vld [vmem:[#allocation2 + $0x28] sm:$0xff] }
 0x13b   :  { %925 = vst.msk [vmem:[#allocation2 + $0x10] sm:$0xff] %vm22_vm0, %v909_v22  ;;  %v915_v40 = vadd.f32 %v877_v24, %v47_v12  ;;  %v910_v38 = vadd.f32 %v856_v27, %v42_v19  ;;  %v880_v41 = vadd.f32 %v879_v37, %v1847_v18  ;;  %v1269_v26 = vunpack.c.l.bf16 %v1867_v39  ;;  %v46_v14 = vld [vmem:[#allocation2 + $0x38] sm:$0xff] }
 0x13c   :  { %933 = vst.msk [vmem:[#allocation2 + $0x50] sm:$0xff] %vm22_vm0, %v917_v30  ;;  %923 = vst.msk [vmem:[#allocation2] sm:$0xff] %vm22_vm0, %v907_v31  ;;  %v918_v44 = vadd.f32 %v888_v33, %v50_v21  ;;  %v908_v18 = vadd.f32 %v848_v35, %v40_v28  ;;  %v1277_v60 = vunpack.c.l.bf16 %v1893_v34  ;;  %v1273_v7 = vunpack.c.l.bf16 %v1907_v46  ;;  %v54_v24 = vld [vmem:[#allocation2 + $0x78] sm:$0xff]  ;;  %v52_v35 = vld [vmem:[#allocation2 + $0x68] sm:$0xff] }
 0x13d   :  { %931 = vst.msk [vmem:[#allocation2 + $0x40] sm:$0xff] %vm22_vm0, %v915_v40  ;;  %926 = vst.msk [vmem:[#allocation2 + $0x18] sm:$0xff] %vm22_vm0, %v910_v38  ;;  %v916_v52 = vadd.f32 %v880_v41, %v48_v36  ;;  %v1262_v8 = vunpack.c.h.bf16 %v1888_v42  ;;  %v1278_v16 = vunpack.c.h.bf16 %v1893_v34  ;;  %v1258_v19 = vunpack.c.h.bf16 %v1902_v45 }
 0x13e   :  { %934 = vst.msk [vmem:[#allocation2 + $0x58] sm:$0xff] %vm22_vm0, %v918_v44  ;;  %924 = vst.msk [vmem:[#allocation2 + $0x8] sm:$0xff] %vm22_vm0, %v908_v18  ;;  %v1440_v58 = vpop.f32.mrb[36].mxu0 }
 0x13f   :  { %932 = vst.msk [vmem:[#allocation2 + $0x48] sm:$0xff] %vm22_vm0, %v916_v52  ;;  %v869_v61 = vadd.f32 %v1440_v58, %v1841_v3  ;;  %v1448_v63 = vpop.f32.mrb[36].mxu1  ;;  %v860_v5 = vpop.f32.mrb[37].mxu0 }
 0x140   :  { %v901_v10 = vadd.f32 %v1448_v63, %v1853_v1  ;;  %v861_v3 = vadd.f32 %v860_v5, %v1837_v53  ;;  %v892_v12 = vpop.f32.mrb[37].mxu1  ;;  %v1441_v15 = vpop.f32.mrb[38].mxu0  ;;  %v1274_v1 = vunpack.c.h.bf16 %v1907_v46 }
 0x141   :  { %v913_v20 = vadd.f32 %v869_v61, %v45_v57  ;;  %v893_v21 = vadd.f32 %v892_v12, %v1849_v49  ;;  %v872_v22 = vadd.f32 %v1441_v15, %v1843_v4  ;;  %v1449_v27 = vpop.f32.mrb[38].mxu1  ;;  %v863_v28 = vpop.f32.mrb[39].mxu0 }
 0x142   :  { %v944_v53 = vld [vmem:[#allocation2 + $0x10] sm:$0xff]  ;;  %v921_v29 = vadd.f32 %v901_v10, %v53_v62  ;;  %v911_v30 = vadd.f32 %v861_v3, %v43_v0  ;;  %v904_v31 = vadd.f32 %v1449_v27, %v1855_v2  ;;  %v864_v33 = vadd.f32 %v863_v28, %v1839_v54  ;;  %v895_v36 = vpop.f32.mrb[39].mxu1 }
 0x143   :  { %v967_v37 = vadd.f32 %v1928_v9, %v944_v53  ;;  %v952_v49 = vld [vmem:[#allocation2 + $0x50] sm:$0xff]  ;;  %v942_v40 = vld [vmem:[#allocation2] sm:$0xff]  ;;  %929 = vst.msk [vmem:[#allocation2 + $0x30] sm:$0xff] %vm22_vm0, %v913_v20  ;;  %v919_v4 = vadd.f32 %v893_v21, %v51_v11  ;;  %v914_v38 = vadd.f32 %v872_v22, %v46_v14  ;;  %v896_v41 = vadd.f32 %v895_v36, %v1851_v50 }
 0x144   :  { %v975_v44 = vadd.f32 %v1928_v9, %v952_v49  ;;  %v965_v18 = vadd.f32 %v1928_v9, %v942_v40  ;;  %v950_v52 = vld [vmem:[#allocation2 + $0x40] sm:$0xff]  ;;  %v945_v2 = vld [vmem:[#allocation2 + $0x18] sm:$0xff]  ;;  %937 = vst.msk [vmem:[#allocation2 + $0x70] sm:$0xff] %vm22_vm0, %v921_v29  ;;  %927 = vst.msk [vmem:[#allocation2 + $0x20] sm:$0xff] %vm22_vm0, %v911_v30  ;;  %v922_v54 = vadd.f32 %v904_v31, %v54_v24 }
 0x145   :  { %v912_v57 = vadd.f32 %v864_v33, %v44_v25  ;;  %v1015_v58 = vadd.f32 %v1253_v17, %v967_v37  ;;  %v973_v61 = vadd.f32 %v1928_v9, %v950_v52  ;;  %v968_v62 = vadd.f32 %v1928_v9, %v945_v2  ;;  %v953_v50 = vld [vmem:[#allocation2 + $0x58] sm:$0xff]  ;;  %v943_v63 = vld [vmem:[#allocation2 + $0x8] sm:$0xff]  ;;  %935 = vst.msk [vmem:[#allocation2 + $0x60] sm:$0xff] %vm22_vm0, %v919_v4 }
 0x146   :  { %930 = vst.msk [vmem:[#allocation2 + $0x38] sm:$0xff] %vm22_vm0, %v914_v38  ;;  %v920_v0 = vadd.f32 %v896_v41, %v52_v35  ;;  %v1023_v5 = vadd.f32 %v1269_v26, %v975_v44  ;;  %v1013_v10 = vadd.f32 %v1249_v43, %v965_v18  ;;  %v976_v3 = vadd.f32 %v1928_v9, %v953_v50  ;;  %v951_v11 = vld [vmem:[#allocation2 + $0x48] sm:$0xff] }
 0x147   :  { %v966_v17 = vadd.f32 %v1928_v9, %v943_v63  ;;  %938 = vst.msk [vmem:[#allocation2 + $0x78] sm:$0xff] %vm22_vm0, %v922_v54  ;;  %928 = vst.msk [vmem:[#allocation2 + $0x28] sm:$0xff] %vm22_vm0, %v912_v57  ;;  %v1031_v12 = vmax.f32 %v1015_v58, 0.0  ;;  %v1021_v14 = vadd.f32 %v1265_v47, %v973_v61  ;;  %v1016_v15 = vadd.f32 %v1254_v48, %v968_v62 }
 0x148   :  { %v974_v26 = vadd.f32 %v1928_v9, %v951_v11  ;;  %936 = vst.msk [vmem:[#allocation2 + $0x68] sm:$0xff] %vm22_vm0, %v920_v0  ;;  %v1039_v43 = vmax.f32 %v1023_v5, 0.0  ;;  %v1029_v20 = vmax.f32 %v1013_v10, 0.0  ;;  %v1024_v21 = vadd.f32 %v1270_v51, %v976_v3 }
 0x149   :  { %v1014_v22 = vadd.f32 %v1250_v55, %v966_v17  ;;  %v1233_v24 = vpack.c.bf16 %v1031_v12, %v1031_v12  ;;  %v1037_v27 = vmax.f32 %v1021_v14, 0.0  ;;  %v1032_v25 = vmax.f32 %v1016_v15, 0.0 }
 0x14a   :  { %v1022_v47 = vadd.f32 %v1266_v56, %v974_v26  ;;  %v1241_v13 = vpack.c.bf16 %v1039_v43, %v1039_v43  ;;  %v1231_v48 = vpack.c.bf16 %v1029_v20, %v1029_v20  ;;  %v1040_v28 = vmax.f32 %v1024_v21, 0.0  ;;  %v948_v29 = vld [vmem:[#allocation2 + $0x30] sm:$0xff] }
 0x14b   :  { %v1030_v53 = vmax.f32 %v1014_v22, 0.0  ;;  %1112 = vst.msk [vmem:[%s2064_s4 + $0x8] sm:$0xf] %vm1109_vm1, %v1233_v24  ;;  %v1239_v39 = vpack.c.bf16 %v1037_v27, %v1037_v27  ;;  %v1234_v51 = vpack.c.bf16 %v1032_v25, %v1032_v25  ;;  %v971_v55 = vadd.f32 %v1928_v9, %v948_v29  ;;  %v956_v30 = vld [vmem:[#allocation2 + $0x70] sm:$0xff]  ;;  %v946_v31 = vld [vmem:[#allocation2 + $0x20] sm:$0xff] }
 0x14c   :  { %v1038_v23 = vmax.f32 %v1022_v47, 0.0  ;;  %1120 = vst.msk [vmem:[%s2064_s4 + $0x28] sm:$0xf] %vm1109_vm1, %v1241_v13  ;;  %1110 = vst.msk [vmem:[%s2064_s4] sm:$0xf] %vm1109_vm1, %v1231_v48  ;;  %v1242_v32 = vpack.c.bf16 %v1040_v28, %v1040_v28  ;;  %v979_v33 = vadd.f32 %v1928_v9, %v956_v30  ;;  %v969_v35 = vadd.f32 %v1928_v9, %v946_v31  ;;  %v954_v36 = vld [vmem:[#allocation2 + $0x60] sm:$0xff] }
 0x14d   :  { %v1232_v56 = vpack.c.bf16 %v1030_v53, %v1030_v53  ;;  %v949_v37 = vld [vmem:[#allocation2 + $0x38] sm:$0xff]  ;;  %1118 = vst.msk [vmem:[%s2064_s4 + $0x20] sm:$0xf] %vm1109_vm1, %v1239_v39  ;;  %1113 = vst.msk [vmem:[%s2064_s4 + $0xc] sm:$0xf] %vm1109_vm1, %v1234_v51  ;;  %v1019_v40 = vadd.f32 %v1261_v59, %v971_v55  ;;  %v977_v4 = vadd.f32 %v1928_v9, %v954_v36 }
 0x14e   :  { %v1240_v49 = vpack.c.bf16 %v1038_v23, %v1038_v23  ;;  %v972_v38 = vadd.f32 %v1928_v9, %v949_v37  ;;  %v957_v41 = vld [vmem:[#allocation2 + $0x78] sm:$0xff]  ;;  %v947_v44 = vld [vmem:[#allocation2 + $0x28] sm:$0xff]  ;;  %1121 = vst.msk [vmem:[%s2064_s4 + $0x2c] sm:$0xf] %vm1109_vm1, %v1242_v32  ;;  %v1027_v18 = vadd.f32 %v1277_v60, %v979_v33  ;;  %v1017_v59 = vadd.f32 %v1257_v6, %v969_v35 }
 0x14f   :  { %1111 = vst.msk [vmem:[%s2064_s4 + $0x4] sm:$0xf] %vm1109_vm1, %v1232_v56  ;;  %v980_v52 = vadd.f32 %v1928_v9, %v957_v41  ;;  %v970_v2 = vadd.f32 %v1928_v9, %v947_v44  ;;  %v955_v54 = vld [vmem:[#allocation2 + $0x68] sm:$0xff]  ;;  %v1035_v57 = vmax.f32 %v1019_v40, 0.0  ;;  %v1025_v58 = vadd.f32 %v1273_v7, %v977_v4 }
 0x150   :  { %1119 = vst.msk [vmem:[%s2064_s4 + $0x24] sm:$0xf] %vm1109_vm1, %v1240_v49  ;;  %v1020_v60 = vadd.f32 %v1262_v8, %v972_v38  ;;  %v978_v61 = vadd.f32 %v1928_v9, %v955_v54  ;;  %v1043_v6 = vmax.f32 %v1027_v18, 0.0  ;;  %v1033_v62 = vmax.f32 %v1017_v59, 0.0 }
 0x151   :  { %v1028_v50 = vadd.f32 %v1278_v16, %v980_v52  ;;  %v1018_v63 = vadd.f32 %v1258_v19, %v970_v2  ;;  %v1237_v0 = vpack.c.bf16 %v1035_v57, %v1035_v57  ;;  %v1041_v5 = vmax.f32 %v1025_v58, 0.0 }
 0x152   :  { %v1036_v10 = vmax.f32 %v1020_v60, 0.0  ;;  %v1026_v3 = vadd.f32 %v1274_v1, %v978_v61  ;;  %v1245_v7 = vpack.c.bf16 %v1043_v6, %v1043_v6  ;;  %v1235_v17 = vpack.c.bf16 %v1033_v62, %v1033_v62 }
 0x153   :  { %v1044_v42 = vmax.f32 %v1028_v50, 0.0  ;;  %v1034_v8 = vmax.f32 %v1018_v63, 0.0  ;;  %1116 = vst.msk [vmem:[%s2064_s4 + $0x18] sm:$0xf] %vm1109_vm1, %v1237_v0  ;;  %v1243_v34 = vpack.c.bf16 %v1041_v5, %v1041_v5 }
 0x154   :  { %v1238_v9 = vpack.c.bf16 %v1036_v10, %v1036_v10  ;;  %v1042_v16 = vmax.f32 %v1026_v3, 0.0  ;;  %1124 = vst.msk [vmem:[%s2064_s4 + $0x38] sm:$0xf] %vm1109_vm1, %v1245_v7  ;;  %1114 = vst.msk [vmem:[%s2064_s4 + $0x10] sm:$0xf] %vm1109_vm1, %v1235_v17 }
 0x155   :  { %v1246_v45 = vpack.c.bf16 %v1044_v42, %v1044_v42  ;;  %v1236_v46 = vpack.c.bf16 %v1034_v8, %v1034_v8  ;;  %1122 = vst.msk [vmem:[%s2064_s4 + $0x30] sm:$0xf] %vm1109_vm1, %v1243_v34 }
 0x156   :  { %1117 = vst.msk [vmem:[%s2064_s4 + $0x1c] sm:$0xf] %vm1109_vm1, %v1238_v9  ;;  %v1244_v19 = vpack.c.bf16 %v1042_v16, %v1042_v16 }
 0x157   :  { %1125 = vst.msk [vmem:[%s2064_s4 + $0x3c] sm:$0xf] %vm1109_vm1, %v1246_v45  ;;  %1115 = vst.msk [vmem:[%s2064_s4 + $0x14] sm:$0xf] %vm1109_vm1, %v1236_v46 }
 0x158   :  { %1123 = vst.msk [vmem:[%s2064_s4 + $0x34] sm:$0xf] %vm1109_vm1, %v1244_v19 }

// kernel: image_captioning_forward.33
= control target key start
LH: loop header
LB: loop body
LE: loop exit
PB: predicated region body
PF: predicated region fallthrough
CT: control target
= control target key end

     0   :  { %vm377_vm0 = vcmask 523264   ;;  %s944_s1 = inlined_call_operand.vmem [shape: bf16[576,128], index: 1, kind: input, shape index: {}]   ;;  %s945_s0 = inlined_call_operand.vmem [shape: bf16[32,576], index: 0, kind: input, shape index: {}]   ;;  %s946_s2 = inlined_call_operand.vmem [shape: f32[1,128], index: 2, kind: input, shape index: {}]   ;;  %s947_s3 = inlined_call_operand.vmem [shape: bf16[32,128], index: 3, kind: output, shape index: {}]  }
   0x1   :  { %v727_v0 = vld [vmem:[%s944_s1 + $0x40] sm:$0xff]   ;;  %v731_v4 = vld [vmem:[%s944_s1 + $0x48] sm:$0xff]   ;;  %v735_v8 = vld [vmem:[%s944_s1 + $0x50] sm:$0xff]  }
   0x2   :  { %v728_v1 = vld [vmem:[%s944_s1 + $0xc0] sm:$0xff]   ;;  %653 = vmatprep.subr.bf16.mxu0 %v727_v0  ;;  %v732_v5 = vld [vmem:[%s944_s1 + $0xc8] sm:$0xff]   ;;  %v736_v9 = vld [vmem:[%s944_s1 + $0xd0] sm:$0xff]  }
   0x3   :  { %v729_v2 = vld [vmem:[%s944_s1] sm:$0xff]   ;;  %681 = vmatprep.subr.bf16.mxu1 %v728_v1  ;;  %v733_v6 = vld [vmem:[%s944_s1 + $0x8] sm:$0xff]   ;;  %v737_v10 = vld [vmem:[%s944_s1 + $0x10] sm:$0xff]  }
   0x4   :  { %v730_v3 = vld [vmem:[%s944_s1 + $0x80] sm:$0xff]   ;;  %654 = vmatpush3.bf16.msra.mxu0 %v729_v2  ;;  %v734_v7 = vld [vmem:[%s944_s1 + $0x88] sm:$0xff]   ;;  %v738_v11 = vld [vmem:[%s944_s1 + $0x90] sm:$0xff]  }
   0x5   :  { %682 = vmatpush3.bf16.msra.mxu1 %v730_v3  ;;  %655 = vmatprep.subr.bf16.mxu0 %v731_v4  ;;  %v739_v12 = vld [vmem:[%s944_s1 + $0x58] sm:$0xff]   ;;  %v743_v16 = vld [vmem:[%s944_s1 + $0x60] sm:$0xff]   ;;  %v747_v20 = vld [vmem:[%s944_s1 + $0x68] sm:$0xff]  }
   0x6   :  { %683 = vmatprep.subr.bf16.mxu1 %v732_v5  ;;  %v740_v13 = vld [vmem:[%s944_s1 + $0xd8] sm:$0xff]   ;;  %v744_v17 = vld [vmem:[%s944_s1 + $0xe0] sm:$0xff]   ;;  %v748_v21 = vld [vmem:[%s944_s1 + $0xe8] sm:$0xff]  }
   0x7   :  { %v741_v14 = vld [vmem:[%s944_s1 + $0x18] sm:$0xff]   ;;  %v745_v18 = vld [vmem:[%s944_s1 + $0x20] sm:$0xff]   ;;  %v749_v22 = vld [vmem:[%s944_s1 + $0x28] sm:$0xff]  }
   0x8   :  { %656 = vmatpush3.bf16.msra.mxu0 %v733_v6  ;;  %v742_v15 = vld [vmem:[%s944_s1 + $0x98] sm:$0xff]   ;;  %v746_v19 = vld [vmem:[%s944_s1 + $0xa0] sm:$0xff]   ;;  %v750_v23 = vld [vmem:[%s944_s1 + $0xa8] sm:$0xff]  }
   0x9   :  { %684 = vmatpush3.bf16.msra.mxu1 %v734_v7  ;;  %657 = vmatprep.subr.bf16.mxu0 %v735_v8  ;;  %v751_v24 = vld [vmem:[%s944_s1 + $0x70] sm:$0xff]   ;;  %v755_v28 = vld [vmem:[%s944_s1 + $0x78] sm:$0xff]   ;;  %v764_v35 = vld [vmem:[%s945_s0 + $0xc] ss:$20 sps:$4 sm:$0xff]  }
   0xa   :  { %685 = vmatprep.subr.bf16.mxu1 %v736_v9  ;;  %v752_v25 = vld [vmem:[%s944_s1 + $0xf0] sm:$0xff]   ;;  %v756_v29 = vld [vmem:[%s944_s1 + $0xf8] sm:$0xff]   ;;  %v765_v36 = vld [vmem:[%s944_s1 + $0x100] sm:$0xff]   ;;  %465 = vmatprep.mubr.bf16.mxu1 %v764_v35 }
   0xb   :  { %v753_v26 = vld [vmem:[%s944_s1 + $0x30] sm:$0xff]   ;;  %v757_v30 = vld [vmem:[%s944_s1 + $0x38] sm:$0xff]   ;;  %v766_v37 = vld [vmem:[%s944_s1 + $0x108] sm:$0xff]  }
   0xc   :  { %658 = vmatpush3.bf16.msra.mxu0 %v737_v10  ;;  %v754_v27 = vld [vmem:[%s944_s1 + $0xb0] sm:$0xff]   ;;  %v758_v31 = vld [vmem:[%s944_s1 + $0xb8] sm:$0xff]   ;;  %v767_v38 = vld [vmem:[%s945_s0 + $0x2c] ss:$20 sps:$4 sm:$0xff]  }
   0xd   :  { %686 = vmatpush3.bf16.msra.mxu1 %v738_v11  ;;  %659 = vmatprep.subr.bf16.mxu0 %v739_v12  ;;  %v759_v32 = vld [vmem:[%s945_s0] ss:$20 sps:$4 sm:$0xff]   ;;  %v761_v33 = vld [vmem:[%s945_s0 + $0x4] ss:$20 sps:$4 sm:$0xff]   ;;  %v762_v34 = vld [vmem:[%s945_s0 + $0x8] ss:$20 sps:$4 sm:$0xff]  }
   0xe   :  { %687 = vmatprep.subr.bf16.mxu1 %v740_v13  ;;  %416 = vmatprep.mubr.bf16.mxu0 %v761_v33  ;;  %v769_v39 = vld [vmem:[%s945_s0 + $0x34] ss:$20 sps:$4 sm:$0xff]   ;;  %v772_v42 = vld [vmem:[%s945_s0 + $0x30] ss:$20 sps:$4 sm:$0xff]   ;;  %v774_v44 = vld [vmem:[%s944_s1 + $0x118] sm:$0xff]  }
   0xf   :  { %v771_v40 = vld [vmem:[%s945_s0 + $0x28] ss:$20 sps:$4 sm:$0xff]   ;;  %v773_v41 = vld [vmem:[%s944_s1 + $0x110] sm:$0xff]   ;;  %v776_v45 = vld [vmem:[%s945_s0 + $0x38] ss:$20 sps:$4 sm:$0xff]  }
  0x10   :  { %660 = vmatpush3.bf16.msra.mxu0 %v741_v14  ;;  %v775_v43 = vld [vmem:[%s945_s0 + $0x10] ss:$20 sps:$4 sm:$0xff]   ;;  %v633_v11 = vld [vmem:[%s946_s2] ss:$0 sm:$0xff] }
  0x11   :  { %688 = vmatpush3.bf16.msra.mxu1 %v742_v15  ;;  %661 = vmatprep.subr.bf16.mxu0 %v743_v16 }
  0x12   :  { %689 = vmatprep.subr.bf16.mxu1 %v744_v17 }
  0x14   :  { %662 = vmatpush3.bf16.msra.mxu0 %v745_v18 }
  0x15   :  { %690 = vmatpush3.bf16.msra.mxu1 %v746_v19  ;;  %663 = vmatprep.subr.bf16.mxu0 %v747_v20 }
  0x16   :  { %691 = vmatprep.subr.bf16.mxu1 %v748_v21 }
  0x18   :  { %664 = vmatpush3.bf16.msra.mxu0 %v749_v22 }
  0x19   :  { %692 = vmatpush3.bf16.msra.mxu1 %v750_v23  ;;  %665 = vmatprep.subr.bf16.mxu0 %v751_v24 }
  0x1a   :  { %693 = vmatprep.subr.bf16.mxu1 %v752_v25 }
  0x1c   :  { %666 = vmatpush3.bf16.msra.mxu0 %v753_v26 }
  0x1d   :  { %694 = vmatpush3.bf16.msra.mxu1 %v754_v27  ;;  %667 = vmatprep.subr.bf16.mxu0 %v755_v28 }
  0x1e   :  { %695 = vmatprep.subr.bf16.mxu1 %v756_v29 }
  0x20   :  { %668 = vmatpush3.bf16.msra.mxu0 %v757_v30 }
  0x21   :  { %696 = vmatpush3.bf16.msra.mxu1 %v758_v31  ;;  %715 = vmatprep.subr.bf16.mxu0 %v765_v36 }
  0x23   :  { %417 = vmatmul.mubr.bf16.vlgmr.msra.gmra.mrb[0].mxu0 %v759_v32 }
  0x24   :  { %466 = vmatmul.mubr.bf16.vlgmr.msra.gmra.mrb[0].mxu1 %v762_v34  ;;  %716 = vmatpush3.bf16.msra.mxu0 %v765_v36 }
  0x25   :  { %717 = vmatprep.subr.bf16.mxu0 %v766_v37  ;;  %424 = vmatprep.mubr.bf16.mxu0 %v767_v38 }
  0x26   :  { %473 = vmatprep.mubr.bf16.mxu1 %v769_v39 }
  0x28   :  { %718 = vmatpush3.bf16.msra.mxu0 %v766_v37 }
  0x29   :  { %719 = vmatprep.subr.bf16.mxu0 %v773_v41 }
  0x2b   :  { %425 = vmatmul.mubr.bf16.gmra.mrb[4].mxu0 %v771_v40 }
  0x2c   :  { %474 = vmatmul.mubr.bf16.gmra.mrb[4].mxu1 %v772_v42  ;;  %723 = vmatprep.mubr.msk.bf16.mxu0 %vm377_vm0, %v775_v43 }
  0x2d   :  { %720 = vmatpush3.bf16.msra.mxu0 %v773_v41 }
  0x2e   :  { %721 = vmatprep.subr.bf16.mxu0 %v774_v44 }
  0x31   :  { %722 = vmatpush3.bf16.msra.mxu0 %v774_v44 }
  0x34   :  { %724 = vmatmul.mubr.msk.bf16.vlgmr.msra.gmra.mrb[8].mxu0 %vm377_vm0, %v776_v45 }
  0xf6   :  { %v669_v46 = vpop.f32.mrb[0].mxu0 }
  0xf7   :  { %v697_v47 = vpop.f32.mrb[0].mxu1  ;;  %v670_v48 = vpop.f32.mrb[1].mxu0 }
  0xf8   :  { %v671_v49 = vadd.f32 %v670_v48, %v669_v46  ;;  %v698_v50 = vpop.f32.mrb[1].mxu1  ;;  %v672_v51 = vpop.f32.mrb[2].mxu0 }
  0xf9   :  { %v699_v52 = vadd.f32 %v698_v50, %v697_v47  ;;  %v700_v53 = vpop.f32.mrb[2].mxu1  ;;  %v673_v54 = vpop.f32.mrb[3].mxu0 }
  0xfa   :  { %v674_v55 = vadd.f32 %v673_v54, %v672_v51  ;;  %v701_v56 = vpop.f32.mrb[3].mxu1 }
  0xfb   :  { %v702_v57 = vadd.f32 %v701_v56, %v700_v53  ;;  %v468_v58 = vadd.f32 %v699_v52, %v671_v49 }
  0xfd   :  { %v471_v59 = vadd.f32 %v702_v57, %v674_v55 }
  0xfe   :  { %v675_v60 = vpop.f32.mrb[4].mxu0 }
  0xff   :  { %v703_v61 = vpop.f32.mrb[4].mxu1  ;;  %v676_v62 = vpop.f32.mrb[5].mxu0 }
 0x100   :  { %v677_v63 = vadd.f32 %v676_v62, %v675_v60  ;;  %v704_v0 = vpop.f32.mrb[5].mxu1  ;;  %v678_v1 = vpop.f32.mrb[6].mxu0 }
 0x101   :  { %v705_v2 = vadd.f32 %v704_v0, %v703_v61  ;;  %v706_v3 = vpop.f32.mrb[6].mxu1  ;;  %v679_v4 = vpop.f32.mrb[7].mxu0 }
 0x102   :  { %v680_v5 = vadd.f32 %v679_v4, %v678_v1  ;;  %v707_v6 = vpop.f32.mrb[7].mxu1 }
 0x103   :  { %v708_v7 = vadd.f32 %v707_v6, %v706_v3  ;;  %v476_v8 = vadd.f32 %v705_v2, %v677_v63 }
 0x105   :  { %v479_v9 = vadd.f32 %v708_v7, %v680_v5 }
 0x107   :  { %v725_v10 = vpop.f32.mrb[8].mxu0 }
 0x108   :  { %v525_v12 = vadd.f32 %v725_v10, %v476_v8  ;;  %v516_v13 = vpop.f32.mrb[9].mxu0 }
 0x109   :  { %v517_v14 = vadd.f32 %v516_v13, %v468_v58  ;;  %v726_v15 = vpop.f32.mrb[10].mxu0 }
 0x10a   :  { %v555_v16 = vadd.f32 %v633_v11, %v525_v12  ;;  %v528_v17 = vadd.f32 %v726_v15, %v479_v9  ;;  %v519_v18 = vpop.f32.mrb[11].mxu0 }
 0x10b   :  { %v553_v19 = vadd.f32 %v633_v11, %v517_v14  ;;  %v520_v20 = vadd.f32 %v519_v18, %v471_v59 }
 0x10c   :  { %v556_v21 = vadd.f32 %v633_v11, %v528_v17  ;;  %v559_v23 = vmax.f32 %v555_v16, 0.0 }
 0x10d   :  { %v554_v22 = vadd.f32 %v633_v11, %v520_v20  ;;  %v557_v25 = vmax.f32 %v553_v19, 0.0 }
 0x10e   :  { %v560_v24 = vmax.f32 %v556_v21, 0.0 }
 0x10f   :  { %v558_v26 = vmax.f32 %v554_v22, 0.0 }
 0x110   :  { %v650_v27 = vpack.c.bf16 %v560_v24, %v559_v23 }
 0x111   :  { %v645_v28 = vpack.c.bf16 %v558_v26, %v557_v25 }
 0x112   :  { %652 = vst [vmem:[%s947_s3 + $0x8] sm:$0xff] %v650_v27  }
 0x113   :  { %646 = vst [vmem:[%s947_s3] sm:$0xff] %v645_v28  }

// kernel: image_captioning_forward.32
= control target key start
LH: loop header
LB: loop body
LE: loop exit
PB: predicated region body
PF: predicated region fallthrough
CT: control target
= control target key end

     0   :  { %vm73_vm0 = vcmask 523264   ;;  %s278_s1 = inlined_call_operand.vmem [shape: bf16[64,128], index: 1, kind: input, shape index: {}]   ;;  %s279_s0 = inlined_call_operand.vmem [shape: bf16[32,64], index: 0, kind: input, shape index: {}]   ;;  %s280_s2 = inlined_call_operand.vmem [shape: f32[1,128], index: 2, kind: input, shape index: {}]   ;;  %s281_s3 = inlined_call_operand.vmem [shape: bf16[32,128], index: 3, kind: output, shape index: {}]  }
   0x1   :  { %v225_v0 = vld [vmem:[%s278_s1] sm:$0xff]   ;;  %v226_v1 = vld [vmem:[%s278_s1 + $0x8] sm:$0xff]   ;;  %v227_v2 = vld [vmem:[%s278_s1 + $0x10] sm:$0xff]  }
   0x2   :  { %213 = vmatprep.subr.bf16.mxu0 %v225_v0  ;;  %v229_v3 = vld [vmem:[%s279_s0] sm:$0xff]   ;;  %v228_v4 = vld [vmem:[%s278_s1 + $0x18] sm:$0xff]   ;;  %v230_v5 = vld [vmem:[%s279_s0 + $0x8] sm:$0xff]  }
   0x3   :  { %214 = vmatpush3.bf16.msra.mxu0 %v225_v0  ;;  %221 = vmatprep.mubr.msk.bf16.mxu0 %vm73_vm0, %v229_v3  ;;  %v187_v7 = vld [vmem:[%s280_s2] ss:$0 sm:$0xff] }
   0x4   :  { %215 = vmatprep.subr.bf16.mxu0 %v226_v1 }
   0x7   :  { %216 = vmatpush3.bf16.msra.mxu0 %v226_v1 }
   0x8   :  { %217 = vmatprep.subr.bf16.mxu0 %v227_v2 }
   0xb   :  { %218 = vmatpush3.bf16.msra.mxu0 %v227_v2 }
   0xc   :  { %219 = vmatprep.subr.bf16.mxu0 %v228_v4 }
   0xf   :  { %220 = vmatpush3.bf16.msra.mxu0 %v228_v4 }
  0x12   :  { %222 = vmatmul.mubr.msk.bf16.vlgmr.msra.gmra.mrb[0].mxu0 %vm73_vm0, %v230_v5 }
  0xe5   :  { %v223_v6 = vpop.f32.mrb[0].mxu0 }
  0xe6   :  { %v114_v8 = vpop.f32.mrb[1].mxu0  ;;  %v153_v10 = vadd.f32 %v223_v6, %v187_v7 }
  0xe7   :  { %v224_v9 = vpop.f32.mrb[2].mxu0  ;;  %v151_v13 = vadd.f32 %v187_v7, %v114_v8 }
  0xe8   :  { %v154_v11 = vadd.f32 %v224_v9, %v187_v7  ;;  %v117_v12 = vpop.f32.mrb[3].mxu0 }
  0xe9   :  { %v152_v14 = vadd.f32 %v187_v7, %v117_v12 }
  0xea   :  { %v204_v15 = vpack.c.bf16 %v154_v11, %v153_v10 }
  0xeb   :  { %v199_v16 = vpack.c.bf16 %v152_v14, %v151_v13 }
  0xec   :  { %206 = vst [vmem:[%s281_s3 + $0x8] sm:$0xff] %v204_v15  }
  0xed   :  { %200 = vst [vmem:[%s281_s3] sm:$0xff] %v199_v16  }

// kernel: image_captioning_forward.34
= control target key start
LH: loop header
LB: loop body
LE: loop exit
PB: predicated region body
PF: predicated region fallthrough
CT: control target
= control target key end

     0   :  { %s1176_s15 = smov 0   ;;  %s1178_s16 = smov 0   ;;  %s1292_s0 = inlined_call_operand.vmem [shape: bf16[32,1152], index: 0, kind: input, shape index: {}]   ;;  %s1293_s1 = inlined_call_operand.vmem [shape: bf16[1152,128], index: 1, kind: input, shape index: {}]   ;;  %s1294_s2 = inlined_call_operand.vmem [shape: f32[1,128], index: 2, kind: input, shape index: {}]   ;;  %s1295_s3 = inlined_call_operand.vmem [shape: bf16[32,128], index: 3, kind: input, shape index: {}]   ;;  %s1296_s4 = inlined_call_operand.vmem [shape: bf16[32,128], index: 4, kind: output, shape index: {}]  }
   0x1   :  { %s1180_s17 = smov 0   ;;  %s1182_s18 = smov 0  }
   0x2   :  { %s1184_s19 = smov 0  }
   0x3 LB: > { %s26_s20 = sadd.s32 1, %s1144_s18  ;;  %p49_p1 = scmp.ne.s32.totalorder %s1136_s16, %s1132_s15  ;;  %s1148_s19 = sphi %s1184_s19, %s14_s19   ;;  %s1144_s18 = sphi %s1182_s18, %s1300_s18   ;;  %s1140_s17 = sphi %s1180_s17, %s1299_s17   ;;  %s1136_s16 = sphi %s1178_s16, %s1298_s16   ;;  %s1132_s15 = sphi %s1176_s15, %s1297_s15  }
   0x4   : > { %p27_p0 = scmp.ge.s32.totalorder %s26_s20, 3  ;;  %p50_p2 = scmp.eq.s32.totalorder %s1148_s19, 0 }
   0x5   : > { %s42_s22 = sadd.s32 1, %s1136_s16  ;;  %p899_p5 = scmp.ge.s32.totalorder %s1148_s19, 3 }
   0x6   : > { %s1302_s20 = smov (%p27_p0, %s26_s20), 0  ;;  %p51_p3 = por %p50_p2, %p49_p1 }
   0x7   : > { %s38_s21 = ssub.s32 %s1144_s18, %s1302_s20  ;;  %203 = sbr.rel (%p899_p5) target bundleno = 23 (0x17), region = 24 }
   0x8   : > { %p40_p4 = scmp.eq.s32.totalorder %s38_s21, 0 }
   0xa   : > { %s1211_s23 = scalar_select %p40_p4, %s1136_s16, %s42_s22  }
   0xe   : > { %206 = sbr.rel (!%p51_p3) target bundleno = 23 (0x17), region = 28  ;;  %s208_s24 = sand.u32 (%p51_p3), 1, %s1136_s16  }
   0xf   : > { %s952_s25 = smul.u32 (%p51_p3), 12, %s1144_s18 }
  0x10   : > { %s1035_s26 = smul.u32 (%p51_p3), 48, %s208_s24 }
  0x11   : > { %s216_s29 = scalar_lea.vmem (%p51_p3), %s1292_s0, %s952_s25 }
  0x12   : > { %v231_v0 = vld [vmem:[%s216_s29] sm:$0xff] (%p51_p3)  ;;  %v235_v2 = vld [vmem:[%s216_s29 + $0x48] sm:$0xff] (%p51_p3)  ;;  %s210_s30 = scalar_lea.vmem (%p51_p3), [#allocation3], %s1035_s26  ;;  %v905_v6 = vld [vmem:[%s216_s29 + $0x50] sm:$0xf] (%p51_p3) }
  0x13   : > { %v233_v1 = vld [vmem:[%s216_s29 + $0x24] sm:$0xff] (%p51_p3)  ;;  %232 = vst [vmem:[%s210_s30] sm:$0xff] (%p51_p3), %v231_v0  ;;  %236 = vst [vmem:[%s210_s30 + $0x18] sm:$0xff] (%p51_p3), %v235_v2  ;;  %v237_v3 = vld [vmem:[%s216_s29 + $0x6c] sm:$0xff] (%p51_p3) }
  0x14   : > { %234 = vst [vmem:[%s210_s30 + $0xc] sm:$0xff] (%p51_p3), %v233_v1  ;;  %v901_v4 = vld [vmem:[%s216_s29 + $0x8] sm:$0xf] (%p51_p3)  ;;  %v903_v5 = vld [vmem:[%s216_s29 + $0x2c] sm:$0xf] (%p51_p3)  ;;  %238 = vst [vmem:[%s210_s30 + $0x24] sm:$0xff] (%p51_p3), %v237_v3 }
  0x15   : > { %902 = vst [vmem:[%s210_s30 + $0x8] sm:$0xf] %v901_v4  ;;  %904 = vst [vmem:[%s210_s30 + $0x14] sm:$0xf] %v903_v5  ;;  %v907_v7 = vld [vmem:[%s216_s29 + $0x74] sm:$0xf] }
  0x16   : > { %906 = vst [vmem:[%s210_s30 + $0x20] sm:$0xf] %v905_v6  ;;  %908 = vst [vmem:[%s210_s30 + $0x2c] sm:$0xf] %v907_v7 }
  0x17 PF: > { %p909_p6 = scmp.ge.s32.totalorder %s1148_s19, 1  ;;  %p270_p7 = scmp.lt.s32.totalorder %s1148_s19, 4 }
  0x19   : > { %p271_p8 = pnand %p909_p6, %p270_p7 }
  0x1a   : > { %s277_s5 = sand.u32 (!%p271_p8), 1, %s1132_s15   ;;  %s326_s6 = smul.u32 (!%p271_p8), 48, %s1140_s17 }
  0x1b   : > { %274 = sbr.rel (%p271_p8) target bundleno = 320 (0x140), region = 58  ;;  %p911_p10 = scmp.ne.s32.totalorder (!%p271_p8), %s1140_s17, 0 }
  0x1c   : > { %s1036_s7 = smul.u32 (!%p271_p8), 48, %s277_s5  ;;  %p327_p9 = scmp.lt.s32.totalorder (!%p271_p8), %s326_s6, 143 }
  0x1e   : > { %s1228_s12 = scalar_lea.vmem (!%p271_p8), [#allocation3], %s1036_s7 }
  0x22   : > { %s1304_s6 = smov (!%p327_p9, %s326_s6), 143  ;;  %360 = sbr.rel (%p911_p10) target bundleno = 41 (0x29), region = 66 }
  0x23   : > { %s910_s8 = sshll.u32 %s1304_s6, 2  ;;  %v1150_v8 = vmov (!%p911_p10), 0.0  }
  0x24   : > { %s1226_s11 = scalar_lea.vmem %s1293_s1, %s910_s8  ;;  %361 = vst [vmem:[#allocation2] sm:$0xff] (!%p911_p10), %v1150_v8  ;;  %362 = vst [vmem:[#allocation2 + $0x8] sm:$0xff] (!%p911_p10), %v1150_v8 }
  0x25   : > { %363 = vst [vmem:[#allocation2 + $0x10] sm:$0xff] (!%p911_p10), %v1150_v8  ;;  %364 = vst [vmem:[#allocation2 + $0x18] sm:$0xff] (!%p911_p10), %v1150_v8 }
  0x29 PF: > { %v1078_v9 = vld [vmem:[%s1226_s11 + $0x40] sm:$0xff]   ;;  %v1081_v12 = vld [vmem:[%s1226_s11 + $0x48] sm:$0xff]   ;;  %v1084_v15 = vld [vmem:[%s1226_s11 + $0x50] sm:$0xff]   ;;  %p942_p11 = scmp.ne.s32.totalorder %s1140_s17, 2 }
  0x2a   : > { %v1079_v10 = vld [vmem:[%s1226_s11] sm:$0xff]   ;;  %977 = vmatprep.subr.bf16.mxu0 %v1078_v9  ;;  %v1082_v13 = vld [vmem:[%s1226_s11 + $0x8] sm:$0xff]   ;;  %v1085_v16 = vld [vmem:[%s1226_s11 + $0x10] sm:$0xff]  }
  0x2b   : > { %v1080_v11 = vld [vmem:[%s1226_s11 + $0x80] sm:$0xff]   ;;  %978 = vmatpush3.bf16.msra.mxu0 %v1079_v10  ;;  %v1083_v14 = vld [vmem:[%s1226_s11 + $0x88] sm:$0xff]   ;;  %v1086_v17 = vld [vmem:[%s1226_s11 + $0x90] sm:$0xff]  }
  0x2c   : > { %1015 = vmatprep.subr.bf16.mxu1 %v1080_v11  ;;  %979 = vmatprep.subr.bf16.mxu0 %v1081_v12  ;;  %v1087_v18 = vld [vmem:[%s1226_s11 + $0x58] sm:$0xff]   ;;  %v1090_v21 = vld [vmem:[%s1226_s11 + $0x60] sm:$0xff]   ;;  %v1093_v24 = vld [vmem:[%s1226_s11 + $0x68] sm:$0xff]  }
  0x2d   : > { %1016 = vmatpush3.bf16.msra.mxu1 %v1080_v11  ;;  %v1088_v19 = vld [vmem:[%s1226_s11 + $0x18] sm:$0xff]   ;;  %v1092_v22 = vld [vmem:[%s1226_s11 + $0xa0] sm:$0xff]   ;;  %v1095_v25 = vld [vmem:[%s1226_s11 + $0xa8] sm:$0xff]  }
  0x2e   : > { %1017 = vmatprep.subr.bf16.mxu1 %v1083_v14  ;;  %v1089_v20 = vld [vmem:[%s1226_s11 + $0x98] sm:$0xff]   ;;  %v1091_v23 = vld [vmem:[%s1226_s11 + $0x20] sm:$0xff]   ;;  %v1094_v26 = vld [vmem:[%s1226_s11 + $0x28] sm:$0xff]  }
  0x2f   : > { %980 = vmatpush3.bf16.msra.mxu0 %v1082_v13  ;;  %v1096_v27 = vld [vmem:[%s1226_s11 + $0x70] sm:$0xff]   ;;  %v1099_v30 = vld [vmem:[%s1226_s11 + $0x78] sm:$0xff]   ;;  %v365_v45 = vld [vmem:[#allocation2] sm:$0xff] }
  0x30   : > { %981 = vmatprep.subr.bf16.mxu0 %v1084_v15  ;;  %v1097_v28 = vld [vmem:[%s1226_s11 + $0x30] sm:$0xff]   ;;  %v1101_v31 = vld [vmem:[%s1226_s11 + $0xb8] sm:$0xff]   ;;  %v366_v50 = vld [vmem:[#allocation2 + $0x8] sm:$0xff] }
  0x31   : > { %1018 = vmatpush3.bf16.msra.mxu1 %v1083_v14  ;;  %v1098_v29 = vld [vmem:[%s1226_s11 + $0xb0] sm:$0xff]   ;;  %v1100_v34 = vld [vmem:[%s1226_s11 + $0x38] sm:$0xff]   ;;  %v943_v5 = vld [vmem:[%s1294_s2] ss:$0 sm:$0xff] (!%p942_p11) }
  0x32   : > { %1019 = vmatprep.subr.bf16.mxu1 %v1086_v17  ;;  %v1104_v32 = vld [vmem:[%s1228_s12 + $0x4] ss:$12 sps:$4 sm:$0xff]   ;;  %v1105_v33 = vld [vmem:[%s1228_s12 + $0x8] ss:$12 sps:$4 sm:$0xff]   ;;  %v1102_v35 = vld [vmem:[%s1228_s12] ss:$12 sps:$4 sm:$0xff]  }
  0x33   : > { %982 = vmatpush3.bf16.msra.mxu0 %v1085_v16  ;;  %633 = vmatprep.mubr.bf16.mxu0 %v1104_v32  ;;  %v1107_v36 = vld [vmem:[%s1228_s12 + $0x1c] ss:$12 sps:$4 sm:$0xff]   ;;  %v1106_v37 = vld [vmem:[%s1228_s12 + $0x20] ss:$12 sps:$4 sm:$0xff]   ;;  %v1109_v38 = vld [vmem:[%s1228_s12 + $0x18] ss:$12 sps:$4 sm:$0xff]  }
  0x34   : > { %983 = vmatprep.subr.bf16.mxu0 %v1087_v18  ;;  %1031 = vmatprep.mubr.bf16.mxu1 %v1105_v33  ;;  %v367_v59 = vld [vmem:[#allocation2 + $0x10] sm:$0xff]  ;;  %v368_v63 = vld [vmem:[#allocation2 + $0x18] sm:$0xff]  ;;  %v958_v8 = vld [vmem:[%s1295_s3] sm:$0xff] (!%p942_p11)  }
  0x35   : > { %1020 = vmatpush3.bf16.msra.mxu1 %v1086_v17  ;;  %v959_v11 = vunpack.c.l.bf16 (!%p942_p11), %v958_v8  ;;  %v960_v12 = vunpack.c.h.bf16 (!%p942_p11), %v958_v8  ;;  %v975_v15 = vld [vmem:[%s1295_s3 + $0x8] sm:$0xff] (!%p942_p11)  }
  0x36   : > { %1021 = vmatprep.subr.bf16.mxu1 %v1089_v20  ;;  %v963_v16 = vunpack.c.l.bf16 (!%p942_p11), %v975_v15  ;;  %v964_v17 = vunpack.c.h.bf16 (!%p942_p11), %v975_v15 }
  0x37   : > { %984 = vmatpush3.bf16.msra.mxu0 %v1088_v19 }
  0x38   : > { %985 = vmatprep.subr.bf16.mxu0 %v1090_v21 }
  0x39   : > { %1022 = vmatpush3.bf16.msra.mxu1 %v1089_v20 }
  0x3a   : > { %1023 = vmatprep.subr.bf16.mxu1 %v1092_v22 }
  0x3b   : > { %986 = vmatpush3.bf16.msra.mxu0 %v1091_v23 }
  0x3c   : > { %987 = vmatprep.subr.bf16.mxu0 %v1093_v24 }
  0x3d   : > { %1024 = vmatpush3.bf16.msra.mxu1 %v1092_v22 }
  0x3e   : > { %1025 = vmatprep.subr.bf16.mxu1 %v1095_v25 }
  0x3f   : > { %988 = vmatpush3.bf16.msra.mxu0 %v1094_v26 }
  0x40   : > { %989 = vmatprep.subr.bf16.mxu0 %v1096_v27 }
  0x41   : > { %1026 = vmatpush3.bf16.msra.mxu1 %v1095_v25 }
  0x42   : > { %1027 = vmatprep.subr.bf16.mxu1 %v1098_v29 }
  0x43   : > { %990 = vmatpush3.bf16.msra.mxu0 %v1097_v28 }
  0x44   : > { %991 = vmatprep.subr.bf16.mxu0 %v1099_v30 }
  0x45   : > { %1028 = vmatpush3.bf16.msra.mxu1 %v1098_v29 }
  0x46   : > { %1029 = vmatprep.subr.bf16.mxu1 %v1101_v31 }
  0x47   : > { %992 = vmatpush3.bf16.msra.mxu0 %v1100_v34 }
  0x49   : > { %1030 = vmatpush3.bf16.msra.mxu1 %v1101_v31 }
  0x4a   : > { %634 = vmatmul.mubr.bf16.vlgmr.msra.gmra.mrb[0].mxu0 %v1102_v35 }
  0x4b   : > { %641 = vmatprep.mubr.bf16.mxu0 %v1107_v36 }
  0x4c   : > { %1032 = vmatmul.mubr.bf16.vlgmr.msra.gmra.mrb[0].mxu1 %v1106_v37 }
  0x52   : > { %642 = vmatmul.mubr.bf16.gmra.mrb[4].mxu0 %v1109_v38 }
 0x11d   : > { %v993_v39 = vpop.f32.mrb[0].mxu0 }
 0x11e   : > { %v994_v40 = vpop.f32.mrb[1].mxu0 }
 0x11f   : > { %v995_v41 = vadd.f32 %v994_v40, %v993_v39  ;;  %v996_v42 = vpop.f32.mrb[2].mxu0  ;;  %v1033_v43 = vpop.f32.mrb[0].mxu1 }
 0x120   : > { %v997_v44 = vpop.f32.mrb[3].mxu0  ;;  %v684_v46 = vpop.f32.mrb[1].mxu1 }
 0x121   : > { %v998_v47 = vadd.f32 %v997_v44, %v996_v42  ;;  %v685_v48 = vadd.f32 %v995_v41, %v684_v46  ;;  %v1034_v49 = vpop.f32.mrb[2].mxu1 }
 0x122   : > { %v687_v51 = vpop.f32.mrb[3].mxu1 }
 0x123   : > { %v699_v52 = vadd.f32 %v685_v48, %v365_v45  ;;  %v688_v53 = vadd.f32 %v998_v47, %v687_v51 }
 0x125   : > { %703 = vst [vmem:[#allocation2] sm:$0xff] %v699_v52  ;;  %v700_v54 = vadd.f32 %v688_v53, %v366_v50  ;;  %v999_v55 = vpop.f32.mrb[4].mxu0 }
 0x126   : > { %v1000_v56 = vpop.f32.mrb[5].mxu0 }
 0x127   : > { %704 = vst [vmem:[#allocation2 + $0x8] sm:$0xff] %v700_v54  ;;  %v1001_v57 = vadd.f32 %v1000_v56, %v999_v55  ;;  %v1002_v58 = vpop.f32.mrb[6].mxu0 }
 0x128   : > { %v1003_v60 = vpop.f32.mrb[7].mxu0 }
 0x129   : > { %v693_v61 = vadd.f32 %v1033_v43, %v1001_v57  ;;  %v1004_v62 = vadd.f32 %v1003_v60, %v1002_v58  ;;  %710 = sbr.rel (%p942_p11) target bundleno = 320 (0x140), region = 70 }
 0x12b   : > { %v701_v0 = vadd.f32 %v693_v61, %v367_v59  ;;  %v696_v1 = vadd.f32 %v1034_v49, %v1004_v62 }
 0x12c   : > { %v711_v3 = vld [vmem:[#allocation2] sm:$0xff] (!%p942_p11) }
 0x12d   : > { %705 = vst [vmem:[#allocation2 + $0x10] sm:$0xff] %v701_v0  ;;  %v702_v2 = vadd.f32 %v696_v1, %v368_v63  ;;  %v722_v6 = vadd.f32 (!%p942_p11), %v943_v5, %v711_v3 }
 0x12e   : > { %v712_v4 = vld [vmem:[#allocation2 + $0x8] sm:$0xff] (!%p942_p11) }
 0x12f   : > { %706 = vst [vmem:[#allocation2 + $0x18] sm:$0xff] %v702_v2  ;;  %v723_v7 = vadd.f32 (!%p942_p11), %v943_v5, %v712_v4  ;;  %v734_v18 = vadd.f32 (!%p942_p11), %v959_v11, %v722_v6 }
 0x131   : > { %v735_v19 = vadd.f32 %v960_v12, %v723_v7  ;;  %v738_v22 = vmax.f32 %v734_v18, 0.0 }
 0x133   : > { %v739_v23 = vmax.f32 %v735_v19, 0.0 }
 0x134   : > { %v713_v9 = vld [vmem:[#allocation2 + $0x10] sm:$0xff] }
 0x135   : > { %v724_v13 = vadd.f32 %v943_v5, %v713_v9  ;;  %v968_v26 = vpack.c.bf16 %v739_v23, %v738_v22 }
 0x136   : > { %v714_v10 = vld [vmem:[#allocation2 + $0x18] sm:$0xff] }
 0x137   : > { %v725_v14 = vadd.f32 %v943_v5, %v714_v10  ;;  %v736_v20 = vadd.f32 %v963_v16, %v724_v13  ;;  %969 = vst [vmem:[%s1296_s4] sm:$0xff] %v968_v26  }
 0x139   : > { %v737_v21 = vadd.f32 %v964_v17, %v725_v14  ;;  %v740_v24 = vmax.f32 %v736_v20, 0.0 }
 0x13b   : > { %v741_v25 = vmax.f32 %v737_v21, 0.0 }
 0x13d   : > { %v973_v27 = vpack.c.bf16 %v741_v25, %v740_v24 }
 0x13f   : > { %976 = vst [vmem:[%s1296_s4 + $0x8] sm:$0xff] %v973_v27  }
 0x140 PF: > { %s14_s19 = sadd.s32 1, %s1148_s19   ;;  %s1297_s15 = smov %s1136_s16 }
 0x141   : > { %p11_p12 = scmp.ge.s32.totalorder %s14_s19, 5   ;;  %s1298_s16 = smov %s1211_s23 }
 0x142   : > { %s1299_s17 = smov %s1144_s18  ;;  %s1300_s18 = smov %s1302_s20 }
 0x143   :  { %13 = sbr.rel (!%p11_p12) target bundleno = 3 (0x3), region = 120 }

// kernel: image_captioning_forward.35
= control target key start
LH: loop header
LB: loop body
LE: loop exit
PB: predicated region body
PF: predicated region fallthrough
CT: control target
= control target key end

     0   :  { %s1071_s12 = smov 0   ;;  %s1073_s13 = smov 0   ;;  %s1181_s0 = inlined_call_operand.vmem [shape: bf16[32,1152], index: 0, kind: input, shape index: {}]   ;;  %s1182_s1 = inlined_call_operand.vmem [shape: bf16[1152,128], index: 1, kind: input, shape index: {}]   ;;  %s1183_s2 = inlined_call_operand.vmem [shape: f32[1,128], index: 2, kind: input, shape index: {}]   ;;  %s1184_s3 = inlined_call_operand.vmem [shape: bf16[32,128], index: 3, kind: output, shape index: {}]  }
   0x1   :  { %s1075_s14 = smov 0   ;;  %s1077_s15 = smov 0  }
   0x2   :  { %s1079_s16 = smov 0  }
   0x3 LB: > { %s25_s17 = sadd.s32 1, %s1044_s15  ;;  %p48_p1 = scmp.ne.s32.totalorder %s1036_s13, %s1032_s12  ;;  %s1048_s16 = sphi %s1079_s16, %s13_s16   ;;  %s1044_s15 = sphi %s1077_s15, %s1188_s15   ;;  %s1040_s14 = sphi %s1075_s14, %s1187_s14   ;;  %s1036_s13 = sphi %s1073_s13, %s1186_s13   ;;  %s1032_s12 = sphi %s1071_s12, %s1185_s12  }
   0x4   : > { %p26_p0 = scmp.ge.s32.totalorder %s25_s17, 3  ;;  %p49_p2 = scmp.eq.s32.totalorder %s1048_s16, 0 }
   0x5   : > { %s41_s19 = sadd.s32 1, %s1036_s13  ;;  %p808_p5 = scmp.ge.s32.totalorder %s1048_s16, 3 }
   0x6   : > { %s1190_s17 = smov (%p26_p0, %s25_s17), 0  ;;  %p50_p3 = por %p49_p2, %p48_p1 }
   0x7   : > { %s37_s18 = ssub.s32 %s1044_s15, %s1190_s17  ;;  %162 = sbr.rel (%p808_p5) target bundleno = 23 (0x17), region = 20 }
   0x8   : > { %p39_p4 = scmp.eq.s32.totalorder %s37_s18, 0 }
   0xa   : > { %s1106_s20 = scalar_select %p39_p4, %s1036_s13, %s41_s19  }
   0xe   : > { %165 = sbr.rel (!%p50_p3) target bundleno = 23 (0x17), region = 24  ;;  %s167_s21 = sand.u32 (%p50_p3), 1, %s1036_s13  }
   0xf   : > { %s861_s22 = smul.u32 (%p50_p3), 12, %s1044_s15 }
  0x10   : > { %s935_s23 = smul.u32 (%p50_p3), 48, %s167_s21 }
  0x11   : > { %s175_s26 = scalar_lea.vmem (%p50_p3), %s1181_s0, %s861_s22 }
  0x12   : > { %v190_v0 = vld [vmem:[%s175_s26] sm:$0xff] (%p50_p3)  ;;  %v194_v2 = vld [vmem:[%s175_s26 + $0x48] sm:$0xff] (%p50_p3)  ;;  %s169_s27 = scalar_lea.vmem (%p50_p3), [#allocation3], %s935_s23  ;;  %v814_v6 = vld [vmem:[%s175_s26 + $0x50] sm:$0xf] (%p50_p3) }
  0x13   : > { %v192_v1 = vld [vmem:[%s175_s26 + $0x24] sm:$0xff] (%p50_p3)  ;;  %191 = vst [vmem:[%s169_s27] sm:$0xff] (%p50_p3), %v190_v0  ;;  %195 = vst [vmem:[%s169_s27 + $0x18] sm:$0xff] (%p50_p3), %v194_v2  ;;  %v196_v3 = vld [vmem:[%s175_s26 + $0x6c] sm:$0xff] (%p50_p3) }
  0x14   : > { %193 = vst [vmem:[%s169_s27 + $0xc] sm:$0xff] (%p50_p3), %v192_v1  ;;  %v810_v4 = vld [vmem:[%s175_s26 + $0x8] sm:$0xf] (%p50_p3)  ;;  %v812_v5 = vld [vmem:[%s175_s26 + $0x2c] sm:$0xf] (%p50_p3)  ;;  %197 = vst [vmem:[%s169_s27 + $0x24] sm:$0xff] (%p50_p3), %v196_v3 }
  0x15   : > { %811 = vst [vmem:[%s169_s27 + $0x8] sm:$0xf] %v810_v4  ;;  %813 = vst [vmem:[%s169_s27 + $0x14] sm:$0xf] %v812_v5  ;;  %v816_v7 = vld [vmem:[%s175_s26 + $0x74] sm:$0xf] }
  0x16   : > { %815 = vst [vmem:[%s169_s27 + $0x20] sm:$0xf] %v814_v6  ;;  %817 = vst [vmem:[%s169_s27 + $0x2c] sm:$0xf] %v816_v7 }
  0x17 PF: > { %p818_p6 = scmp.ge.s32.totalorder %s1048_s16, 1  ;;  %p229_p7 = scmp.lt.s32.totalorder %s1048_s16, 4 }
  0x19   : > { %p230_p8 = pnand %p818_p6, %p229_p7 }
  0x1a   : > { %s236_s28 = sand.u32 (!%p230_p8), 1, %s1032_s12   ;;  %s275_s29 = smul.u32 (!%p230_p8), 48, %s1040_s14 }
  0x1b   : > { %233 = sbr.rel (%p230_p8) target bundleno = 318 (0x13e), region = 54  ;;  %p820_p10 = scmp.ne.s32.totalorder (!%p230_p8), %s1040_s14, 0 }
  0x1c   : > { %s936_s30 = smul.u32 (!%p230_p8), 48, %s236_s28  ;;  %p276_p9 = scmp.lt.s32.totalorder (!%p230_p8), %s275_s29, 143 }
  0x1e   : > { %s1123_s8 = scalar_lea.vmem (!%p230_p8), [#allocation3], %s936_s30 }
  0x22   : > { %s1192_s29 = smov (!%p276_p9, %s275_s29), 143  ;;  %300 = sbr.rel (%p820_p10) target bundleno = 41 (0x29), region = 62 }
  0x23   : > { %s819_s4 = sshll.u32 %s1192_s29, 2  ;;  %v1050_v8 = vmov (!%p820_p10), 0.0  }
  0x24   : > { %s1121_s7 = scalar_lea.vmem %s1182_s1, %s819_s4  ;;  %301 = vst [vmem:[#allocation2] sm:$0xff] (!%p820_p10), %v1050_v8  ;;  %302 = vst [vmem:[#allocation2 + $0x8] sm:$0xff] (!%p820_p10), %v1050_v8 }
  0x25   : > { %303 = vst [vmem:[#allocation2 + $0x10] sm:$0xff] (!%p820_p10), %v1050_v8  ;;  %304 = vst [vmem:[#allocation2 + $0x18] sm:$0xff] (!%p820_p10), %v1050_v8 }
  0x29 PF: > { %v978_v9 = vld [vmem:[%s1121_s7 + $0x40] sm:$0xff]   ;;  %v981_v12 = vld [vmem:[%s1121_s7 + $0x48] sm:$0xff]   ;;  %v984_v15 = vld [vmem:[%s1121_s7 + $0x50] sm:$0xff]   ;;  %p851_p11 = scmp.ne.s32.totalorder %s1040_s14, 2 }
  0x2a   : > { %v979_v10 = vld [vmem:[%s1121_s7] sm:$0xff]   ;;  %877 = vmatprep.subr.bf16.mxu0 %v978_v9  ;;  %v982_v13 = vld [vmem:[%s1121_s7 + $0x8] sm:$0xff]   ;;  %v985_v16 = vld [vmem:[%s1121_s7 + $0x10] sm:$0xff]  }
  0x2b   : > { %v980_v11 = vld [vmem:[%s1121_s7 + $0x80] sm:$0xff]   ;;  %878 = vmatpush3.bf16.msra.mxu0 %v979_v10  ;;  %v983_v14 = vld [vmem:[%s1121_s7 + $0x88] sm:$0xff]   ;;  %v986_v17 = vld [vmem:[%s1121_s7 + $0x90] sm:$0xff]  }
  0x2c   : > { %915 = vmatprep.subr.bf16.mxu1 %v980_v11  ;;  %879 = vmatprep.subr.bf16.mxu0 %v981_v12  ;;  %v987_v18 = vld [vmem:[%s1121_s7 + $0x58] sm:$0xff]   ;;  %v990_v21 = vld [vmem:[%s1121_s7 + $0x60] sm:$0xff]   ;;  %v993_v24 = vld [vmem:[%s1121_s7 + $0x68] sm:$0xff]  }
  0x2d   : > { %916 = vmatpush3.bf16.msra.mxu1 %v980_v11  ;;  %v988_v19 = vld [vmem:[%s1121_s7 + $0x18] sm:$0xff]   ;;  %v992_v22 = vld [vmem:[%s1121_s7 + $0xa0] sm:$0xff]   ;;  %v995_v25 = vld [vmem:[%s1121_s7 + $0xa8] sm:$0xff]  }
  0x2e   : > { %917 = vmatprep.subr.bf16.mxu1 %v983_v14  ;;  %v989_v20 = vld [vmem:[%s1121_s7 + $0x98] sm:$0xff]   ;;  %v991_v23 = vld [vmem:[%s1121_s7 + $0x20] sm:$0xff]   ;;  %v994_v26 = vld [vmem:[%s1121_s7 + $0x28] sm:$0xff]  }
  0x2f   : > { %880 = vmatpush3.bf16.msra.mxu0 %v982_v13  ;;  %v996_v27 = vld [vmem:[%s1121_s7 + $0x70] sm:$0xff]   ;;  %v999_v30 = vld [vmem:[%s1121_s7 + $0x78] sm:$0xff]   ;;  %v305_v45 = vld [vmem:[#allocation2] sm:$0xff] }
  0x30   : > { %881 = vmatprep.subr.bf16.mxu0 %v984_v15  ;;  %v997_v28 = vld [vmem:[%s1121_s7 + $0x30] sm:$0xff]   ;;  %v1001_v31 = vld [vmem:[%s1121_s7 + $0xb8] sm:$0xff]   ;;  %v306_v50 = vld [vmem:[#allocation2 + $0x8] sm:$0xff] }
  0x31   : > { %918 = vmatpush3.bf16.msra.mxu1 %v983_v14  ;;  %v998_v29 = vld [vmem:[%s1121_s7 + $0xb0] sm:$0xff]   ;;  %v1000_v34 = vld [vmem:[%s1121_s7 + $0x38] sm:$0xff]   ;;  %v852_v5 = vld [vmem:[%s1183_s2] ss:$0 sm:$0xff] (!%p851_p11) }
  0x32   : > { %919 = vmatprep.subr.bf16.mxu1 %v986_v17  ;;  %v1004_v32 = vld [vmem:[%s1123_s8 + $0x4] ss:$12 sps:$4 sm:$0xff]   ;;  %v1005_v33 = vld [vmem:[%s1123_s8 + $0x8] ss:$12 sps:$4 sm:$0xff]   ;;  %v1002_v35 = vld [vmem:[%s1123_s8] ss:$12 sps:$4 sm:$0xff]  }
  0x33   : > { %882 = vmatpush3.bf16.msra.mxu0 %v985_v16  ;;  %573 = vmatprep.mubr.bf16.mxu0 %v1004_v32  ;;  %v1007_v36 = vld [vmem:[%s1123_s8 + $0x1c] ss:$12 sps:$4 sm:$0xff]   ;;  %v1006_v37 = vld [vmem:[%s1123_s8 + $0x20] ss:$12 sps:$4 sm:$0xff]   ;;  %v1009_v38 = vld [vmem:[%s1123_s8 + $0x18] ss:$12 sps:$4 sm:$0xff]  }
  0x34   : > { %883 = vmatprep.subr.bf16.mxu0 %v987_v18  ;;  %931 = vmatprep.mubr.bf16.mxu1 %v1005_v33  ;;  %v307_v59 = vld [vmem:[#allocation2 + $0x10] sm:$0xff]  ;;  %v308_v63 = vld [vmem:[#allocation2 + $0x18] sm:$0xff] }
  0x35   : > { %920 = vmatpush3.bf16.msra.mxu1 %v986_v17 }
  0x36   : > { %921 = vmatprep.subr.bf16.mxu1 %v989_v20 }
  0x37   : > { %884 = vmatpush3.bf16.msra.mxu0 %v988_v19 }
  0x38   : > { %885 = vmatprep.subr.bf16.mxu0 %v990_v21 }
  0x39   : > { %922 = vmatpush3.bf16.msra.mxu1 %v989_v20 }
  0x3a   : > { %923 = vmatprep.subr.bf16.mxu1 %v992_v22 }
  0x3b   : > { %886 = vmatpush3.bf16.msra.mxu0 %v991_v23 }
  0x3c   : > { %887 = vmatprep.subr.bf16.mxu0 %v993_v24 }
  0x3d   : > { %924 = vmatpush3.bf16.msra.mxu1 %v992_v22 }
  0x3e   : > { %925 = vmatprep.subr.bf16.mxu1 %v995_v25 }
  0x3f   : > { %888 = vmatpush3.bf16.msra.mxu0 %v994_v26 }
  0x40   : > { %889 = vmatprep.subr.bf16.mxu0 %v996_v27 }
  0x41   : > { %926 = vmatpush3.bf16.msra.mxu1 %v995_v25 }
  0x42   : > { %927 = vmatprep.subr.bf16.mxu1 %v998_v29 }
  0x43   : > { %890 = vmatpush3.bf16.msra.mxu0 %v997_v28 }
  0x44   : > { %891 = vmatprep.subr.bf16.mxu0 %v999_v30 }
  0x45   : > { %928 = vmatpush3.bf16.msra.mxu1 %v998_v29 }
  0x46   : > { %929 = vmatprep.subr.bf16.mxu1 %v1001_v31 }
  0x47   : > { %892 = vmatpush3.bf16.msra.mxu0 %v1000_v34 }
  0x49   : > { %930 = vmatpush3.bf16.msra.mxu1 %v1001_v31 }
  0x4a   : > { %574 = vmatmul.mubr.bf16.vlgmr.msra.gmra.mrb[0].mxu0 %v1002_v35 }
  0x4b   : > { %581 = vmatprep.mubr.bf16.mxu0 %v1007_v36 }
  0x4c   : > { %932 = vmatmul.mubr.bf16.vlgmr.msra.gmra.mrb[0].mxu1 %v1006_v37 }
  0x52   : > { %582 = vmatmul.mubr.bf16.gmra.mrb[4].mxu0 %v1009_v38 }
 0x11d   : > { %v893_v39 = vpop.f32.mrb[0].mxu0 }
 0x11e   : > { %v894_v40 = vpop.f32.mrb[1].mxu0 }
 0x11f   : > { %v895_v41 = vadd.f32 %v894_v40, %v893_v39  ;;  %v896_v42 = vpop.f32.mrb[2].mxu0  ;;  %v933_v43 = vpop.f32.mrb[0].mxu1 }
 0x120   : > { %v897_v44 = vpop.f32.mrb[3].mxu0  ;;  %v624_v46 = vpop.f32.mrb[1].mxu1 }
 0x121   : > { %v898_v47 = vadd.f32 %v897_v44, %v896_v42  ;;  %v625_v48 = vadd.f32 %v895_v41, %v624_v46  ;;  %v934_v49 = vpop.f32.mrb[2].mxu1 }
 0x122   : > { %v627_v51 = vpop.f32.mrb[3].mxu1 }
 0x123   : > { %v639_v52 = vadd.f32 %v625_v48, %v305_v45  ;;  %v628_v53 = vadd.f32 %v898_v47, %v627_v51 }
 0x125   : > { %643 = vst [vmem:[#allocation2] sm:$0xff] %v639_v52  ;;  %v640_v54 = vadd.f32 %v628_v53, %v306_v50  ;;  %v899_v55 = vpop.f32.mrb[4].mxu0 }
 0x126   : > { %v900_v56 = vpop.f32.mrb[5].mxu0 }
 0x127   : > { %644 = vst [vmem:[#allocation2 + $0x8] sm:$0xff] %v640_v54  ;;  %v901_v57 = vadd.f32 %v900_v56, %v899_v55  ;;  %v902_v58 = vpop.f32.mrb[6].mxu0 }
 0x128   : > { %v903_v60 = vpop.f32.mrb[7].mxu0 }
 0x129   : > { %v633_v61 = vadd.f32 %v933_v43, %v901_v57  ;;  %v904_v62 = vadd.f32 %v903_v60, %v902_v58  ;;  %650 = sbr.rel (%p851_p11) target bundleno = 318 (0x13e), region = 66 }
 0x12b   : > { %v641_v0 = vadd.f32 %v633_v61, %v307_v59  ;;  %v636_v1 = vadd.f32 %v934_v49, %v904_v62 }
 0x12c   : > { %v651_v3 = vld [vmem:[#allocation2] sm:$0xff] (!%p851_p11) }
 0x12d   : > { %645 = vst [vmem:[#allocation2 + $0x10] sm:$0xff] %v641_v0  ;;  %v642_v2 = vadd.f32 %v636_v1, %v308_v63  ;;  %v662_v6 = vadd.f32 (!%p851_p11), %v852_v5, %v651_v3 }
 0x12e   : > { %v652_v4 = vld [vmem:[#allocation2 + $0x8] sm:$0xff] (!%p851_p11) }
 0x12f   : > { %646 = vst [vmem:[#allocation2 + $0x18] sm:$0xff] %v642_v2  ;;  %v663_v7 = vadd.f32 (!%p851_p11), %v852_v5, %v652_v4  ;;  %v666_v12 = vmax.f32 (!%p851_p11), %v662_v6, 0.0 }
 0x131   : > { %v667_v13 = vmax.f32 %v663_v7, 0.0 }
 0x133   : > { %v869_v16 = vpack.c.bf16 %v667_v13, %v666_v12 }
 0x134   : > { %v653_v8 = vld [vmem:[#allocation2 + $0x10] sm:$0xff] }
 0x135   : > { %v664_v10 = vadd.f32 %v852_v5, %v653_v8  ;;  %870 = vst [vmem:[%s1184_s3] sm:$0xff] %v869_v16  }
 0x136   : > { %v654_v9 = vld [vmem:[#allocation2 + $0x18] sm:$0xff] }
 0x137   : > { %v665_v11 = vadd.f32 %v852_v5, %v654_v9  ;;  %v668_v14 = vmax.f32 %v664_v10, 0.0 }
 0x139   : > { %v669_v15 = vmax.f32 %v665_v11, 0.0 }
 0x13b   : > { %v874_v17 = vpack.c.bf16 %v669_v15, %v668_v14 }
 0x13d   : > { %876 = vst [vmem:[%s1184_s3 + $0x8] sm:$0xff] %v874_v17  }
 0x13e PF: > { %s13_s16 = sadd.s32 1, %s1048_s16   ;;  %s1185_s12 = smov %s1036_s13 }
 0x13f   : > { %p10_p12 = scmp.ge.s32.totalorder %s13_s16, 5   ;;  %s1186_s13 = smov %s1106_s20 }
 0x140   : > { %s1187_s14 = smov %s1044_s15  ;;  %s1188_s15 = smov %s1190_s17 }
 0x141   :  { %12 = sbr.rel (!%p10_p12) target bundleno = 3 (0x3), region = 113 }

// kernel: image_captioning_forward.38
= control target key start
LH: loop header
LB: loop body
LE: loop exit
PB: predicated region body
PF: predicated region fallthrough
CT: control target
= control target key end

     0   :  { %s1036_s12 = smov 0   ;;  %s1038_s13 = smov 0   ;;  %s1135_s0 = inlined_call_operand.vmem [shape: bf16[8,1152], index: 0, kind: input, shape index: {}]   ;;  %s1136_s1 = inlined_call_operand.vmem [shape: bf16[1152,256], index: 1, kind: input, shape index: {}]   ;;  %s1137_s2 = inlined_call_operand.vmem [shape: f32[1,256], index: 2, kind: input, shape index: {}]   ;;  %s1138_s3 = inlined_call_operand.vmem [shape: bf16[8,256], index: 3, kind: output, shape index: {}]  }
   0x1   :  { %s1040_s14 = smov 0  }
   0x2 LB: > { %s25_s15 = sadd.s32 1, %s1008_s13  ;;  %p825_p0 = scmp.ge.s32.totalorder %s1012_s14, 1  ;;  %s1012_s14 = sphi %s1040_s14, %s13_s14   ;;  %s1008_s13 = sphi %s1038_s13, %s1140_s13   ;;  %s1004_s12 = sphi %s1036_s12, %s1139_s12  }
   0x3   : > { %p26_p1 = scmp.ge.s32.totalorder %s25_s15, 3  ;;  %p194_p2 = scmp.lt.s32.totalorder %s1012_s14, 4 }
   0x5   : > { %s1142_s15 = smov (%p26_p1, %s25_s15), 0  ;;  %p195_p3 = pnand %p825_p0, %p194_p2 }
   0x6   : > { %s240_s16 = smul.u32 (!%p195_p3), 3, %s1004_s12  ;;  %p829_p6 = scmp.ne.s32.totalorder (!%p195_p3), %s1004_s12, 0 }
   0x7   : > { %198 = sbr.rel (%p195_p3) target bundleno = 321 (0x141), region = 32 }
   0x8   : > { %s250_s17 = smul.u32 (!%p195_p3), 48, %s1004_s12  ;;  %p243_p4 = scmp.lt.s32.totalorder (!%p195_p3), %s240_s16, 8 }
   0xa   : > { %p252_p5 = scmp.lt.s32.totalorder (!%p195_p3), %s250_s17, 143 }
   0xe   : > { %s1144_s16 = smov (!%p243_p4, %s240_s16), 8  ;;  %s1146_s17 = smov (!%p252_p5, %s250_s17), 143 }
   0xf   : > { %s826_s18 = sshll.u32 %s1144_s16, 2  ;;  %s887_s22 = sshll.u32 %s1146_s17, 3  ;;  %v1014_v0 = vmov (!%p829_p6), 0.0  }
  0x10   : > { %s1061_s21 = scalar_lea.vmem %s1135_s0, %s826_s18  ;;  %s1066_s25 = scalar_lea.vmem %s1136_s1, %s887_s22  ;;  %282 = vst [vmem:[#allocation2] sm:$0xff] (!%p829_p6), %v1014_v0  ;;  %283 = vst [vmem:[#allocation2 + $0x8] sm:$0xff] (!%p829_p6), %v1014_v0 }
  0x11   : > { %281 = sbr.rel (%p829_p6) target bundleno = 24 (0x18), region = 36 }
  0x18 PF: > { %v915_v1 = vld [vmem:[%s1066_s25 + $0x4] ss:$8 sps:$4 sm:$0xff]   ;;  %v917_v2 = vld [vmem:[%s1066_s25] ss:$8 sps:$4 sm:$0xff]   ;;  %v1015_v3 = vmov 0   ;;  %p881_p7 = scmp.ne.s32.totalorder %s1004_s12, 2 }
  0x19   : > { %660 = vmatprep.mubr.bf16.mxu1 %v1015_v3  ;;  %587 = vmatprep.subr.bf16.mxu0 %v915_v1  ;;  %v918_v4 = vld [vmem:[%s1066_s25 + $0x14] ss:$8 sps:$4 sm:$0xff]   ;;  %v920_v5 = vld [vmem:[%s1066_s25 + $0x10] ss:$8 sps:$4 sm:$0xff]   ;;  %v921_v6 = vld [vmem:[%s1066_s25 + $0x24] ss:$8 sps:$4 sm:$0xff]  }
  0x1a   : > { %588 = vmatpush1.bf16.msra.mxu0 %v917_v2  ;;  %v923_v7 = vld [vmem:[%s1066_s25 + $0x20] ss:$8 sps:$4 sm:$0xff]   ;;  %v924_v8 = vld [vmem:[%s1066_s25 + $0x34] ss:$8 sps:$4 sm:$0xff]   ;;  %v926_v9 = vld [vmem:[%s1066_s25 + $0x30] ss:$8 sps:$4 sm:$0xff]  }
  0x1b   : > { %589 = vmatprep.subr.bf16.mxu0 %v918_v4  ;;  %v939_v10 = vld [vmem:[%s1066_s25 + $0x104] ss:$8 sps:$4 sm:$0xff]   ;;  %v941_v11 = vld [vmem:[%s1066_s25 + $0x100] ss:$8 sps:$4 sm:$0xff]   ;;  %v945_v13 = vld [vmem:[%s1066_s25 + $0x114] ss:$8 sps:$4 sm:$0xff]   ;;  %v681_v4 = vlaneseq (!%p881_p7) }
  0x1c   : > { %v927_v12 = vld [vmem:[%s1066_s25 + $0x44] ss:$8 sps:$4 sm:$0xff]   ;;  %628 = vmatprep.subr.bf16.mxu1 %v939_v10  ;;  %v947_v14 = vld [vmem:[%s1066_s25 + $0x110] ss:$8 sps:$4 sm:$0xff]   ;;  %v929_v15 = vld [vmem:[%s1066_s25 + $0x40] ss:$8 sps:$4 sm:$0xff]  }
  0x1d   : > { %629 = vmatpush1.bf16.msra.mxu1 %v941_v11  ;;  %v930_v16 = vld [vmem:[%s1066_s25 + $0x54] ss:$8 sps:$4 sm:$0xff]   ;;  %v951_v17 = vld [vmem:[%s1066_s25 + $0x124] ss:$8 sps:$4 sm:$0xff]   ;;  %v953_v18 = vld [vmem:[%s1066_s25 + $0x120] ss:$8 sps:$4 sm:$0xff]  }
  0x1e   : > { %590 = vmatpush1.bf16.msra.mxu0 %v920_v5  ;;  %630 = vmatprep.subr.bf16.mxu1 %v945_v13  ;;  %v932_v19 = vld [vmem:[%s1066_s25 + $0x50] ss:$8 sps:$4 sm:$0xff]   ;;  %v957_v20 = vld [vmem:[%s1066_s25 + $0x134] ss:$8 sps:$4 sm:$0xff]   ;;  %v933_v21 = vld [vmem:[%s1066_s25 + $0x64] ss:$8 sps:$4 sm:$0xff]  }
  0x1f   : > { %591 = vmatprep.subr.bf16.mxu0 %v921_v6  ;;  %v959_v22 = vld [vmem:[%s1066_s25 + $0x130] ss:$8 sps:$4 sm:$0xff]   ;;  %v935_v23 = vld [vmem:[%s1066_s25 + $0x60] ss:$8 sps:$4 sm:$0xff]   ;;  %v963_v24 = vld [vmem:[%s1066_s25 + $0x144] ss:$8 sps:$4 sm:$0xff]  }
  0x20   : > { %v936_v25 = vld [vmem:[%s1066_s25 + $0x74] ss:$8 sps:$4 sm:$0xff]   ;;  %v965_v26 = vld [vmem:[%s1066_s25 + $0x140] ss:$8 sps:$4 sm:$0xff]   ;;  %v938_v27 = vld [vmem:[%s1066_s25 + $0x70] ss:$8 sps:$4 sm:$0xff]  }
  0x21   : > { %631 = vmatpush1.bf16.msra.mxu1 %v947_v14  ;;  %v969_v28 = vld [vmem:[%s1066_s25 + $0x154] ss:$8 sps:$4 sm:$0xff]   ;;  %v942_v29 = vld [vmem:[%s1066_s25 + $0x84] ss:$8 sps:$4 sm:$0xff]   ;;  %v971_v30 = vld [vmem:[%s1066_s25 + $0x150] ss:$8 sps:$4 sm:$0xff]  }
  0x22   : > { %592 = vmatpush1.bf16.msra.mxu0 %v923_v7  ;;  %632 = vmatprep.subr.bf16.mxu1 %v951_v17  ;;  %v944_v31 = vld [vmem:[%s1066_s25 + $0x80] ss:$8 sps:$4 sm:$0xff]   ;;  %v975_v32 = vld [vmem:[%s1066_s25 + $0x164] ss:$8 sps:$4 sm:$0xff]   ;;  %v948_v33 = vld [vmem:[%s1066_s25 + $0x94] ss:$8 sps:$4 sm:$0xff]  }
  0x23   : > { %593 = vmatprep.subr.bf16.mxu0 %v924_v8  ;;  %v286_v34 = vld [vmem:[%s1061_s21] sm:$0xff]  ;;  %v950_v37 = vld [vmem:[%s1066_s25 + $0x90] ss:$8 sps:$4 sm:$0xff]   ;;  %v981_v38 = vld [vmem:[%s1066_s25 + $0x174] ss:$8 sps:$4 sm:$0xff]   ;;  %v682_v5 = vshrl.u32 (!%p881_p7), %v681_v4, 7 }
  0x24   : > { %v831_v35 = vcombine.high %v286_v34, %v286_v34  ;;  %v977_v36 = vld [vmem:[%s1066_s25 + $0x160] ss:$8 sps:$4 sm:$0xff]   ;;  %v954_v39 = vld [vmem:[%s1066_s25 + $0xa4] ss:$8 sps:$4 sm:$0xff]   ;;  %v983_v40 = vld [vmem:[%s1066_s25 + $0x170] ss:$8 sps:$4 sm:$0xff]   ;;  %v830_v53 = vcombine.low %v286_v34, %v286_v34 }
  0x25   : > { %633 = vmatpush1.bf16.msra.mxu1 %v953_v18  ;;  %v956_v41 = vld [vmem:[%s1066_s25 + $0xa0] ss:$8 sps:$4 sm:$0xff]   ;;  %v960_v42 = vld [vmem:[%s1066_s25 + $0xb4] ss:$8 sps:$4 sm:$0xff]   ;;  %v962_v44 = vld [vmem:[%s1066_s25 + $0xb0] ss:$8 sps:$4 sm:$0xff]  }
  0x26   : > { %594 = vmatpush1.bf16.msra.mxu0 %v926_v9  ;;  %634 = vmatprep.subr.bf16.mxu1 %v957_v20  ;;  %v987_v43 = vld [vmem:[%s1061_s21 + $0x8] ss:$0 sps:$4 sm:$0xff]   ;;  %v966_v45 = vld [vmem:[%s1066_s25 + $0xc4] ss:$8 sps:$4 sm:$0xff]   ;;  %v972_v47 = vld [vmem:[%s1066_s25 + $0xd4] ss:$8 sps:$4 sm:$0xff]  }
  0x27   : > { %595 = vmatprep.subr.bf16.mxu0 %v927_v12  ;;  %619 = vmatprep.mubr.bf16.mxu0 %v831_v35  ;;  %v968_v46 = vld [vmem:[%s1066_s25 + $0xc0] ss:$8 sps:$4 sm:$0xff]   ;;  %v974_v48 = vld [vmem:[%s1066_s25 + $0xd0] ss:$8 sps:$4 sm:$0xff]   ;;  %v978_v49 = vld [vmem:[%s1066_s25 + $0xe4] ss:$8 sps:$4 sm:$0xff]  }
  0x28   : > { %v980_v50 = vld [vmem:[%s1066_s25 + $0xe0] ss:$8 sps:$4 sm:$0xff]   ;;  %v984_v51 = vld [vmem:[%s1066_s25 + $0xf4] ss:$8 sps:$4 sm:$0xff]   ;;  %v986_v52 = vld [vmem:[%s1066_s25 + $0xf0] ss:$8 sps:$4 sm:$0xff]  }
  0x29   : > { %635 = vmatpush1.bf16.msra.mxu1 %v959_v22  ;;  %v284_v58 = vld [vmem:[#allocation2] sm:$0xff]  ;;  %v285_v61 = vld [vmem:[#allocation2 + $0x8] sm:$0xff]  ;;  %v683_v7 = vsub.s32 (!%p881_p7), 0, %v682_v5  ;;  %v687_v8 = vsub.s32 (!%p881_p7), 1, %v682_v5 }
  0x2a   : > { %596 = vmatpush1.bf16.msra.mxu0 %v929_v15  ;;  %636 = vmatprep.subr.bf16.mxu1 %v963_v24  ;;  %v679_v6 = vld [vmem:[%s1137_s2] sm:$0x3] (!%p881_p7) }
  0x2b   : > { %597 = vmatprep.subr.bf16.mxu0 %v930_v16  ;;  %v684_v11 = vrot.slane (!%p881_p7), %v679_v6, %v683_v7  ;;  %v688_v12 = vrot.slane (!%p881_p7), %v679_v6, %v687_v8 }
  0x2d   : > { %637 = vmatpush1.bf16.msra.mxu1 %v965_v26 }
  0x2e   : > { %598 = vmatpush1.bf16.msra.mxu0 %v932_v19  ;;  %638 = vmatprep.subr.bf16.mxu1 %v969_v28 }
  0x2f   : > { %599 = vmatprep.subr.bf16.mxu0 %v933_v21 }
  0x31   : > { %639 = vmatpush1.bf16.msra.mxu1 %v971_v30 }
  0x32   : > { %600 = vmatpush1.bf16.msra.mxu0 %v935_v23  ;;  %640 = vmatprep.subr.bf16.mxu1 %v975_v32 }
  0x33   : > { %601 = vmatprep.subr.bf16.mxu0 %v936_v25 }
  0x35   : > { %641 = vmatpush1.bf16.msra.mxu1 %v977_v36 }
  0x36   : > { %602 = vmatpush1.bf16.msra.mxu0 %v938_v27  ;;  %642 = vmatprep.subr.bf16.mxu1 %v981_v38 }
  0x37   : > { %603 = vmatprep.subr.bf16.mxu0 %v942_v29 }
  0x39   : > { %643 = vmatpush1.bf16.msra.mxu1 %v983_v40 }
  0x3a   : > { %604 = vmatpush1.bf16.msra.mxu0 %v944_v31 }
  0x3b   : > { %605 = vmatprep.subr.bf16.mxu0 %v948_v33 }
  0x3c   : > { %661 = vmatmul.mubr.bf16.vlgmr.msra.gmra.mrb[0].mxu1 %v987_v43 }
  0x3e   : > { %606 = vmatpush1.bf16.msra.mxu0 %v950_v37 }
  0x3f   : > { %607 = vmatprep.subr.bf16.mxu0 %v954_v39 }
  0x42   : > { %608 = vmatpush1.bf16.msra.mxu0 %v956_v41 }
  0x43   : > { %609 = vmatprep.subr.bf16.mxu0 %v960_v42 }
  0x46   : > { %610 = vmatpush1.bf16.msra.mxu0 %v962_v44 }
  0x47   : > { %611 = vmatprep.subr.bf16.mxu0 %v966_v45 }
  0x4a   : > { %612 = vmatpush1.bf16.msra.mxu0 %v968_v46 }
  0x4b   : > { %613 = vmatprep.subr.bf16.mxu0 %v972_v47 }
  0x4e   : > { %614 = vmatpush1.bf16.msra.mxu0 %v974_v48 }
  0x4f   : > { %615 = vmatprep.subr.bf16.mxu0 %v978_v49 }
  0x52   : > { %616 = vmatpush1.bf16.msra.mxu0 %v980_v50 }
  0x53   : > { %617 = vmatprep.subr.bf16.mxu0 %v984_v51 }
  0x56   : > { %618 = vmatpush1.bf16.msra.mxu0 %v986_v52 }
  0x59   : > { %620 = vmatmul.mubr.bf16.vlgmr.msra.gmra.mrb[0].mxu0 %v830_v53 }
 0x10f   : > { %v662_v54 = vpop.f32.mrb[0].mxu1 }
 0x110   : > { %v664_v55 = vpop.f32.mrb[1].mxu1 }
 0x111   : > { %v666_v56 = vpop.f32.mrb[2].mxu1 }
 0x112   : > { %v667_v57 = vpop.f32.mrb[3].mxu1 }
 0x12c   : > { %v621_v59 = vpop.f32.mrb[0].mxu0  ;;  %676 = sbr.rel (%p881_p7) target bundleno = 321 (0x141), region = 40 }
 0x12d   : > { %v663_v60 = vadd.f32 %v662_v54, %v621_v59  ;;  %v623_v62 = vpop.f32.mrb[1].mxu0 }
 0x12e   : > { %v665_v63 = vadd.f32 %v664_v55, %v623_v62  ;;  %v625_v0 = vpop.f32.mrb[2].mxu0 }
 0x12f   : > { %v669_v1 = vadd.f32 %v663_v60, %v284_v58  ;;  %v626_v2 = vpop.f32.mrb[3].mxu0 }
 0x130   : > { %v670_v3 = vadd.f32 %v665_v63, %v285_v61 }
 0x131   : > { %671 = vst [vmem:[#allocation2] sm:$0xff] %v669_v1 }
 0x132   : > { %672 = vst [vmem:[#allocation2 + $0x8] sm:$0xff] %v670_v3 }
 0x138   : > { %v677_v9 = vld [vmem:[#allocation2] sm:$0xff] }
 0x139   : > { %v678_v10 = vld [vmem:[#allocation2 + $0x8] sm:$0xff]  ;;  %v691_v13 = vadd.f32 %v684_v11, %v677_v9 }
 0x13a   : > { %v692_v14 = vadd.f32 %v688_v12, %v678_v10 }
 0x13b   : > { %v693_v15 = vmax.f32 %v691_v13, 0.0 }
 0x13c   : > { %v694_v16 = vmax.f32 %v692_v14, 0.0 }
 0x13e   : > { %v888_v17 = vpack.c.bf16 %v694_v16, %v693_v15 }
 0x140   : > { %703 = vst [vmem:[%s1138_s3] sm:$0xff] %v888_v17 }
 0x141 PF: > { %s13_s14 = sadd.s32 1, %s1012_s14   ;;  %s1139_s12 = smov %s1008_s13 }
 0x142   : > { %p10_p8 = scmp.ge.s32.totalorder %s13_s14, 5   ;;  %s1140_s13 = smov %s1142_s15 }
 0x144   :  { %12 = sbr.rel (!%p10_p8) target bundleno = 2 (0x2), region = 76 }

// kernel: image_captioning_forward.37
= control target key start
LH: loop header
LB: loop body
LE: loop exit
PB: predicated region body
PF: predicated region fallthrough
CT: control target
= control target key end

     0   :  { %v240_v1 = vmov 0   ;;  %v172_v18 = vlaneseq  ;;  %s318_s1 = inlined_call_operand.vmem [shape: bf16[128,256], index: 1, kind: input, shape index: {}]   ;;  %s319_s0 = inlined_call_operand.vmem [shape: bf16[8,128], index: 0, kind: input, shape index: {}]   ;;  %s320_s2 = inlined_call_operand.vmem [shape: f32[1,256], index: 2, kind: input, shape index: {}]   ;;  %s321_s3 = inlined_call_operand.vmem [shape: bf16[8,256], index: 3, kind: output, shape index: {}]  }
   0x1   :  { %v216_v0 = vld [vmem:[%s318_s1 + $0x4] ss:$8 sps:$4 sm:$0xff]   ;;  %152 = vmatprep.mubr.bf16.mxu0 %v240_v1  ;;  %v218_v2 = vld [vmem:[%s318_s1] ss:$8 sps:$4 sm:$0xff]   ;;  %v219_v3 = vld [vmem:[%s318_s1 + $0x14] ss:$8 sps:$4 sm:$0xff]  }
   0x2   :  { %120 = vmatprep.subr.bf16.mxu0 %v216_v0  ;;  %v221_v4 = vld [vmem:[%s318_s1 + $0x10] ss:$8 sps:$4 sm:$0xff]   ;;  %v222_v5 = vld [vmem:[%s318_s1 + $0x24] ss:$8 sps:$4 sm:$0xff]   ;;  %v224_v6 = vld [vmem:[%s318_s1 + $0x20] ss:$8 sps:$4 sm:$0xff]  }
   0x3   :  { %121 = vmatpush1.bf16.msra.mxu0 %v218_v2  ;;  %v225_v7 = vld [vmem:[%s318_s1 + $0x34] ss:$8 sps:$4 sm:$0xff]   ;;  %v227_v8 = vld [vmem:[%s318_s1 + $0x30] ss:$8 sps:$4 sm:$0xff]   ;;  %v228_v9 = vld [vmem:[%s318_s1 + $0x44] ss:$8 sps:$4 sm:$0xff]  }
   0x4   :  { %122 = vmatprep.subr.bf16.mxu0 %v219_v3  ;;  %v230_v10 = vld [vmem:[%s318_s1 + $0x40] ss:$8 sps:$4 sm:$0xff]   ;;  %v231_v11 = vld [vmem:[%s318_s1 + $0x54] ss:$8 sps:$4 sm:$0xff]   ;;  %v233_v12 = vld [vmem:[%s318_s1 + $0x50] ss:$8 sps:$4 sm:$0xff]  }
   0x5   :  { %v234_v13 = vld [vmem:[%s318_s1 + $0x64] ss:$8 sps:$4 sm:$0xff]   ;;  %v236_v14 = vld [vmem:[%s318_s1 + $0x60] ss:$8 sps:$4 sm:$0xff]   ;;  %v237_v15 = vld [vmem:[%s318_s1 + $0x74] ss:$8 sps:$4 sm:$0xff]  }
   0x6   :  { %v239_v16 = vld [vmem:[%s318_s1 + $0x70] ss:$8 sps:$4 sm:$0xff]   ;;  %v23_v17 = vld [vmem:[%s319_s0] sm:$0xf]  ;;  %v173_v19 = vshrl.u32 %v172_v18, 7 }
   0x7   :  { %123 = vmatpush1.bf16.msra.mxu0 %v221_v4  ;;  %v170_v21 = vld [vmem:[%s320_s2] sm:$0x3] }
   0x8   :  { %124 = vmatprep.subr.bf16.mxu0 %v222_v5  ;;  %v174_v20 = vsub.s32 0, %v173_v19  ;;  %v178_v22 = vsub.s32 1, %v173_v19 }
   0xa   :  { %v175_v23 = vrot.slane %v170_v21, %v174_v20  ;;  %v179_v24 = vrot.slane %v170_v21, %v178_v22 }
   0xb   :  { %125 = vmatpush1.bf16.msra.mxu0 %v224_v6 }
   0xc   :  { %126 = vmatprep.subr.bf16.mxu0 %v225_v7 }
   0xf   :  { %127 = vmatpush1.bf16.msra.mxu0 %v227_v8 }
  0x10   :  { %128 = vmatprep.subr.bf16.mxu0 %v228_v9 }
  0x13   :  { %129 = vmatpush1.bf16.msra.mxu0 %v230_v10 }
  0x14   :  { %130 = vmatprep.subr.bf16.mxu0 %v231_v11 }
  0x17   :  { %131 = vmatpush1.bf16.msra.mxu0 %v233_v12 }
  0x18   :  { %132 = vmatprep.subr.bf16.mxu0 %v234_v13 }
  0x1b   :  { %133 = vmatpush1.bf16.msra.mxu0 %v236_v14 }
  0x1c   :  { %134 = vmatprep.subr.bf16.mxu0 %v237_v15 }
  0x1f   :  { %135 = vmatpush1.bf16.msra.mxu0 %v239_v16 }
  0x22   :  { %153 = vmatmul.mubr.bf16.vlgmr.msra.gmra.mrb[0].mxu0 %v23_v17 }
  0xf5   :  { %v154_v25 = vpop.f32.mrb[0].mxu0 }
  0xf6   :  { %v182_v26 = vadd.f32 %v175_v23, %v154_v25  ;;  %v156_v27 = vpop.f32.mrb[1].mxu0 }
  0xf7   :  { %v183_v28 = vadd.f32 %v179_v24, %v156_v27  ;;  %v158_v29 = vpop.f32.mrb[2].mxu0 }
  0xf8   :  { %v159_v30 = vpop.f32.mrb[3].mxu0 }
  0xf9   :  { %v214_v31 = vpack.c.bf16 %v183_v28, %v182_v26 }
  0xfb   :  { %192 = vst [vmem:[%s321_s3] sm:$0xff] %v214_v31 }

// kernel: image_captioning_forward.39
= control target key start
LH: loop header
LB: loop body
LE: loop exit
PB: predicated region body
PF: predicated region fallthrough
CT: control target
= control target key end

     0   :  { %s1131_s15 = smov 0   ;;  %s1133_s16 = smov 0   ;;  %s1233_s0 = inlined_call_operand.vmem [shape: bf16[8,2304], index: 0, kind: input, shape index: {}]   ;;  %s1234_s1 = inlined_call_operand.vmem [shape: bf16[2304,256], index: 1, kind: input, shape index: {}]   ;;  %s1235_s2 = inlined_call_operand.vmem [shape: f32[1,256], index: 2, kind: input, shape index: {}]   ;;  %s1236_s3 = inlined_call_operand.vmem [shape: bf16[8,256], index: 3, kind: input, shape index: {}]   ;;  %s1237_s4 = inlined_call_operand.vmem [shape: bf16[8,256], index: 4, kind: output, shape index: {}]  }
   0x1   :  { %s1135_s17 = smov 0  }
   0x2 LB: > { %s26_s18 = sadd.s32 1, %s1098_s16  ;;  %p915_p0 = scmp.ge.s32.totalorder %s1102_s17, 1  ;;  %s1102_s17 = sphi %s1135_s17, %s14_s17   ;;  %s1098_s16 = sphi %s1133_s16, %s1239_s16   ;;  %s1094_s15 = sphi %s1131_s15, %s1238_s15  }
   0x3   : > { %p27_p1 = scmp.ge.s32.totalorder %s26_s18, 6  ;;  %p236_p2 = scmp.lt.s32.totalorder %s1102_s17, 7 }
   0x5   : > { %s1241_s18 = smov (%p27_p1, %s26_s18), 0  ;;  %p237_p3 = pnand %p915_p0, %p236_p2 }
   0x6   : > { %s293_s19 = smul.u32 (!%p237_p3), 3, %s1094_s15  ;;  %p919_p6 = scmp.ne.s32.totalorder (!%p237_p3), %s1094_s15, 0 }
   0x7   : > { %240 = sbr.rel (%p237_p3) target bundleno = 323 (0x143), region = 36 }
   0x8   : > { %s303_s20 = smul.u32 (!%p237_p3), 48, %s1094_s15  ;;  %p296_p4 = scmp.lt.s32.totalorder (!%p237_p3), %s293_s19, 17 }
   0xa   : > { %p305_p5 = scmp.lt.s32.totalorder (!%p237_p3), %s303_s20, 287 }
   0xe   : > { %s1243_s19 = smov (!%p296_p4, %s293_s19), 17  ;;  %s1245_s20 = smov (!%p305_p5, %s303_s20), 287 }
   0xf   : > { %s916_s21 = sshll.u32 %s1243_s19, 2  ;;  %s977_s25 = sshll.u32 %s1245_s20, 3  ;;  %v1104_v0 = vmov (!%p919_p6), 0.0  }
  0x10   : > { %s1156_s24 = scalar_lea.vmem %s1233_s0, %s916_s21  ;;  %s1161_s28 = scalar_lea.vmem %s1234_s1, %s977_s25  ;;  %345 = vst [vmem:[#allocation2] sm:$0xff] (!%p919_p6), %v1104_v0  ;;  %346 = vst [vmem:[#allocation2 + $0x8] sm:$0xff] (!%p919_p6), %v1104_v0 }
  0x11   : > { %344 = sbr.rel (%p919_p6) target bundleno = 24 (0x18), region = 40 }
  0x18 PF: > { %v1005_v1 = vld [vmem:[%s1161_s28 + $0x4] ss:$8 sps:$4 sm:$0xff]   ;;  %v1007_v2 = vld [vmem:[%s1161_s28] ss:$8 sps:$4 sm:$0xff]   ;;  %v1105_v3 = vmov 0   ;;  %p971_p7 = scmp.ne.s32.totalorder %s1094_s15, 5 }
  0x19   : > { %723 = vmatprep.mubr.bf16.mxu1 %v1105_v3  ;;  %650 = vmatprep.subr.bf16.mxu0 %v1005_v1  ;;  %v1008_v4 = vld [vmem:[%s1161_s28 + $0x14] ss:$8 sps:$4 sm:$0xff]   ;;  %v1010_v5 = vld [vmem:[%s1161_s28 + $0x10] ss:$8 sps:$4 sm:$0xff]   ;;  %v1011_v6 = vld [vmem:[%s1161_s28 + $0x24] ss:$8 sps:$4 sm:$0xff]  }
  0x1a   : > { %651 = vmatpush1.bf16.msra.mxu0 %v1007_v2  ;;  %v1013_v7 = vld [vmem:[%s1161_s28 + $0x20] ss:$8 sps:$4 sm:$0xff]   ;;  %v1014_v8 = vld [vmem:[%s1161_s28 + $0x34] ss:$8 sps:$4 sm:$0xff]   ;;  %v1016_v9 = vld [vmem:[%s1161_s28 + $0x30] ss:$8 sps:$4 sm:$0xff]  }
  0x1b   : > { %652 = vmatprep.subr.bf16.mxu0 %v1008_v4  ;;  %v1029_v10 = vld [vmem:[%s1161_s28 + $0x104] ss:$8 sps:$4 sm:$0xff]   ;;  %v1031_v11 = vld [vmem:[%s1161_s28 + $0x100] ss:$8 sps:$4 sm:$0xff]   ;;  %v1035_v13 = vld [vmem:[%s1161_s28 + $0x114] ss:$8 sps:$4 sm:$0xff]   ;;  %v744_v4 = vlaneseq (!%p971_p7) }
  0x1c   : > { %v1017_v12 = vld [vmem:[%s1161_s28 + $0x44] ss:$8 sps:$4 sm:$0xff]   ;;  %691 = vmatprep.subr.bf16.mxu1 %v1029_v10  ;;  %v1037_v14 = vld [vmem:[%s1161_s28 + $0x110] ss:$8 sps:$4 sm:$0xff]   ;;  %v1019_v15 = vld [vmem:[%s1161_s28 + $0x40] ss:$8 sps:$4 sm:$0xff]  }
  0x1d   : > { %692 = vmatpush1.bf16.msra.mxu1 %v1031_v11  ;;  %v1020_v16 = vld [vmem:[%s1161_s28 + $0x54] ss:$8 sps:$4 sm:$0xff]   ;;  %v1041_v17 = vld [vmem:[%s1161_s28 + $0x124] ss:$8 sps:$4 sm:$0xff]   ;;  %v1043_v18 = vld [vmem:[%s1161_s28 + $0x120] ss:$8 sps:$4 sm:$0xff]  }
  0x1e   : > { %653 = vmatpush1.bf16.msra.mxu0 %v1010_v5  ;;  %693 = vmatprep.subr.bf16.mxu1 %v1035_v13  ;;  %v1022_v19 = vld [vmem:[%s1161_s28 + $0x50] ss:$8 sps:$4 sm:$0xff]   ;;  %v1047_v20 = vld [vmem:[%s1161_s28 + $0x134] ss:$8 sps:$4 sm:$0xff]   ;;  %v1023_v21 = vld [vmem:[%s1161_s28 + $0x64] ss:$8 sps:$4 sm:$0xff]  }
  0x1f   : > { %654 = vmatprep.subr.bf16.mxu0 %v1011_v6  ;;  %v1049_v22 = vld [vmem:[%s1161_s28 + $0x130] ss:$8 sps:$4 sm:$0xff]   ;;  %v1025_v23 = vld [vmem:[%s1161_s28 + $0x60] ss:$8 sps:$4 sm:$0xff]   ;;  %v1053_v24 = vld [vmem:[%s1161_s28 + $0x144] ss:$8 sps:$4 sm:$0xff]  }
  0x20   : > { %v1026_v25 = vld [vmem:[%s1161_s28 + $0x74] ss:$8 sps:$4 sm:$0xff]   ;;  %v1055_v26 = vld [vmem:[%s1161_s28 + $0x140] ss:$8 sps:$4 sm:$0xff]   ;;  %v1028_v27 = vld [vmem:[%s1161_s28 + $0x70] ss:$8 sps:$4 sm:$0xff]  }
  0x21   : > { %694 = vmatpush1.bf16.msra.mxu1 %v1037_v14  ;;  %v1059_v28 = vld [vmem:[%s1161_s28 + $0x154] ss:$8 sps:$4 sm:$0xff]   ;;  %v1032_v29 = vld [vmem:[%s1161_s28 + $0x84] ss:$8 sps:$4 sm:$0xff]   ;;  %v1061_v30 = vld [vmem:[%s1161_s28 + $0x150] ss:$8 sps:$4 sm:$0xff]  }
  0x22   : > { %655 = vmatpush1.bf16.msra.mxu0 %v1013_v7  ;;  %695 = vmatprep.subr.bf16.mxu1 %v1041_v17  ;;  %v1034_v31 = vld [vmem:[%s1161_s28 + $0x80] ss:$8 sps:$4 sm:$0xff]   ;;  %v1065_v32 = vld [vmem:[%s1161_s28 + $0x164] ss:$8 sps:$4 sm:$0xff]   ;;  %v1038_v33 = vld [vmem:[%s1161_s28 + $0x94] ss:$8 sps:$4 sm:$0xff]  }
  0x23   : > { %656 = vmatprep.subr.bf16.mxu0 %v1014_v8  ;;  %v349_v34 = vld [vmem:[%s1156_s24] sm:$0xff]  ;;  %v1040_v37 = vld [vmem:[%s1161_s28 + $0x90] ss:$8 sps:$4 sm:$0xff]   ;;  %v1071_v38 = vld [vmem:[%s1161_s28 + $0x174] ss:$8 sps:$4 sm:$0xff]   ;;  %v745_v5 = vshrl.u32 (!%p971_p7), %v744_v4, 7 }
  0x24   : > { %v921_v35 = vcombine.high %v349_v34, %v349_v34  ;;  %v1067_v36 = vld [vmem:[%s1161_s28 + $0x160] ss:$8 sps:$4 sm:$0xff]   ;;  %v1044_v39 = vld [vmem:[%s1161_s28 + $0xa4] ss:$8 sps:$4 sm:$0xff]   ;;  %v1073_v40 = vld [vmem:[%s1161_s28 + $0x170] ss:$8 sps:$4 sm:$0xff]   ;;  %v920_v53 = vcombine.low %v349_v34, %v349_v34 }
  0x25   : > { %696 = vmatpush1.bf16.msra.mxu1 %v1043_v18  ;;  %v1046_v41 = vld [vmem:[%s1161_s28 + $0xa0] ss:$8 sps:$4 sm:$0xff]   ;;  %v1050_v42 = vld [vmem:[%s1161_s28 + $0xb4] ss:$8 sps:$4 sm:$0xff]   ;;  %v1052_v44 = vld [vmem:[%s1161_s28 + $0xb0] ss:$8 sps:$4 sm:$0xff]  }
  0x26   : > { %657 = vmatpush1.bf16.msra.mxu0 %v1016_v9  ;;  %697 = vmatprep.subr.bf16.mxu1 %v1047_v20  ;;  %v1077_v43 = vld [vmem:[%s1156_s24 + $0x8] ss:$0 sps:$4 sm:$0xff]   ;;  %v1056_v45 = vld [vmem:[%s1161_s28 + $0xc4] ss:$8 sps:$4 sm:$0xff]   ;;  %v1062_v47 = vld [vmem:[%s1161_s28 + $0xd4] ss:$8 sps:$4 sm:$0xff]  }
  0x27   : > { %658 = vmatprep.subr.bf16.mxu0 %v1017_v12  ;;  %682 = vmatprep.mubr.bf16.mxu0 %v921_v35  ;;  %v1058_v46 = vld [vmem:[%s1161_s28 + $0xc0] ss:$8 sps:$4 sm:$0xff]   ;;  %v1064_v48 = vld [vmem:[%s1161_s28 + $0xd0] ss:$8 sps:$4 sm:$0xff]   ;;  %v1068_v49 = vld [vmem:[%s1161_s28 + $0xe4] ss:$8 sps:$4 sm:$0xff]  }
  0x28   : > { %v1070_v50 = vld [vmem:[%s1161_s28 + $0xe0] ss:$8 sps:$4 sm:$0xff]   ;;  %v1074_v51 = vld [vmem:[%s1161_s28 + $0xf4] ss:$8 sps:$4 sm:$0xff]   ;;  %v1076_v52 = vld [vmem:[%s1161_s28 + $0xf0] ss:$8 sps:$4 sm:$0xff]  }
  0x29   : > { %698 = vmatpush1.bf16.msra.mxu1 %v1049_v22  ;;  %v347_v58 = vld [vmem:[#allocation2] sm:$0xff]  ;;  %v348_v61 = vld [vmem:[#allocation2 + $0x8] sm:$0xff]  ;;  %v746_v8 = vsub.s32 (!%p971_p7), 0, %v745_v5  ;;  %v750_v9 = vsub.s32 (!%p971_p7), 1, %v745_v5 }
  0x2a   : > { %659 = vmatpush1.bf16.msra.mxu0 %v1019_v15  ;;  %699 = vmatprep.subr.bf16.mxu1 %v1053_v24  ;;  %v742_v6 = vld [vmem:[%s1235_s2] sm:$0x3] (!%p971_p7) }
  0x2b   : > { %660 = vmatprep.subr.bf16.mxu0 %v1020_v16  ;;  %v756_v7 = vld [vmem:[%s1236_s3] sm:$0xff] (!%p971_p7)  ;;  %v747_v12 = vrot.slane (!%p971_p7), %v742_v6, %v746_v8  ;;  %v751_v13 = vrot.slane (!%p971_p7), %v742_v6, %v750_v9 }
  0x2c   : > { %v757_v14 = vunpack.c.l.bf16 (!%p971_p7), %v756_v7  ;;  %v758_v15 = vunpack.c.h.bf16 (!%p971_p7), %v756_v7 }
  0x2d   : > { %700 = vmatpush1.bf16.msra.mxu1 %v1055_v26 }
  0x2e   : > { %661 = vmatpush1.bf16.msra.mxu0 %v1022_v19  ;;  %701 = vmatprep.subr.bf16.mxu1 %v1059_v28 }
  0x2f   : > { %662 = vmatprep.subr.bf16.mxu0 %v1023_v21 }
  0x31   : > { %702 = vmatpush1.bf16.msra.mxu1 %v1061_v30 }
  0x32   : > { %663 = vmatpush1.bf16.msra.mxu0 %v1025_v23  ;;  %703 = vmatprep.subr.bf16.mxu1 %v1065_v32 }
  0x33   : > { %664 = vmatprep.subr.bf16.mxu0 %v1026_v25 }
  0x35   : > { %704 = vmatpush1.bf16.msra.mxu1 %v1067_v36 }
  0x36   : > { %665 = vmatpush1.bf16.msra.mxu0 %v1028_v27  ;;  %705 = vmatprep.subr.bf16.mxu1 %v1071_v38 }
  0x37   : > { %666 = vmatprep.subr.bf16.mxu0 %v1032_v29 }
  0x39   : > { %706 = vmatpush1.bf16.msra.mxu1 %v1073_v40 }
  0x3a   : > { %667 = vmatpush1.bf16.msra.mxu0 %v1034_v31 }
  0x3b   : > { %668 = vmatprep.subr.bf16.mxu0 %v1038_v33 }
  0x3c   : > { %724 = vmatmul.mubr.bf16.vlgmr.msra.gmra.mrb[0].mxu1 %v1077_v43 }
  0x3e   : > { %669 = vmatpush1.bf16.msra.mxu0 %v1040_v37 }
  0x3f   : > { %670 = vmatprep.subr.bf16.mxu0 %v1044_v39 }
  0x42   : > { %671 = vmatpush1.bf16.msra.mxu0 %v1046_v41 }
  0x43   : > { %672 = vmatprep.subr.bf16.mxu0 %v1050_v42 }
  0x46   : > { %673 = vmatpush1.bf16.msra.mxu0 %v1052_v44 }
  0x47   : > { %674 = vmatprep.subr.bf16.mxu0 %v1056_v45 }
  0x4a   : > { %675 = vmatpush1.bf16.msra.mxu0 %v1058_v46 }
  0x4b   : > { %676 = vmatprep.subr.bf16.mxu0 %v1062_v47 }
  0x4e   : > { %677 = vmatpush1.bf16.msra.mxu0 %v1064_v48 }
  0x4f   : > { %678 = vmatprep.subr.bf16.mxu0 %v1068_v49 }
  0x52   : > { %679 = vmatpush1.bf16.msra.mxu0 %v1070_v50 }
  0x53   : > { %680 = vmatprep.subr.bf16.mxu0 %v1074_v51 }
  0x56   : > { %681 = vmatpush1.bf16.msra.mxu0 %v1076_v52 }
  0x59   : > { %683 = vmatmul.mubr.bf16.vlgmr.msra.gmra.mrb[0].mxu0 %v920_v53 }
 0x10f   : > { %v725_v54 = vpop.f32.mrb[0].mxu1 }
 0x110   : > { %v727_v55 = vpop.f32.mrb[1].mxu1 }
 0x111   : > { %v729_v56 = vpop.f32.mrb[2].mxu1 }
 0x112   : > { %v730_v57 = vpop.f32.mrb[3].mxu1 }
 0x12c   : > { %v684_v59 = vpop.f32.mrb[0].mxu0  ;;  %739 = sbr.rel (%p971_p7) target bundleno = 323 (0x143), region = 44 }
 0x12d   : > { %v726_v60 = vadd.f32 %v725_v54, %v684_v59  ;;  %v686_v62 = vpop.f32.mrb[1].mxu0 }
 0x12e   : > { %v728_v63 = vadd.f32 %v727_v55, %v686_v62  ;;  %v688_v0 = vpop.f32.mrb[2].mxu0 }
 0x12f   : > { %v732_v1 = vadd.f32 %v726_v60, %v347_v58  ;;  %v689_v2 = vpop.f32.mrb[3].mxu0 }
 0x130   : > { %v733_v3 = vadd.f32 %v728_v63, %v348_v61 }
 0x131   : > { %734 = vst [vmem:[#allocation2] sm:$0xff] %v732_v1 }
 0x132   : > { %735 = vst [vmem:[#allocation2 + $0x8] sm:$0xff] %v733_v3 }
 0x138   : > { %v740_v10 = vld [vmem:[#allocation2] sm:$0xff] }
 0x139   : > { %v741_v11 = vld [vmem:[#allocation2 + $0x8] sm:$0xff]  ;;  %v754_v16 = vadd.f32 %v747_v12, %v740_v10 }
 0x13a   : > { %v755_v17 = vadd.f32 %v751_v13, %v741_v11 }
 0x13b   : > { %v759_v18 = vadd.f32 %v757_v14, %v754_v16 }
 0x13c   : > { %v760_v19 = vadd.f32 %v758_v15, %v755_v17 }
 0x13d   : > { %v761_v20 = vmax.f32 %v759_v18, 0.0 }
 0x13e   : > { %v762_v21 = vmax.f32 %v760_v19, 0.0 }
 0x140   : > { %v978_v22 = vpack.c.bf16 %v762_v21, %v761_v20 }
 0x142   : > { %771 = vst [vmem:[%s1237_s4] sm:$0xff] %v978_v22 }
 0x143 PF: > { %s14_s17 = sadd.s32 1, %s1102_s17   ;;  %s1238_s15 = smov %s1098_s16 }
 0x144   : > { %p11_p8 = scmp.ge.s32.totalorder %s14_s17, 8   ;;  %s1239_s16 = smov %s1241_s18 }
 0x146   :  { %13 = sbr.rel (!%p11_p8) target bundleno = 2 (0x2), region = 83 }

// kernel: image_captioning_forward.40
= control target key start
LH: loop header
LB: loop body
LE: loop exit
PB: predicated region body
PF: predicated region fallthrough
CT: control target
= control target key end

     0   :  { %s1036_s12 = smov 0   ;;  %s1038_s13 = smov 0   ;;  %s1135_s0 = inlined_call_operand.vmem [shape: bf16[8,2304], index: 0, kind: input, shape index: {}]   ;;  %s1136_s1 = inlined_call_operand.vmem [shape: bf16[2304,256], index: 1, kind: input, shape index: {}]   ;;  %s1137_s2 = inlined_call_operand.vmem [shape: f32[1,256], index: 2, kind: input, shape index: {}]   ;;  %s1138_s3 = inlined_call_operand.vmem [shape: bf16[8,256], index: 3, kind: output, shape index: {}]  }
   0x1   :  { %s1040_s14 = smov 0  }
   0x2 LB: > { %s25_s15 = sadd.s32 1, %s1008_s13  ;;  %p825_p0 = scmp.ge.s32.totalorder %s1012_s14, 1  ;;  %s1012_s14 = sphi %s1040_s14, %s13_s14   ;;  %s1008_s13 = sphi %s1038_s13, %s1140_s13   ;;  %s1004_s12 = sphi %s1036_s12, %s1139_s12  }
   0x3   : > { %p26_p1 = scmp.ge.s32.totalorder %s25_s15, 6  ;;  %p194_p2 = scmp.lt.s32.totalorder %s1012_s14, 7 }
   0x5   : > { %s1142_s15 = smov (%p26_p1, %s25_s15), 0  ;;  %p195_p3 = pnand %p825_p0, %p194_p2 }
   0x6   : > { %s240_s16 = smul.u32 (!%p195_p3), 3, %s1004_s12  ;;  %p829_p6 = scmp.ne.s32.totalorder (!%p195_p3), %s1004_s12, 0 }
   0x7   : > { %198 = sbr.rel (%p195_p3) target bundleno = 321 (0x141), region = 32 }
   0x8   : > { %s250_s17 = smul.u32 (!%p195_p3), 48, %s1004_s12  ;;  %p243_p4 = scmp.lt.s32.totalorder (!%p195_p3), %s240_s16, 17 }
   0xa   : > { %p252_p5 = scmp.lt.s32.totalorder (!%p195_p3), %s250_s17, 287 }
   0xe   : > { %s1144_s16 = smov (!%p243_p4, %s240_s16), 17  ;;  %s1146_s17 = smov (!%p252_p5, %s250_s17), 287 }
   0xf   : > { %s826_s18 = sshll.u32 %s1144_s16, 2  ;;  %s887_s22 = sshll.u32 %s1146_s17, 3  ;;  %v1014_v0 = vmov (!%p829_p6), 0.0  }
  0x10   : > { %s1061_s21 = scalar_lea.vmem %s1135_s0, %s826_s18  ;;  %s1066_s25 = scalar_lea.vmem %s1136_s1, %s887_s22  ;;  %282 = vst [vmem:[#allocation2] sm:$0xff] (!%p829_p6), %v1014_v0  ;;  %283 = vst [vmem:[#allocation2 + $0x8] sm:$0xff] (!%p829_p6), %v1014_v0 }
  0x11   : > { %281 = sbr.rel (%p829_p6) target bundleno = 24 (0x18), region = 36 }
  0x18 PF: > { %v915_v1 = vld [vmem:[%s1066_s25 + $0x4] ss:$8 sps:$4 sm:$0xff]   ;;  %v917_v2 = vld [vmem:[%s1066_s25] ss:$8 sps:$4 sm:$0xff]   ;;  %v1015_v3 = vmov 0   ;;  %p881_p7 = scmp.ne.s32.totalorder %s1004_s12, 5 }
  0x19   : > { %660 = vmatprep.mubr.bf16.mxu1 %v1015_v3  ;;  %587 = vmatprep.subr.bf16.mxu0 %v915_v1  ;;  %v918_v4 = vld [vmem:[%s1066_s25 + $0x14] ss:$8 sps:$4 sm:$0xff]   ;;  %v920_v5 = vld [vmem:[%s1066_s25 + $0x10] ss:$8 sps:$4 sm:$0xff]   ;;  %v921_v6 = vld [vmem:[%s1066_s25 + $0x24] ss:$8 sps:$4 sm:$0xff]  }
  0x1a   : > { %588 = vmatpush1.bf16.msra.mxu0 %v917_v2  ;;  %v923_v7 = vld [vmem:[%s1066_s25 + $0x20] ss:$8 sps:$4 sm:$0xff]   ;;  %v924_v8 = vld [vmem:[%s1066_s25 + $0x34] ss:$8 sps:$4 sm:$0xff]   ;;  %v926_v9 = vld [vmem:[%s1066_s25 + $0x30] ss:$8 sps:$4 sm:$0xff]  }
  0x1b   : > { %589 = vmatprep.subr.bf16.mxu0 %v918_v4  ;;  %v939_v10 = vld [vmem:[%s1066_s25 + $0x104] ss:$8 sps:$4 sm:$0xff]   ;;  %v941_v11 = vld [vmem:[%s1066_s25 + $0x100] ss:$8 sps:$4 sm:$0xff]   ;;  %v945_v13 = vld [vmem:[%s1066_s25 + $0x114] ss:$8 sps:$4 sm:$0xff]   ;;  %v681_v4 = vlaneseq (!%p881_p7) }
  0x1c   : > { %v927_v12 = vld [vmem:[%s1066_s25 + $0x44] ss:$8 sps:$4 sm:$0xff]   ;;  %628 = vmatprep.subr.bf16.mxu1 %v939_v10  ;;  %v947_v14 = vld [vmem:[%s1066_s25 + $0x110] ss:$8 sps:$4 sm:$0xff]   ;;  %v929_v15 = vld [vmem:[%s1066_s25 + $0x40] ss:$8 sps:$4 sm:$0xff]  }
  0x1d   : > { %629 = vmatpush1.bf16.msra.mxu1 %v941_v11  ;;  %v930_v16 = vld [vmem:[%s1066_s25 + $0x54] ss:$8 sps:$4 sm:$0xff]   ;;  %v951_v17 = vld [vmem:[%s1066_s25 + $0x124] ss:$8 sps:$4 sm:$0xff]   ;;  %v953_v18 = vld [vmem:[%s1066_s25 + $0x120] ss:$8 sps:$4 sm:$0xff]  }
  0x1e   : > { %590 = vmatpush1.bf16.msra.mxu0 %v920_v5  ;;  %630 = vmatprep.subr.bf16.mxu1 %v945_v13  ;;  %v932_v19 = vld [vmem:[%s1066_s25 + $0x50] ss:$8 sps:$4 sm:$0xff]   ;;  %v957_v20 = vld [vmem:[%s1066_s25 + $0x134] ss:$8 sps:$4 sm:$0xff]   ;;  %v933_v21 = vld [vmem:[%s1066_s25 + $0x64] ss:$8 sps:$4 sm:$0xff]  }
  0x1f   : > { %591 = vmatprep.subr.bf16.mxu0 %v921_v6  ;;  %v959_v22 = vld [vmem:[%s1066_s25 + $0x130] ss:$8 sps:$4 sm:$0xff]   ;;  %v935_v23 = vld [vmem:[%s1066_s25 + $0x60] ss:$8 sps:$4 sm:$0xff]   ;;  %v963_v24 = vld [vmem:[%s1066_s25 + $0x144] ss:$8 sps:$4 sm:$0xff]  }
  0x20   : > { %v936_v25 = vld [vmem:[%s1066_s25 + $0x74] ss:$8 sps:$4 sm:$0xff]   ;;  %v965_v26 = vld [vmem:[%s1066_s25 + $0x140] ss:$8 sps:$4 sm:$0xff]   ;;  %v938_v27 = vld [vmem:[%s1066_s25 + $0x70] ss:$8 sps:$4 sm:$0xff]  }
  0x21   : > { %631 = vmatpush1.bf16.msra.mxu1 %v947_v14  ;;  %v969_v28 = vld [vmem:[%s1066_s25 + $0x154] ss:$8 sps:$4 sm:$0xff]   ;;  %v942_v29 = vld [vmem:[%s1066_s25 + $0x84] ss:$8 sps:$4 sm:$0xff]   ;;  %v971_v30 = vld [vmem:[%s1066_s25 + $0x150] ss:$8 sps:$4 sm:$0xff]  }
  0x22   : > { %592 = vmatpush1.bf16.msra.mxu0 %v923_v7  ;;  %632 = vmatprep.subr.bf16.mxu1 %v951_v17  ;;  %v944_v31 = vld [vmem:[%s1066_s25 + $0x80] ss:$8 sps:$4 sm:$0xff]   ;;  %v975_v32 = vld [vmem:[%s1066_s25 + $0x164] ss:$8 sps:$4 sm:$0xff]   ;;  %v948_v33 = vld [vmem:[%s1066_s25 + $0x94] ss:$8 sps:$4 sm:$0xff]  }
  0x23   : > { %593 = vmatprep.subr.bf16.mxu0 %v924_v8  ;;  %v286_v34 = vld [vmem:[%s1061_s21] sm:$0xff]  ;;  %v950_v37 = vld [vmem:[%s1066_s25 + $0x90] ss:$8 sps:$4 sm:$0xff]   ;;  %v981_v38 = vld [vmem:[%s1066_s25 + $0x174] ss:$8 sps:$4 sm:$0xff]   ;;  %v682_v5 = vshrl.u32 (!%p881_p7), %v681_v4, 7 }
  0x24   : > { %v831_v35 = vcombine.high %v286_v34, %v286_v34  ;;  %v977_v36 = vld [vmem:[%s1066_s25 + $0x160] ss:$8 sps:$4 sm:$0xff]   ;;  %v954_v39 = vld [vmem:[%s1066_s25 + $0xa4] ss:$8 sps:$4 sm:$0xff]   ;;  %v983_v40 = vld [vmem:[%s1066_s25 + $0x170] ss:$8 sps:$4 sm:$0xff]   ;;  %v830_v53 = vcombine.low %v286_v34, %v286_v34 }
  0x25   : > { %633 = vmatpush1.bf16.msra.mxu1 %v953_v18  ;;  %v956_v41 = vld [vmem:[%s1066_s25 + $0xa0] ss:$8 sps:$4 sm:$0xff]   ;;  %v960_v42 = vld [vmem:[%s1066_s25 + $0xb4] ss:$8 sps:$4 sm:$0xff]   ;;  %v962_v44 = vld [vmem:[%s1066_s25 + $0xb0] ss:$8 sps:$4 sm:$0xff]  }
  0x26   : > { %594 = vmatpush1.bf16.msra.mxu0 %v926_v9  ;;  %634 = vmatprep.subr.bf16.mxu1 %v957_v20  ;;  %v987_v43 = vld [vmem:[%s1061_s21 + $0x8] ss:$0 sps:$4 sm:$0xff]   ;;  %v966_v45 = vld [vmem:[%s1066_s25 + $0xc4] ss:$8 sps:$4 sm:$0xff]   ;;  %v972_v47 = vld [vmem:[%s1066_s25 + $0xd4] ss:$8 sps:$4 sm:$0xff]  }
  0x27   : > { %595 = vmatprep.subr.bf16.mxu0 %v927_v12  ;;  %619 = vmatprep.mubr.bf16.mxu0 %v831_v35  ;;  %v968_v46 = vld [vmem:[%s1066_s25 + $0xc0] ss:$8 sps:$4 sm:$0xff]   ;;  %v974_v48 = vld [vmem:[%s1066_s25 + $0xd0] ss:$8 sps:$4 sm:$0xff]   ;;  %v978_v49 = vld [vmem:[%s1066_s25 + $0xe4] ss:$8 sps:$4 sm:$0xff]  }
  0x28   : > { %v980_v50 = vld [vmem:[%s1066_s25 + $0xe0] ss:$8 sps:$4 sm:$0xff]   ;;  %v984_v51 = vld [vmem:[%s1066_s25 + $0xf4] ss:$8 sps:$4 sm:$0xff]   ;;  %v986_v52 = vld [vmem:[%s1066_s25 + $0xf0] ss:$8 sps:$4 sm:$0xff]  }
  0x29   : > { %635 = vmatpush1.bf16.msra.mxu1 %v959_v22  ;;  %v284_v58 = vld [vmem:[#allocation2] sm:$0xff]  ;;  %v285_v61 = vld [vmem:[#allocation2 + $0x8] sm:$0xff]  ;;  %v683_v7 = vsub.s32 (!%p881_p7), 0, %v682_v5  ;;  %v687_v8 = vsub.s32 (!%p881_p7), 1, %v682_v5 }
  0x2a   : > { %596 = vmatpush1.bf16.msra.mxu0 %v929_v15  ;;  %636 = vmatprep.subr.bf16.mxu1 %v963_v24  ;;  %v679_v6 = vld [vmem:[%s1137_s2] sm:$0x3] (!%p881_p7) }
  0x2b   : > { %597 = vmatprep.subr.bf16.mxu0 %v930_v16  ;;  %v684_v11 = vrot.slane (!%p881_p7), %v679_v6, %v683_v7  ;;  %v688_v12 = vrot.slane (!%p881_p7), %v679_v6, %v687_v8 }
  0x2d   : > { %637 = vmatpush1.bf16.msra.mxu1 %v965_v26 }
  0x2e   : > { %598 = vmatpush1.bf16.msra.mxu0 %v932_v19  ;;  %638 = vmatprep.subr.bf16.mxu1 %v969_v28 }
  0x2f   : > { %599 = vmatprep.subr.bf16.mxu0 %v933_v21 }
  0x31   : > { %639 = vmatpush1.bf16.msra.mxu1 %v971_v30 }
  0x32   : > { %600 = vmatpush1.bf16.msra.mxu0 %v935_v23  ;;  %640 = vmatprep.subr.bf16.mxu1 %v975_v32 }
  0x33   : > { %601 = vmatprep.subr.bf16.mxu0 %v936_v25 }
  0x35   : > { %641 = vmatpush1.bf16.msra.mxu1 %v977_v36 }
  0x36   : > { %602 = vmatpush1.bf16.msra.mxu0 %v938_v27  ;;  %642 = vmatprep.subr.bf16.mxu1 %v981_v38 }
  0x37   : > { %603 = vmatprep.subr.bf16.mxu0 %v942_v29 }
  0x39   : > { %643 = vmatpush1.bf16.msra.mxu1 %v983_v40 }
  0x3a   : > { %604 = vmatpush1.bf16.msra.mxu0 %v944_v31 }
  0x3b   : > { %605 = vmatprep.subr.bf16.mxu0 %v948_v33 }
  0x3c   : > { %661 = vmatmul.mubr.bf16.vlgmr.msra.gmra.mrb[0].mxu1 %v987_v43 }
  0x3e   : > { %606 = vmatpush1.bf16.msra.mxu0 %v950_v37 }
  0x3f   : > { %607 = vmatprep.subr.bf16.mxu0 %v954_v39 }
  0x42   : > { %608 = vmatpush1.bf16.msra.mxu0 %v956_v41 }
  0x43   : > { %609 = vmatprep.subr.bf16.mxu0 %v960_v42 }
  0x46   : > { %610 = vmatpush1.bf16.msra.mxu0 %v962_v44 }
  0x47   : > { %611 = vmatprep.subr.bf16.mxu0 %v966_v45 }
  0x4a   : > { %612 = vmatpush1.bf16.msra.mxu0 %v968_v46 }
  0x4b   : > { %613 = vmatprep.subr.bf16.mxu0 %v972_v47 }
  0x4e   : > { %614 = vmatpush1.bf16.msra.mxu0 %v974_v48 }
  0x4f   : > { %615 = vmatprep.subr.bf16.mxu0 %v978_v49 }
  0x52   : > { %616 = vmatpush1.bf16.msra.mxu0 %v980_v50 }
  0x53   : > { %617 = vmatprep.subr.bf16.mxu0 %v984_v51 }
  0x56   : > { %618 = vmatpush1.bf16.msra.mxu0 %v986_v52 }
  0x59   : > { %620 = vmatmul.mubr.bf16.vlgmr.msra.gmra.mrb[0].mxu0 %v830_v53 }
 0x10f   : > { %v662_v54 = vpop.f32.mrb[0].mxu1 }
 0x110   : > { %v664_v55 = vpop.f32.mrb[1].mxu1 }
 0x111   : > { %v666_v56 = vpop.f32.mrb[2].mxu1 }
 0x112   : > { %v667_v57 = vpop.f32.mrb[3].mxu1 }
 0x12c   : > { %v621_v59 = vpop.f32.mrb[0].mxu0  ;;  %676 = sbr.rel (%p881_p7) target bundleno = 321 (0x141), region = 40 }
 0x12d   : > { %v663_v60 = vadd.f32 %v662_v54, %v621_v59  ;;  %v623_v62 = vpop.f32.mrb[1].mxu0 }
 0x12e   : > { %v665_v63 = vadd.f32 %v664_v55, %v623_v62  ;;  %v625_v0 = vpop.f32.mrb[2].mxu0 }
 0x12f   : > { %v669_v1 = vadd.f32 %v663_v60, %v284_v58  ;;  %v626_v2 = vpop.f32.mrb[3].mxu0 }
 0x130   : > { %v670_v3 = vadd.f32 %v665_v63, %v285_v61 }
 0x131   : > { %671 = vst [vmem:[#allocation2] sm:$0xff] %v669_v1 }
 0x132   : > { %672 = vst [vmem:[#allocation2 + $0x8] sm:$0xff] %v670_v3 }
 0x138   : > { %v677_v9 = vld [vmem:[#allocation2] sm:$0xff] }
 0x139   : > { %v678_v10 = vld [vmem:[#allocation2 + $0x8] sm:$0xff]  ;;  %v691_v13 = vadd.f32 %v684_v11, %v677_v9 }
 0x13a   : > { %v692_v14 = vadd.f32 %v688_v12, %v678_v10 }
 0x13b   : > { %v693_v15 = vmax.f32 %v691_v13, 0.0 }
 0x13c   : > { %v694_v16 = vmax.f32 %v692_v14, 0.0 }
 0x13e   : > { %v888_v17 = vpack.c.bf16 %v694_v16, %v693_v15 }
 0x140   : > { %703 = vst [vmem:[%s1138_s3] sm:$0xff] %v888_v17 }
 0x141 PF: > { %s13_s14 = sadd.s32 1, %s1012_s14   ;;  %s1139_s12 = smov %s1008_s13 }
 0x142   : > { %p10_p8 = scmp.ge.s32.totalorder %s13_s14, 8   ;;  %s1140_s13 = smov %s1142_s15 }
 0x144   :  { %12 = sbr.rel (!%p10_p8) target bundleno = 2 (0x2), region = 76 }

// kernel: image_captioning_forward.50
= control target key start
LH: loop header
LB: loop body
LE: loop exit
PB: predicated region body
PF: predicated region fallthrough
CT: control target
= control target key end

     0   :  { %s1626_s15 = smov 0   ;;  %s1628_s16 = smov 0   ;;  %s1800_s0 = inlined_call_operand.vmem [shape: bf16[2,1,1,9,512], index: 0, kind: input, shape index: {}, may-alias: {0,4}]   ;;  %s1801_s1 = inlined_call_operand.vmem [shape: bf16[2,2304], index: 1, kind: input, shape index: {}]   ;;  %s1802_s2 = inlined_call_operand.vmem [shape: bf16[2304,512], index: 2, kind: input, shape index: {}]   ;;  %s1803_s3 = inlined_call_operand.vmem [shape: f32[1,512], index: 3, kind: input, shape index: {}]   ;;  %s1804_s4 = inlined_call_operand.vmem [shape: bf16[2,1,1,9,512], index: 4, kind: output, shape index: {}, may-alias: {0,4}]  }
   0x1   :  { %s1630_s17 = smov 0  }
   0x2 LB: > { %s1279_s0 = sadd.s32 4294967295, %s1595_s17   ;;  %s27_s18 = sadd.s32 1, %s1591_s16  ;;  %s1595_s17 = sphi %s1630_s17, %s15_s17   ;;  %s1591_s16 = sphi %s1628_s16, %s1806_s16   ;;  %s1587_s15 = sphi %s1626_s15, %s1805_s15  }
   0x3   : > { %p28_p0 = scmp.ge.s32.totalorder %s27_s18, 6  ;;  %p1283_p1 = scmp.ge.s32.totalorder %s1595_s17, 1 }
   0x4   : > { %p195_p2 = scmp.lt.s32.totalorder %s1595_s17, 7 }
   0x5   : > { %s1808_s18 = smov (%p28_p0, %s27_s18), 0 }
   0x6   : > { %p196_p3 = pnand %p1283_p1, %p195_p2 }
   0x7   : > { %s231_s19 = smul.u32 (!%p196_p3), 3, %s1587_s15  ;;  %p1286_p6 = scmp.ne.s32.totalorder (!%p196_p3), %s1587_s15, 0 }
   0x8   : > { %199 = sbr.rel (%p196_p3) target bundleno = 376 (0x178), region = 32 }
   0x9   : > { %s240_s20 = smul.u32 (!%p196_p3), 48, %s1587_s15  ;;  %p234_p4 = scmp.lt.s32.totalorder (!%p196_p3), %s231_s19, 17 }
   0xb   : > { %p242_p5 = scmp.lt.s32.totalorder (!%p196_p3), %s240_s20, 287 }
   0xf   : > { %s1810_s19 = smov (!%p234_p4, %s231_s19), 17  ;;  %s1812_s20 = smov (!%p242_p5, %s240_s20), 287 }
  0x10   : > { %s238_s23 = scalar_lea.vmem %s1801_s1, %s1810_s19  ;;  %s1392_s24 = sshll.u32 %s1812_s20, 4  ;;  %v1597_v0 = vmov (!%p1286_p6), 0.0  }
  0x11   : > { %s1658_s27 = scalar_lea.vmem %s1802_s2, %s1392_s24  ;;  %262 = sbr.rel (%p1286_p6) target bundleno = 24 (0x18), region = 36  ;;  %263 = vst [vmem:[#allocation2] sm:$0xff] (!%p1286_p6), %v1597_v0 }
  0x18 PF: > { %v1429_v1 = vld [vmem:[%s1658_s27 + $0x4] ss:$16 sps:$4 sm:$0xff]   ;;  %v1431_v2 = vld [vmem:[%s1658_s27 + $0xc] ss:$16 sps:$4 sm:$0xff]   ;;  %v1433_v3 = vld [vmem:[%s1658_s27] ss:$16 sps:$4 sm:$0xff]   ;;  %v374_v41 = vlaneseq }
  0x19   : > { %869 = vmatprep.subr.bf16.mxu0 %v1429_v1  ;;  %v1434_v4 = vld [vmem:[%s1658_s27 + $0x8] ss:$16 sps:$4 sm:$0xff]   ;;  %951 = vmatprep.subr.bf16.mxu1 %v1431_v2  ;;  %v1435_v5 = vld [vmem:[%s1658_s27 + $0x24] ss:$16 sps:$4 sm:$0xff]   ;;  %v1437_v6 = vld [vmem:[%s1658_s27 + $0x2c] ss:$16 sps:$4 sm:$0xff]  }
  0x1a   : > { %870 = vmatpush1.bf16.msra.mxu0 %v1433_v3  ;;  %952 = vmatpush1.bf16.msra.mxu1 %v1434_v4  ;;  %v1439_v7 = vld [vmem:[%s1658_s27 + $0x20] ss:$16 sps:$4 sm:$0xff]   ;;  %v1440_v8 = vld [vmem:[%s1658_s27 + $0x28] ss:$16 sps:$4 sm:$0xff]   ;;  %v1441_v9 = vld [vmem:[%s1658_s27 + $0x44] ss:$16 sps:$4 sm:$0xff]  }
  0x1b   : > { %871 = vmatprep.subr.bf16.mxu0 %v1435_v5  ;;  %953 = vmatprep.subr.bf16.mxu1 %v1437_v6  ;;  %v1443_v10 = vld [vmem:[%s1658_s27 + $0x4c] ss:$16 sps:$4 sm:$0xff]   ;;  %v1445_v11 = vld [vmem:[%s1658_s27 + $0x40] ss:$16 sps:$4 sm:$0xff]   ;;  %v1446_v12 = vld [vmem:[%s1658_s27 + $0x48] ss:$16 sps:$4 sm:$0xff]  }
  0x1c   : > { %v1447_v13 = vld [vmem:[%s1658_s27 + $0x64] ss:$16 sps:$4 sm:$0xff]   ;;  %v1449_v14 = vld [vmem:[%s1658_s27 + $0x6c] ss:$16 sps:$4 sm:$0xff]   ;;  %v1451_v15 = vld [vmem:[%s1658_s27 + $0x60] ss:$16 sps:$4 sm:$0xff]  }
  0x1d   : > { %v1452_v16 = vld [vmem:[%s1658_s27 + $0x68] ss:$16 sps:$4 sm:$0xff]   ;;  %v1453_v17 = vld [vmem:[%s1658_s27 + $0x84] ss:$16 sps:$4 sm:$0xff]   ;;  %v1455_v18 = vld [vmem:[%s1658_s27 + $0x8c] ss:$16 sps:$4 sm:$0xff]  }
  0x1e   : > { %872 = vmatpush1.bf16.msra.mxu0 %v1439_v7  ;;  %954 = vmatpush1.bf16.msra.mxu1 %v1440_v8  ;;  %v1457_v19 = vld [vmem:[%s1658_s27 + $0x80] ss:$16 sps:$4 sm:$0xff]   ;;  %v1458_v20 = vld [vmem:[%s1658_s27 + $0x88] ss:$16 sps:$4 sm:$0xff]   ;;  %v1459_v21 = vld [vmem:[%s1658_s27 + $0xa4] ss:$16 sps:$4 sm:$0xff]  }
  0x1f   : > { %873 = vmatprep.subr.bf16.mxu0 %v1441_v9  ;;  %955 = vmatprep.subr.bf16.mxu1 %v1443_v10  ;;  %v1461_v22 = vld [vmem:[%s1658_s27 + $0xac] ss:$16 sps:$4 sm:$0xff]   ;;  %v1463_v23 = vld [vmem:[%s1658_s27 + $0xa0] ss:$16 sps:$4 sm:$0xff]   ;;  %v1464_v24 = vld [vmem:[%s1658_s27 + $0xa8] ss:$16 sps:$4 sm:$0xff]  }
  0x20   : > { %v1465_v25 = vld [vmem:[%s1658_s27 + $0xc4] ss:$16 sps:$4 sm:$0xff]   ;;  %v1467_v26 = vld [vmem:[%s1658_s27 + $0xcc] ss:$16 sps:$4 sm:$0xff]   ;;  %v1469_v27 = vld [vmem:[%s1658_s27 + $0xc0] ss:$16 sps:$4 sm:$0xff]  }
  0x21   : > { %v1470_v28 = vld [vmem:[%s1658_s27 + $0xc8] ss:$16 sps:$4 sm:$0xff]   ;;  %v1471_v29 = vld [vmem:[%s1658_s27 + $0xe4] ss:$16 sps:$4 sm:$0xff]   ;;  %v1473_v30 = vld [vmem:[%s1658_s27 + $0xec] ss:$16 sps:$4 sm:$0xff]  }
  0x22   : > { %874 = vmatpush1.bf16.msra.mxu0 %v1445_v11  ;;  %956 = vmatpush1.bf16.msra.mxu1 %v1446_v12  ;;  %v1475_v31 = vld [vmem:[%s1658_s27 + $0xe0] ss:$16 sps:$4 sm:$0xff]   ;;  %v1476_v32 = vld [vmem:[%s1658_s27 + $0xe8] ss:$16 sps:$4 sm:$0xff]   ;;  %v1477_v33 = vld [vmem:[%s1658_s27 + $0x104] ss:$16 sps:$4 sm:$0xff]  }
  0x23   : > { %875 = vmatprep.subr.bf16.mxu0 %v1447_v13  ;;  %957 = vmatprep.subr.bf16.mxu1 %v1449_v14  ;;  %v1479_v34 = vld [vmem:[%s1658_s27 + $0x10c] ss:$16 sps:$4 sm:$0xff]   ;;  %v1481_v35 = vld [vmem:[%s1658_s27 + $0x100] ss:$16 sps:$4 sm:$0xff]   ;;  %v1482_v36 = vld [vmem:[%s1658_s27 + $0x108] ss:$16 sps:$4 sm:$0xff]  }
  0x24   : > { %v1483_v37 = vld [vmem:[%s1658_s27 + $0x124] ss:$16 sps:$4 sm:$0xff]   ;;  %v1485_v38 = vld [vmem:[%s1658_s27 + $0x12c] ss:$16 sps:$4 sm:$0xff]   ;;  %v1598_v39 = vmov 1966171168  }
  0x25   : > { %v372_v40 = vunpack.c.l.s4 %v1598_v39  ;;  %v1487_v42 = vld [vmem:[%s1658_s27 + $0x120] ss:$16 sps:$4 sm:$0xff]   ;;  %v1488_v43 = vld [vmem:[%s1658_s27 + $0x128] ss:$16 sps:$4 sm:$0xff]   ;;  %v1489_v44 = vld [vmem:[%s1658_s27 + $0x144] ss:$16 sps:$4 sm:$0xff]  }
  0x26   : > { %876 = vmatpush1.bf16.msra.mxu0 %v1451_v15  ;;  %958 = vmatpush1.bf16.msra.mxu1 %v1452_v16  ;;  %v1491_v45 = vld [vmem:[%s1658_s27 + $0x14c] ss:$16 sps:$4 sm:$0xff]   ;;  %v1703_v47 = vshrl.u32 %v374_v41, 7  ;;  %v1493_v48 = vld [vmem:[%s1658_s27 + $0x140] ss:$16 sps:$4 sm:$0xff]   ;;  %p1384_p7 = scmp.ne.s32.totalorder %s1587_s15, 5 }
  0x27   : > { %877 = vmatprep.subr.bf16.mxu0 %v1453_v17  ;;  %959 = vmatprep.subr.bf16.mxu1 %v1455_v18  ;;  %v373_v46 = vunpack.c.0.s8 %v372_v40  ;;  %v1494_v49 = vld [vmem:[%s1658_s27 + $0x148] ss:$16 sps:$4 sm:$0xff]   ;;  %v1495_v50 = vld [vmem:[%s1658_s27 + $0x164] ss:$16 sps:$4 sm:$0xff]   ;;  %v1497_v51 = vld [vmem:[%s1658_s27 + $0x16c] ss:$16 sps:$4 sm:$0xff]  }
  0x28   : > { %v1287_v53 = vld.sshfl [vmem:[%s238_s23] sm:$0x13 pattern:$0x75316420]  ;;  %v1500_v55 = vld [vmem:[%s1658_s27 + $0x168] ss:$16 sps:$4 sm:$0xff]  }
  0x29   : > { %v1710_v52 = vsub.s32 %v373_v46, %v1703_v47  ;;  %v1499_v54 = vld [vmem:[%s1658_s27 + $0x160] ss:$16 sps:$4 sm:$0xff]   ;;  %v370_v56 = vcombine.high %v1287_v53, %v1287_v53  ;;  %v1501_v57 = vld [vmem:[%s1658_s27 + $0x184] ss:$16 sps:$4 sm:$0xff]   ;;  %v1503_v58 = vld [vmem:[%s1658_s27 + $0x18c] ss:$16 sps:$4 sm:$0xff]  }
  0x2a   : > { %878 = vmatpush1.bf16.msra.mxu0 %v1457_v19  ;;  %960 = vmatpush1.bf16.msra.mxu1 %v1458_v20  ;;  %v1505_v60 = vld [vmem:[%s1658_s27 + $0x180] ss:$16 sps:$4 sm:$0xff]   ;;  %v1506_v61 = vld [vmem:[%s1658_s27 + $0x188] ss:$16 sps:$4 sm:$0xff]   ;;  %v1507_v62 = vld [vmem:[%s1658_s27 + $0x1a4] ss:$16 sps:$4 sm:$0xff]  }
  0x2b   : > { %879 = vmatprep.subr.bf16.mxu0 %v1459_v21  ;;  %961 = vmatprep.subr.bf16.mxu1 %v1461_v22  ;;  %v384_v59 = vrot.slane %v370_v56, %v1710_v52  ;;  %v1509_v63 = vld [vmem:[%s1658_s27 + $0x1ac] ss:$16 sps:$4 sm:$0xff]   ;;  %v1511_v0 = vld [vmem:[%s1658_s27 + $0x1a0] ss:$16 sps:$4 sm:$0xff]   ;;  %v1512_v1 = vld [vmem:[%s1658_s27 + $0x1a8] ss:$16 sps:$4 sm:$0xff]   ;;  %v1739_v12 = vrot.slane %v1287_v53, %v1710_v52 }
  0x2c   : > { %v1513_v2 = vld [vmem:[%s1658_s27 + $0x1c4] ss:$16 sps:$4 sm:$0xff]   ;;  %v1515_v3 = vld [vmem:[%s1658_s27 + $0x1cc] ss:$16 sps:$4 sm:$0xff]   ;;  %v1517_v4 = vld [vmem:[%s1658_s27 + $0x1c0] ss:$16 sps:$4 sm:$0xff]  }
  0x2d   : > { %901 = vmatprep.mubr.bf16.mxu0 %v384_v59  ;;  %983 = vmatprep.mubr.bf16.mxu1 %v384_v59  ;;  %v1518_v5 = vld [vmem:[%s1658_s27 + $0x1c8] ss:$16 sps:$4 sm:$0xff]   ;;  %v1519_v6 = vld [vmem:[%s1658_s27 + $0x1e4] ss:$16 sps:$4 sm:$0xff]   ;;  %v1521_v7 = vld [vmem:[%s1658_s27 + $0x1ec] ss:$16 sps:$4 sm:$0xff]  }
  0x2e   : > { %880 = vmatpush1.bf16.msra.mxu0 %v1463_v23  ;;  %962 = vmatpush1.bf16.msra.mxu1 %v1464_v24  ;;  %v1523_v8 = vld [vmem:[%s1658_s27 + $0x1e0] ss:$16 sps:$4 sm:$0xff]   ;;  %v1524_v9 = vld [vmem:[%s1658_s27 + $0x1e8] ss:$16 sps:$4 sm:$0xff]   ;;  %v1527_v10 = vld [vmem:[%s1658_s27 + $0x204] ss:$16 sps:$4 sm:$0xff]  }
  0x2f   : > { %881 = vmatprep.subr.bf16.mxu0 %v1465_v25  ;;  %963 = vmatprep.subr.bf16.mxu1 %v1467_v26  ;;  %v1530_v11 = vld [vmem:[%s1658_s27 + $0x20c] ss:$16 sps:$4 sm:$0xff]   ;;  %v1525_v13 = vld [vmem:[%s1658_s27 + $0x200] ss:$16 sps:$4 sm:$0xff]   ;;  %v1528_v14 = vld [vmem:[%s1658_s27 + $0x208] ss:$16 sps:$4 sm:$0xff]  }
  0x30   : > { %v1533_v15 = vld [vmem:[%s1658_s27 + $0x224] ss:$16 sps:$4 sm:$0xff]   ;;  %v1536_v16 = vld [vmem:[%s1658_s27 + $0x22c] ss:$16 sps:$4 sm:$0xff]   ;;  %v1531_v17 = vld [vmem:[%s1658_s27 + $0x220] ss:$16 sps:$4 sm:$0xff]  }
  0x31   : > { %v1534_v18 = vld [vmem:[%s1658_s27 + $0x228] ss:$16 sps:$4 sm:$0xff]   ;;  %v1539_v19 = vld [vmem:[%s1658_s27 + $0x244] ss:$16 sps:$4 sm:$0xff]   ;;  %v1542_v20 = vld [vmem:[%s1658_s27 + $0x24c] ss:$16 sps:$4 sm:$0xff]  }
  0x32   : > { %882 = vmatpush1.bf16.msra.mxu0 %v1469_v27  ;;  %964 = vmatpush1.bf16.msra.mxu1 %v1470_v28  ;;  %v1599_v21 = vmov 0   ;;  %v1537_v22 = vld [vmem:[%s1658_s27 + $0x240] ss:$16 sps:$4 sm:$0xff]   ;;  %v1540_v23 = vld [vmem:[%s1658_s27 + $0x248] ss:$16 sps:$4 sm:$0xff]  }
  0x33   : > { %883 = vmatprep.subr.bf16.mxu0 %v1471_v29  ;;  %965 = vmatprep.subr.bf16.mxu1 %v1473_v30  ;;  %v1545_v24 = vld [vmem:[%s1658_s27 + $0x264] ss:$16 sps:$4 sm:$0xff]   ;;  %v1548_v25 = vld [vmem:[%s1658_s27 + $0x26c] ss:$16 sps:$4 sm:$0xff]   ;;  %v1543_v26 = vld [vmem:[%s1658_s27 + $0x260] ss:$16 sps:$4 sm:$0xff]  }
  0x34   : > { %v1546_v27 = vld [vmem:[%s1658_s27 + $0x268] ss:$16 sps:$4 sm:$0xff]   ;;  %v1551_v28 = vld [vmem:[%s1658_s27 + $0x284] ss:$16 sps:$4 sm:$0xff]   ;;  %v1554_v29 = vld [vmem:[%s1658_s27 + $0x28c] ss:$16 sps:$4 sm:$0xff]  }
  0x35   : > { %v1549_v30 = vld [vmem:[%s1658_s27 + $0x280] ss:$16 sps:$4 sm:$0xff]   ;;  %v1564_v39 = vld [vmem:[%s1658_s27 + $0x2c8] ss:$16 sps:$4 sm:$0xff]   ;;  %v1569_v40 = vld [vmem:[%s1658_s27 + $0x2e4] ss:$16 sps:$4 sm:$0xff]  }
  0x36   : > { %884 = vmatpush1.bf16.msra.mxu0 %v1475_v31  ;;  %966 = vmatpush1.bf16.msra.mxu1 %v1476_v32  ;;  %v1552_v31 = vld [vmem:[%s1658_s27 + $0x288] ss:$16 sps:$4 sm:$0xff]   ;;  %v1557_v32 = vld [vmem:[%s1658_s27 + $0x2a4] ss:$16 sps:$4 sm:$0xff]   ;;  %v1572_v41 = vld [vmem:[%s1658_s27 + $0x2ec] ss:$16 sps:$4 sm:$0xff]  }
  0x37   : > { %885 = vmatprep.subr.bf16.mxu0 %v1477_v33  ;;  %967 = vmatprep.subr.bf16.mxu1 %v1479_v34  ;;  %v1560_v33 = vld [vmem:[%s1658_s27 + $0x2ac] ss:$16 sps:$4 sm:$0xff]   ;;  %v1555_v34 = vld [vmem:[%s1658_s27 + $0x2a0] ss:$16 sps:$4 sm:$0xff]  }
  0x3a   : > { %886 = vmatpush1.bf16.msra.mxu0 %v1481_v35  ;;  %968 = vmatpush1.bf16.msra.mxu1 %v1482_v36  ;;  %v1558_v35 = vld [vmem:[%s1658_s27 + $0x2a8] ss:$16 sps:$4 sm:$0xff]   ;;  %v1563_v36 = vld [vmem:[%s1658_s27 + $0x2c4] ss:$16 sps:$4 sm:$0xff]  }
  0x3b   : > { %887 = vmatprep.subr.bf16.mxu0 %v1483_v37  ;;  %969 = vmatprep.subr.bf16.mxu1 %v1485_v38  ;;  %v1566_v37 = vld [vmem:[%s1658_s27 + $0x2cc] ss:$16 sps:$4 sm:$0xff]   ;;  %v1561_v38 = vld [vmem:[%s1658_s27 + $0x2c0] ss:$16 sps:$4 sm:$0xff]  }
  0x3e   : > { %888 = vmatpush1.bf16.msra.mxu0 %v1487_v42  ;;  %970 = vmatpush1.bf16.msra.mxu1 %v1488_v43  ;;  %v1567_v42 = vld [vmem:[%s1658_s27 + $0x2e0] ss:$16 sps:$4 sm:$0xff]   ;;  %v1570_v43 = vld [vmem:[%s1658_s27 + $0x2e8] ss:$16 sps:$4 sm:$0xff]  }
  0x3f   : > { %889 = vmatprep.subr.bf16.mxu0 %v1489_v44  ;;  %971 = vmatprep.subr.bf16.mxu1 %v1491_v45  ;;  %v385_v44 = vcombine.high %v1739_v12, %v1739_v12  ;;  %v1600_v45 = vmov 1983009808  }
  0x40   : > { %v1040_v46 = vunpack.c.l.s4 %v1600_v45 }
  0x42   : > { %890 = vmatpush1.bf16.msra.mxu0 %v1493_v48  ;;  %972 = vmatpush1.bf16.msra.mxu1 %v1494_v49  ;;  %v1041_v48 = vunpack.c.0.s8 %v1040_v46 }
  0x43   : > { %891 = vmatprep.subr.bf16.mxu0 %v1495_v50  ;;  %973 = vmatprep.subr.bf16.mxu1 %v1497_v51 }
  0x44   : > { %v1044_v51 = vsub.s32 %v1041_v48, %v1703_v47 }
  0x46   : > { %892 = vmatpush1.bf16.msra.mxu0 %v1499_v54  ;;  %974 = vmatpush1.bf16.msra.mxu1 %v1500_v55 }
  0x47   : > { %893 = vmatprep.subr.bf16.mxu0 %v1501_v57  ;;  %975 = vmatprep.subr.bf16.mxu1 %v1503_v58 }
  0x4a   : > { %894 = vmatpush1.bf16.msra.mxu0 %v1505_v60  ;;  %976 = vmatpush1.bf16.msra.mxu1 %v1506_v61 }
  0x4b   : > { %895 = vmatprep.subr.bf16.mxu0 %v1507_v62  ;;  %977 = vmatprep.subr.bf16.mxu1 %v1509_v63  ;;  %v264_v63 = vld [vmem:[#allocation2] sm:$0xff] }
  0x4e   : > { %896 = vmatpush1.bf16.msra.mxu0 %v1511_v0  ;;  %978 = vmatpush1.bf16.msra.mxu1 %v1512_v1 }
  0x4f   : > { %897 = vmatprep.subr.bf16.mxu0 %v1513_v2  ;;  %979 = vmatprep.subr.bf16.mxu1 %v1515_v3  ;;  %v1062_v2 = vld [vmem:[%s1803_s3] sm:$0xf] (!%p1384_p7)  ;;  %v1066_v3 = vsub.s32 (!%p1384_p7), 0, %v1703_v47 }
  0x52   : > { %898 = vmatpush1.bf16.msra.mxu0 %v1517_v4  ;;  %980 = vmatpush1.bf16.msra.mxu1 %v1518_v5  ;;  %v1070_v4 = vsub.s32 (!%p1384_p7), 1, %v1703_v47  ;;  %v1074_v5 = vsub.s32 (!%p1384_p7), 2, %v1703_v47 }
  0x53   : > { %899 = vmatprep.subr.bf16.mxu0 %v1519_v6  ;;  %981 = vmatprep.subr.bf16.mxu1 %v1521_v7  ;;  %v1078_v6 = vsub.s32 (!%p1384_p7), 3, %v1703_v47  ;;  %v1067_v7 = vrot.slane (!%p1384_p7), %v1062_v2, %v1066_v3 }
  0x56   : > { %900 = vmatpush1.bf16.msra.mxu0 %v1523_v8  ;;  %982 = vmatpush1.bf16.msra.mxu1 %v1524_v9  ;;  %v1071_v8 = vrot.slane (!%p1384_p7), %v1062_v2, %v1070_v4  ;;  %v1075_v9 = vrot.slane (!%p1384_p7), %v1062_v2, %v1074_v5 }
  0x57   : > { %910 = vmatprep.subr.bf16.mxu0 %v1527_v10  ;;  %992 = vmatprep.subr.bf16.mxu1 %v1530_v11  ;;  %v1079_v10 = vrot.slane (!%p1384_p7), %v1062_v2, %v1078_v6 }
  0x58   : > { %v1080_v11 = vcombine.low (!%p1384_p7), %v1067_v7, %v1071_v8 }
  0x59   : > { %902 = vmatmul.mubr.bf16.vlgmr.msra.gmra.mrb[0].mxu0 %v1739_v12  ;;  %984 = vmatmul.mubr.bf16.vlgmr.msra.gmra.mrb[0].mxu1 %v1739_v12  ;;  %v1081_v12 = vcombine.low (!%p1384_p7), %v1075_v9, %v1079_v10 }
  0x5a   : > { %911 = vmatpush1.bf16.msra.mxu0 %v1525_v13  ;;  %993 = vmatpush1.bf16.msra.mxu1 %v1528_v14  ;;  %v1088_v13 = vrot.slane (!%p1384_p7), %v1080_v11, %v1044_v51 }
  0x5b   : > { %912 = vmatprep.subr.bf16.mxu0 %v1533_v15  ;;  %994 = vmatprep.subr.bf16.mxu1 %v1536_v16  ;;  %v1095_v14 = vrot.slane (!%p1384_p7), %v1081_v12, %v1044_v51 }
  0x5c   : > { %942 = vmatprep.mubr.bf16.mxu0 %v1599_v21  ;;  %1024 = vmatprep.mubr.bf16.mxu1 %v1599_v21 }
  0x5d   : > { %v1096_v16 = vcombine.low (!%p1384_p7), %v1088_v13, %v1095_v14 }
  0x5e   : > { %913 = vmatpush1.bf16.msra.mxu0 %v1531_v17  ;;  %995 = vmatpush1.bf16.msra.mxu1 %v1534_v18 }
  0x5f   : > { %914 = vmatprep.subr.bf16.mxu0 %v1539_v19  ;;  %996 = vmatprep.subr.bf16.mxu1 %v1542_v20 }
  0x62   : > { %915 = vmatpush1.bf16.msra.mxu0 %v1537_v22  ;;  %997 = vmatpush1.bf16.msra.mxu1 %v1540_v23 }
  0x63   : > { %916 = vmatprep.subr.bf16.mxu0 %v1545_v24  ;;  %998 = vmatprep.subr.bf16.mxu1 %v1548_v25 }
  0x66   : > { %917 = vmatpush1.bf16.msra.mxu0 %v1543_v26  ;;  %999 = vmatpush1.bf16.msra.mxu1 %v1546_v27 }
  0x67   : > { %918 = vmatprep.subr.bf16.mxu0 %v1551_v28  ;;  %1000 = vmatprep.subr.bf16.mxu1 %v1554_v29 }
  0x6a   : > { %919 = vmatpush1.bf16.msra.mxu0 %v1549_v30  ;;  %1001 = vmatpush1.bf16.msra.mxu1 %v1552_v31 }
  0x6b   : > { %920 = vmatprep.subr.bf16.mxu0 %v1557_v32  ;;  %1002 = vmatprep.subr.bf16.mxu1 %v1560_v33 }
  0x6e   : > { %921 = vmatpush1.bf16.msra.mxu0 %v1555_v34  ;;  %1003 = vmatpush1.bf16.msra.mxu1 %v1558_v35 }
  0x6f   : > { %922 = vmatprep.subr.bf16.mxu0 %v1563_v36  ;;  %1004 = vmatprep.subr.bf16.mxu1 %v1566_v37 }
  0x72   : > { %923 = vmatpush1.bf16.msra.mxu0 %v1561_v38  ;;  %1005 = vmatpush1.bf16.msra.mxu1 %v1564_v39 }
  0x73   : > { %924 = vmatprep.subr.bf16.mxu0 %v1569_v40  ;;  %1006 = vmatprep.subr.bf16.mxu1 %v1572_v41 }
  0x76   : > { %925 = vmatpush1.bf16.msra.mxu0 %v1567_v42  ;;  %1007 = vmatpush1.bf16.msra.mxu1 %v1570_v43 }
  0x79   : > { %943 = vmatmul.mubr.bf16.vlgmr.msra.gmra.mrb[0].mxu0 %v385_v44  ;;  %1025 = vmatmul.mubr.bf16.vlgmr.msra.gmra.mrb[0].mxu1 %v385_v44 }
 0x14c   : > { %v944_v49 = vpop.f32.mrb[0].mxu0  ;;  %v1026_v50 = vpop.f32.mrb[0].mxu1 }
 0x14d   : > { %v946_v53 = vpop.f32.mrb[1].mxu0  ;;  %v1028_v54 = vpop.f32.mrb[1].mxu1 }
 0x14e   : > { %v1037_v55 = vcombine.low %v944_v49, %v946_v53  ;;  %v1038_v56 = vcombine.low %v1026_v50, %v1028_v54  ;;  %v948_v57 = vpop.f32.mrb[2].mxu0  ;;  %v1030_v58 = vpop.f32.mrb[2].mxu1 }
 0x14f   : > { %v949_v59 = vpop.f32.mrb[3].mxu0  ;;  %v1031_v60 = vpop.f32.mrb[3].mxu1 }
 0x150   : > { %v1045_v61 = vrot.slane %v1037_v55, %v1044_v51  ;;  %v1052_v62 = vrot.slane %v1038_v56, %v1044_v51  ;;  %1060 = sbr.rel (%p1384_p7) target bundleno = 367 (0x16f), region = 40 }
 0x152   : > { %v1053_v0 = vcombine.low %v1045_v61, %v1052_v62 }
 0x154   : > { %v1055_v1 = vadd.f32 %v1053_v0, %v264_v63 }
 0x156   : > { %1056 = vst [vmem:[#allocation2] sm:$0xff] %v1055_v1 }
 0x15d   : > { %v1061_v15 = vld [vmem:[#allocation2] sm:$0xff] }
 0x15e   : > { %v1098_v17 = vadd.f32 %v1096_v16, %v1061_v15 }
 0x160   : > { %v1099_v18 = vmax.f32 %v1098_v17, 0.0 }
 0x162   : > { %v1101_v19 = vcombine.high %v1099_v18, %v1099_v18  ;;  %v1108_v20 = vrot.slane %v1099_v18, %v1044_v51 }
 0x164   : > { %v1115_v21 = vrot.slane %v1101_v19, %v1044_v51  ;;  %v1116_v22 = vcombine.high %v1108_v20, %v1108_v20 }
 0x166   : > { %v1117_v23 = vcombine.high %v1115_v21, %v1115_v21  ;;  %v1385_v24 = vpack.c.bf16 %v1116_v22, %v1108_v20 }
 0x168   : > { %v1386_v25 = vpack.c.bf16 %v1117_v23, %v1115_v21  ;;  %v1138_v47 = vrot.slane %v1385_v24, %v1710_v52 }
 0x16a   : > { %v1145_v26 = vrot.slane %v1386_v25, %v1710_v52 }
 0x16c   : > { %v1146_v27 = vcombine.low %v1138_v47, %v1145_v26 }
 0x16e   : > { %1387 = vst.sshfl [vmem:[#allocation3] sm:$0x55 pattern:$0x73625140] %v1146_v27 }
 0x16f PF: > { %p1388_p8 = scmp.ne.s32.totalorder %s1279_s0, 5 }
 0x171   : > { %1158 = sbr.rel (%p1388_p8) target bundleno = 376 (0x178), region = 44 }
 0x175   : > { %v1178_v28 = vld [vmem:[#allocation3] sm:$0xf] (!%p1388_p8) }
 0x176   : > { %1389 = vst [vmem:[%s1804_s4 + $0x10] sm:$0xf] (!%p1388_p8), %v1178_v28 }
 0x178 PF: > { %s15_s17 = sadd.s32 1, %s1595_s17   ;;  %s1805_s15 = smov %s1591_s16 }
 0x179   : > { %p12_p9 = scmp.ge.s32.totalorder %s15_s17, 8   ;;  %s1806_s16 = smov %s1808_s18 }
 0x17b   :  { %14 = sbr.rel (!%p12_p9) target bundleno = 2 (0x2), region = 108 }

// kernel: image_captioning_forward.42
= control target key start
LH: loop header
LB: loop body
LE: loop exit
PB: predicated region body
PF: predicated region fallthrough
CT: control target
= control target key end

     0   :  { %v803_v38 = vmov 1966171168   ;;  %v97_v40 = vlaneseq  ;;  %s1040_s1 = inlined_call_operand.vmem [shape: bf16[256,512], index: 1, kind: input, shape index: {}]   ;;  %s1041_s0 = inlined_call_operand.vmem [shape: bf16[2,256], index: 0, kind: input, shape index: {}]   ;;  %s1042_s2 = inlined_call_operand.vmem [shape: f32[1,512], index: 2, kind: input, shape index: {}]   ;;  %s1043_s3 = inlined_call_operand.vmem [shape: bf16[2,512], index: 3, kind: output, shape index: {}]  }
   0x1   :  { %v707_v0 = vld [vmem:[%s1040_s1 + $0x4] ss:$16 sps:$4 sm:$0xff]   ;;  %v709_v1 = vld [vmem:[%s1040_s1 + $0xc] ss:$16 sps:$4 sm:$0xff]   ;;  %v711_v2 = vld [vmem:[%s1040_s1] ss:$16 sps:$4 sm:$0xff]   ;;  %v95_v39 = vunpack.c.l.s4 %v803_v38 }
   0x2   :  { %430 = vmatprep.subr.bf16.mxu0 %v707_v0  ;;  %v712_v3 = vld [vmem:[%s1040_s1 + $0x8] ss:$16 sps:$4 sm:$0xff]   ;;  %471 = vmatprep.subr.bf16.mxu1 %v709_v1  ;;  %v713_v4 = vld [vmem:[%s1040_s1 + $0x24] ss:$16 sps:$4 sm:$0xff]   ;;  %v715_v5 = vld [vmem:[%s1040_s1 + $0x2c] ss:$16 sps:$4 sm:$0xff]  }
   0x3   :  { %431 = vmatpush1.bf16.msra.mxu0 %v711_v2  ;;  %472 = vmatpush1.bf16.msra.mxu1 %v712_v3  ;;  %v717_v6 = vld [vmem:[%s1040_s1 + $0x20] ss:$16 sps:$4 sm:$0xff]   ;;  %v718_v7 = vld [vmem:[%s1040_s1 + $0x28] ss:$16 sps:$4 sm:$0xff]   ;;  %v719_v8 = vld [vmem:[%s1040_s1 + $0x44] ss:$16 sps:$4 sm:$0xff]   ;;  %v96_v45 = vunpack.c.0.s8 %v95_v39 }
   0x4   :  { %432 = vmatprep.subr.bf16.mxu0 %v713_v4  ;;  %473 = vmatprep.subr.bf16.mxu1 %v715_v5  ;;  %v721_v9 = vld [vmem:[%s1040_s1 + $0x4c] ss:$16 sps:$4 sm:$0xff]   ;;  %v723_v10 = vld [vmem:[%s1040_s1 + $0x40] ss:$16 sps:$4 sm:$0xff]   ;;  %v724_v11 = vld [vmem:[%s1040_s1 + $0x48] ss:$16 sps:$4 sm:$0xff]  }
   0x5   :  { %v725_v12 = vld [vmem:[%s1040_s1 + $0x64] ss:$16 sps:$4 sm:$0xff]   ;;  %v727_v13 = vld [vmem:[%s1040_s1 + $0x6c] ss:$16 sps:$4 sm:$0xff]   ;;  %v729_v14 = vld [vmem:[%s1040_s1 + $0x60] ss:$16 sps:$4 sm:$0xff]  }
   0x6   :  { %v730_v15 = vld [vmem:[%s1040_s1 + $0x68] ss:$16 sps:$4 sm:$0xff]   ;;  %v731_v16 = vld [vmem:[%s1040_s1 + $0x84] ss:$16 sps:$4 sm:$0xff]   ;;  %v733_v17 = vld [vmem:[%s1040_s1 + $0x8c] ss:$16 sps:$4 sm:$0xff]  }
   0x7   :  { %433 = vmatpush1.bf16.msra.mxu0 %v717_v6  ;;  %474 = vmatpush1.bf16.msra.mxu1 %v718_v7  ;;  %v735_v18 = vld [vmem:[%s1040_s1 + $0x80] ss:$16 sps:$4 sm:$0xff]   ;;  %v736_v19 = vld [vmem:[%s1040_s1 + $0x88] ss:$16 sps:$4 sm:$0xff]   ;;  %v737_v20 = vld [vmem:[%s1040_s1 + $0xa4] ss:$16 sps:$4 sm:$0xff]  }
   0x8   :  { %434 = vmatprep.subr.bf16.mxu0 %v719_v8  ;;  %475 = vmatprep.subr.bf16.mxu1 %v721_v9  ;;  %v739_v21 = vld [vmem:[%s1040_s1 + $0xac] ss:$16 sps:$4 sm:$0xff]   ;;  %v741_v22 = vld [vmem:[%s1040_s1 + $0xa0] ss:$16 sps:$4 sm:$0xff]   ;;  %v742_v23 = vld [vmem:[%s1040_s1 + $0xa8] ss:$16 sps:$4 sm:$0xff]  }
   0x9   :  { %v743_v24 = vld [vmem:[%s1040_s1 + $0xc4] ss:$16 sps:$4 sm:$0xff]   ;;  %v745_v25 = vld [vmem:[%s1040_s1 + $0xcc] ss:$16 sps:$4 sm:$0xff]   ;;  %v747_v26 = vld [vmem:[%s1040_s1 + $0xc0] ss:$16 sps:$4 sm:$0xff]  }
   0xa   :  { %v748_v27 = vld [vmem:[%s1040_s1 + $0xc8] ss:$16 sps:$4 sm:$0xff]   ;;  %v749_v28 = vld [vmem:[%s1040_s1 + $0xe4] ss:$16 sps:$4 sm:$0xff]   ;;  %v751_v29 = vld [vmem:[%s1040_s1 + $0xec] ss:$16 sps:$4 sm:$0xff]  }
   0xb   :  { %435 = vmatpush1.bf16.msra.mxu0 %v723_v10  ;;  %476 = vmatpush1.bf16.msra.mxu1 %v724_v11  ;;  %v753_v30 = vld [vmem:[%s1040_s1 + $0xe0] ss:$16 sps:$4 sm:$0xff]   ;;  %v754_v31 = vld [vmem:[%s1040_s1 + $0xe8] ss:$16 sps:$4 sm:$0xff]   ;;  %v755_v32 = vld [vmem:[%s1040_s1 + $0x104] ss:$16 sps:$4 sm:$0xff]  }
   0xc   :  { %436 = vmatprep.subr.bf16.mxu0 %v725_v12  ;;  %477 = vmatprep.subr.bf16.mxu1 %v727_v13  ;;  %v757_v33 = vld [vmem:[%s1040_s1 + $0x10c] ss:$16 sps:$4 sm:$0xff]   ;;  %v759_v34 = vld [vmem:[%s1040_s1 + $0x100] ss:$16 sps:$4 sm:$0xff]   ;;  %v760_v35 = vld [vmem:[%s1040_s1 + $0x108] ss:$16 sps:$4 sm:$0xff]  }
   0xd   :  { %v761_v36 = vld [vmem:[%s1040_s1 + $0x124] ss:$16 sps:$4 sm:$0xff]   ;;  %v763_v37 = vld [vmem:[%s1040_s1 + $0x12c] ss:$16 sps:$4 sm:$0xff]   ;;  %v765_v41 = vld [vmem:[%s1040_s1 + $0x120] ss:$16 sps:$4 sm:$0xff]  }
   0xe   :  { %v766_v42 = vld [vmem:[%s1040_s1 + $0x128] ss:$16 sps:$4 sm:$0xff]   ;;  %v767_v43 = vld [vmem:[%s1040_s1 + $0x144] ss:$16 sps:$4 sm:$0xff]   ;;  %v769_v44 = vld [vmem:[%s1040_s1 + $0x14c] ss:$16 sps:$4 sm:$0xff]  }
   0xf   :  { %437 = vmatpush1.bf16.msra.mxu0 %v729_v14  ;;  %478 = vmatpush1.bf16.msra.mxu1 %v730_v15  ;;  %v951_v46 = vshrl.u32 %v97_v40, 7  ;;  %v771_v47 = vld [vmem:[%s1040_s1 + $0x140] ss:$16 sps:$4 sm:$0xff]   ;;  %v772_v48 = vld [vmem:[%s1040_s1 + $0x148] ss:$16 sps:$4 sm:$0xff]  }
  0x10   :  { %438 = vmatprep.subr.bf16.mxu0 %v731_v16  ;;  %479 = vmatprep.subr.bf16.mxu1 %v733_v17  ;;  %v773_v49 = vld [vmem:[%s1040_s1 + $0x164] ss:$16 sps:$4 sm:$0xff]   ;;  %v775_v50 = vld [vmem:[%s1040_s1 + $0x16c] ss:$16 sps:$4 sm:$0xff]   ;;  %v777_v53 = vld [vmem:[%s1040_s1 + $0x160] ss:$16 sps:$4 sm:$0xff]  }
  0x11   :  { %v966_v51 = vsub.s32 %v96_v45, %v951_v46  ;;  %v637_v52 = vld.sshfl [vmem:[%s1041_s0] sm:$0x11 pattern:$0x75316420]  ;;  %v778_v54 = vld [vmem:[%s1040_s1 + $0x168] ss:$16 sps:$4 sm:$0xff]  }
  0x12   :  { %v93_v55 = vcombine.high %v637_v52, %v637_v52  ;;  %v779_v56 = vld [vmem:[%s1040_s1 + $0x184] ss:$16 sps:$4 sm:$0xff]   ;;  %v781_v57 = vld [vmem:[%s1040_s1 + $0x18c] ss:$16 sps:$4 sm:$0xff]   ;;  %v783_v59 = vld [vmem:[%s1040_s1 + $0x180] ss:$16 sps:$4 sm:$0xff]  }
  0x13   :  { %439 = vmatpush1.bf16.msra.mxu0 %v735_v18  ;;  %480 = vmatpush1.bf16.msra.mxu1 %v736_v19  ;;  %v784_v60 = vld [vmem:[%s1040_s1 + $0x188] ss:$16 sps:$4 sm:$0xff]   ;;  %v785_v61 = vld [vmem:[%s1040_s1 + $0x1a4] ss:$16 sps:$4 sm:$0xff]   ;;  %v787_v62 = vld [vmem:[%s1040_s1 + $0x1ac] ss:$16 sps:$4 sm:$0xff]   ;;  %v100_v9 = vrot.slane %v637_v52, %v966_v51 }
  0x14   :  { %440 = vmatprep.subr.bf16.mxu0 %v737_v20  ;;  %481 = vmatprep.subr.bf16.mxu1 %v739_v21  ;;  %v107_v58 = vrot.slane %v93_v55, %v966_v51  ;;  %v789_v63 = vld [vmem:[%s1040_s1 + $0x1a0] ss:$16 sps:$4 sm:$0xff]   ;;  %v790_v0 = vld [vmem:[%s1040_s1 + $0x1a8] ss:$16 sps:$4 sm:$0xff]   ;;  %v791_v1 = vld [vmem:[%s1040_s1 + $0x1c4] ss:$16 sps:$4 sm:$0xff]  }
  0x15   :  { %v793_v2 = vld [vmem:[%s1040_s1 + $0x1cc] ss:$16 sps:$4 sm:$0xff]   ;;  %v795_v3 = vld [vmem:[%s1040_s1 + $0x1c0] ss:$16 sps:$4 sm:$0xff]   ;;  %v796_v4 = vld [vmem:[%s1040_s1 + $0x1c8] ss:$16 sps:$4 sm:$0xff]  }
  0x16   :  { %462 = vmatprep.mubr.bf16.mxu0 %v107_v58  ;;  %503 = vmatprep.mubr.bf16.mxu1 %v107_v58  ;;  %v797_v5 = vld [vmem:[%s1040_s1 + $0x1e4] ss:$16 sps:$4 sm:$0xff]   ;;  %v799_v6 = vld [vmem:[%s1040_s1 + $0x1ec] ss:$16 sps:$4 sm:$0xff]   ;;  %v801_v7 = vld [vmem:[%s1040_s1 + $0x1e0] ss:$16 sps:$4 sm:$0xff]  }
  0x17   :  { %441 = vmatpush1.bf16.msra.mxu0 %v741_v22  ;;  %482 = vmatpush1.bf16.msra.mxu1 %v742_v23  ;;  %v802_v8 = vld [vmem:[%s1040_s1 + $0x1e8] ss:$16 sps:$4 sm:$0xff]   ;;  %v804_v10 = vmov 1983009808   ;;  %v544_v12 = vsub.s32 0, %v951_v46  ;;  %v548_v13 = vsub.s32 1, %v951_v46 }
  0x18   :  { %442 = vmatprep.subr.bf16.mxu0 %v743_v24  ;;  %483 = vmatprep.subr.bf16.mxu1 %v745_v25  ;;  %v519_v11 = vunpack.c.l.s4 %v804_v10  ;;  %v552_v14 = vsub.s32 2, %v951_v46  ;;  %v556_v15 = vsub.s32 3, %v951_v46  ;;  %v540_v16 = vld [vmem:[%s1042_s2] sm:$0xf] }
  0x19   :  { %v545_v18 = vrot.slane %v540_v16, %v544_v12  ;;  %v549_v19 = vrot.slane %v540_v16, %v548_v13 }
  0x1a   :  { %v520_v17 = vunpack.c.0.s8 %v519_v11  ;;  %v553_v20 = vrot.slane %v540_v16, %v552_v14  ;;  %v557_v21 = vrot.slane %v540_v16, %v556_v15 }
  0x1b   :  { %443 = vmatpush1.bf16.msra.mxu0 %v747_v26  ;;  %484 = vmatpush1.bf16.msra.mxu1 %v748_v27  ;;  %v558_v23 = vcombine.low %v545_v18, %v549_v19 }
  0x1c   :  { %444 = vmatprep.subr.bf16.mxu0 %v749_v28  ;;  %485 = vmatprep.subr.bf16.mxu1 %v751_v29  ;;  %v523_v22 = vsub.s32 %v520_v17, %v951_v46  ;;  %v559_v24 = vcombine.low %v553_v20, %v557_v21 }
  0x1e   :  { %v566_v27 = vrot.slane %v558_v23, %v523_v22  ;;  %v573_v28 = vrot.slane %v559_v24, %v523_v22 }
  0x1f   :  { %445 = vmatpush1.bf16.msra.mxu0 %v753_v30  ;;  %486 = vmatpush1.bf16.msra.mxu1 %v754_v31 }
  0x20   :  { %446 = vmatprep.subr.bf16.mxu0 %v755_v32  ;;  %487 = vmatprep.subr.bf16.mxu1 %v757_v33  ;;  %v574_v39 = vcombine.low %v566_v27, %v573_v28 }
  0x23   :  { %447 = vmatpush1.bf16.msra.mxu0 %v759_v34  ;;  %488 = vmatpush1.bf16.msra.mxu1 %v760_v35 }
  0x24   :  { %448 = vmatprep.subr.bf16.mxu0 %v761_v36  ;;  %489 = vmatprep.subr.bf16.mxu1 %v763_v37 }
  0x27   :  { %449 = vmatpush1.bf16.msra.mxu0 %v765_v41  ;;  %490 = vmatpush1.bf16.msra.mxu1 %v766_v42 }
  0x28   :  { %450 = vmatprep.subr.bf16.mxu0 %v767_v43  ;;  %491 = vmatprep.subr.bf16.mxu1 %v769_v44 }
  0x2b   :  { %451 = vmatpush1.bf16.msra.mxu0 %v771_v47  ;;  %492 = vmatpush1.bf16.msra.mxu1 %v772_v48 }
  0x2c   :  { %452 = vmatprep.subr.bf16.mxu0 %v773_v49  ;;  %493 = vmatprep.subr.bf16.mxu1 %v775_v50 }
  0x2f   :  { %453 = vmatpush1.bf16.msra.mxu0 %v777_v53  ;;  %494 = vmatpush1.bf16.msra.mxu1 %v778_v54 }
  0x30   :  { %454 = vmatprep.subr.bf16.mxu0 %v779_v56  ;;  %495 = vmatprep.subr.bf16.mxu1 %v781_v57 }
  0x33   :  { %455 = vmatpush1.bf16.msra.mxu0 %v783_v59  ;;  %496 = vmatpush1.bf16.msra.mxu1 %v784_v60 }
  0x34   :  { %456 = vmatprep.subr.bf16.mxu0 %v785_v61  ;;  %497 = vmatprep.subr.bf16.mxu1 %v787_v62 }
  0x37   :  { %457 = vmatpush1.bf16.msra.mxu0 %v789_v63  ;;  %498 = vmatpush1.bf16.msra.mxu1 %v790_v0 }
  0x38   :  { %458 = vmatprep.subr.bf16.mxu0 %v791_v1  ;;  %499 = vmatprep.subr.bf16.mxu1 %v793_v2 }
  0x3b   :  { %459 = vmatpush1.bf16.msra.mxu0 %v795_v3  ;;  %500 = vmatpush1.bf16.msra.mxu1 %v796_v4 }
  0x3c   :  { %460 = vmatprep.subr.bf16.mxu0 %v797_v5  ;;  %501 = vmatprep.subr.bf16.mxu1 %v799_v6 }
  0x3f   :  { %461 = vmatpush1.bf16.msra.mxu0 %v801_v7  ;;  %502 = vmatpush1.bf16.msra.mxu1 %v802_v8 }
  0x42   :  { %463 = vmatmul.mubr.bf16.vlgmr.msra.gmra.mrb[0].mxu0 %v100_v9  ;;  %504 = vmatmul.mubr.bf16.vlgmr.msra.gmra.mrb[0].mxu1 %v100_v9 }
 0x115   :  { %v464_v25 = vpop.f32.mrb[0].mxu0  ;;  %v505_v26 = vpop.f32.mrb[0].mxu1 }
 0x116   :  { %v466_v29 = vpop.f32.mrb[1].mxu0  ;;  %v507_v30 = vpop.f32.mrb[1].mxu1 }
 0x117   :  { %v516_v31 = vcombine.low %v464_v25, %v466_v29  ;;  %v517_v32 = vcombine.low %v505_v26, %v507_v30  ;;  %v468_v33 = vpop.f32.mrb[2].mxu0  ;;  %v509_v34 = vpop.f32.mrb[2].mxu1 }
 0x118   :  { %v469_v35 = vpop.f32.mrb[3].mxu0  ;;  %v510_v36 = vpop.f32.mrb[3].mxu1 }
 0x119   :  { %v524_v37 = vrot.slane %v516_v31, %v523_v22  ;;  %v531_v38 = vrot.slane %v517_v32, %v523_v22 }
 0x11b   :  { %v532_v40 = vcombine.low %v524_v37, %v531_v38 }
 0x11d   :  { %v576_v41 = vadd.f32 %v574_v39, %v532_v40 }
 0x11f   :  { %v578_v42 = vcombine.high %v576_v41, %v576_v41  ;;  %v585_v43 = vrot.slane %v576_v41, %v523_v22 }
 0x121   :  { %v592_v44 = vrot.slane %v578_v42, %v523_v22  ;;  %v593_v45 = vcombine.high %v585_v43, %v585_v43 }
 0x123   :  { %v594_v46 = vcombine.high %v592_v44, %v592_v44  ;;  %v702_v47 = vpack.c.bf16 %v593_v45, %v585_v43 }
 0x125   :  { %v703_v48 = vpack.c.bf16 %v594_v46, %v592_v44  ;;  %v615_v49 = vrot.slane %v702_v47, %v966_v51 }
 0x127   :  { %v622_v50 = vrot.slane %v703_v48, %v966_v51 }
 0x129   :  { %v623_v52 = vcombine.low %v615_v49, %v622_v50 }
 0x12b   :  { %704 = vst.sshfl [vmem:[%s1043_s3] sm:$0x55 pattern:$0x73625140] %v623_v52 }

// kernel: image_captioning_forward.43
= control target key start
LH: loop header
LB: loop body
LE: loop exit
PB: predicated region body
PF: predicated region fallthrough
CT: control target
= control target key end

     0   :  { %s1980_s15 = smov 0   ;;  %s1982_s16 = smov 0   ;;  %s2186_s0 = inlined_call_operand.vmem [shape: bf16[2,4608], index: 0, kind: input, shape index: {}]   ;;  %s2187_s1 = inlined_call_operand.vmem [shape: bf16[4608,512], index: 1, kind: input, shape index: {}]   ;;  %s2188_s2 = inlined_call_operand.vmem [shape: f32[1,512], index: 2, kind: input, shape index: {}]   ;;  %s2189_s3 = inlined_call_operand.vmem [shape: bf16[2,512], index: 3, kind: input, shape index: {}]   ;;  %s2190_s4 = inlined_call_operand.vmem [shape: bf16[2,512], index: 4, kind: output, shape index: {}]  }
   0x1   :  { %s1984_s17 = smov 0  }
   0x2 LB: > { %s26_s18 = sadd.s32 1, %s1946_s16  ;;  %p1557_p0 = scmp.ge.s32.totalorder %s1950_s17, 1  ;;  %s1950_s17 = sphi %s1984_s17, %s14_s17   ;;  %s1946_s16 = sphi %s1982_s16, %s2192_s16   ;;  %s1942_s15 = sphi %s1980_s15, %s2191_s15  }
   0x3   : > { %p27_p1 = scmp.ge.s32.totalorder %s26_s18, 9  ;;  %p234_p2 = scmp.lt.s32.totalorder %s1950_s17, 10 }
   0x5   : > { %s2194_s18 = smov (%p27_p1, %s26_s18), 0  ;;  %p235_p3 = pnand %p1557_p0, %p234_p2 }
   0x6   : > { %s1558_s19 = sshll.u32 (!%p235_p3), %s1942_s15, 2  ;;  %s1559_s20 = sshll.u32 (!%p235_p3), %s1942_s15, 6 }
   0x7   : > { %238 = sbr.rel (%p235_p3) target bundleno = 400 (0x190), region = 36  ;;  %p291_p4 = scmp.lt.s32.totalorder (!%p235_p3), %s1558_s19, 35 }
   0x8   : > { %p299_p5 = scmp.lt.s32.totalorder (!%p235_p3), %s1559_s20, 575  ;;  %p1562_p6 = scmp.ne.s32.totalorder (!%p235_p3), %s1942_s15, 0 }
   0xe   : > { %s2196_s19 = smov (!%p291_p4, %s1558_s19), 35  ;;  %s2198_s20 = smov (!%p299_p5, %s1559_s20), 575 }
   0xf   : > { %s295_s23 = scalar_lea.vmem %s2186_s0, %s2196_s19  ;;  %s1700_s24 = sshll.u32 %s2198_s20, 4  ;;  %v1952_v0 = vmov (!%p1562_p6), 0.0  }
  0x10   : > { %s2011_s27 = scalar_lea.vmem %s2187_s1, %s1700_s24  ;;  %335 = sbr.rel (%p1562_p6) target bundleno = 23 (0x17), region = 40  ;;  %336 = vst [vmem:[#allocation2] sm:$0xff] (!%p1562_p6), %v1952_v0 }
  0x17 PF: > { %v1736_v1 = vld [vmem:[%s2011_s27 + $0x4] ss:$16 sps:$4 sm:$0xff]   ;;  %v1738_v2 = vld [vmem:[%s2011_s27 + $0xc] ss:$16 sps:$4 sm:$0xff]   ;;  %v1740_v3 = vld [vmem:[%s2011_s27] ss:$16 sps:$4 sm:$0xff]   ;;  %v479_v41 = vlaneseq }
  0x18   : > { %1136 = vmatprep.subr.bf16.mxu0 %v1736_v1  ;;  %v1741_v4 = vld [vmem:[%s2011_s27 + $0x8] ss:$16 sps:$4 sm:$0xff]   ;;  %1218 = vmatprep.subr.bf16.mxu1 %v1738_v2  ;;  %v1742_v5 = vld [vmem:[%s2011_s27 + $0x24] ss:$16 sps:$4 sm:$0xff]   ;;  %v1744_v6 = vld [vmem:[%s2011_s27 + $0x2c] ss:$16 sps:$4 sm:$0xff]  }
  0x19   : > { %1137 = vmatpush1.bf16.msra.mxu0 %v1740_v3  ;;  %1219 = vmatpush1.bf16.msra.mxu1 %v1741_v4  ;;  %v1746_v7 = vld [vmem:[%s2011_s27 + $0x20] ss:$16 sps:$4 sm:$0xff]   ;;  %v1747_v8 = vld [vmem:[%s2011_s27 + $0x28] ss:$16 sps:$4 sm:$0xff]   ;;  %v1748_v9 = vld [vmem:[%s2011_s27 + $0x44] ss:$16 sps:$4 sm:$0xff]  }
  0x1a   : > { %1138 = vmatprep.subr.bf16.mxu0 %v1742_v5  ;;  %1220 = vmatprep.subr.bf16.mxu1 %v1744_v6  ;;  %v1750_v10 = vld [vmem:[%s2011_s27 + $0x4c] ss:$16 sps:$4 sm:$0xff]   ;;  %v1752_v11 = vld [vmem:[%s2011_s27 + $0x40] ss:$16 sps:$4 sm:$0xff]   ;;  %v1753_v12 = vld [vmem:[%s2011_s27 + $0x48] ss:$16 sps:$4 sm:$0xff]  }
  0x1b   : > { %v1754_v13 = vld [vmem:[%s2011_s27 + $0x64] ss:$16 sps:$4 sm:$0xff]   ;;  %v1756_v14 = vld [vmem:[%s2011_s27 + $0x6c] ss:$16 sps:$4 sm:$0xff]   ;;  %v1758_v15 = vld [vmem:[%s2011_s27 + $0x60] ss:$16 sps:$4 sm:$0xff]  }
  0x1c   : > { %v1759_v16 = vld [vmem:[%s2011_s27 + $0x68] ss:$16 sps:$4 sm:$0xff]   ;;  %v1760_v17 = vld [vmem:[%s2011_s27 + $0x84] ss:$16 sps:$4 sm:$0xff]   ;;  %v1762_v18 = vld [vmem:[%s2011_s27 + $0x8c] ss:$16 sps:$4 sm:$0xff]  }
  0x1d   : > { %1139 = vmatpush1.bf16.msra.mxu0 %v1746_v7  ;;  %1221 = vmatpush1.bf16.msra.mxu1 %v1747_v8  ;;  %v1764_v19 = vld [vmem:[%s2011_s27 + $0x80] ss:$16 sps:$4 sm:$0xff]   ;;  %v1765_v20 = vld [vmem:[%s2011_s27 + $0x88] ss:$16 sps:$4 sm:$0xff]   ;;  %v1766_v21 = vld [vmem:[%s2011_s27 + $0xa4] ss:$16 sps:$4 sm:$0xff]  }
  0x1e   : > { %1140 = vmatprep.subr.bf16.mxu0 %v1748_v9  ;;  %1222 = vmatprep.subr.bf16.mxu1 %v1750_v10  ;;  %v1768_v22 = vld [vmem:[%s2011_s27 + $0xac] ss:$16 sps:$4 sm:$0xff]   ;;  %v1770_v23 = vld [vmem:[%s2011_s27 + $0xa0] ss:$16 sps:$4 sm:$0xff]   ;;  %v1771_v24 = vld [vmem:[%s2011_s27 + $0xa8] ss:$16 sps:$4 sm:$0xff]  }
  0x1f   : > { %v1772_v25 = vld [vmem:[%s2011_s27 + $0xc4] ss:$16 sps:$4 sm:$0xff]   ;;  %v1774_v26 = vld [vmem:[%s2011_s27 + $0xcc] ss:$16 sps:$4 sm:$0xff]   ;;  %v1776_v27 = vld [vmem:[%s2011_s27 + $0xc0] ss:$16 sps:$4 sm:$0xff]  }
  0x20   : > { %v1777_v28 = vld [vmem:[%s2011_s27 + $0xc8] ss:$16 sps:$4 sm:$0xff]   ;;  %v1778_v29 = vld [vmem:[%s2011_s27 + $0xe4] ss:$16 sps:$4 sm:$0xff]   ;;  %v1780_v30 = vld [vmem:[%s2011_s27 + $0xec] ss:$16 sps:$4 sm:$0xff]  }
  0x21   : > { %1141 = vmatpush1.bf16.msra.mxu0 %v1752_v11  ;;  %1223 = vmatpush1.bf16.msra.mxu1 %v1753_v12  ;;  %v1782_v31 = vld [vmem:[%s2011_s27 + $0xe0] ss:$16 sps:$4 sm:$0xff]   ;;  %v1783_v32 = vld [vmem:[%s2011_s27 + $0xe8] ss:$16 sps:$4 sm:$0xff]   ;;  %v1784_v33 = vld [vmem:[%s2011_s27 + $0x104] ss:$16 sps:$4 sm:$0xff]  }
  0x22   : > { %1142 = vmatprep.subr.bf16.mxu0 %v1754_v13  ;;  %1224 = vmatprep.subr.bf16.mxu1 %v1756_v14  ;;  %v1786_v34 = vld [vmem:[%s2011_s27 + $0x10c] ss:$16 sps:$4 sm:$0xff]   ;;  %v1788_v35 = vld [vmem:[%s2011_s27 + $0x100] ss:$16 sps:$4 sm:$0xff]   ;;  %v1789_v36 = vld [vmem:[%s2011_s27 + $0x108] ss:$16 sps:$4 sm:$0xff]  }
  0x23   : > { %v1790_v37 = vld [vmem:[%s2011_s27 + $0x124] ss:$16 sps:$4 sm:$0xff]   ;;  %v1792_v38 = vld [vmem:[%s2011_s27 + $0x12c] ss:$16 sps:$4 sm:$0xff]   ;;  %v1953_v39 = vmov 1966171168  }
  0x24   : > { %v477_v40 = vunpack.c.l.s4 %v1953_v39  ;;  %v1794_v42 = vld [vmem:[%s2011_s27 + $0x120] ss:$16 sps:$4 sm:$0xff]   ;;  %v1795_v43 = vld [vmem:[%s2011_s27 + $0x128] ss:$16 sps:$4 sm:$0xff]   ;;  %v1796_v44 = vld [vmem:[%s2011_s27 + $0x144] ss:$16 sps:$4 sm:$0xff]  }
  0x25   : > { %1143 = vmatpush1.bf16.msra.mxu0 %v1758_v15  ;;  %1225 = vmatpush1.bf16.msra.mxu1 %v1759_v16  ;;  %v1798_v45 = vld [vmem:[%s2011_s27 + $0x14c] ss:$16 sps:$4 sm:$0xff]   ;;  %v2056_v47 = vshrl.u32 %v479_v41, 7  ;;  %v1800_v48 = vld [vmem:[%s2011_s27 + $0x140] ss:$16 sps:$4 sm:$0xff]   ;;  %p1692_p7 = scmp.ne.s32.totalorder %s1942_s15, 8 }
  0x26   : > { %1144 = vmatprep.subr.bf16.mxu0 %v1760_v17  ;;  %1226 = vmatprep.subr.bf16.mxu1 %v1762_v18  ;;  %v478_v46 = vunpack.c.0.s8 %v477_v40  ;;  %v1801_v49 = vld [vmem:[%s2011_s27 + $0x148] ss:$16 sps:$4 sm:$0xff]   ;;  %v1802_v50 = vld [vmem:[%s2011_s27 + $0x164] ss:$16 sps:$4 sm:$0xff]   ;;  %v1804_v51 = vld [vmem:[%s2011_s27 + $0x16c] ss:$16 sps:$4 sm:$0xff]  }
  0x27   : > { %v1563_v53 = vld.sshfl [vmem:[%s295_s23] sm:$0x33 pattern:$0x75316420]  ;;  %v1807_v55 = vld [vmem:[%s2011_s27 + $0x168] ss:$16 sps:$4 sm:$0xff]  }
  0x28   : > { %v2063_v52 = vsub.s32 %v478_v46, %v2056_v47  ;;  %v1806_v54 = vld [vmem:[%s2011_s27 + $0x160] ss:$16 sps:$4 sm:$0xff]   ;;  %v475_v56 = vcombine.high %v1563_v53, %v1563_v53  ;;  %v1808_v57 = vld [vmem:[%s2011_s27 + $0x184] ss:$16 sps:$4 sm:$0xff]   ;;  %v1810_v58 = vld [vmem:[%s2011_s27 + $0x18c] ss:$16 sps:$4 sm:$0xff]  }
  0x29   : > { %1145 = vmatpush1.bf16.msra.mxu0 %v1764_v19  ;;  %1227 = vmatpush1.bf16.msra.mxu1 %v1765_v20  ;;  %v1812_v60 = vld [vmem:[%s2011_s27 + $0x180] ss:$16 sps:$4 sm:$0xff]   ;;  %v1813_v61 = vld [vmem:[%s2011_s27 + $0x188] ss:$16 sps:$4 sm:$0xff]   ;;  %v1814_v62 = vld [vmem:[%s2011_s27 + $0x1a4] ss:$16 sps:$4 sm:$0xff]  }
  0x2a   : > { %1146 = vmatprep.subr.bf16.mxu0 %v1766_v21  ;;  %1228 = vmatprep.subr.bf16.mxu1 %v1768_v22  ;;  %v489_v59 = vrot.slane %v475_v56, %v2063_v52  ;;  %v1816_v63 = vld [vmem:[%s2011_s27 + $0x1ac] ss:$16 sps:$4 sm:$0xff]   ;;  %v1818_v0 = vld [vmem:[%s2011_s27 + $0x1a0] ss:$16 sps:$4 sm:$0xff]   ;;  %v1819_v1 = vld [vmem:[%s2011_s27 + $0x1a8] ss:$16 sps:$4 sm:$0xff]   ;;  %v2093_v13 = vrot.slane %v1563_v53, %v2063_v52 }
  0x2b   : > { %v1820_v2 = vld [vmem:[%s2011_s27 + $0x1c4] ss:$16 sps:$4 sm:$0xff]   ;;  %v1822_v3 = vld [vmem:[%s2011_s27 + $0x1cc] ss:$16 sps:$4 sm:$0xff]   ;;  %v1824_v4 = vld [vmem:[%s2011_s27 + $0x1c0] ss:$16 sps:$4 sm:$0xff]  }
  0x2c   : > { %1168 = vmatprep.mubr.bf16.mxu0 %v489_v59  ;;  %1250 = vmatprep.mubr.bf16.mxu1 %v489_v59  ;;  %v1825_v5 = vld [vmem:[%s2011_s27 + $0x1c8] ss:$16 sps:$4 sm:$0xff]   ;;  %v1826_v6 = vld [vmem:[%s2011_s27 + $0x1e4] ss:$16 sps:$4 sm:$0xff]   ;;  %v1828_v7 = vld [vmem:[%s2011_s27 + $0x1ec] ss:$16 sps:$4 sm:$0xff]   ;;  %v491_v17 = vcombine.high %v489_v59, %v489_v59 }
  0x2d   : > { %1147 = vmatpush1.bf16.msra.mxu0 %v1770_v23  ;;  %1229 = vmatpush1.bf16.msra.mxu1 %v1771_v24  ;;  %v1830_v8 = vld [vmem:[%s2011_s27 + $0x1e0] ss:$16 sps:$4 sm:$0xff]   ;;  %v1831_v9 = vld [vmem:[%s2011_s27 + $0x1e8] ss:$16 sps:$4 sm:$0xff]   ;;  %v1834_v10 = vld [vmem:[%s2011_s27 + $0x204] ss:$16 sps:$4 sm:$0xff]  }
  0x2e   : > { %1148 = vmatprep.subr.bf16.mxu0 %v1772_v25  ;;  %1230 = vmatprep.subr.bf16.mxu1 %v1774_v26  ;;  %v1837_v11 = vld [vmem:[%s2011_s27 + $0x20c] ss:$16 sps:$4 sm:$0xff]   ;;  %v1832_v12 = vld [vmem:[%s2011_s27 + $0x200] ss:$16 sps:$4 sm:$0xff]   ;;  %v1835_v14 = vld [vmem:[%s2011_s27 + $0x208] ss:$16 sps:$4 sm:$0xff]  }
  0x2f   : > { %v1840_v15 = vld [vmem:[%s2011_s27 + $0x224] ss:$16 sps:$4 sm:$0xff]   ;;  %v1843_v16 = vld [vmem:[%s2011_s27 + $0x22c] ss:$16 sps:$4 sm:$0xff]   ;;  %v1838_v18 = vld [vmem:[%s2011_s27 + $0x220] ss:$16 sps:$4 sm:$0xff]  }
  0x30   : > { %v1841_v19 = vld [vmem:[%s2011_s27 + $0x228] ss:$16 sps:$4 sm:$0xff]   ;;  %v1846_v20 = vld [vmem:[%s2011_s27 + $0x244] ss:$16 sps:$4 sm:$0xff]   ;;  %v1849_v21 = vld [vmem:[%s2011_s27 + $0x24c] ss:$16 sps:$4 sm:$0xff]  }
  0x31   : > { %1149 = vmatpush1.bf16.msra.mxu0 %v1776_v27  ;;  %1231 = vmatpush1.bf16.msra.mxu1 %v1777_v28  ;;  %v1844_v22 = vld [vmem:[%s2011_s27 + $0x240] ss:$16 sps:$4 sm:$0xff]   ;;  %v1847_v23 = vld [vmem:[%s2011_s27 + $0x248] ss:$16 sps:$4 sm:$0xff]   ;;  %v1852_v24 = vld [vmem:[%s2011_s27 + $0x264] ss:$16 sps:$4 sm:$0xff]  }
  0x32   : > { %1150 = vmatprep.subr.bf16.mxu0 %v1778_v29  ;;  %1232 = vmatprep.subr.bf16.mxu1 %v1780_v30  ;;  %v1855_v25 = vld [vmem:[%s2011_s27 + $0x26c] ss:$16 sps:$4 sm:$0xff]   ;;  %v1850_v26 = vld [vmem:[%s2011_s27 + $0x260] ss:$16 sps:$4 sm:$0xff]   ;;  %v1853_v27 = vld [vmem:[%s2011_s27 + $0x268] ss:$16 sps:$4 sm:$0xff]  }
  0x33   : > { %v1858_v28 = vld [vmem:[%s2011_s27 + $0x284] ss:$16 sps:$4 sm:$0xff]   ;;  %v1861_v29 = vld [vmem:[%s2011_s27 + $0x28c] ss:$16 sps:$4 sm:$0xff]   ;;  %v1856_v30 = vld [vmem:[%s2011_s27 + $0x280] ss:$16 sps:$4 sm:$0xff]  }
  0x34   : > { %v1871_v39 = vld [vmem:[%s2011_s27 + $0x2c8] ss:$16 sps:$4 sm:$0xff]   ;;  %v1876_v40 = vld [vmem:[%s2011_s27 + $0x2e4] ss:$16 sps:$4 sm:$0xff]   ;;  %v1879_v41 = vld [vmem:[%s2011_s27 + $0x2ec] ss:$16 sps:$4 sm:$0xff]  }
  0x35   : > { %1151 = vmatpush1.bf16.msra.mxu0 %v1782_v31  ;;  %1233 = vmatpush1.bf16.msra.mxu1 %v1783_v32  ;;  %v1859_v31 = vld [vmem:[%s2011_s27 + $0x288] ss:$16 sps:$4 sm:$0xff]   ;;  %v1864_v32 = vld [vmem:[%s2011_s27 + $0x2a4] ss:$16 sps:$4 sm:$0xff]   ;;  %v1880_v46 = vld [vmem:[%s2011_s27 + $0x300] ss:$16 sps:$4 sm:$0xff]  }
  0x36   : > { %1152 = vmatprep.subr.bf16.mxu0 %v1784_v33  ;;  %1234 = vmatprep.subr.bf16.mxu1 %v1786_v34  ;;  %v1867_v33 = vld [vmem:[%s2011_s27 + $0x2ac] ss:$16 sps:$4 sm:$0xff]   ;;  %v1862_v34 = vld [vmem:[%s2011_s27 + $0x2a0] ss:$16 sps:$4 sm:$0xff]   ;;  %v1889_v53 = vld [vmem:[%s2011_s27 + $0x328] ss:$16 sps:$4 sm:$0xff]  }
  0x37   : > { %v1892_v56 = vld [vmem:[%s2011_s27 + $0x340] ss:$16 sps:$4 sm:$0xff]   ;;  %v1903_v59 = vld [vmem:[%s2011_s27 + $0x36c] ss:$16 sps:$4 sm:$0xff]  }
  0x39   : > { %1153 = vmatpush1.bf16.msra.mxu0 %v1788_v35  ;;  %1235 = vmatpush1.bf16.msra.mxu1 %v1789_v36  ;;  %v1865_v35 = vld [vmem:[%s2011_s27 + $0x2a8] ss:$16 sps:$4 sm:$0xff]   ;;  %v1870_v36 = vld [vmem:[%s2011_s27 + $0x2c4] ss:$16 sps:$4 sm:$0xff]  }
  0x3a   : > { %1154 = vmatprep.subr.bf16.mxu0 %v1790_v37  ;;  %1236 = vmatprep.subr.bf16.mxu1 %v1792_v38  ;;  %v1873_v37 = vld [vmem:[%s2011_s27 + $0x2cc] ss:$16 sps:$4 sm:$0xff]   ;;  %v1868_v38 = vld [vmem:[%s2011_s27 + $0x2c0] ss:$16 sps:$4 sm:$0xff]  }
  0x3d   : > { %1155 = vmatpush1.bf16.msra.mxu0 %v1794_v42  ;;  %1237 = vmatpush1.bf16.msra.mxu1 %v1795_v43  ;;  %v1874_v42 = vld [vmem:[%s2011_s27 + $0x2e0] ss:$16 sps:$4 sm:$0xff]   ;;  %v1877_v43 = vld [vmem:[%s2011_s27 + $0x2e8] ss:$16 sps:$4 sm:$0xff]  }
  0x3e   : > { %1156 = vmatprep.subr.bf16.mxu0 %v1796_v44  ;;  %1238 = vmatprep.subr.bf16.mxu1 %v1798_v45  ;;  %v1882_v44 = vld [vmem:[%s2011_s27 + $0x304] ss:$16 sps:$4 sm:$0xff]   ;;  %v1885_v45 = vld [vmem:[%s2011_s27 + $0x30c] ss:$16 sps:$4 sm:$0xff]  }
  0x41   : > { %1157 = vmatpush1.bf16.msra.mxu0 %v1800_v48  ;;  %1239 = vmatpush1.bf16.msra.mxu1 %v1801_v49  ;;  %v1883_v48 = vld [vmem:[%s2011_s27 + $0x308] ss:$16 sps:$4 sm:$0xff]   ;;  %v1888_v49 = vld [vmem:[%s2011_s27 + $0x324] ss:$16 sps:$4 sm:$0xff]  }
  0x42   : > { %1158 = vmatprep.subr.bf16.mxu0 %v1802_v50  ;;  %1240 = vmatprep.subr.bf16.mxu1 %v1804_v51  ;;  %v1891_v50 = vld [vmem:[%s2011_s27 + $0x32c] ss:$16 sps:$4 sm:$0xff]   ;;  %v1886_v51 = vld [vmem:[%s2011_s27 + $0x320] ss:$16 sps:$4 sm:$0xff]  }
  0x45   : > { %1159 = vmatpush1.bf16.msra.mxu0 %v1806_v54  ;;  %1241 = vmatpush1.bf16.msra.mxu1 %v1807_v55  ;;  %v1894_v54 = vld [vmem:[%s2011_s27 + $0x344] ss:$16 sps:$4 sm:$0xff]   ;;  %v1897_v55 = vld [vmem:[%s2011_s27 + $0x34c] ss:$16 sps:$4 sm:$0xff]  }
  0x46   : > { %1160 = vmatprep.subr.bf16.mxu0 %v1808_v57  ;;  %1242 = vmatprep.subr.bf16.mxu1 %v1810_v58  ;;  %v1895_v57 = vld [vmem:[%s2011_s27 + $0x348] ss:$16 sps:$4 sm:$0xff]   ;;  %v1900_v58 = vld [vmem:[%s2011_s27 + $0x364] ss:$16 sps:$4 sm:$0xff]  }
  0x49   : > { %1161 = vmatpush1.bf16.msra.mxu0 %v1812_v60  ;;  %1243 = vmatpush1.bf16.msra.mxu1 %v1813_v61  ;;  %v1898_v60 = vld [vmem:[%s2011_s27 + $0x360] ss:$16 sps:$4 sm:$0xff]   ;;  %v1901_v61 = vld [vmem:[%s2011_s27 + $0x368] ss:$16 sps:$4 sm:$0xff]  }
  0x4a   : > { %1162 = vmatprep.subr.bf16.mxu0 %v1814_v62  ;;  %1244 = vmatprep.subr.bf16.mxu1 %v1816_v63  ;;  %v1906_v62 = vld [vmem:[%s2011_s27 + $0x384] ss:$16 sps:$4 sm:$0xff]   ;;  %v1909_v63 = vld [vmem:[%s2011_s27 + $0x38c] ss:$16 sps:$4 sm:$0xff]  }
  0x4d   : > { %1163 = vmatpush1.bf16.msra.mxu0 %v1818_v0  ;;  %1245 = vmatpush1.bf16.msra.mxu1 %v1819_v1  ;;  %v1904_v0 = vld [vmem:[%s2011_s27 + $0x380] ss:$16 sps:$4 sm:$0xff]   ;;  %v1907_v1 = vld [vmem:[%s2011_s27 + $0x388] ss:$16 sps:$4 sm:$0xff]  }
  0x4e   : > { %1164 = vmatprep.subr.bf16.mxu0 %v1820_v2  ;;  %1246 = vmatprep.subr.bf16.mxu1 %v1822_v3  ;;  %v1912_v2 = vld [vmem:[%s2011_s27 + $0x3a4] ss:$16 sps:$4 sm:$0xff]   ;;  %v1915_v3 = vld [vmem:[%s2011_s27 + $0x3ac] ss:$16 sps:$4 sm:$0xff]  }
  0x51   : > { %1165 = vmatpush1.bf16.msra.mxu0 %v1824_v4  ;;  %1247 = vmatpush1.bf16.msra.mxu1 %v1825_v5  ;;  %v1910_v4 = vld [vmem:[%s2011_s27 + $0x3a0] ss:$16 sps:$4 sm:$0xff]   ;;  %v1913_v5 = vld [vmem:[%s2011_s27 + $0x3a8] ss:$16 sps:$4 sm:$0xff]  }
  0x52   : > { %1166 = vmatprep.subr.bf16.mxu0 %v1826_v6  ;;  %1248 = vmatprep.subr.bf16.mxu1 %v1828_v7  ;;  %v1918_v6 = vld [vmem:[%s2011_s27 + $0x3c4] ss:$16 sps:$4 sm:$0xff]   ;;  %v1921_v7 = vld [vmem:[%s2011_s27 + $0x3cc] ss:$16 sps:$4 sm:$0xff]  }
  0x55   : > { %1167 = vmatpush1.bf16.msra.mxu0 %v1830_v8  ;;  %1249 = vmatpush1.bf16.msra.mxu1 %v1831_v9  ;;  %v1916_v8 = vld [vmem:[%s2011_s27 + $0x3c0] ss:$16 sps:$4 sm:$0xff]   ;;  %v1919_v9 = vld [vmem:[%s2011_s27 + $0x3c8] ss:$16 sps:$4 sm:$0xff]  }
  0x56   : > { %1177 = vmatprep.subr.bf16.mxu0 %v1834_v10  ;;  %1259 = vmatprep.subr.bf16.mxu1 %v1837_v11  ;;  %v1924_v10 = vld [vmem:[%s2011_s27 + $0x3e4] ss:$16 sps:$4 sm:$0xff]   ;;  %v1927_v11 = vld [vmem:[%s2011_s27 + $0x3ec] ss:$16 sps:$4 sm:$0xff]  }
  0x58   : > { %1169 = vmatmul.mubr.bf16.vlgmr.msra.gmra.mrb[0].mxu0 %v2093_v13  ;;  %1251 = vmatmul.mubr.bf16.vlgmr.msra.gmra.mrb[0].mxu1 %v2093_v13 }
  0x59   : > { %1178 = vmatpush1.bf16.msra.mxu0 %v1832_v12  ;;  %1260 = vmatpush1.bf16.msra.mxu1 %v1835_v14  ;;  %v1922_v12 = vld [vmem:[%s2011_s27 + $0x3e0] ss:$16 sps:$4 sm:$0xff]   ;;  %v1925_v14 = vld [vmem:[%s2011_s27 + $0x3e8] ss:$16 sps:$4 sm:$0xff]  }
  0x5a   : > { %1179 = vmatprep.subr.bf16.mxu0 %v1840_v15  ;;  %1261 = vmatprep.subr.bf16.mxu1 %v1843_v16  ;;  %v490_v15 = vcombine.high %v2093_v13, %v2093_v13  ;;  %v1954_v16 = vmov 1983009808  }
  0x5b   : > { %1209 = vmatprep.mubr.bf16.mxu0 %v491_v17  ;;  %1291 = vmatprep.mubr.bf16.mxu1 %v491_v17  ;;  %v1307_v17 = vunpack.c.l.s4 %v1954_v16 }
  0x5d   : > { %1180 = vmatpush1.bf16.msra.mxu0 %v1838_v18  ;;  %1262 = vmatpush1.bf16.msra.mxu1 %v1841_v19  ;;  %v1308_v18 = vunpack.c.0.s8 %v1307_v17 }
  0x5e   : > { %1181 = vmatprep.subr.bf16.mxu0 %v1846_v20  ;;  %1263 = vmatprep.subr.bf16.mxu1 %v1849_v21 }
  0x5f   : > { %v1311_v21 = vsub.s32 %v1308_v18, %v2056_v47 }
  0x61   : > { %1182 = vmatpush1.bf16.msra.mxu0 %v1844_v22  ;;  %1264 = vmatpush1.bf16.msra.mxu1 %v1847_v23 }
  0x62   : > { %1183 = vmatprep.subr.bf16.mxu0 %v1852_v24  ;;  %1265 = vmatprep.subr.bf16.mxu1 %v1855_v25 }
  0x65   : > { %1184 = vmatpush1.bf16.msra.mxu0 %v1850_v26  ;;  %1266 = vmatpush1.bf16.msra.mxu1 %v1853_v27 }
  0x66   : > { %1185 = vmatprep.subr.bf16.mxu0 %v1858_v28  ;;  %1267 = vmatprep.subr.bf16.mxu1 %v1861_v29 }
  0x69   : > { %1186 = vmatpush1.bf16.msra.mxu0 %v1856_v30  ;;  %1268 = vmatpush1.bf16.msra.mxu1 %v1859_v31  ;;  %v337_v31 = vld [vmem:[#allocation2] sm:$0xff] }
  0x6a   : > { %1187 = vmatprep.subr.bf16.mxu0 %v1864_v32  ;;  %1269 = vmatprep.subr.bf16.mxu1 %v1867_v33 }
  0x6d   : > { %1188 = vmatpush1.bf16.msra.mxu0 %v1862_v34  ;;  %1270 = vmatpush1.bf16.msra.mxu1 %v1865_v35  ;;  %v1329_v34 = vld [vmem:[%s2188_s2] sm:$0xf] (!%p1692_p7)  ;;  %v1333_v35 = vsub.s32 (!%p1692_p7), 0, %v2056_v47 }
  0x6e   : > { %1189 = vmatprep.subr.bf16.mxu0 %v1870_v36  ;;  %1271 = vmatprep.subr.bf16.mxu1 %v1873_v37  ;;  %v1337_v36 = vsub.s32 (!%p1692_p7), 1, %v2056_v47  ;;  %v1341_v37 = vsub.s32 (!%p1692_p7), 2, %v2056_v47 }
  0x71   : > { %1190 = vmatpush1.bf16.msra.mxu0 %v1868_v38  ;;  %1272 = vmatpush1.bf16.msra.mxu1 %v1871_v39  ;;  %v1345_v38 = vsub.s32 (!%p1692_p7), 3, %v2056_v47  ;;  %v1334_v39 = vrot.slane (!%p1692_p7), %v1329_v34, %v1333_v35 }
  0x72   : > { %1191 = vmatprep.subr.bf16.mxu0 %v1876_v40  ;;  %1273 = vmatprep.subr.bf16.mxu1 %v1879_v41  ;;  %v1338_v40 = vrot.slane (!%p1692_p7), %v1329_v34, %v1337_v36  ;;  %v1342_v41 = vrot.slane (!%p1692_p7), %v1329_v34, %v1341_v37 }
  0x75   : > { %1192 = vmatpush1.bf16.msra.mxu0 %v1874_v42  ;;  %1274 = vmatpush1.bf16.msra.mxu1 %v1877_v43  ;;  %v1346_v42 = vrot.slane (!%p1692_p7), %v1329_v34, %v1345_v38  ;;  %v1347_v43 = vcombine.low (!%p1692_p7), %v1334_v39, %v1338_v40 }
  0x76   : > { %1193 = vmatprep.subr.bf16.mxu0 %v1882_v44  ;;  %1275 = vmatprep.subr.bf16.mxu1 %v1885_v45 }
  0x77   : > { %v1348_v44 = vcombine.low (!%p1692_p7), %v1342_v41, %v1346_v42  ;;  %v1355_v45 = vrot.slane (!%p1692_p7), %v1347_v43, %v1311_v21 }
  0x79   : > { %1194 = vmatpush1.bf16.msra.mxu0 %v1880_v46  ;;  %1276 = vmatpush1.bf16.msra.mxu1 %v1883_v48  ;;  %v1366_v46 = vld [vmem:[%s2189_s3] sm:$0xf] (!%p1692_p7)  ;;  %v1362_v48 = vrot.slane (!%p1692_p7), %v1348_v44, %v1311_v21 }
  0x7a   : > { %1195 = vmatprep.subr.bf16.mxu0 %v1888_v49  ;;  %1277 = vmatprep.subr.bf16.mxu1 %v1891_v50 }
  0x7b   : > { %v1363_v50 = vcombine.low (!%p1692_p7), %v1355_v45, %v1362_v48 }
  0x7d   : > { %1196 = vmatpush1.bf16.msra.mxu0 %v1886_v51  ;;  %1278 = vmatpush1.bf16.msra.mxu1 %v1889_v53  ;;  %v1367_v51 = vunpack.c.l.bf16 (!%p1692_p7), %v1366_v46 }
  0x7e   : > { %1197 = vmatprep.subr.bf16.mxu0 %v1894_v54  ;;  %1279 = vmatprep.subr.bf16.mxu1 %v1897_v55 }
  0x81   : > { %1198 = vmatpush1.bf16.msra.mxu0 %v1892_v56  ;;  %1280 = vmatpush1.bf16.msra.mxu1 %v1895_v57 }
  0x82   : > { %1199 = vmatprep.subr.bf16.mxu0 %v1900_v58  ;;  %1281 = vmatprep.subr.bf16.mxu1 %v1903_v59 }
  0x85   : > { %1200 = vmatpush1.bf16.msra.mxu0 %v1898_v60  ;;  %1282 = vmatpush1.bf16.msra.mxu1 %v1901_v61 }
  0x86   : > { %1201 = vmatprep.subr.bf16.mxu0 %v1906_v62  ;;  %1283 = vmatprep.subr.bf16.mxu1 %v1909_v63 }
  0x89   : > { %1202 = vmatpush1.bf16.msra.mxu0 %v1904_v0  ;;  %1284 = vmatpush1.bf16.msra.mxu1 %v1907_v1 }
  0x8a   : > { %1203 = vmatprep.subr.bf16.mxu0 %v1912_v2  ;;  %1285 = vmatprep.subr.bf16.mxu1 %v1915_v3 }
  0x8d   : > { %1204 = vmatpush1.bf16.msra.mxu0 %v1910_v4  ;;  %1286 = vmatpush1.bf16.msra.mxu1 %v1913_v5 }
  0x8e   : > { %1205 = vmatprep.subr.bf16.mxu0 %v1918_v6  ;;  %1287 = vmatprep.subr.bf16.mxu1 %v1921_v7 }
  0x91   : > { %1206 = vmatpush1.bf16.msra.mxu0 %v1916_v8  ;;  %1288 = vmatpush1.bf16.msra.mxu1 %v1919_v9 }
  0x92   : > { %1207 = vmatprep.subr.bf16.mxu0 %v1924_v10  ;;  %1289 = vmatprep.subr.bf16.mxu1 %v1927_v11 }
  0x95   : > { %1208 = vmatpush1.bf16.msra.mxu0 %v1922_v12  ;;  %1290 = vmatpush1.bf16.msra.mxu1 %v1925_v14 }
  0x98   : > { %1210 = vmatmul.mubr.bf16.vlgmr.msra.gmra.mrb[0].mxu0 %v490_v15  ;;  %1292 = vmatmul.mubr.bf16.vlgmr.msra.gmra.mrb[0].mxu1 %v490_v15 }
 0x16b   : > { %v1211_v19 = vpop.f32.mrb[0].mxu0  ;;  %v1293_v20 = vpop.f32.mrb[0].mxu1 }
 0x16c   : > { %v1213_v22 = vpop.f32.mrb[1].mxu0  ;;  %v1295_v23 = vpop.f32.mrb[1].mxu1 }
 0x16d   : > { %v1304_v24 = vcombine.low %v1211_v19, %v1213_v22  ;;  %v1305_v25 = vcombine.low %v1293_v20, %v1295_v23  ;;  %v1215_v26 = vpop.f32.mrb[2].mxu0  ;;  %v1297_v27 = vpop.f32.mrb[2].mxu1 }
 0x16e   : > { %v1216_v28 = vpop.f32.mrb[3].mxu0  ;;  %v1298_v29 = vpop.f32.mrb[3].mxu1 }
 0x16f   : > { %v1312_v13 = vrot.slane %v1304_v24, %v1311_v21  ;;  %v1319_v30 = vrot.slane %v1305_v25, %v1311_v21  ;;  %1327 = sbr.rel (%p1692_p7) target bundleno = 400 (0x190), region = 44 }
 0x171   : > { %v1320_v32 = vcombine.low %v1312_v13, %v1319_v30 }
 0x173   : > { %v1322_v33 = vadd.f32 %v1320_v32, %v337_v31 }
 0x175   : > { %1323 = vst [vmem:[#allocation2] sm:$0xff] %v1322_v33 }
 0x17c   : > { %v1328_v49 = vld [vmem:[#allocation2] sm:$0xff] }
 0x17d   : > { %v1365_v53 = vadd.f32 %v1363_v50, %v1328_v49 }
 0x17f   : > { %v1368_v54 = vadd.f32 %v1367_v51, %v1365_v53 }
 0x181   : > { %v1369_v55 = vmax.f32 %v1368_v54, 0.0 }
 0x183   : > { %v1371_v56 = vcombine.high %v1369_v55, %v1369_v55  ;;  %v1378_v47 = vrot.slane %v1369_v55, %v1311_v21 }
 0x185   : > { %v1385_v57 = vrot.slane %v1371_v56, %v1311_v21  ;;  %v1386_v58 = vcombine.high %v1378_v47, %v1378_v47 }
 0x187   : > { %v1387_v59 = vcombine.high %v1385_v57, %v1385_v57  ;;  %v1693_v60 = vpack.c.bf16 %v1386_v58, %v1378_v47 }
 0x189   : > { %v1694_v61 = vpack.c.bf16 %v1387_v59, %v1385_v57  ;;  %v1408_v62 = vrot.slane %v1693_v60, %v2063_v52 }
 0x18b   : > { %v1415_v63 = vrot.slane %v1694_v61, %v2063_v52 }
 0x18d   : > { %v1416_v0 = vcombine.low %v1408_v62, %v1415_v63 }
 0x18f   : > { %1695 = vst.sshfl [vmem:[%s2190_s4] sm:$0x55 pattern:$0x73625140] %v1416_v0 }
 0x190 PF: > { %s14_s17 = sadd.s32 1, %s1950_s17   ;;  %s2191_s15 = smov %s1946_s16 }
 0x191   : > { %p11_p8 = scmp.ge.s32.totalorder %s14_s17, 11   ;;  %s2192_s16 = smov %s2194_s18 }
 0x193   :  { %13 = sbr.rel (!%p11_p8) target bundleno = 2 (0x2), region = 83 }

// kernel: image_captioning_forward.51
= control target key start
LH: loop header
LB: loop body
LE: loop exit
PB: predicated region body
PF: predicated region fallthrough
CT: control target
= control target key end

     0   :  { %s1899_s15 = smov 0   ;;  %s1901_s16 = smov 0   ;;  %s2105_s0 = inlined_call_operand.vmem [shape: bf16[2,1,1,9,512], index: 0, kind: input, shape index: {}, may-alias: {0,4}]   ;;  %s2106_s1 = inlined_call_operand.vmem [shape: bf16[2,4608], index: 1, kind: input, shape index: {}]   ;;  %s2107_s2 = inlined_call_operand.vmem [shape: bf16[4608,512], index: 2, kind: input, shape index: {}]   ;;  %s2108_s3 = inlined_call_operand.vmem [shape: f32[1,512], index: 3, kind: input, shape index: {}]   ;;  %s2109_s4 = inlined_call_operand.vmem [shape: bf16[2,1,1,9,512], index: 4, kind: output, shape index: {}, may-alias: {0,4}]  }
   0x1   :  { %s1903_s17 = smov 0  }
   0x2 LB: > { %s1472_s0 = sadd.s32 4294967295, %s1869_s17   ;;  %s27_s18 = sadd.s32 1, %s1865_s16  ;;  %s1869_s17 = sphi %s1903_s17, %s15_s17   ;;  %s1865_s16 = sphi %s1901_s16, %s2111_s16   ;;  %s1861_s15 = sphi %s1899_s15, %s2110_s15  }
   0x3   : > { %p28_p0 = scmp.ge.s32.totalorder %s27_s18, 9  ;;  %p1476_p1 = scmp.ge.s32.totalorder %s1869_s17, 1 }
   0x4   : > { %p195_p2 = scmp.lt.s32.totalorder %s1869_s17, 10 }
   0x5   : > { %s2113_s18 = smov (%p28_p0, %s27_s18), 0 }
   0x6   : > { %p196_p3 = pnand %p1476_p1, %p195_p2 }
   0x7   : > { %s1477_s19 = sshll.u32 (!%p196_p3), %s1861_s15, 2  ;;  %s1478_s20 = sshll.u32 (!%p196_p3), %s1861_s15, 6 }
   0x8   : > { %199 = sbr.rel (%p196_p3) target bundleno = 408 (0x198), region = 32  ;;  %p234_p4 = scmp.lt.s32.totalorder (!%p196_p3), %s1477_s19, 35 }
   0x9   : > { %p242_p5 = scmp.lt.s32.totalorder (!%p196_p3), %s1478_s20, 575  ;;  %p1481_p6 = scmp.ne.s32.totalorder (!%p196_p3), %s1861_s15, 0 }
   0xf   : > { %s2115_s19 = smov (!%p234_p4, %s1477_s19), 35  ;;  %s2117_s20 = smov (!%p242_p5, %s1478_s20), 575 }
  0x10   : > { %s238_s23 = scalar_lea.vmem %s2106_s1, %s2115_s19  ;;  %s1619_s24 = sshll.u32 %s2117_s20, 4  ;;  %v1871_v0 = vmov (!%p1481_p6), 0.0  }
  0x11   : > { %s1931_s27 = scalar_lea.vmem %s2107_s2, %s1619_s24  ;;  %261 = sbr.rel (%p1481_p6) target bundleno = 24 (0x18), region = 36  ;;  %262 = vst [vmem:[#allocation2] sm:$0xff] (!%p1481_p6), %v1871_v0 }
  0x18 PF: > { %v1655_v1 = vld [vmem:[%s1931_s27 + $0x4] ss:$16 sps:$4 sm:$0xff]   ;;  %v1657_v2 = vld [vmem:[%s1931_s27 + $0xc] ss:$16 sps:$4 sm:$0xff]   ;;  %v1659_v3 = vld [vmem:[%s1931_s27] ss:$16 sps:$4 sm:$0xff]   ;;  %v405_v41 = vlaneseq }
  0x19   : > { %1062 = vmatprep.subr.bf16.mxu0 %v1655_v1  ;;  %v1660_v4 = vld [vmem:[%s1931_s27 + $0x8] ss:$16 sps:$4 sm:$0xff]   ;;  %1144 = vmatprep.subr.bf16.mxu1 %v1657_v2  ;;  %v1661_v5 = vld [vmem:[%s1931_s27 + $0x24] ss:$16 sps:$4 sm:$0xff]   ;;  %v1663_v6 = vld [vmem:[%s1931_s27 + $0x2c] ss:$16 sps:$4 sm:$0xff]  }
  0x1a   : > { %1063 = vmatpush1.bf16.msra.mxu0 %v1659_v3  ;;  %1145 = vmatpush1.bf16.msra.mxu1 %v1660_v4  ;;  %v1665_v7 = vld [vmem:[%s1931_s27 + $0x20] ss:$16 sps:$4 sm:$0xff]   ;;  %v1666_v8 = vld [vmem:[%s1931_s27 + $0x28] ss:$16 sps:$4 sm:$0xff]   ;;  %v1667_v9 = vld [vmem:[%s1931_s27 + $0x44] ss:$16 sps:$4 sm:$0xff]  }
  0x1b   : > { %1064 = vmatprep.subr.bf16.mxu0 %v1661_v5  ;;  %1146 = vmatprep.subr.bf16.mxu1 %v1663_v6  ;;  %v1669_v10 = vld [vmem:[%s1931_s27 + $0x4c] ss:$16 sps:$4 sm:$0xff]   ;;  %v1671_v11 = vld [vmem:[%s1931_s27 + $0x40] ss:$16 sps:$4 sm:$0xff]   ;;  %v1672_v12 = vld [vmem:[%s1931_s27 + $0x48] ss:$16 sps:$4 sm:$0xff]  }
  0x1c   : > { %v1673_v13 = vld [vmem:[%s1931_s27 + $0x64] ss:$16 sps:$4 sm:$0xff]   ;;  %v1675_v14 = vld [vmem:[%s1931_s27 + $0x6c] ss:$16 sps:$4 sm:$0xff]   ;;  %v1677_v15 = vld [vmem:[%s1931_s27 + $0x60] ss:$16 sps:$4 sm:$0xff]  }
  0x1d   : > { %v1678_v16 = vld [vmem:[%s1931_s27 + $0x68] ss:$16 sps:$4 sm:$0xff]   ;;  %v1679_v17 = vld [vmem:[%s1931_s27 + $0x84] ss:$16 sps:$4 sm:$0xff]   ;;  %v1681_v18 = vld [vmem:[%s1931_s27 + $0x8c] ss:$16 sps:$4 sm:$0xff]  }
  0x1e   : > { %1065 = vmatpush1.bf16.msra.mxu0 %v1665_v7  ;;  %1147 = vmatpush1.bf16.msra.mxu1 %v1666_v8  ;;  %v1683_v19 = vld [vmem:[%s1931_s27 + $0x80] ss:$16 sps:$4 sm:$0xff]   ;;  %v1684_v20 = vld [vmem:[%s1931_s27 + $0x88] ss:$16 sps:$4 sm:$0xff]   ;;  %v1685_v21 = vld [vmem:[%s1931_s27 + $0xa4] ss:$16 sps:$4 sm:$0xff]  }
  0x1f   : > { %1066 = vmatprep.subr.bf16.mxu0 %v1667_v9  ;;  %1148 = vmatprep.subr.bf16.mxu1 %v1669_v10  ;;  %v1687_v22 = vld [vmem:[%s1931_s27 + $0xac] ss:$16 sps:$4 sm:$0xff]   ;;  %v1689_v23 = vld [vmem:[%s1931_s27 + $0xa0] ss:$16 sps:$4 sm:$0xff]   ;;  %v1690_v24 = vld [vmem:[%s1931_s27 + $0xa8] ss:$16 sps:$4 sm:$0xff]  }
  0x20   : > { %v1691_v25 = vld [vmem:[%s1931_s27 + $0xc4] ss:$16 sps:$4 sm:$0xff]   ;;  %v1693_v26 = vld [vmem:[%s1931_s27 + $0xcc] ss:$16 sps:$4 sm:$0xff]   ;;  %v1695_v27 = vld [vmem:[%s1931_s27 + $0xc0] ss:$16 sps:$4 sm:$0xff]  }
  0x21   : > { %v1696_v28 = vld [vmem:[%s1931_s27 + $0xc8] ss:$16 sps:$4 sm:$0xff]   ;;  %v1697_v29 = vld [vmem:[%s1931_s27 + $0xe4] ss:$16 sps:$4 sm:$0xff]   ;;  %v1699_v30 = vld [vmem:[%s1931_s27 + $0xec] ss:$16 sps:$4 sm:$0xff]  }
  0x22   : > { %1067 = vmatpush1.bf16.msra.mxu0 %v1671_v11  ;;  %1149 = vmatpush1.bf16.msra.mxu1 %v1672_v12  ;;  %v1701_v31 = vld [vmem:[%s1931_s27 + $0xe0] ss:$16 sps:$4 sm:$0xff]   ;;  %v1702_v32 = vld [vmem:[%s1931_s27 + $0xe8] ss:$16 sps:$4 sm:$0xff]   ;;  %v1703_v33 = vld [vmem:[%s1931_s27 + $0x104] ss:$16 sps:$4 sm:$0xff]  }
  0x23   : > { %1068 = vmatprep.subr.bf16.mxu0 %v1673_v13  ;;  %1150 = vmatprep.subr.bf16.mxu1 %v1675_v14  ;;  %v1705_v34 = vld [vmem:[%s1931_s27 + $0x10c] ss:$16 sps:$4 sm:$0xff]   ;;  %v1707_v35 = vld [vmem:[%s1931_s27 + $0x100] ss:$16 sps:$4 sm:$0xff]   ;;  %v1708_v36 = vld [vmem:[%s1931_s27 + $0x108] ss:$16 sps:$4 sm:$0xff]  }
  0x24   : > { %v1709_v37 = vld [vmem:[%s1931_s27 + $0x124] ss:$16 sps:$4 sm:$0xff]   ;;  %v1711_v38 = vld [vmem:[%s1931_s27 + $0x12c] ss:$16 sps:$4 sm:$0xff]   ;;  %v1872_v39 = vmov 1966171168  }
  0x25   : > { %v403_v40 = vunpack.c.l.s4 %v1872_v39  ;;  %v1713_v42 = vld [vmem:[%s1931_s27 + $0x120] ss:$16 sps:$4 sm:$0xff]   ;;  %v1714_v43 = vld [vmem:[%s1931_s27 + $0x128] ss:$16 sps:$4 sm:$0xff]   ;;  %v1715_v44 = vld [vmem:[%s1931_s27 + $0x144] ss:$16 sps:$4 sm:$0xff]  }
  0x26   : > { %1069 = vmatpush1.bf16.msra.mxu0 %v1677_v15  ;;  %1151 = vmatpush1.bf16.msra.mxu1 %v1678_v16  ;;  %v1717_v45 = vld [vmem:[%s1931_s27 + $0x14c] ss:$16 sps:$4 sm:$0xff]   ;;  %v1976_v47 = vshrl.u32 %v405_v41, 7  ;;  %v1719_v48 = vld [vmem:[%s1931_s27 + $0x140] ss:$16 sps:$4 sm:$0xff]   ;;  %p1611_p7 = scmp.ne.s32.totalorder %s1861_s15, 8 }
  0x27   : > { %1070 = vmatprep.subr.bf16.mxu0 %v1679_v17  ;;  %1152 = vmatprep.subr.bf16.mxu1 %v1681_v18  ;;  %v404_v46 = vunpack.c.0.s8 %v403_v40  ;;  %v1720_v49 = vld [vmem:[%s1931_s27 + $0x148] ss:$16 sps:$4 sm:$0xff]   ;;  %v1721_v50 = vld [vmem:[%s1931_s27 + $0x164] ss:$16 sps:$4 sm:$0xff]   ;;  %v1723_v51 = vld [vmem:[%s1931_s27 + $0x16c] ss:$16 sps:$4 sm:$0xff]  }
  0x28   : > { %v1482_v53 = vld.sshfl [vmem:[%s238_s23] sm:$0x33 pattern:$0x75316420]  ;;  %v1726_v55 = vld [vmem:[%s1931_s27 + $0x168] ss:$16 sps:$4 sm:$0xff]  }
  0x29   : > { %v1983_v52 = vsub.s32 %v404_v46, %v1976_v47  ;;  %v1725_v54 = vld [vmem:[%s1931_s27 + $0x160] ss:$16 sps:$4 sm:$0xff]   ;;  %v401_v56 = vcombine.high %v1482_v53, %v1482_v53  ;;  %v1727_v57 = vld [vmem:[%s1931_s27 + $0x184] ss:$16 sps:$4 sm:$0xff]   ;;  %v1729_v58 = vld [vmem:[%s1931_s27 + $0x18c] ss:$16 sps:$4 sm:$0xff]  }
  0x2a   : > { %1071 = vmatpush1.bf16.msra.mxu0 %v1683_v19  ;;  %1153 = vmatpush1.bf16.msra.mxu1 %v1684_v20  ;;  %v1731_v60 = vld [vmem:[%s1931_s27 + $0x180] ss:$16 sps:$4 sm:$0xff]   ;;  %v1732_v61 = vld [vmem:[%s1931_s27 + $0x188] ss:$16 sps:$4 sm:$0xff]   ;;  %v1733_v62 = vld [vmem:[%s1931_s27 + $0x1a4] ss:$16 sps:$4 sm:$0xff]  }
  0x2b   : > { %1072 = vmatprep.subr.bf16.mxu0 %v1685_v21  ;;  %1154 = vmatprep.subr.bf16.mxu1 %v1687_v22  ;;  %v415_v59 = vrot.slane %v401_v56, %v1983_v52  ;;  %v1735_v63 = vld [vmem:[%s1931_s27 + $0x1ac] ss:$16 sps:$4 sm:$0xff]   ;;  %v1737_v0 = vld [vmem:[%s1931_s27 + $0x1a0] ss:$16 sps:$4 sm:$0xff]   ;;  %v1738_v1 = vld [vmem:[%s1931_s27 + $0x1a8] ss:$16 sps:$4 sm:$0xff]   ;;  %v2013_v13 = vrot.slane %v1482_v53, %v1983_v52 }
  0x2c   : > { %v1739_v2 = vld [vmem:[%s1931_s27 + $0x1c4] ss:$16 sps:$4 sm:$0xff]   ;;  %v1741_v3 = vld [vmem:[%s1931_s27 + $0x1cc] ss:$16 sps:$4 sm:$0xff]   ;;  %v1743_v4 = vld [vmem:[%s1931_s27 + $0x1c0] ss:$16 sps:$4 sm:$0xff]  }
  0x2d   : > { %1094 = vmatprep.mubr.bf16.mxu0 %v415_v59  ;;  %1176 = vmatprep.mubr.bf16.mxu1 %v415_v59  ;;  %v1744_v5 = vld [vmem:[%s1931_s27 + $0x1c8] ss:$16 sps:$4 sm:$0xff]   ;;  %v1745_v6 = vld [vmem:[%s1931_s27 + $0x1e4] ss:$16 sps:$4 sm:$0xff]   ;;  %v1747_v7 = vld [vmem:[%s1931_s27 + $0x1ec] ss:$16 sps:$4 sm:$0xff]   ;;  %v417_v17 = vcombine.high %v415_v59, %v415_v59 }
  0x2e   : > { %1073 = vmatpush1.bf16.msra.mxu0 %v1689_v23  ;;  %1155 = vmatpush1.bf16.msra.mxu1 %v1690_v24  ;;  %v1749_v8 = vld [vmem:[%s1931_s27 + $0x1e0] ss:$16 sps:$4 sm:$0xff]   ;;  %v1750_v9 = vld [vmem:[%s1931_s27 + $0x1e8] ss:$16 sps:$4 sm:$0xff]   ;;  %v1753_v10 = vld [vmem:[%s1931_s27 + $0x204] ss:$16 sps:$4 sm:$0xff]  }
  0x2f   : > { %1074 = vmatprep.subr.bf16.mxu0 %v1691_v25  ;;  %1156 = vmatprep.subr.bf16.mxu1 %v1693_v26  ;;  %v1756_v11 = vld [vmem:[%s1931_s27 + $0x20c] ss:$16 sps:$4 sm:$0xff]   ;;  %v1751_v12 = vld [vmem:[%s1931_s27 + $0x200] ss:$16 sps:$4 sm:$0xff]   ;;  %v1754_v14 = vld [vmem:[%s1931_s27 + $0x208] ss:$16 sps:$4 sm:$0xff]  }
  0x30   : > { %v1759_v15 = vld [vmem:[%s1931_s27 + $0x224] ss:$16 sps:$4 sm:$0xff]   ;;  %v1762_v16 = vld [vmem:[%s1931_s27 + $0x22c] ss:$16 sps:$4 sm:$0xff]   ;;  %v1757_v18 = vld [vmem:[%s1931_s27 + $0x220] ss:$16 sps:$4 sm:$0xff]  }
  0x31   : > { %v1760_v19 = vld [vmem:[%s1931_s27 + $0x228] ss:$16 sps:$4 sm:$0xff]   ;;  %v1765_v20 = vld [vmem:[%s1931_s27 + $0x244] ss:$16 sps:$4 sm:$0xff]   ;;  %v1768_v21 = vld [vmem:[%s1931_s27 + $0x24c] ss:$16 sps:$4 sm:$0xff]  }
  0x32   : > { %1075 = vmatpush1.bf16.msra.mxu0 %v1695_v27  ;;  %1157 = vmatpush1.bf16.msra.mxu1 %v1696_v28  ;;  %v1763_v22 = vld [vmem:[%s1931_s27 + $0x240] ss:$16 sps:$4 sm:$0xff]   ;;  %v1766_v23 = vld [vmem:[%s1931_s27 + $0x248] ss:$16 sps:$4 sm:$0xff]   ;;  %v1771_v24 = vld [vmem:[%s1931_s27 + $0x264] ss:$16 sps:$4 sm:$0xff]  }
  0x33   : > { %1076 = vmatprep.subr.bf16.mxu0 %v1697_v29  ;;  %1158 = vmatprep.subr.bf16.mxu1 %v1699_v30  ;;  %v1774_v25 = vld [vmem:[%s1931_s27 + $0x26c] ss:$16 sps:$4 sm:$0xff]   ;;  %v1769_v26 = vld [vmem:[%s1931_s27 + $0x260] ss:$16 sps:$4 sm:$0xff]   ;;  %v1772_v27 = vld [vmem:[%s1931_s27 + $0x268] ss:$16 sps:$4 sm:$0xff]  }
  0x34   : > { %v1777_v28 = vld [vmem:[%s1931_s27 + $0x284] ss:$16 sps:$4 sm:$0xff]   ;;  %v1780_v29 = vld [vmem:[%s1931_s27 + $0x28c] ss:$16 sps:$4 sm:$0xff]   ;;  %v1775_v30 = vld [vmem:[%s1931_s27 + $0x280] ss:$16 sps:$4 sm:$0xff]  }
  0x35   : > { %v1790_v39 = vld [vmem:[%s1931_s27 + $0x2c8] ss:$16 sps:$4 sm:$0xff]   ;;  %v1795_v40 = vld [vmem:[%s1931_s27 + $0x2e4] ss:$16 sps:$4 sm:$0xff]   ;;  %v1798_v41 = vld [vmem:[%s1931_s27 + $0x2ec] ss:$16 sps:$4 sm:$0xff]  }
  0x36   : > { %1077 = vmatpush1.bf16.msra.mxu0 %v1701_v31  ;;  %1159 = vmatpush1.bf16.msra.mxu1 %v1702_v32  ;;  %v1778_v31 = vld [vmem:[%s1931_s27 + $0x288] ss:$16 sps:$4 sm:$0xff]   ;;  %v1783_v32 = vld [vmem:[%s1931_s27 + $0x2a4] ss:$16 sps:$4 sm:$0xff]   ;;  %v1799_v46 = vld [vmem:[%s1931_s27 + $0x300] ss:$16 sps:$4 sm:$0xff]  }
  0x37   : > { %1078 = vmatprep.subr.bf16.mxu0 %v1703_v33  ;;  %1160 = vmatprep.subr.bf16.mxu1 %v1705_v34  ;;  %v1786_v33 = vld [vmem:[%s1931_s27 + $0x2ac] ss:$16 sps:$4 sm:$0xff]   ;;  %v1781_v34 = vld [vmem:[%s1931_s27 + $0x2a0] ss:$16 sps:$4 sm:$0xff]   ;;  %v1808_v53 = vld [vmem:[%s1931_s27 + $0x328] ss:$16 sps:$4 sm:$0xff]  }
  0x38   : > { %v1811_v56 = vld [vmem:[%s1931_s27 + $0x340] ss:$16 sps:$4 sm:$0xff]   ;;  %v1822_v59 = vld [vmem:[%s1931_s27 + $0x36c] ss:$16 sps:$4 sm:$0xff]  }
  0x3a   : > { %1079 = vmatpush1.bf16.msra.mxu0 %v1707_v35  ;;  %1161 = vmatpush1.bf16.msra.mxu1 %v1708_v36  ;;  %v1784_v35 = vld [vmem:[%s1931_s27 + $0x2a8] ss:$16 sps:$4 sm:$0xff]   ;;  %v1789_v36 = vld [vmem:[%s1931_s27 + $0x2c4] ss:$16 sps:$4 sm:$0xff]  }
  0x3b   : > { %1080 = vmatprep.subr.bf16.mxu0 %v1709_v37  ;;  %1162 = vmatprep.subr.bf16.mxu1 %v1711_v38  ;;  %v1792_v37 = vld [vmem:[%s1931_s27 + $0x2cc] ss:$16 sps:$4 sm:$0xff]   ;;  %v1787_v38 = vld [vmem:[%s1931_s27 + $0x2c0] ss:$16 sps:$4 sm:$0xff]  }
  0x3e   : > { %1081 = vmatpush1.bf16.msra.mxu0 %v1713_v42  ;;  %1163 = vmatpush1.bf16.msra.mxu1 %v1714_v43  ;;  %v1793_v42 = vld [vmem:[%s1931_s27 + $0x2e0] ss:$16 sps:$4 sm:$0xff]   ;;  %v1796_v43 = vld [vmem:[%s1931_s27 + $0x2e8] ss:$16 sps:$4 sm:$0xff]  }
  0x3f   : > { %1082 = vmatprep.subr.bf16.mxu0 %v1715_v44  ;;  %1164 = vmatprep.subr.bf16.mxu1 %v1717_v45  ;;  %v1801_v44 = vld [vmem:[%s1931_s27 + $0x304] ss:$16 sps:$4 sm:$0xff]   ;;  %v1804_v45 = vld [vmem:[%s1931_s27 + $0x30c] ss:$16 sps:$4 sm:$0xff]  }
  0x42   : > { %1083 = vmatpush1.bf16.msra.mxu0 %v1719_v48  ;;  %1165 = vmatpush1.bf16.msra.mxu1 %v1720_v49  ;;  %v1802_v48 = vld [vmem:[%s1931_s27 + $0x308] ss:$16 sps:$4 sm:$0xff]   ;;  %v1807_v49 = vld [vmem:[%s1931_s27 + $0x324] ss:$16 sps:$4 sm:$0xff]  }
  0x43   : > { %1084 = vmatprep.subr.bf16.mxu0 %v1721_v50  ;;  %1166 = vmatprep.subr.bf16.mxu1 %v1723_v51  ;;  %v1810_v50 = vld [vmem:[%s1931_s27 + $0x32c] ss:$16 sps:$4 sm:$0xff]   ;;  %v1805_v51 = vld [vmem:[%s1931_s27 + $0x320] ss:$16 sps:$4 sm:$0xff]  }
  0x46   : > { %1085 = vmatpush1.bf16.msra.mxu0 %v1725_v54  ;;  %1167 = vmatpush1.bf16.msra.mxu1 %v1726_v55  ;;  %v1813_v54 = vld [vmem:[%s1931_s27 + $0x344] ss:$16 sps:$4 sm:$0xff]   ;;  %v1816_v55 = vld [vmem:[%s1931_s27 + $0x34c] ss:$16 sps:$4 sm:$0xff]  }
  0x47   : > { %1086 = vmatprep.subr.bf16.mxu0 %v1727_v57  ;;  %1168 = vmatprep.subr.bf16.mxu1 %v1729_v58  ;;  %v1814_v57 = vld [vmem:[%s1931_s27 + $0x348] ss:$16 sps:$4 sm:$0xff]   ;;  %v1819_v58 = vld [vmem:[%s1931_s27 + $0x364] ss:$16 sps:$4 sm:$0xff]  }
  0x4a   : > { %1087 = vmatpush1.bf16.msra.mxu0 %v1731_v60  ;;  %1169 = vmatpush1.bf16.msra.mxu1 %v1732_v61  ;;  %v1817_v60 = vld [vmem:[%s1931_s27 + $0x360] ss:$16 sps:$4 sm:$0xff]   ;;  %v1820_v61 = vld [vmem:[%s1931_s27 + $0x368] ss:$16 sps:$4 sm:$0xff]  }
  0x4b   : > { %1088 = vmatprep.subr.bf16.mxu0 %v1733_v62  ;;  %1170 = vmatprep.subr.bf16.mxu1 %v1735_v63  ;;  %v1825_v62 = vld [vmem:[%s1931_s27 + $0x384] ss:$16 sps:$4 sm:$0xff]   ;;  %v1828_v63 = vld [vmem:[%s1931_s27 + $0x38c] ss:$16 sps:$4 sm:$0xff]  }
  0x4e   : > { %1089 = vmatpush1.bf16.msra.mxu0 %v1737_v0  ;;  %1171 = vmatpush1.bf16.msra.mxu1 %v1738_v1  ;;  %v1823_v0 = vld [vmem:[%s1931_s27 + $0x380] ss:$16 sps:$4 sm:$0xff]   ;;  %v1826_v1 = vld [vmem:[%s1931_s27 + $0x388] ss:$16 sps:$4 sm:$0xff]  }
  0x4f   : > { %1090 = vmatprep.subr.bf16.mxu0 %v1739_v2  ;;  %1172 = vmatprep.subr.bf16.mxu1 %v1741_v3  ;;  %v1831_v2 = vld [vmem:[%s1931_s27 + $0x3a4] ss:$16 sps:$4 sm:$0xff]   ;;  %v1834_v3 = vld [vmem:[%s1931_s27 + $0x3ac] ss:$16 sps:$4 sm:$0xff]  }
  0x52   : > { %1091 = vmatpush1.bf16.msra.mxu0 %v1743_v4  ;;  %1173 = vmatpush1.bf16.msra.mxu1 %v1744_v5  ;;  %v1829_v4 = vld [vmem:[%s1931_s27 + $0x3a0] ss:$16 sps:$4 sm:$0xff]   ;;  %v1832_v5 = vld [vmem:[%s1931_s27 + $0x3a8] ss:$16 sps:$4 sm:$0xff]  }
  0x53   : > { %1092 = vmatprep.subr.bf16.mxu0 %v1745_v6  ;;  %1174 = vmatprep.subr.bf16.mxu1 %v1747_v7  ;;  %v1837_v6 = vld [vmem:[%s1931_s27 + $0x3c4] ss:$16 sps:$4 sm:$0xff]   ;;  %v1840_v7 = vld [vmem:[%s1931_s27 + $0x3cc] ss:$16 sps:$4 sm:$0xff]  }
  0x56   : > { %1093 = vmatpush1.bf16.msra.mxu0 %v1749_v8  ;;  %1175 = vmatpush1.bf16.msra.mxu1 %v1750_v9  ;;  %v1835_v8 = vld [vmem:[%s1931_s27 + $0x3c0] ss:$16 sps:$4 sm:$0xff]   ;;  %v1838_v9 = vld [vmem:[%s1931_s27 + $0x3c8] ss:$16 sps:$4 sm:$0xff]  }
  0x57   : > { %1103 = vmatprep.subr.bf16.mxu0 %v1753_v10  ;;  %1185 = vmatprep.subr.bf16.mxu1 %v1756_v11  ;;  %v1843_v10 = vld [vmem:[%s1931_s27 + $0x3e4] ss:$16 sps:$4 sm:$0xff]   ;;  %v1846_v11 = vld [vmem:[%s1931_s27 + $0x3ec] ss:$16 sps:$4 sm:$0xff]  }
  0x59   : > { %1095 = vmatmul.mubr.bf16.vlgmr.msra.gmra.mrb[0].mxu0 %v2013_v13  ;;  %1177 = vmatmul.mubr.bf16.vlgmr.msra.gmra.mrb[0].mxu1 %v2013_v13 }
  0x5a   : > { %1104 = vmatpush1.bf16.msra.mxu0 %v1751_v12  ;;  %1186 = vmatpush1.bf16.msra.mxu1 %v1754_v14  ;;  %v1841_v12 = vld [vmem:[%s1931_s27 + $0x3e0] ss:$16 sps:$4 sm:$0xff]   ;;  %v1844_v14 = vld [vmem:[%s1931_s27 + $0x3e8] ss:$16 sps:$4 sm:$0xff]  }
  0x5b   : > { %1105 = vmatprep.subr.bf16.mxu0 %v1759_v15  ;;  %1187 = vmatprep.subr.bf16.mxu1 %v1762_v16  ;;  %v416_v15 = vcombine.high %v2013_v13, %v2013_v13  ;;  %v1873_v16 = vmov 1983009808  }
  0x5c   : > { %1135 = vmatprep.mubr.bf16.mxu0 %v417_v17  ;;  %1217 = vmatprep.mubr.bf16.mxu1 %v417_v17  ;;  %v1233_v17 = vunpack.c.l.s4 %v1873_v16 }
  0x5e   : > { %1106 = vmatpush1.bf16.msra.mxu0 %v1757_v18  ;;  %1188 = vmatpush1.bf16.msra.mxu1 %v1760_v19  ;;  %v1234_v18 = vunpack.c.0.s8 %v1233_v17 }
  0x5f   : > { %1107 = vmatprep.subr.bf16.mxu0 %v1765_v20  ;;  %1189 = vmatprep.subr.bf16.mxu1 %v1768_v21 }
  0x60   : > { %v1237_v21 = vsub.s32 %v1234_v18, %v1976_v47 }
  0x62   : > { %1108 = vmatpush1.bf16.msra.mxu0 %v1763_v22  ;;  %1190 = vmatpush1.bf16.msra.mxu1 %v1766_v23 }
  0x63   : > { %1109 = vmatprep.subr.bf16.mxu0 %v1771_v24  ;;  %1191 = vmatprep.subr.bf16.mxu1 %v1774_v25 }
  0x66   : > { %1110 = vmatpush1.bf16.msra.mxu0 %v1769_v26  ;;  %1192 = vmatpush1.bf16.msra.mxu1 %v1772_v27 }
  0x67   : > { %1111 = vmatprep.subr.bf16.mxu0 %v1777_v28  ;;  %1193 = vmatprep.subr.bf16.mxu1 %v1780_v29 }
  0x6a   : > { %1112 = vmatpush1.bf16.msra.mxu0 %v1775_v30  ;;  %1194 = vmatpush1.bf16.msra.mxu1 %v1778_v31  ;;  %v263_v31 = vld [vmem:[#allocation2] sm:$0xff] }
  0x6b   : > { %1113 = vmatprep.subr.bf16.mxu0 %v1783_v32  ;;  %1195 = vmatprep.subr.bf16.mxu1 %v1786_v33 }
  0x6e   : > { %1114 = vmatpush1.bf16.msra.mxu0 %v1781_v34  ;;  %1196 = vmatpush1.bf16.msra.mxu1 %v1784_v35  ;;  %v1255_v34 = vld [vmem:[%s2108_s3] sm:$0xf] (!%p1611_p7)  ;;  %v1259_v35 = vsub.s32 (!%p1611_p7), 0, %v1976_v47 }
  0x6f   : > { %1115 = vmatprep.subr.bf16.mxu0 %v1789_v36  ;;  %1197 = vmatprep.subr.bf16.mxu1 %v1792_v37  ;;  %v1263_v36 = vsub.s32 (!%p1611_p7), 1, %v1976_v47  ;;  %v1267_v37 = vsub.s32 (!%p1611_p7), 2, %v1976_v47 }
  0x72   : > { %1116 = vmatpush1.bf16.msra.mxu0 %v1787_v38  ;;  %1198 = vmatpush1.bf16.msra.mxu1 %v1790_v39  ;;  %v1271_v38 = vsub.s32 (!%p1611_p7), 3, %v1976_v47  ;;  %v1260_v39 = vrot.slane (!%p1611_p7), %v1255_v34, %v1259_v35 }
  0x73   : > { %1117 = vmatprep.subr.bf16.mxu0 %v1795_v40  ;;  %1199 = vmatprep.subr.bf16.mxu1 %v1798_v41  ;;  %v1264_v40 = vrot.slane (!%p1611_p7), %v1255_v34, %v1263_v36  ;;  %v1268_v41 = vrot.slane (!%p1611_p7), %v1255_v34, %v1267_v37 }
  0x76   : > { %1118 = vmatpush1.bf16.msra.mxu0 %v1793_v42  ;;  %1200 = vmatpush1.bf16.msra.mxu1 %v1796_v43  ;;  %v1272_v42 = vrot.slane (!%p1611_p7), %v1255_v34, %v1271_v38  ;;  %v1273_v43 = vcombine.low (!%p1611_p7), %v1260_v39, %v1264_v40 }
  0x77   : > { %1119 = vmatprep.subr.bf16.mxu0 %v1801_v44  ;;  %1201 = vmatprep.subr.bf16.mxu1 %v1804_v45 }
  0x78   : > { %v1274_v44 = vcombine.low (!%p1611_p7), %v1268_v41, %v1272_v42  ;;  %v1281_v45 = vrot.slane (!%p1611_p7), %v1273_v43, %v1237_v21 }
  0x7a   : > { %1120 = vmatpush1.bf16.msra.mxu0 %v1799_v46  ;;  %1202 = vmatpush1.bf16.msra.mxu1 %v1802_v48  ;;  %v1288_v46 = vrot.slane (!%p1611_p7), %v1274_v44, %v1237_v21 }
  0x7b   : > { %1121 = vmatprep.subr.bf16.mxu0 %v1807_v49  ;;  %1203 = vmatprep.subr.bf16.mxu1 %v1810_v50 }
  0x7c   : > { %v1289_v49 = vcombine.low (!%p1611_p7), %v1281_v45, %v1288_v46 }
  0x7e   : > { %1122 = vmatpush1.bf16.msra.mxu0 %v1805_v51  ;;  %1204 = vmatpush1.bf16.msra.mxu1 %v1808_v53 }
  0x7f   : > { %1123 = vmatprep.subr.bf16.mxu0 %v1813_v54  ;;  %1205 = vmatprep.subr.bf16.mxu1 %v1816_v55 }
  0x82   : > { %1124 = vmatpush1.bf16.msra.mxu0 %v1811_v56  ;;  %1206 = vmatpush1.bf16.msra.mxu1 %v1814_v57 }
  0x83   : > { %1125 = vmatprep.subr.bf16.mxu0 %v1819_v58  ;;  %1207 = vmatprep.subr.bf16.mxu1 %v1822_v59 }
  0x86   : > { %1126 = vmatpush1.bf16.msra.mxu0 %v1817_v60  ;;  %1208 = vmatpush1.bf16.msra.mxu1 %v1820_v61 }
  0x87   : > { %1127 = vmatprep.subr.bf16.mxu0 %v1825_v62  ;;  %1209 = vmatprep.subr.bf16.mxu1 %v1828_v63 }
  0x8a   : > { %1128 = vmatpush1.bf16.msra.mxu0 %v1823_v0  ;;  %1210 = vmatpush1.bf16.msra.mxu1 %v1826_v1 }
  0x8b   : > { %1129 = vmatprep.subr.bf16.mxu0 %v1831_v2  ;;  %1211 = vmatprep.subr.bf16.mxu1 %v1834_v3 }
  0x8e   : > { %1130 = vmatpush1.bf16.msra.mxu0 %v1829_v4  ;;  %1212 = vmatpush1.bf16.msra.mxu1 %v1832_v5 }
  0x8f   : > { %1131 = vmatprep.subr.bf16.mxu0 %v1837_v6  ;;  %1213 = vmatprep.subr.bf16.mxu1 %v1840_v7 }
  0x92   : > { %1132 = vmatpush1.bf16.msra.mxu0 %v1835_v8  ;;  %1214 = vmatpush1.bf16.msra.mxu1 %v1838_v9 }
  0x93   : > { %1133 = vmatprep.subr.bf16.mxu0 %v1843_v10  ;;  %1215 = vmatprep.subr.bf16.mxu1 %v1846_v11 }
  0x96   : > { %1134 = vmatpush1.bf16.msra.mxu0 %v1841_v12  ;;  %1216 = vmatpush1.bf16.msra.mxu1 %v1844_v14 }
  0x99   : > { %1136 = vmatmul.mubr.bf16.vlgmr.msra.gmra.mrb[0].mxu0 %v416_v15  ;;  %1218 = vmatmul.mubr.bf16.vlgmr.msra.gmra.mrb[0].mxu1 %v416_v15 }
 0x16c   : > { %v1137_v19 = vpop.f32.mrb[0].mxu0  ;;  %v1219_v20 = vpop.f32.mrb[0].mxu1 }
 0x16d   : > { %v1139_v22 = vpop.f32.mrb[1].mxu0  ;;  %v1221_v23 = vpop.f32.mrb[1].mxu1 }
 0x16e   : > { %v1230_v24 = vcombine.low %v1137_v19, %v1139_v22  ;;  %v1231_v25 = vcombine.low %v1219_v20, %v1221_v23  ;;  %v1141_v26 = vpop.f32.mrb[2].mxu0  ;;  %v1223_v27 = vpop.f32.mrb[2].mxu1 }
 0x16f   : > { %v1142_v28 = vpop.f32.mrb[3].mxu0  ;;  %v1224_v29 = vpop.f32.mrb[3].mxu1 }
 0x170   : > { %v1238_v13 = vrot.slane %v1230_v24, %v1237_v21  ;;  %v1245_v30 = vrot.slane %v1231_v25, %v1237_v21  ;;  %1253 = sbr.rel (%p1611_p7) target bundleno = 399 (0x18f), region = 40 }
 0x172   : > { %v1246_v32 = vcombine.low %v1238_v13, %v1245_v30 }
 0x174   : > { %v1248_v33 = vadd.f32 %v1246_v32, %v263_v31 }
 0x176   : > { %1249 = vst [vmem:[#allocation2] sm:$0xff] %v1248_v33 }
 0x17d   : > { %v1254_v48 = vld [vmem:[#allocation2] sm:$0xff] }
 0x17e   : > { %v1291_v50 = vadd.f32 %v1289_v49, %v1254_v48 }
 0x180   : > { %v1292_v51 = vmax.f32 %v1291_v50, 0.0 }
 0x182   : > { %v1294_v53 = vcombine.high %v1292_v51, %v1292_v51  ;;  %v1301_v54 = vrot.slane %v1292_v51, %v1237_v21 }
 0x184   : > { %v1308_v55 = vrot.slane %v1294_v53, %v1237_v21  ;;  %v1309_v56 = vcombine.high %v1301_v54, %v1301_v54 }
 0x186   : > { %v1310_v57 = vcombine.high %v1308_v55, %v1308_v55  ;;  %v1612_v58 = vpack.c.bf16 %v1309_v56, %v1301_v54 }
 0x188   : > { %v1613_v59 = vpack.c.bf16 %v1310_v57, %v1308_v55  ;;  %v1331_v47 = vrot.slane %v1612_v58, %v1983_v52 }
 0x18a   : > { %v1338_v60 = vrot.slane %v1613_v59, %v1983_v52 }
 0x18c   : > { %v1339_v61 = vcombine.low %v1331_v47, %v1338_v60 }
 0x18e   : > { %1614 = vst.sshfl [vmem:[#allocation3] sm:$0x55 pattern:$0x73625140] %v1339_v61 }
 0x18f PF: > { %p1615_p8 = scmp.ne.s32.totalorder %s1472_s0, 8 }
 0x191   : > { %1351 = sbr.rel (%p1615_p8) target bundleno = 408 (0x198), region = 44 }
 0x195   : > { %v1371_v62 = vld [vmem:[#allocation3] sm:$0xf] (!%p1615_p8) }
 0x196   : > { %1616 = vst [vmem:[%s2109_s4 + $0x10] sm:$0xf] (!%p1615_p8), %v1371_v62 }
 0x198 PF: > { %s15_s17 = sadd.s32 1, %s1869_s17   ;;  %s2110_s15 = smov %s1865_s16 }
 0x199   : > { %p12_p9 = scmp.ge.s32.totalorder %s15_s17, 11   ;;  %s2111_s16 = smov %s2113_s18 }
 0x19b   :  { %14 = sbr.rel (!%p12_p9) target bundleno = 2 (0x2), region = 108 }

// kernel: image_captioning_forward.45
= control target key start
LH: loop header
LB: loop body
LE: loop exit
PB: predicated region body
PF: predicated region fallthrough
CT: control target
= control target key end

     0   :  { %s204_s6 = smov 0   ;;  %s225_s0 = inlined_call_operand.vmem [shape: bf16[2,1,512], index: 0, kind: input, shape index: {}]   ;;  %s226_s1 = inlined_call_operand.vmem [shape: f32[2,1,512], index: 1, kind: output, shape index: {}]  }
   0x1 LB: > { %s182_s7 = sadd.s32 4294967295, %s206_s6   ;;  %p186_p0 = scmp.ge.s32.totalorder %s206_s6, 1  ;;  %s206_s6 = sphi %s204_s6, %s11_s6  }
   0x2   : > { %p86_p1 = scmp.lt.s32.totalorder %s206_s6, 3 }
   0x4   : > { %p87_p2 = pnand %p186_p0, %p86_p1 }
   0x5   : > { %p104_p3 = scmp.lt.s32.totalorder (!%p87_p2), %s182_s7, 1  ;;  %v119_v0 = vlaneseq (!%p87_p2)  ;;  %v208_v1 = vmov (!%p87_p2), 1966171168  }
   0x6   : > { %90 = sbr.rel (%p87_p2) target bundleno = 22 (0x16), region = 24  ;;  %v117_v2 = vunpack.c.l.s4 (!%p87_p2), %v208_v1 }
   0x7   : > { %v120_v3 = vshrl.u32 (!%p87_p2), %v119_v0, 7  ;;  %vm126_vm0 = vcmp.lt.s32.totalorder (!%p87_p2), %v119_v0, 512 }
   0x8   : > { %v118_v4 = vunpack.c.0.s8 (!%p87_p2), %v117_v2 }
   0xa   : > { %v121_v5 = vsub.s32 (!%p87_p2), %v118_v4, %v120_v3 }
   0xd   : > { %s228_s7 = smov (!%p104_p3, %s182_s7), 1 }
   0xe   : > { %s187_s8 = sshll.u32 %s228_s7, 2 }
   0xf   : > { %s107_s11 = scalar_lea.vmem %s225_s0, %s187_s8  ;;  %s111_s14 = scalar_lea.vmem %s226_s1, %s187_s8 }
  0x10   : > { %v112_v6 = vld [vmem:[%s107_s11] sm:$0xf] }
  0x11   : > { %v113_v7 = vunpack.c.l.bf16 %v112_v6 }
  0x13   : > { %v122_v8 = vrot.slane %v113_v7, %v121_v5 }
  0x15   : > { %128 = vst.msk [vmem:[%s111_s14] sm:$0xf] %vm126_vm0, %v122_v8 }
  0x16 PF: > { %s11_s6 = sadd.s32 1, %s206_s6  }
  0x17   : > { %p8_p4 = scmp.ge.s32.totalorder %s11_s6, 4  }
  0x19   :  { %10 = sbr.rel (!%p8_p4) target bundleno = 1 (0x1), region = 54 }

// kernel: image_captioning_forward.46
= control target key start
LH: loop header
LB: loop body
LE: loop exit
PB: predicated region body
PF: predicated region fallthrough
CT: control target
= control target key end

     0   :  { %v520_v22 = vmov 1966171168   ;;  %v99_v24 = vlaneseq  ;;  %vm19_vm0 = vcmask 254976   ;;  %v521_v44 = vmov 0.0   ;;  %s650_s1 = inlined_call_operand.vmem [shape: bf16[512,32], index: 1, kind: input, shape index: {}]   ;;  %s651_s0 = inlined_call_operand.vmem [shape: bf16[2,512], index: 0, kind: input, shape index: {}]   ;;  %s652_s2 = inlined_call_operand.vmem [shape: f32[1,32], index: 2, kind: input, shape index: {}]   ;;  %s653_s3 = inlined_call_operand.vmem [shape: f32[2,32], index: 3, kind: output, shape index: {}]  }
   0x1   :  { %v488_v0 = vld [vmem:[%s650_s1 + $0x40] sm:$0xff]   ;;  %v492_v4 = vld [vmem:[%s650_s1 + $0x48] sm:$0xff]   ;;  %v496_v8 = vld [vmem:[%s650_s1 + $0x50] sm:$0xff]   ;;  %v97_v23 = vunpack.c.l.s4 %v520_v22  ;;  %20 = vst.msk [vmem:[#allocation2] sm:$0x3] %vm19_vm0, %v521_v44 }
   0x2   :  { %v489_v1 = vld [vmem:[%s650_s1 + $0xc0] sm:$0xff]   ;;  %442 = vmatprep.subr.bf16.mxu0 %v488_v0  ;;  %v493_v5 = vld [vmem:[%s650_s1 + $0xc8] sm:$0xff]   ;;  %v497_v9 = vld [vmem:[%s650_s1 + $0xd0] sm:$0xff]   ;;  %v100_v30 = vshrl.u32 %v99_v24, 7 }
   0x3   :  { %v490_v2 = vld [vmem:[%s650_s1] sm:$0xff]   ;;  %464 = vmatprep.subr.bf16.mxu1 %v489_v1  ;;  %v494_v6 = vld [vmem:[%s650_s1 + $0x8] sm:$0xff]   ;;  %v498_v10 = vld [vmem:[%s650_s1 + $0x10] sm:$0xff]   ;;  %v98_v29 = vunpack.c.0.s8 %v97_v23 }
   0x4   :  { %v491_v3 = vld [vmem:[%s650_s1 + $0x80] sm:$0xff]   ;;  %443 = vmatpush3.bf16.msra.mxu0 %v490_v2  ;;  %v495_v7 = vld [vmem:[%s650_s1 + $0x88] sm:$0xff]   ;;  %v499_v11 = vld [vmem:[%s650_s1 + $0x90] sm:$0xff]  }
   0x5   :  { %465 = vmatpush3.bf16.msra.mxu1 %v491_v3  ;;  %444 = vmatprep.subr.bf16.mxu0 %v492_v4  ;;  %v500_v12 = vld [vmem:[%s650_s1 + $0x58] sm:$0xff]   ;;  %v504_v16 = vld [vmem:[%s650_s1 + $0x60] sm:$0xff]   ;;  %v508_v20 = vld [vmem:[%s650_s1 + $0x68] sm:$0xff]   ;;  %v101_v35 = vsub.s32 %v98_v29, %v100_v30 }
   0x6   :  { %466 = vmatprep.subr.bf16.mxu1 %v493_v5  ;;  %v501_v13 = vld [vmem:[%s650_s1 + $0xd8] sm:$0xff]   ;;  %v505_v17 = vld [vmem:[%s650_s1 + $0xe0] sm:$0xff]   ;;  %v509_v21 = vld [vmem:[%s650_s1 + $0xe8] sm:$0xff]  }
   0x7   :  { %v502_v14 = vld [vmem:[%s650_s1 + $0x18] sm:$0xff]   ;;  %v506_v18 = vld [vmem:[%s650_s1 + $0x20] sm:$0xff]   ;;  %v510_v25 = vld [vmem:[%s650_s1 + $0x28] sm:$0xff]  }
   0x8   :  { %445 = vmatpush3.bf16.msra.mxu0 %v494_v6  ;;  %v503_v15 = vld [vmem:[%s650_s1 + $0x98] sm:$0xff]   ;;  %v507_v19 = vld [vmem:[%s650_s1 + $0xa0] sm:$0xff]   ;;  %v511_v26 = vld [vmem:[%s650_s1 + $0xa8] sm:$0xff]  }
   0x9   :  { %467 = vmatpush3.bf16.msra.mxu1 %v495_v7  ;;  %446 = vmatprep.subr.bf16.mxu0 %v496_v8  ;;  %v512_v27 = vld [vmem:[%s650_s1 + $0x70] sm:$0xff]   ;;  %v516_v33 = vld [vmem:[%s650_s1 + $0x78] sm:$0xff]   ;;  %v408_v38 = vld.sshfl [vmem:[%s651_s0] sm:$0x33 pattern:$0x75316420] }
   0xa   :  { %468 = vmatprep.subr.bf16.mxu1 %v497_v9  ;;  %v513_v28 = vld [vmem:[%s650_s1 + $0xf0] sm:$0xff]   ;;  %v517_v34 = vld [vmem:[%s650_s1 + $0xf8] sm:$0xff]   ;;  %v95_v39 = vcombine.high %v408_v38, %v408_v38  ;;  %v102_v40 = vrot.slane %v408_v38, %v101_v35  ;;  %v21_v54 = vld [vmem:[#allocation2] sm:$0x3] }
   0xb   :  { %v514_v31 = vld [vmem:[%s650_s1 + $0x30] sm:$0xff]   ;;  %v518_v36 = vld [vmem:[%s650_s1 + $0x38] sm:$0xff]   ;;  %v441_v58 = vld [vmem:[%s652_s2] ss:$0 sm:$0xff] }
   0xc   :  { %447 = vmatpush3.bf16.msra.mxu0 %v498_v10  ;;  %v515_v32 = vld [vmem:[%s650_s1 + $0xb0] sm:$0xff]   ;;  %v519_v37 = vld [vmem:[%s650_s1 + $0xb8] sm:$0xff]   ;;  %v109_v41 = vrot.slane %v95_v39, %v101_v35  ;;  %v110_v42 = vcombine.high %v102_v40, %v102_v40 }
   0xd   :  { %469 = vmatpush3.bf16.msra.mxu1 %v499_v11  ;;  %448 = vmatprep.subr.bf16.mxu0 %v500_v12 }
   0xe   :  { %470 = vmatprep.subr.bf16.mxu1 %v501_v13  ;;  %340 = vmatprep.mubr.bf16.mxu0 %v109_v41  ;;  %v111_v43 = vcombine.high %v109_v41, %v109_v41 }
  0x10   :  { %449 = vmatpush3.bf16.msra.mxu0 %v502_v14  ;;  %380 = vmatprep.mubr.bf16.mxu1 %v111_v43 }
  0x11   :  { %471 = vmatpush3.bf16.msra.mxu1 %v503_v15  ;;  %450 = vmatprep.subr.bf16.mxu0 %v504_v16 }
  0x12   :  { %472 = vmatprep.subr.bf16.mxu1 %v505_v17 }
  0x14   :  { %451 = vmatpush3.bf16.msra.mxu0 %v506_v18 }
  0x15   :  { %473 = vmatpush3.bf16.msra.mxu1 %v507_v19  ;;  %452 = vmatprep.subr.bf16.mxu0 %v508_v20 }
  0x16   :  { %474 = vmatprep.subr.bf16.mxu1 %v509_v21 }
  0x18   :  { %453 = vmatpush3.bf16.msra.mxu0 %v510_v25 }
  0x19   :  { %475 = vmatpush3.bf16.msra.mxu1 %v511_v26  ;;  %454 = vmatprep.subr.bf16.mxu0 %v512_v27 }
  0x1a   :  { %476 = vmatprep.subr.bf16.mxu1 %v513_v28 }
  0x1c   :  { %455 = vmatpush3.bf16.msra.mxu0 %v514_v31 }
  0x1d   :  { %477 = vmatpush3.bf16.msra.mxu1 %v515_v32  ;;  %456 = vmatprep.subr.bf16.mxu0 %v516_v33 }
  0x1e   :  { %478 = vmatprep.subr.bf16.mxu1 %v517_v34 }
  0x20   :  { %457 = vmatpush3.bf16.msra.mxu0 %v518_v36 }
  0x21   :  { %479 = vmatpush3.bf16.msra.mxu1 %v519_v37 }
  0x23   :  { %341 = vmatmul.mubr.bf16.vlgmr.msra.gmra.mrb[0].mxu0 %v102_v40 }
  0x24   :  { %381 = vmatmul.mubr.bf16.vlgmr.msra.gmra.mrb[0].mxu1 %v110_v42 }
  0xf6   :  { %v458_v45 = vpop.f32.mrb[0].mxu0 }
  0xf7   :  { %v459_v46 = vpop.f32.mrb[1].mxu0  ;;  %v480_v47 = vpop.f32.mrb[0].mxu1 }
  0xf8   :  { %v460_v48 = vadd.f32 %v459_v46, %v458_v45  ;;  %v461_v49 = vpop.f32.mrb[2].mxu0  ;;  %v481_v50 = vpop.f32.mrb[1].mxu1 }
  0xf9   :  { %v462_v51 = vpop.f32.mrb[3].mxu0  ;;  %v482_v52 = vadd.f32 %v481_v50, %v480_v47  ;;  %v483_v53 = vpop.f32.mrb[2].mxu1 }
  0xfa   :  { %v484_v55 = vpop.f32.mrb[3].mxu1 }
  0xfb   :  { %v383_v56 = vadd.f32 %v482_v52, %v460_v48 }
  0xfd   :  { %v388_v57 = vadd.f32 %v383_v56, %v21_v54 }
  0xff   :  { %390 = vst.msk [vmem:[#allocation2] sm:$0x3] %vm19_vm0, %v388_v57 }
 0x106   :  { %v394_v59 = vld [vmem:[#allocation2] sm:$0x3] }
 0x107   :  { %v402_v60 = vadd.f32 %v441_v58, %v394_v59 }
 0x109   :  { %403 = vst.msk [vmem:[%s653_s3] sm:$0x3] %vm19_vm0, %v402_v60 }

// kernel: image_captioning_forward.47
= control target key start
LH: loop header
LB: loop body
LE: loop exit
PB: predicated region body
PF: predicated region fallthrough
CT: control target
= control target key end

     0   :  { %v544_v1 = vmov 0   ;;  %vm159_vm0 = vcmask 261120   ;;  %v419_v13 = vlaneseq  ;;  %s748_s1 = inlined_call_operand.vmem [shape: bf16[32,512], index: 1, kind: input, shape index: {}]   ;;  %s749_s0 = inlined_call_operand.vmem [shape: bf16[64,32], index: 0, kind: input, shape index: {}]   ;;  %s750_s2 = inlined_call_operand.vmem [shape: f32[1,512], index: 2, kind: input, shape index: {}]   ;;  %s751_s3 = inlined_call_operand.vmem [shape: f32[64,512], index: 3, kind: output, shape index: {}]  }
   0x1   :  { %v528_v0 = vld [vmem:[%s748_s1 + $0x4] ss:$16 sps:$4 sm:$0xff]   ;;  %204 = vmatprep.mubr.bf16.mxu0 %v544_v1  ;;  %277 = vmatprep.mubr.bf16.mxu1 %v544_v1  ;;  %v530_v2 = vld [vmem:[%s748_s1 + $0xc] ss:$16 sps:$4 sm:$0xff]   ;;  %v532_v3 = vld [vmem:[%s748_s1] ss:$16 sps:$4 sm:$0xff]  }
   0x2   :  { %172 = vmatprep.subr.bf16.mxu0 %v528_v0  ;;  %v533_v4 = vld [vmem:[%s748_s1 + $0x8] ss:$16 sps:$4 sm:$0xff]   ;;  %245 = vmatprep.subr.bf16.mxu1 %v530_v2  ;;  %v534_v5 = vld [vmem:[%s748_s1 + $0x24] ss:$16 sps:$4 sm:$0xff]   ;;  %v536_v6 = vld [vmem:[%s748_s1 + $0x2c] ss:$16 sps:$4 sm:$0xff]  }
   0x3   :  { %173 = vmatpush1.bf16.msra.mxu0 %v532_v3  ;;  %246 = vmatpush1.bf16.msra.mxu1 %v533_v4  ;;  %v538_v7 = vld [vmem:[%s748_s1 + $0x20] ss:$16 sps:$4 sm:$0xff]   ;;  %v539_v8 = vld [vmem:[%s748_s1 + $0x28] ss:$16 sps:$4 sm:$0xff]   ;;  %v420_v14 = vshrl.u32 %v419_v13, 7 }
   0x4   :  { %174 = vmatprep.subr.bf16.mxu0 %v534_v5  ;;  %247 = vmatprep.subr.bf16.mxu1 %v536_v6  ;;  %v540_v9 = vld [vmem:[%s749_s0] sm:$0xff]   ;;  %v541_v10 = vld [vmem:[%s749_s0 + $0x8] sm:$0xff]   ;;  %v542_v11 = vld [vmem:[%s749_s0 + $0x10] sm:$0xff]  }
   0x5   :  { %v543_v12 = vld [vmem:[%s749_s0 + $0x18] sm:$0xff]   ;;  %v421_v15 = vsub.s32 0, %v420_v14  ;;  %v429_v16 = vsub.s32 2, %v420_v14  ;;  %v417_v17 = vld [vmem:[%s750_s2] sm:$0xf]  ;;  %v425_v18 = vsub.s32 1, %v420_v14 }
   0x6   :  { %v433_v19 = vsub.s32 3, %v420_v14 }
   0x7   :  { %175 = vmatpush1.bf16.msra.mxu0 %v538_v7  ;;  %248 = vmatpush1.bf16.msra.mxu1 %v539_v8  ;;  %v612_v20 = vrot.slane %v417_v17, %v421_v15  ;;  %v614_v21 = vrot.slane %v417_v17, %v429_v16  ;;  %v616_v22 = vrot.slane %v417_v17, %v425_v18 }
   0x8   :  { %v618_v23 = vrot.slane %v417_v17, %v433_v19 }
   0xa   :  { %519 = vmatmul.mubr.msk.bf16.vlgmr.msra.gmra.mrb[0].mxu0 %vm159_vm0, %v540_v9  ;;  %523 = vmatmul.mubr.msk.bf16.vlgmr.msra.gmra.mrb[0].mxu1 %vm159_vm0, %v540_v9 }
   0xb   :  { %214 = vmatprep.mubr.bf16.mxu0 %v544_v1  ;;  %287 = vmatprep.mubr.bf16.mxu1 %v544_v1 }
  0x12   :  { %520 = vmatmul.mubr.msk.bf16.gmra.mrb[4].mxu0 %vm159_vm0, %v541_v10  ;;  %524 = vmatmul.mubr.msk.bf16.gmra.mrb[4].mxu1 %vm159_vm0, %v541_v10 }
  0x13   :  { %224 = vmatprep.mubr.bf16.mxu0 %v544_v1  ;;  %297 = vmatprep.mubr.bf16.mxu1 %v544_v1 }
  0x1a   :  { %521 = vmatmul.mubr.msk.bf16.gmra.mrb[8].mxu0 %vm159_vm0, %v542_v11  ;;  %525 = vmatmul.mubr.msk.bf16.gmra.mrb[8].mxu1 %vm159_vm0, %v542_v11 }
  0x1b   :  { %234 = vmatprep.mubr.bf16.mxu0 %v544_v1  ;;  %307 = vmatprep.mubr.bf16.mxu1 %v544_v1 }
  0x22   :  { %522 = vmatmul.mubr.msk.bf16.gmra.mrb[12].mxu0 %vm159_vm0, %v543_v12  ;;  %526 = vmatmul.mubr.msk.bf16.gmra.mrb[12].mxu1 %vm159_vm0, %v543_v12 }
  0xdd   :  { %v206_v24 = vpop.f32.mrb[0].mxu0  ;;  %v279_v25 = vpop.f32.mrb[0].mxu1 }
  0xde   :  { %v439_v26 = vadd.f32 %v612_v20, %v206_v24  ;;  %v441_v27 = vadd.f32 %v614_v21, %v279_v25  ;;  %v208_v28 = vpop.f32.mrb[1].mxu0  ;;  %v281_v29 = vpop.f32.mrb[1].mxu1 }
  0xdf   :  { %v440_v30 = vadd.f32 %v616_v22, %v208_v28  ;;  %v442_v31 = vadd.f32 %v618_v23, %v281_v29  ;;  %v210_v32 = vpop.f32.mrb[2].mxu0  ;;  %v283_v33 = vpop.f32.mrb[2].mxu1 }
  0xe0   :  { %471 = vst [vmem:[%s751_s3] sm:$0xff] %v439_v26  ;;  %473 = vst [vmem:[%s751_s3 + $0x10] sm:$0xff] %v441_v27  ;;  %v443_v34 = vadd.f32 %v612_v20, %v210_v32  ;;  %v445_v35 = vadd.f32 %v614_v21, %v283_v33  ;;  %v212_v36 = vpop.f32.mrb[3].mxu0  ;;  %v285_v37 = vpop.f32.mrb[3].mxu1 }
  0xe1   :  { %472 = vst [vmem:[%s751_s3 + $0x8] sm:$0xff] %v440_v30  ;;  %474 = vst [vmem:[%s751_s3 + $0x18] sm:$0xff] %v442_v31  ;;  %v444_v38 = vadd.f32 %v616_v22, %v212_v36  ;;  %v446_v39 = vadd.f32 %v618_v23, %v285_v37 }
  0xe2   :  { %475 = vst [vmem:[%s751_s3 + $0x20] sm:$0xff] %v443_v34  ;;  %477 = vst [vmem:[%s751_s3 + $0x30] sm:$0xff] %v445_v35 }
  0xe3   :  { %476 = vst [vmem:[%s751_s3 + $0x28] sm:$0xff] %v444_v38  ;;  %478 = vst [vmem:[%s751_s3 + $0x38] sm:$0xff] %v446_v39 }
  0xe5   :  { %v216_v40 = vpop.f32.mrb[4].mxu0  ;;  %v289_v41 = vpop.f32.mrb[4].mxu1 }
  0xe6   :  { %v447_v42 = vadd.f32 %v612_v20, %v216_v40  ;;  %v449_v43 = vadd.f32 %v614_v21, %v289_v41  ;;  %v218_v44 = vpop.f32.mrb[5].mxu0  ;;  %v291_v45 = vpop.f32.mrb[5].mxu1 }
  0xe7   :  { %v448_v46 = vadd.f32 %v616_v22, %v218_v44  ;;  %v450_v47 = vadd.f32 %v618_v23, %v291_v45  ;;  %v220_v48 = vpop.f32.mrb[6].mxu0  ;;  %v293_v49 = vpop.f32.mrb[6].mxu1 }
  0xe8   :  { %479 = vst [vmem:[%s751_s3 + $0x40] sm:$0xff] %v447_v42  ;;  %481 = vst [vmem:[%s751_s3 + $0x50] sm:$0xff] %v449_v43  ;;  %v451_v50 = vadd.f32 %v612_v20, %v220_v48  ;;  %v453_v51 = vadd.f32 %v614_v21, %v293_v49  ;;  %v222_v52 = vpop.f32.mrb[7].mxu0  ;;  %v295_v53 = vpop.f32.mrb[7].mxu1 }
  0xe9   :  { %480 = vst [vmem:[%s751_s3 + $0x48] sm:$0xff] %v448_v46  ;;  %482 = vst [vmem:[%s751_s3 + $0x58] sm:$0xff] %v450_v47  ;;  %v452_v54 = vadd.f32 %v616_v22, %v222_v52  ;;  %v454_v55 = vadd.f32 %v618_v23, %v295_v53 }
  0xea   :  { %483 = vst [vmem:[%s751_s3 + $0x60] sm:$0xff] %v451_v50  ;;  %485 = vst [vmem:[%s751_s3 + $0x70] sm:$0xff] %v453_v51 }
  0xeb   :  { %484 = vst [vmem:[%s751_s3 + $0x68] sm:$0xff] %v452_v54  ;;  %486 = vst [vmem:[%s751_s3 + $0x78] sm:$0xff] %v454_v55 }
  0xed   :  { %v226_v56 = vpop.f32.mrb[8].mxu0  ;;  %v299_v57 = vpop.f32.mrb[8].mxu1 }
  0xee   :  { %v455_v58 = vadd.f32 %v612_v20, %v226_v56  ;;  %v457_v59 = vadd.f32 %v614_v21, %v299_v57  ;;  %v228_v60 = vpop.f32.mrb[9].mxu0  ;;  %v301_v61 = vpop.f32.mrb[9].mxu1 }
  0xef   :  { %v456_v62 = vadd.f32 %v616_v22, %v228_v60  ;;  %v458_v63 = vadd.f32 %v618_v23, %v301_v61  ;;  %v230_v0 = vpop.f32.mrb[10].mxu0  ;;  %v303_v1 = vpop.f32.mrb[10].mxu1 }
  0xf0   :  { %487 = vst [vmem:[%s751_s3 + $0x80] sm:$0xff] %v455_v58  ;;  %489 = vst [vmem:[%s751_s3 + $0x90] sm:$0xff] %v457_v59  ;;  %v459_v2 = vadd.f32 %v612_v20, %v230_v0  ;;  %v461_v3 = vadd.f32 %v614_v21, %v303_v1  ;;  %v232_v4 = vpop.f32.mrb[11].mxu0  ;;  %v305_v5 = vpop.f32.mrb[11].mxu1 }
  0xf1   :  { %488 = vst [vmem:[%s751_s3 + $0x88] sm:$0xff] %v456_v62  ;;  %490 = vst [vmem:[%s751_s3 + $0x98] sm:$0xff] %v458_v63  ;;  %v460_v6 = vadd.f32 %v616_v22, %v232_v4  ;;  %v462_v7 = vadd.f32 %v618_v23, %v305_v5 }
  0xf2   :  { %491 = vst [vmem:[%s751_s3 + $0xa0] sm:$0xff] %v459_v2  ;;  %493 = vst [vmem:[%s751_s3 + $0xb0] sm:$0xff] %v461_v3 }
  0xf3   :  { %492 = vst [vmem:[%s751_s3 + $0xa8] sm:$0xff] %v460_v6  ;;  %494 = vst [vmem:[%s751_s3 + $0xb8] sm:$0xff] %v462_v7 }
  0xf5   :  { %v236_v8 = vpop.f32.mrb[12].mxu0  ;;  %v309_v9 = vpop.f32.mrb[12].mxu1 }
  0xf6   :  { %v463_v10 = vadd.f32 %v612_v20, %v236_v8  ;;  %v465_v11 = vadd.f32 %v614_v21, %v309_v9  ;;  %v238_v12 = vpop.f32.mrb[13].mxu0  ;;  %v311_v13 = vpop.f32.mrb[13].mxu1 }
  0xf7   :  { %v464_v14 = vadd.f32 %v616_v22, %v238_v12  ;;  %v466_v15 = vadd.f32 %v618_v23, %v311_v13  ;;  %v240_v16 = vpop.f32.mrb[14].mxu0  ;;  %v313_v17 = vpop.f32.mrb[14].mxu1 }
  0xf8   :  { %495 = vst [vmem:[%s751_s3 + $0xc0] sm:$0xff] %v463_v10  ;;  %497 = vst [vmem:[%s751_s3 + $0xd0] sm:$0xff] %v465_v11  ;;  %v467_v18 = vadd.f32 %v612_v20, %v240_v16  ;;  %v469_v19 = vadd.f32 %v614_v21, %v313_v17  ;;  %v242_v24 = vpop.f32.mrb[15].mxu0  ;;  %v315_v25 = vpop.f32.mrb[15].mxu1 }
  0xf9   :  { %496 = vst [vmem:[%s751_s3 + $0xc8] sm:$0xff] %v464_v14  ;;  %498 = vst [vmem:[%s751_s3 + $0xd8] sm:$0xff] %v466_v15  ;;  %v468_v26 = vadd.f32 %v616_v22, %v242_v24  ;;  %v470_v27 = vadd.f32 %v618_v23, %v315_v25 }
  0xfa   :  { %499 = vst [vmem:[%s751_s3 + $0xe0] sm:$0xff] %v467_v18  ;;  %501 = vst [vmem:[%s751_s3 + $0xf0] sm:$0xff] %v469_v19 }
  0xfb   :  { %500 = vst [vmem:[%s751_s3 + $0xe8] sm:$0xff] %v468_v26  ;;  %502 = vst [vmem:[%s751_s3 + $0xf8] sm:$0xff] %v470_v27 }

// kernel: image_captioning_forward.48
= control target key start
LH: loop header
LB: loop body
LE: loop exit
PB: predicated region body
PF: predicated region fallthrough
CT: control target
= control target key end

     0   :  { %s660_s9 = smov 0   ;;  %s782_s0 = inlined_call_operand.vmem [shape: f32[8,8,512], index: 0, kind: input, shape index: {}]   ;;  %s783_s1 = inlined_call_operand.vmem [shape: bf16[128,512], index: 1, kind: input, shape index: {}]   ;;  %s784_s2 = inlined_call_operand.vmem [shape: f32[8,8,128], index: 2, kind: output, shape index: {}]  }
   0x1 LB: > { %s514_s10 = sadd.s32 4294967295, %s641_s9   ;;  %p518_p0 = scmp.ge.s32.totalorder %s641_s9, 1  ;;  %s641_s9 = sphi %s660_s9, %s12_s9  }
   0x2   : > { %p112_p1 = scmp.lt.s32.totalorder %s641_s9, 9 }
   0x4   : > { %p113_p2 = pnand %p518_p0, %p112_p1 }
   0x5   : > { %p133_p3 = scmp.lt.s32.totalorder (!%p113_p2), %s514_s10, 7  ;;  %p522_p4 = scmp.ne.s32.totalorder (!%p113_p2), %s514_s10, 0 }
   0x6   : > { %116 = sbr.rel (%p113_p2) target bundleno = 314 (0x13a), region = 28 }
   0xd   : > { %s134_s11 = scalar_select %p133_p3, %s514_s10, 7 }
   0xe   : > { %146 = sbr.rel (%p522_p4) target bundleno = 21 (0x15), region = 32  ;;  %v643_v0 = vmov (!%p522_p4), 0.0  }
   0xf   : > { %s560_s12 = sshll.u32 %s134_s11, 5  ;;  %s521_s13 = sshll.u32 %s134_s11, 3  ;;  %147 = vst [vmem:[#allocation2] sm:$0xff] (!%p522_p4), %v643_v0  ;;  %148 = vst [vmem:[#allocation3] sm:$0xff] (!%p522_p4), %v643_v0 }
  0x10   : > { %s671_s16 = scalar_lea.vmem %s782_s0, %s560_s12  ;;  %s676_s19 = scalar_lea.vmem %s784_s2, %s521_s13 }
  0x15 PF: > { %v571_v1 = vld [vmem:[%s783_s1 + $0x4] ss:$16 sps:$4 sm:$0xff]   ;;  %v573_v2 = vld [vmem:[%s783_s1] ss:$16 sps:$4 sm:$0xff]   ;;  %v644_v3 = vmov 0   ;;  %v150_v37 = vld [vmem:[%s671_s16 + $0x8] sm:$0xff] }
  0x16   : > { %379 = vmatprep.mubr.bf16.mxu0 %v644_v3  ;;  %420 = vmatprep.mubr.bf16.mxu1 %v644_v3  ;;  %v574_v4 = vld [vmem:[%s783_s1 + $0x24] ss:$16 sps:$4 sm:$0xff]   ;;  %v576_v5 = vld [vmem:[%s783_s1 + $0x20] ss:$16 sps:$4 sm:$0xff]   ;;  %v582_v7 = vld [vmem:[%s783_s1 + $0xc] ss:$16 sps:$4 sm:$0xff]  }
  0x17   : > { %347 = vmatprep.subr.bf16.mxu0 %v571_v1  ;;  %v577_v6 = vld [vmem:[%s783_s1 + $0x44] ss:$16 sps:$4 sm:$0xff]   ;;  %v585_v8 = vld [vmem:[%s783_s1 + $0x8] ss:$16 sps:$4 sm:$0xff]   ;;  %v579_v9 = vld [vmem:[%s783_s1 + $0x40] ss:$16 sps:$4 sm:$0xff]   ;;  %388 = vmatprep.subr.bf16.mxu1 %v582_v7 }
  0x18   : > { %348 = vmatpush1.bf16.msra.mxu0 %v573_v2  ;;  %v580_v10 = vld [vmem:[%s783_s1 + $0x64] ss:$16 sps:$4 sm:$0xff]   ;;  %389 = vmatpush1.bf16.msra.mxu1 %v585_v8  ;;  %v588_v11 = vld [vmem:[%s783_s1 + $0x2c] ss:$16 sps:$4 sm:$0xff]   ;;  %v591_v12 = vld [vmem:[%s783_s1 + $0x28] ss:$16 sps:$4 sm:$0xff]  }
  0x19   : > { %349 = vmatprep.subr.bf16.mxu0 %v574_v4  ;;  %390 = vmatprep.subr.bf16.mxu1 %v588_v11  ;;  %v584_v13 = vld [vmem:[%s783_s1 + $0x60] ss:$16 sps:$4 sm:$0xff]   ;;  %v586_v14 = vld [vmem:[%s783_s1 + $0x84] ss:$16 sps:$4 sm:$0xff]   ;;  %v594_v15 = vld [vmem:[%s783_s1 + $0x4c] ss:$16 sps:$4 sm:$0xff]  }
  0x1a   : > { %v597_v16 = vld [vmem:[%s783_s1 + $0x48] ss:$16 sps:$4 sm:$0xff]   ;;  %v600_v17 = vld [vmem:[%s783_s1 + $0x6c] ss:$16 sps:$4 sm:$0xff]   ;;  %v590_v18 = vld [vmem:[%s783_s1 + $0x80] ss:$16 sps:$4 sm:$0xff]  }
  0x1b   : > { %v592_v19 = vld [vmem:[%s783_s1 + $0xa4] ss:$16 sps:$4 sm:$0xff]   ;;  %v603_v20 = vld [vmem:[%s783_s1 + $0x68] ss:$16 sps:$4 sm:$0xff]   ;;  %v606_v21 = vld [vmem:[%s783_s1 + $0x8c] ss:$16 sps:$4 sm:$0xff]  }
  0x1c   : > { %350 = vmatpush1.bf16.msra.mxu0 %v576_v5  ;;  %391 = vmatpush1.bf16.msra.mxu1 %v591_v12  ;;  %v596_v22 = vld [vmem:[%s783_s1 + $0xa0] ss:$16 sps:$4 sm:$0xff]   ;;  %v598_v23 = vld [vmem:[%s783_s1 + $0xc4] ss:$16 sps:$4 sm:$0xff]   ;;  %v609_v24 = vld [vmem:[%s783_s1 + $0x88] ss:$16 sps:$4 sm:$0xff]  }
  0x1d   : > { %351 = vmatprep.subr.bf16.mxu0 %v577_v6  ;;  %392 = vmatprep.subr.bf16.mxu1 %v594_v15  ;;  %v610_v25 = vld [vmem:[%s783_s1 + $0xac] ss:$16 sps:$4 sm:$0xff]   ;;  %v602_v26 = vld [vmem:[%s783_s1 + $0xc0] ss:$16 sps:$4 sm:$0xff]   ;;  %v604_v27 = vld [vmem:[%s783_s1 + $0xe4] ss:$16 sps:$4 sm:$0xff]  }
  0x1e   : > { %v612_v28 = vld [vmem:[%s783_s1 + $0xa8] ss:$16 sps:$4 sm:$0xff]   ;;  %v613_v29 = vld [vmem:[%s783_s1 + $0xcc] ss:$16 sps:$4 sm:$0xff]   ;;  %v608_v30 = vld [vmem:[%s783_s1 + $0xe0] ss:$16 sps:$4 sm:$0xff]  }
  0x1f   : > { %v153_v31 = vld [vmem:[#allocation2] sm:$0xff]  ;;  %v615_v32 = vld [vmem:[%s783_s1 + $0xc8] ss:$16 sps:$4 sm:$0xff]   ;;  %v616_v33 = vld [vmem:[%s783_s1 + $0xec] ss:$16 sps:$4 sm:$0xff]  }
  0x20   : > { %352 = vmatpush1.bf16.msra.mxu0 %v579_v9  ;;  %393 = vmatpush1.bf16.msra.mxu1 %v597_v16  ;;  %v154_v34 = vpack.c.bf16 %v153_v31, %v153_v31  ;;  %v618_v35 = vld [vmem:[%s783_s1 + $0xe8] ss:$16 sps:$4 sm:$0xff]   ;;  %v149_v36 = vld [vmem:[%s671_s16] sm:$0xff]  ;;  %v151_v52 = vld [vmem:[%s671_s16 + $0x10] sm:$0xff] }
  0x21   : > { %353 = vmatprep.subr.bf16.mxu0 %v580_v10  ;;  %394 = vmatprep.subr.bf16.mxu1 %v600_v17  ;;  %v152_v46 = vld [vmem:[%s671_s16 + $0x18] sm:$0xff]  ;;  %v452_v61 = vld [vmem:[#allocation3] sm:$0xff] }
  0x24   : > { %354 = vmatpush1.bf16.msra.mxu0 %v584_v13  ;;  %395 = vmatpush1.bf16.msra.mxu1 %v603_v20 }
  0x25   : > { %355 = vmatprep.subr.bf16.mxu0 %v586_v14  ;;  %396 = vmatprep.subr.bf16.mxu1 %v606_v21 }
  0x28   : > { %356 = vmatpush1.bf16.msra.mxu0 %v590_v18  ;;  %397 = vmatpush1.bf16.msra.mxu1 %v609_v24 }
  0x29   : > { %357 = vmatprep.subr.bf16.mxu0 %v592_v19  ;;  %398 = vmatprep.subr.bf16.mxu1 %v610_v25 }
  0x2c   : > { %358 = vmatpush1.bf16.msra.mxu0 %v596_v22  ;;  %399 = vmatpush1.bf16.msra.mxu1 %v612_v28 }
  0x2d   : > { %359 = vmatprep.subr.bf16.mxu0 %v598_v23  ;;  %400 = vmatprep.subr.bf16.mxu1 %v613_v29 }
  0x30   : > { %360 = vmatpush1.bf16.msra.mxu0 %v602_v26  ;;  %401 = vmatpush1.bf16.msra.mxu1 %v615_v32 }
  0x31   : > { %361 = vmatprep.subr.bf16.mxu0 %v604_v27  ;;  %402 = vmatprep.subr.bf16.mxu1 %v616_v33 }
  0x34   : > { %362 = vmatpush1.bf16.msra.mxu0 %v608_v30  ;;  %403 = vmatpush1.bf16.msra.mxu1 %v618_v35 }
  0x37   : > { %380 = vmatmul.mubr.bf16.vlgmr.msra.gmra.mrb[0].mxu0 %v154_v34  ;;  %421 = vmatmul.mubr.bf16.vlgmr.msra.gmra.mrb[0].mxu1 %v154_v34 }
 0x10a   : > { %v381_v38 = vpop.f32.mrb[0].mxu0  ;;  %v422_v47 = vpop.f32.mrb[0].mxu1 }
 0x10b   : > { %v429_v39 = vadd.f32 %v381_v38, %v149_v36  ;;  %v383_v40 = vpop.f32.mrb[1].mxu0  ;;  %v424_v48 = vpop.f32.mrb[1].mxu1  ;;  %v431_v54 = vadd.f32 %v422_v47, %v151_v52 }
 0x10c   : > { %v430_v41 = vadd.f32 %v383_v40, %v150_v37  ;;  %v385_v42 = vpop.f32.mrb[2].mxu0  ;;  %v432_v49 = vadd.f32 %v424_v48, %v152_v46  ;;  %v426_v50 = vpop.f32.mrb[2].mxu1 }
 0x10d   : > { %v555_v43 = vmul.f32 -1.442695, %v429_v39  ;;  %v386_v44 = vpop.f32.mrb[3].mxu0  ;;  %v427_v51 = vpop.f32.mrb[3].mxu1 }
 0x10e   : > { %v556_v45 = vmul.f32 -1.442695, %v430_v41  ;;  %v557_v53 = vmul.f32 -1.442695, %v432_v49 }
 0x10f   : > { %619 = vpow2.f32 %v555_v43 }
 0x110   : > { %621 = vpow2.f32 %v556_v45 }
 0x111   : > { %623 = vpow2.f32 %v557_v53 }
 0x112   : > { %625 = vtanh.f32 %v431_v54 }
 0x119   : > { %v620_v55 = vpop.eup %619 }
 0x11a   : > { %v622_v56 = vpop.eup %621  ;;  %v436_v57 = vadd.f32 1.0, %v620_v55 }
 0x11b   : > { %v442_v58 = vadd.f32 1.0, %v622_v56  ;;  %v624_v59 = vpop.eup %623 }
 0x11c   : > { %627 = vrcp.f32 %v436_v57  ;;  %v626_v60 = vpop.eup %625  ;;  %v449_v63 = vadd.f32 1.0, %v624_v59 }
 0x11d   : > { %629 = vrcp.f32 %v442_v58 }
 0x11e   : > { %631 = vrcp.f32 %v449_v63 }
 0x126   : > { %v628_v62 = vpop.eup %627 }
 0x127   : > { %v630_v0 = vpop.eup %629  ;;  %v454_v1 = vmul.f32 %v628_v62, %v626_v60 }
 0x128   : > { %v453_v2 = vmul.f32 %v630_v0, %v452_v61  ;;  %v632_v4 = vpop.eup %631 }
 0x12a   : > { %v455_v3 = vadd.f32 %v454_v1, %v453_v2 }
 0x12c   : > { %633 = vtanh.f32 %v455_v3  ;;  %458 = vst [vmem:[#allocation3] sm:$0xff] %v455_v3 }
 0x136   : > { %v634_v5 = vpop.eup %633 }
 0x137   : > { %v457_v6 = vmul.f32 %v634_v5, %v632_v4 }
 0x139   : > { %459 = vst [vmem:[#allocation2] sm:$0xff] %v457_v6  ;;  %460 = vst [vmem:[%s676_s19] sm:$0xff] %v457_v6 }
 0x13a PF: > { %s12_s9 = sadd.s32 1, %s641_s9  }
 0x13b   : > { %p9_p5 = scmp.ge.s32.totalorder %s12_s9, 10  }
 0x13d   :  { %11 = sbr.rel (!%p9_p5) target bundleno = 1 (0x1), region = 62 }

// kernel: image_captioning_forward.49
= control target key start
LH: loop header
LB: loop body
LE: loop exit
PB: predicated region body
PF: predicated region fallthrough
CT: control target
= control target key end

     0   :  { %vm19_vm0 = vcmask 408576   ;;  %v330_v1 = vmov 0.0   ;;  %s438_s1 = inlined_call_operand.vmem [shape: bf16[128,50], index: 1, kind: input, shape index: {}]   ;;  %s439_s0 = inlined_call_operand.vmem [shape: bf16[64,128], index: 0, kind: input, shape index: {}]   ;;  %s440_s2 = inlined_call_operand.vmem [shape: f32[1,50], index: 2, kind: input, shape index: {}]   ;;  %s441_s3 = inlined_call_operand.vmem [shape: f32[64,50], index: 3, kind: output, shape index: {}]  }
   0x1   :  { %v318_v0 = vld [vmem:[%s438_s1] sm:$0xff]   ;;  %22 = vst.msk [vmem:[#allocation2 + $0x10] sm:$0xff] %vm19_vm0, %v330_v1  ;;  %20 = vst.msk [vmem:[#allocation2] sm:$0xff] %vm19_vm0, %v330_v1  ;;  %v319_v2 = vld [vmem:[%s438_s1 + $0x8] sm:$0xff]  }
   0x2   :  { %21 = vst.msk [vmem:[#allocation2 + $0x8] sm:$0xff] %vm19_vm0, %v330_v1  ;;  %23 = vst.msk [vmem:[#allocation2 + $0x18] sm:$0xff] %vm19_vm0, %v330_v1  ;;  %277 = vmatprep.subr.bf16.mxu0 %v318_v0  ;;  %301 = vmatprep.subr.bf16.mxu1 %v318_v0  ;;  %v320_v3 = vld [vmem:[%s438_s1 + $0x10] sm:$0xff]   ;;  %v321_v4 = vld [vmem:[%s438_s1 + $0x18] sm:$0xff]  }
   0x3   :  { %24 = vst.msk [vmem:[#allocation2 + $0x20] sm:$0xff] %vm19_vm0, %v330_v1  ;;  %25 = vst.msk [vmem:[#allocation2 + $0x28] sm:$0xff] %vm19_vm0, %v330_v1  ;;  %278 = vmatpush3.bf16.msra.mxu0 %v318_v0  ;;  %309 = vmatpush3.bf16.msra.mxu1 %v318_v0  ;;  %v326_v5 = vld [vmem:[%s439_s0] sm:$0xff]   ;;  %v327_v6 = vld [vmem:[%s439_s0 + $0x10] sm:$0xff]  }
   0x4   :  { %26 = vst.msk [vmem:[#allocation2 + $0x30] sm:$0xff] %vm19_vm0, %v330_v1  ;;  %27 = vst.msk [vmem:[#allocation2 + $0x38] sm:$0xff] %vm19_vm0, %v330_v1  ;;  %279 = vmatprep.subr.bf16.mxu0 %v319_v2  ;;  %302 = vmatprep.subr.bf16.mxu1 %v319_v2  ;;  %v322_v7 = vld [vmem:[%s438_s1 + $0x20] sm:$0xff]   ;;  %v323_v8 = vld [vmem:[%s438_s1 + $0x28] sm:$0xff]  }
   0x5   :  { %293 = vmatprep.mubr.bf16.mxu0 %v326_v5  ;;  %297 = vmatprep.mubr.bf16.mxu1 %v327_v6  ;;  %v324_v9 = vld [vmem:[%s438_s1 + $0x30] sm:$0xff]   ;;  %v325_v10 = vld [vmem:[%s438_s1 + $0x38] sm:$0xff]   ;;  %v328_v11 = vld [vmem:[%s439_s0 + $0x8] sm:$0xff]  }
   0x6   :  { %v329_v12 = vld [vmem:[%s439_s0 + $0x18] sm:$0xff]   ;;  %v264_v37 = vld [vmem:[%s440_s2] ss:$0 sm:$0xff] }
   0x7   :  { %280 = vmatpush3.bf16.msra.mxu0 %v319_v2  ;;  %310 = vmatpush3.bf16.msra.mxu1 %v319_v2 }
   0x8   :  { %281 = vmatprep.subr.bf16.mxu0 %v320_v3  ;;  %303 = vmatprep.subr.bf16.mxu1 %v320_v3  ;;  %v30_v13 = vld [vmem:[#allocation2 + $0x10] sm:$0xff]  ;;  %v28_v15 = vld [vmem:[#allocation2] sm:$0xff] }
   0x9   :  { %v31_v19 = vld [vmem:[#allocation2 + $0x18] sm:$0xff]  ;;  %v29_v25 = vld [vmem:[#allocation2 + $0x8] sm:$0xff] }
   0xa   :  { %v32_v16 = vld [vmem:[#allocation2 + $0x20] sm:$0xff]  ;;  %v33_v26 = vld [vmem:[#allocation2 + $0x28] sm:$0xff] }
   0xb   :  { %282 = vmatpush3.bf16.msra.mxu0 %v320_v3  ;;  %311 = vmatpush3.bf16.msra.mxu1 %v320_v3  ;;  %v34_v14 = vld [vmem:[#allocation2 + $0x30] sm:$0xff]  ;;  %v35_v20 = vld [vmem:[#allocation2 + $0x38] sm:$0xff] }
   0xc   :  { %283 = vmatprep.subr.bf16.mxu0 %v321_v4  ;;  %304 = vmatprep.subr.bf16.mxu1 %v321_v4 }
   0xf   :  { %284 = vmatpush3.bf16.msra.mxu0 %v321_v4  ;;  %312 = vmatpush3.bf16.msra.mxu1 %v321_v4 }
  0x10   :  { %285 = vmatprep.subr.bf16.mxu0 %v322_v7  ;;  %305 = vmatprep.subr.bf16.mxu1 %v322_v7 }
  0x13   :  { %286 = vmatpush3.bf16.msra.mxu0 %v322_v7  ;;  %313 = vmatpush3.bf16.msra.mxu1 %v322_v7 }
  0x14   :  { %287 = vmatprep.subr.bf16.mxu0 %v323_v8  ;;  %306 = vmatprep.subr.bf16.mxu1 %v323_v8 }
  0x17   :  { %288 = vmatpush3.bf16.msra.mxu0 %v323_v8  ;;  %314 = vmatpush3.bf16.msra.mxu1 %v323_v8 }
  0x18   :  { %289 = vmatprep.subr.bf16.mxu0 %v324_v9  ;;  %307 = vmatprep.subr.bf16.mxu1 %v324_v9 }
  0x1b   :  { %290 = vmatpush3.bf16.msra.mxu0 %v324_v9  ;;  %315 = vmatpush3.bf16.msra.mxu1 %v324_v9 }
  0x1c   :  { %291 = vmatprep.subr.bf16.mxu0 %v325_v10  ;;  %308 = vmatprep.subr.bf16.mxu1 %v325_v10 }
  0x1f   :  { %292 = vmatpush3.bf16.msra.mxu0 %v325_v10  ;;  %316 = vmatpush3.bf16.msra.mxu1 %v325_v10 }
  0x22   :  { %294 = vmatmul.mubr.bf16.vlgmr.msra.gmra.mrb[0].mxu0 %v328_v11  ;;  %298 = vmatmul.mubr.bf16.vlgmr.msra.gmra.mrb[0].mxu1 %v329_v12 }
  0xf5   :  { %v295_v17 = vpop.f32.mrb[0].mxu0  ;;  %v299_v18 = vpop.f32.mrb[0].mxu1 }
  0xf6   :  { %v199_v21 = vadd.f32 %v295_v17, %v30_v13  ;;  %v203_v22 = vadd.f32 %v299_v18, %v34_v14  ;;  %v166_v23 = vpop.f32.mrb[1].mxu0  ;;  %v182_v24 = vpop.f32.mrb[1].mxu1 }
  0xf7   :  { %v197_v27 = vadd.f32 %v166_v23, %v28_v15  ;;  %v201_v28 = vadd.f32 %v182_v24, %v32_v16  ;;  %v296_v29 = vpop.f32.mrb[2].mxu0  ;;  %v300_v30 = vpop.f32.mrb[2].mxu1 }
  0xf8   :  { %208 = vst.msk [vmem:[#allocation2 + $0x10] sm:$0xff] %vm19_vm0, %v199_v21  ;;  %212 = vst.msk [vmem:[#allocation2 + $0x30] sm:$0xff] %vm19_vm0, %v203_v22  ;;  %v200_v31 = vadd.f32 %v296_v29, %v31_v19  ;;  %v204_v32 = vadd.f32 %v300_v30, %v35_v20  ;;  %v169_v33 = vpop.f32.mrb[3].mxu0  ;;  %v185_v34 = vpop.f32.mrb[3].mxu1 }
  0xf9   :  { %206 = vst.msk [vmem:[#allocation2] sm:$0xff] %vm19_vm0, %v197_v27  ;;  %210 = vst.msk [vmem:[#allocation2 + $0x20] sm:$0xff] %vm19_vm0, %v201_v28  ;;  %v198_v35 = vadd.f32 %v169_v33, %v29_v25  ;;  %v202_v36 = vadd.f32 %v185_v34, %v33_v26 }
  0xfa   :  { %209 = vst.msk [vmem:[#allocation2 + $0x18] sm:$0xff] %vm19_vm0, %v200_v31  ;;  %213 = vst.msk [vmem:[#allocation2 + $0x38] sm:$0xff] %vm19_vm0, %v204_v32 }
  0xfb   :  { %207 = vst.msk [vmem:[#allocation2 + $0x8] sm:$0xff] %vm19_vm0, %v198_v35  ;;  %211 = vst.msk [vmem:[#allocation2 + $0x28] sm:$0xff] %vm19_vm0, %v202_v36 }
  0xff   :  { %v219_v38 = vld [vmem:[#allocation2 + $0x10] sm:$0xff] }
 0x100   :  { %v223_v39 = vld [vmem:[#allocation2 + $0x30] sm:$0xff]  ;;  %v234_v40 = vadd.f32 %v264_v37, %v219_v38  ;;  %v217_v42 = vld [vmem:[#allocation2] sm:$0xff] }
 0x101   :  { %v238_v41 = vadd.f32 %v264_v37, %v223_v39  ;;  %v221_v43 = vld [vmem:[#allocation2 + $0x20] sm:$0xff]  ;;  %v232_v44 = vadd.f32 %v264_v37, %v217_v42  ;;  %v220_v46 = vld [vmem:[#allocation2 + $0x18] sm:$0xff] }
 0x102   :  { %v236_v45 = vadd.f32 %v264_v37, %v221_v43  ;;  %v224_v47 = vld [vmem:[#allocation2 + $0x38] sm:$0xff]  ;;  %242 = vst.msk [vmem:[%s441_s3 + $0x10] sm:$0xff] %vm19_vm0, %v234_v40  ;;  %v235_v48 = vadd.f32 %v264_v37, %v220_v46  ;;  %v218_v50 = vld [vmem:[#allocation2 + $0x8] sm:$0xff] }
 0x103   :  { %246 = vst.msk [vmem:[%s441_s3 + $0x30] sm:$0xff] %vm19_vm0, %v238_v41  ;;  %v239_v49 = vadd.f32 %v264_v37, %v224_v47  ;;  %v222_v51 = vld [vmem:[#allocation2 + $0x28] sm:$0xff]  ;;  %240 = vst.msk [vmem:[%s441_s3] sm:$0xff] %vm19_vm0, %v232_v44  ;;  %v233_v52 = vadd.f32 %v264_v37, %v218_v50 }
 0x104   :  { %244 = vst.msk [vmem:[%s441_s3 + $0x20] sm:$0xff] %vm19_vm0, %v236_v45  ;;  %v237_v53 = vadd.f32 %v264_v37, %v222_v51  ;;  %243 = vst.msk [vmem:[%s441_s3 + $0x18] sm:$0xff] %vm19_vm0, %v235_v48 }
 0x105   :  { %247 = vst.msk [vmem:[%s441_s3 + $0x38] sm:$0xff] %vm19_vm0, %v239_v49  ;;  %241 = vst.msk [vmem:[%s441_s3 + $0x8] sm:$0xff] %vm19_vm0, %v233_v52 }
 0x106   :  { %245 = vst.msk [vmem:[%s441_s3 + $0x28] sm:$0xff] %vm19_vm0, %v237_v53 }

</bundles_post_ra>
